<compile_context>
chip_gen: v5e
topology: v5e:2x2
jax: 0.10.0
libtpu: 0.0.40
codegen_flags: <defaults>
</compile_context>

<pallas_src>
import functools

import numpy as np
import jax
import jax.numpy as jnp
from jax import lax
from jax.experimental import pallas as pl
from jax.experimental.pallas import tpu as pltpu


_VMEM_LIMIT_BYTES = 32 * 1024 * 1024   # explicit scoped-VMEM request (review item)
_TILE_BYTES = 2 << 20                  # per activation tile budget used to size tiles


# ----------------------------- helpers -----------------------------

def _const_index(nd, *_):
    return (0,) * nd


def _full_spec(a):
    """BlockSpec covering the whole (small) array; block index is constant."""
    return pl.BlockSpec(a.shape, functools.partial(_const_index, a.ndim))


def _seq_tile(n_seq, seq_len, feat):
    """Largest divisor of n_seq whose [tb, seq_len, feat] f32 tile fits the budget.

    Capped at n_seq // 2 so even the toy shapes get a multi-step grid and the
    tiled two-pass BatchNorm path is exercised.
    """
    cap = max(1, n_seq // 2)
    best = 1
    for d in range(1, cap + 1):
        if n_seq % d == 0 and d * seq_len * feat * 4 <= _TILE_BYTES:
            best = d
    return best


# ----------------------------- Pallas kernels -----------------------------

def _attn_kernel(x_ref, a_ref, b_ref, wqkv_ref, wo_ref, y1_ref, pstats_ref, *,
                 mode, n_head, k_dim, v_dim, prev_rows):
    """[projector | pre-BN] -> per-sequence multi-head attention -> residual.

    Emits the residual stream y1 and this tile's partial BatchNorm statistics
    (sum / sum-of-squares), which the next kernel reduces (two-pass BN).
    """
    tb, S, _ = x_ref.shape
    H = y1_ref.shape[-1]
    rows = tb * S

    if mode == 'project':
        # fused input projector (Linear + bias) on the raw LP features
        x2 = (jnp.dot(x_ref[...].reshape(rows, -1).astype(jnp.bfloat16), a_ref[...],
                      preferred_element_type=jnp.float32) + b_ref[...])
    else:
        # fused "pre-BN": normalize the previous half-layer's residual stream with
        # its full-batch statistics (pass 2 of the tiled two-pass BatchNorm).
        st = jnp.sum(a_ref[...], axis=0)                       # [2, H]
        mean = st[0:1, :] * (1.0 / prev_rows)
        var = st[1:2, :] * (1.0 / prev_rows) - mean * mean
        x2 = ((x_ref[...].reshape(rows, H) - mean) * lax.rsqrt(var + 1e-5)
              * b_ref[0:1, :] + b_ref[1:2, :])

    # --- per-sequence multi-head self-attention (no [M, M] score matrix) ---
    qkv = jnp.dot(x2.astype(jnp.bfloat16), wqkv_ref[...],
                  preferred_element_type=jnp.float32)          # [rows, nh*(2kd+vd)]
    qk_w = n_head * k_dim
    scale = 1.0 / (k_dim ** 0.5)
    parts = []
    # TODO(synk): batch heads through a single head-major dot_general (needs a
    # head-major repack of wqkv / wo) to push MXU utilisation above k_dim/128.
    for h in range(n_head):
        qh = qkv[:, h * k_dim:(h + 1) * k_dim].reshape(tb, S, k_dim).astype(jnp.bfloat16)
        kh = qkv[:, qk_w + h * k_dim:qk_w + (h + 1) * k_dim].reshape(tb, S, k_dim).astype(jnp.bfloat16)
        vh = qkv[:, 2 * qk_w + h * v_dim:2 * qk_w + (h + 1) * v_dim].reshape(tb, S, v_dim)
        u = jnp.einsum('bqd,bkd->bqk', qh, kh,
                       preferred_element_type=jnp.float32) * scale     # [tb, S, S]
        u = u - jnp.max(u, axis=-1, keepdims=True)
        e = jnp.exp(u)
        att = e * pl.reciprocal(jnp.sum(e, axis=-1, keepdims=True), approx=True)
        parts.append(jnp.einsum('bqk,bkd->bqd', att.astype(jnp.bfloat16),
                                vh.astype(jnp.bfloat16),
                                preferred_element_type=jnp.float32))    # [tb, S, vd]
    ctx = jnp.concatenate(parts, axis=-1).reshape(rows, n_head * v_dim)
    att_out = jnp.dot(ctx.astype(jnp.bfloat16), wo_ref[...],
                      preferred_element_type=jnp.float32)               # [rows, H]

    y1 = x2 + att_out
    y1_ref[...] = y1.reshape(tb, S, H)
    # per-tile partial BatchNorm statistics (pass 1 of two-pass BN)
    s = jnp.sum(y1, axis=0, keepdims=True)
    sq = jnp.sum(y1 * y1, axis=0, keepdims=True)
    pstats_ref[...] = jnp.concatenate([s, sq], axis=0).reshape(1, 2, H)


def _bn_ff_kernel(y1_ref, pstats1_ref, bn1_ref, w1_ref, b1_ref, w2_ref, b2_ref,
                  y2_ref, pstats2_ref, *, n_rows):
    """BN1 normalize -> feed-forward -> residual; emits y2 + partial BN2 stats."""
    tb, S, H = y1_ref.shape
    rows = tb * S
    y1 = y1_ref[...].reshape(rows, H)
    st = jnp.sum(pstats1_ref[...], axis=0)                     # [2, H]
    mean = st[0:1, :] * (1.0 / n_rows)
    var = st[1:2, :] * (1.0 / n_rows) - mean * mean
    h1 = (y1 - mean) * lax.rsqrt(var + 1e-5) * bn1_ref[0:1, :] + bn1_ref[1:2, :]
    f = jnp.dot(h1.astype(jnp.bfloat16), w1_ref[...],
                preferred_element_type=jnp.float32) + b1_ref[...]
    f = jnp.maximum(f, 0.0)
    f = jnp.dot(f.astype(jnp.bfloat16), w2_ref[...],
                preferred_element_type=jnp.float32) + b2_ref[...]
    y2 = h1 + f
    y2_ref[...] = y2.reshape(tb, S, H)
    s = jnp.sum(y2, axis=0, keepdims=True)
    sq = jnp.sum(y2 * y2, axis=0, keepdims=True)
    pstats2_ref[...] = jnp.concatenate([s, sq], axis=0).reshape(1, 2, H)


def _pool_head_kernel(x_ref, pstats_ref, bn_ref, w_ref, b_ref, mask_ref, o_ref, *,
                      n_rows):
    """Final BN2 + mean-pool over variables + policy head + mask, fused."""
    B, K, N, H = x_ref.shape
    st = jnp.sum(pstats_ref[...], axis=0)
    mean = st[0:1, :] * (1.0 / n_rows)
    var = st[1:2, :] * (1.0 / n_rows) - mean * mean
    # The mean over variables commutes with the (per-feature affine) BatchNorm,
    # so pool first and normalize the [B*K, H] constraint embeddings.
    ce = jnp.mean(x_ref[...], axis=2).reshape(B * K, H)
    ce = (ce - mean) * lax.rsqrt(var + 1e-5) * bn_ref[0:1, :] + bn_ref[1:2, :]
    logits = jnp.dot(w_ref[...], ce.T, preferred_element_type=jnp.float32) + b_ref[...]
    o_ref[...] = jnp.where(mask_ref[...] > 0.5, -jnp.inf, logits)       # [1, B*K]


# ----------------------------- pallas_call wrappers -----------------------------

def _attn_call(x3, a, b, wqkv, wo, *, hidden_dim, mode, n_head, k_dim, v_dim,
               prev_rows):
    BB, S, Fin = x3.shape
    tb = _seq_tile(BB, S, max(Fin, hidden_dim))
    nt = BB // tb
    kern = functools.partial(_attn_kernel, mode=mode, n_head=n_head, k_dim=k_dim,
                             v_dim=v_dim, prev_rows=prev_rows)
    weight_args = (a, b, wqkv, wo)
    return pl.pallas_call(
        kern,
        out_shape=(jax.ShapeDtypeStruct((BB, S, hidden_dim), jnp.float32),
                   jax.ShapeDtypeStruct((nt, 2, hidden_dim), jnp.float32)),
        grid=(nt,),
        in_specs=[pl.BlockSpec((tb, S, Fin), lambda i: (i, 0, 0))]
                 + [_full_spec(w) for w in weight_args],
        out_specs=(pl.BlockSpec((tb, S, hidden_dim), lambda i: (i, 0, 0)),
                   pl.BlockSpec((1, 2, hidden_dim), lambda i: (i, 0, 0))),
        compiler_params=pltpu.CompilerParams(
            dimension_semantics=("parallel",),   # per-tile stats -> no cross-step carry
            vmem_limit_bytes=_VMEM_LIMIT_BYTES),
    )(x3, *weight_args)


def _bn_ff_call(y1, pstats1, bn1, w1, b1, w2, b2, *, n_rows):
    BB, S, H = y1.shape
    tb = _seq_tile(BB, S, H)
    nt = BB // tb
    kern = functools.partial(_bn_ff_kernel, n_rows=n_rows)
    weight_args = (pstats1, bn1, w1, b1, w2, b2)
    return pl.pallas_call(
        kern,
        out_shape=(jax.ShapeDtypeStruct((BB, S, H), jnp.float32),
                   jax.ShapeDtypeStruct((nt, 2, H), jnp.float32)),
        grid=(nt,),
        in_specs=[pl.BlockSpec((tb, S, H), lambda i: (i, 0, 0))]
                 + [_full_spec(w) for w in weight_args],
        out_specs=(pl.BlockSpec((tb, S, H), lambda i: (i, 0, 0)),
                   pl.BlockSpec((1, 2, H), lambda i: (i, 0, 0))),
        compiler_params=pltpu.CompilerParams(
            dimension_semantics=("parallel",),
            vmem_limit_bytes=_VMEM_LIMIT_BYTES),
    )(y1, *weight_args)


def _pool_head_call(x4, pstats, bn, w, b, mask, *, n_rows):
    B, K, N, H = x4.shape
    BK = B * K
    mask2 = mask.reshape(1, BK).astype(jnp.float32)
    args = (x4, pstats, bn, w, b, mask2)
    kern = functools.partial(_pool_head_kernel, n_rows=n_rows)
    # TODO(synk): at large B this tail kernel should be tiled over the batch axis.
    out = pl.pallas_call(
        kern,
        out_shape=jax.ShapeDtypeStruct((1, BK), jnp.float32),   # lane-dense logits
        grid=(1,),
        in_specs=[_full_spec(a) for a in args],
        out_specs=pl.BlockSpec((1, BK), functools.partial(_const_index, 2)),
        compiler_params=pltpu.CompilerParams(
            dimension_semantics=("arbitrary",),
            vmem_limit_bytes=_VMEM_LIMIT_BYTES),
    )(*args)
    return out.reshape(B, K)


# ----------------------------- model glue -----------------------------

def lp_to_matrix(constraint_features, edge_features, mask):
    # TODO(synk): lp_to_matrix is not defined in the reference source; we assume it
    # concatenates per-edge features with broadcast per-constraint features.
    B, K, Fc = constraint_features.shape
    _, _, N, Fe = edge_features.shape
    cf = jnp.broadcast_to(constraint_features[:, :, None, :], (B, K, N, Fc))
    return jnp.concatenate([edge_features, cf], axis=-1)        # [B, K, N, Fe+Fc]


def dba_agent_forward(params, constraint_features, edge_features, mask, *,
                      n_head, k_dim, v_dim):
    x = lp_to_matrix(constraint_features, edge_features, mask)   # [B, K, N, F]
    B, K, N, F = x.shape
    H = params['proj_w'].shape[1]
    M = float(B * K * N)                                          # BatchNorm batch size

    cur = x.reshape(B * K, N, F)            # var side: (b k) sequences of N variables
    pre_a, pre_b = params['proj_w'], params['proj_b']
    mode = 'project'                        # first attention kernel fuses the projector

    for lp_ in params['layers']:
        for side, s1, s2 in (('var', K, N), ('cons', N, K)):
            wp = lp_[side]
            y1, p1 = _attn_call(cur, pre_a, pre_b, wp['wqkv'], wp['wo'],
                                hidden_dim=H, mode=mode, n_head=n_head,
                                k_dim=k_dim, v_dim=v_dim, prev_rows=M)
            y2, p2 = _bn_ff_call(y1, p1, wp['bn1'], wp['ff_w1'], wp['ff_b1'],
                                 wp['ff_w2'], wp['ff_b2'], n_rows=M)
            # Layout swap for the other bipartite side: (b s1) s2 h -> (b s2) s1 h.
            # Replaces the former O(M^2 H) one-hot permutation matmul with a
            # linear-cost XLA transpose between kernels.
            # TODO(synk): fold into the producer's out_spec index_map (needs
            # sublane-aligned s1 tiles) to also save this HBM pass.
            cur = y2.reshape(B, s1, s2, H).transpose(0, 2, 1, 3).reshape(B * s2, s1, H)
            pre_a, pre_b = p2, wp['bn2']    # its BN2 is fused into the next kernel
            mode = 'prebn'

    # The last half's BN2 is fused into the pooling / policy-head kernel.
    return _pool_head_call(cur.reshape(B, K, N, H), pre_a, pre_b,
                           params['policy_w'], params['policy_b'], mask, n_rows=M)


# ----------------------------- pure-JAX reference -----------------------------

def _ref_bn(x2, gb):
    mean = jnp.mean(x2, axis=0, keepdims=True)
    var = jnp.mean((x2 - mean) ** 2, axis=0, keepdims=True)
    return (x2 - mean) * lax.rsqrt(var + 1e-5) * gb[0:1] + gb[1:2]


def _ref_attention(x3, wqkv, wo, n_head, k_dim, v_dim):
    BB, S, H = x3.shape
    qkv = jnp.dot(x3.reshape(-1, H).astype(jnp.bfloat16), wqkv,
                  preferred_element_type=jnp.float32).reshape(BB, S, -1)
    qk_w = n_head * k_dim
    scale = k_dim ** 0.5
    outs = []
    for h in range(n_head):
        qh = qkv[..., h * k_dim:(h + 1) * k_dim].astype(jnp.bfloat16)
        kh = qkv[..., qk_w + h * k_dim:qk_w + (h + 1) * k_dim].astype(jnp.bfloat16)
        vh = qkv[..., 2 * qk_w + h * v_dim:2 * qk_w + (h + 1) * v_dim].astype(jnp.bfloat16)
        u = jnp.einsum('bqd,bkd->bqk', qh, kh, preferred_element_type=jnp.float32) / scale
        att = jax.nn.softmax(u, axis=-1)
        outs.append(jnp.einsum('bqk,bkd->bqd', att.astype(jnp.bfloat16), vh,
                               preferred_element_type=jnp.float32))
    ctx = jnp.concatenate(outs, axis=-1).reshape(-1, n_head * v_dim)
    return jnp.dot(ctx.astype(jnp.bfloat16), wo,
                   preferred_element_type=jnp.float32).reshape(BB, S, H)


def _ref_half(x3, wp, n_head, k_dim, v_dim):
    BB, S, H = x3.shape
    a = _ref_attention(x3, wp['wqkv'], wp['wo'], n_head, k_dim, v_dim)
    h1 = _ref_bn((x3 + a).reshape(-1, H), wp['bn1'])
    f = jnp.maximum(jnp.dot(h1.astype(jnp.bfloat16), wp['ff_w1'],
                            preferred_element_type=jnp.float32) + wp['ff_b1'], 0.0)
    f = jnp.dot(f.astype(jnp.bfloat16), wp['ff_w2'],
                preferred_element_type=jnp.float32) + wp['ff_b2']
    return _ref_bn(h1 + f, wp['bn2']).reshape(BB, S, H)


def ref_forward(params, constraint_features, edge_features, mask, *,
                n_head, k_dim, v_dim):
    x = lp_to_matrix(constraint_features, edge_features, mask)
    B, K, N, F = x.shape
    H = params['proj_w'].shape[1]
    x = (jnp.dot(x.reshape(-1, F).astype(jnp.bfloat16), params['proj_w'],
                 preferred_element_type=jnp.float32)
         + params['proj_b']).reshape(B, K, N, H)
    for lp_ in params['layers']:
        xv = _ref_half(x.reshape(B * K, N, H), lp_['var'],
                       n_head, k_dim, v_dim).reshape(B, K, N, H)
        xc = _ref_half(xv.transpose(0, 2, 1, 3).reshape(B * N, K, H), lp_['cons'],
                       n_head, k_dim, v_dim)
        x = xc.reshape(B, N, K, H).transpose(0, 2, 1, 3)
    ce = jnp.mean(x, axis=2)                                      # [B, K, H]
    logits = jnp.einsum('bkh,h->bk', ce, params['policy_w'][0]) + params['policy_b'][0, 0]
    return jnp.where(mask > 0.5, -jnp.inf, logits)


# ----------------------------- parameter init -----------------------------

def init_params(key, *, input_dim, hidden_dim, ff_dim, k_dim, v_dim, n_head, n_layers):
    keys = iter(jax.random.split(key, 8 + n_layers * 24))

    def w(shape, scale=0.05, dtype=jnp.float32):
        return (jax.random.normal(next(keys), shape, jnp.float32) * scale).astype(dtype)

    def bn(h):
        g = 1.0 + 0.1 * jax.random.normal(next(keys), (1, h), jnp.float32)
        b = 0.1 * jax.random.normal(next(keys), (1, h), jnp.float32)
        return jnp.concatenate([g, b], axis=0)                    # [2, H] = [gamma; beta]

    params = {
        'proj_w': w((input_dim, hidden_dim), dtype=jnp.bfloat16),
        'proj_b': w((1, hidden_dim)),
        'policy_w': w((1, hidden_dim)),
        'policy_b': w((1, 1)),
        'layers': [],
    }
    for _ in range(n_layers):
        layer = {}
        for side in ('var', 'cons'):
            wq = w((hidden_dim, n_head * k_dim))
            wk = w((hidden_dim, n_head * k_dim))
            wv = w((hidden_dim, n_head * v_dim))
            layer[side] = {
                'wqkv': jnp.concatenate([wq, wk, wv], axis=1).astype(jnp.bfloat16),
                'wo': w((n_head * v_dim, hidden_dim), dtype=jnp.bfloat16),
                'ff_w1': w((hidden_dim, ff_dim), dtype=jnp.bfloat16),
                'ff_b1': w((1, ff_dim)),
                'ff_w2': w((ff_dim, hidden_dim), dtype=jnp.bfloat16),
                'ff_b2': w((1, hidden_dim)),
                'bn1': bn(hidden_dim),
                'bn2': bn(hidden_dim),
            }
        params['layers'].append(layer)
    return params


# ----------------------------- main -----------------------------

if __name__ == "__main__":
    # Small shapes consistent with the module's forward:
    B, K, N = 2, 6, 8          # batch, n_cons, n_var
    Fc, Fe = 3, 5              # constraint / edge feature dims -> input_dim = 8
    H, FF = 32, 64             # hidden, feed-forward (pad to x128 at real scale)
    KD, VD, NH, NL = 8, 8, 4, 2

    key = jax.random.PRNGKey(0)
    kp, kc, ke = jax.random.split(key, 3)
    params = init_params(kp, input_dim=Fc + Fe, hidden_dim=H, ff_dim=FF,
                         k_dim=KD, v_dim=VD, n_head=NH, n_layers=NL)

    constraint_features = jax.random.normal(kc, (B, K, Fc), jnp.float32)
    edge_features = jax.random.normal(ke, (B, K, N, Fe), jnp.float32)
    # mask out the last constraint of every instance (masked_fill -> -inf)
    mask = jnp.broadcast_to((jnp.arange(K)[None, :] == K - 1).astype(jnp.float32), (B, K))

    fwd = jax.jit(functools.partial(dba_agent_forward, n_head=NH, k_dim=KD, v_dim=VD))
    logits = fwd(params, constraint_features, edge_features, mask)
    jax.block_until_ready(logits)

    ref = ref_forward(params, constraint_features, edge_features, mask,
                      n_head=NH, k_dim=KD, v_dim=VD)
    np.testing.assert_allclose(np.asarray(logits), np.asarray(ref),
                               rtol=2e-2, atol=2e-2)
    assert logits.shape == (B, K)
    print("KERNEL_OK")
</pallas_src>

<mosaic_0001>
module attributes {stable_mosaic.version = 11 : i64} {
  func.func @_bn_ff_kernel(%arg0: i32, %arg1: memref<6x8x32xf32, #tpu.memory_space<vmem>>, %arg2: memref<2x2x32xf32, #tpu.memory_space<vmem>>, %arg3: memref<2x32xf32, #tpu.memory_space<vmem>>, %arg4: memref<32x64xbf16, #tpu.memory_space<vmem>>, %arg5: memref<1x64xf32, #tpu.memory_space<vmem>>, %arg6: memref<64x32xbf16, #tpu.memory_space<vmem>>, %arg7: memref<1x32xf32, #tpu.memory_space<vmem>>, %arg8: memref<6x8x32xf32, #tpu.memory_space<vmem>>, %arg9: memref<1x2x32xf32, #tpu.memory_space<vmem>>) attributes {dimension_semantics = [#tpu.dimension_semantics<parallel>], iteration_bounds = array<i64: 2>, scalar_prefetch = 0 : i64, scratch_operands = 0 : i64, tpu.core_type = #tpu.core_type<tc>, window_params = [{transform_indices = @transform_0, window_bounds = array<i64: 6, 8, 32>}, {pipeline_mode = #tpu.pipeline_mode<synchronous>, transform_indices = @transform_1, window_bounds = array<i64: 2, 2, 32>}, {pipeline_mode = #tpu.pipeline_mode<synchronous>, transform_indices = @transform_2, window_bounds = array<i64: 2, 32>}, {pipeline_mode = #tpu.pipeline_mode<synchronous>, transform_indices = @transform_3, window_bounds = array<i64: 32, 64>}, {pipeline_mode = #tpu.pipeline_mode<synchronous>, transform_indices = @transform_4, window_bounds = array<i64: 1, 64>}, {pipeline_mode = #tpu.pipeline_mode<synchronous>, transform_indices = @transform_5, window_bounds = array<i64: 64, 32>}, {pipeline_mode = #tpu.pipeline_mode<synchronous>, transform_indices = @transform_6, window_bounds = array<i64: 1, 32>}, {transform_indices = @transform_7, window_bounds = array<i64: 6, 8, 32>}, {transform_indices = @transform_8, window_bounds = array<i64: 1, 2, 32>}]} {
    %c0 = arith.constant 0 : index
    %c0_0 = arith.constant 0 : index
    %c0_1 = arith.constant 0 : index
    %0 = vector.load %arg1[%c0, %c0_0, %c0_1] : memref<6x8x32xf32, #tpu.memory_space<vmem>>, vector<6x8x32xf32>
    %1 = vector.shape_cast %0 : vector<6x8x32xf32> to vector<48x32xf32>
    %c0_2 = arith.constant 0 : index
    %c0_3 = arith.constant 0 : index
    %c0_4 = arith.constant 0 : index
    %2 = vector.load %arg2[%c0_2, %c0_3, %c0_4] : memref<2x2x32xf32, #tpu.memory_space<vmem>>, vector<2x2x32xf32>
    %cst = arith.constant dense<0.000000e+00> : vector<2x32xf32>
    %3 = vector.multi_reduction <add>, %2, %cst [0] : vector<2x2x32xf32> to vector<2x32xf32>
    %4 = vector.extract_strided_slice %3 {offsets = [0, 0], sizes = [1, 32], strides = [1, 1]} : vector<2x32xf32> to vector<1x32xf32>
    %cst_5 = arith.constant 0.010416667 : f32
    %5 = vector.broadcast %cst_5 : f32 to vector<1x32xf32>
    %6 = arith.mulf %4, %5 : vector<1x32xf32>
    %7 = vector.extract_strided_slice %3 {offsets = [1, 0], sizes = [1, 32], strides = [1, 1]} : vector<2x32xf32> to vector<1x32xf32>
    %cst_6 = arith.constant 0.010416667 : f32
    %8 = vector.broadcast %cst_6 : f32 to vector<1x32xf32>
    %9 = arith.mulf %7, %8 : vector<1x32xf32>
    %10 = arith.mulf %6, %6 : vector<1x32xf32>
    %11 = arith.subf %9, %10 : vector<1x32xf32>
    %12 = vector.broadcast %6 : vector<1x32xf32> to vector<48x32xf32>
    %13 = arith.subf %1, %12 : vector<48x32xf32>
    %cst_7 = arith.constant 9.99999974E-6 : f32
    %14 = vector.broadcast %cst_7 : f32 to vector<1x32xf32>
    %15 = arith.addf %11, %14 : vector<1x32xf32>
    %16 = math.rsqrt %15 : vector<1x32xf32>
    %17 = vector.broadcast %16 : vector<1x32xf32> to vector<48x32xf32>
    %18 = arith.mulf %13, %17 : vector<48x32xf32>
    %c0_8 = arith.constant 0 : index
    %c0_9 = arith.constant 0 : index
    %19 = vector.load %arg3[%c0_8, %c0_9] : memref<2x32xf32, #tpu.memory_space<vmem>>, vector<1x32xf32>
    %20 = vector.broadcast %19 : vector<1x32xf32> to vector<48x32xf32>
    %21 = arith.mulf %18, %20 : vector<48x32xf32>
    %c1 = arith.constant 1 : index
    %c0_10 = arith.constant 0 : index
    %22 = vector.load %arg3[%c1, %c0_10] : memref<2x32xf32, #tpu.memory_space<vmem>>, vector<1x32xf32>
    %23 = vector.broadcast %22 : vector<1x32xf32> to vector<48x32xf32>
    %24 = arith.addf %21, %23 : vector<48x32xf32>
    %25 = arith.truncf %24 : vector<48x32xf32> to vector<48x32xbf16>
    %c0_11 = arith.constant 0 : index
    %c0_12 = arith.constant 0 : index
    %26 = vector.load %arg4[%c0_11, %c0_12] : memref<32x64xbf16, #tpu.memory_space<vmem>>, vector<32x64xbf16>
    %cst_13 = arith.constant dense<0.000000e+00> : vector<48x64xf32>
    %27 = tpu.matmul %25, %26, %cst_13 {dimension_numbers = #tpu.dot_dimension_numbers<[1], [0], [0], [1], [0, 0, 1, 1], [], []>} : vector<48x32xbf16>, vector<32x64xbf16>, vector<48x64xf32> -> vector<48x64xf32>
    %c0_14 = arith.constant 0 : index
    %c0_15 = arith.constant 0 : index
    %28 = vector.load %arg5[%c0_14, %c0_15] : memref<1x64xf32, #tpu.memory_space<vmem>>, vector<1x64xf32>
    %29 = vector.broadcast %28 : vector<1x64xf32> to vector<48x64xf32>
    %30 = arith.addf %27, %29 : vector<48x64xf32>
    %cst_16 = arith.constant 0.000000e+00 : f32
    %31 = vector.broadcast %cst_16 : f32 to vector<48x64xf32>
    %32 = arith.maximumf %30, %31 : vector<48x64xf32>
    %33 = arith.truncf %32 : vector<48x64xf32> to vector<48x64xbf16>
    %c0_17 = arith.constant 0 : index
    %c0_18 = arith.constant 0 : index
    %34 = vector.load %arg6[%c0_17, %c0_18] : memref<64x32xbf16, #tpu.memory_space<vmem>>, vector<64x32xbf16>
    %cst_19 = arith.constant dense<0.000000e+00> : vector<48x32xf32>
    %35 = tpu.matmul %33, %34, %cst_19 {dimension_numbers = #tpu.dot_dimension_numbers<[1], [0], [0], [1], [0, 0, 1, 1], [], []>} : vector<48x64xbf16>, vector<64x32xbf16>, vector<48x32xf32> -> vector<48x32xf32>
    %c0_20 = arith.constant 0 : index
    %c0_21 = arith.constant 0 : index
    %36 = vector.load %arg7[%c0_20, %c0_21] : memref<1x32xf32, #tpu.memory_space<vmem>>, vector<1x32xf32>
    %37 = vector.broadcast %36 : vector<1x32xf32> to vector<48x32xf32>
    %38 = arith.addf %35, %37 : vector<48x32xf32>
    %39 = arith.addf %24, %38 : vector<48x32xf32>
    %40 = vector.shape_cast %39 : vector<48x32xf32> to vector<6x8x32xf32>
    %c0_22 = arith.constant 0 : index
    %c0_23 = arith.constant 0 : index
    %c0_24 = arith.constant 0 : index
    %41 = vector.load %arg8[%c0_22, %c0_23, %c0_24] : memref<6x8x32xf32, #tpu.memory_space<vmem>>, vector<6x8x32xf32>
    tpu.vector_store %arg8[%c0_22, %c0_23, %c0_24], %40 {strides = array<i32>} : memref<6x8x32xf32, #tpu.memory_space<vmem>>, vector<6x8x32xf32>,
    %cst_25 = arith.constant dense<0.000000e+00> : vector<32xf32>
    %42 = vector.multi_reduction <add>, %39, %cst_25 [0] : vector<48x32xf32> to vector<32xf32>
    %43 = vector.shape_cast %42 : vector<32xf32> to vector<1x32xf32>
    %44 = arith.mulf %39, %39 : vector<48x32xf32>
    %cst_26 = arith.constant dense<0.000000e+00> : vector<32xf32>
    %45 = vector.multi_reduction <add>, %44, %cst_26 [0] : vector<48x32xf32> to vector<32xf32>
    %46 = vector.shape_cast %45 : vector<32xf32> to vector<1x32xf32>
    %47 = tpu.concatenate %43, %46 in 0 : vector<1x32xf32>, vector<1x32xf32> -> vector<2x32xf32>
    %48 = vector.shape_cast %47 : vector<2x32xf32> to vector<1x2x32xf32>
    %c0_27 = arith.constant 0 : index
    %c0_28 = arith.constant 0 : index
    %c0_29 = arith.constant 0 : index
    %49 = vector.load %arg9[%c0_27, %c0_28, %c0_29] : memref<1x2x32xf32, #tpu.memory_space<vmem>>, vector<1x2x32xf32>
    tpu.vector_store %arg9[%c0_27, %c0_28, %c0_29], %48 {strides = array<i32>} : memref<1x2x32xf32, #tpu.memory_space<vmem>>, vector<1x2x32xf32>,
    return
  }
  func.func @transform_0(%arg0: i32) -> (i32, i32, i32) {
    %c0_i32 = arith.constant 0 : i32
    %c0_i32_0 = arith.constant 0 : i32
    %c0_i32_1 = arith.constant 0 : i32
    return %arg0, %c0_i32, %c0_i32_0 : i32, i32, i32
  }
  func.func @transform_1(%arg0: i32) -> (i32, i32, i32) {
    %c0_i32 = arith.constant 0 : i32
    %c0_i32_0 = arith.constant 0 : i32
    %c0_i32_1 = arith.constant 0 : i32
    %c0_i32_2 = arith.constant 0 : i32
    return %c0_i32, %c0_i32_0, %c0_i32_1 : i32, i32, i32
  }
  func.func @transform_2(%arg0: i32) -> (i32, i32) {
    %c0_i32 = arith.constant 0 : i32
    %c0_i32_0 = arith.constant 0 : i32
    %c0_i32_1 = arith.constant 0 : i32
    return %c0_i32, %c0_i32_0 : i32, i32
  }
  func.func @transform_3(%arg0: i32) -> (i32, i32) {
    %c0_i32 = arith.constant 0 : i32
    %c0_i32_0 = arith.constant 0 : i32
    %c0_i32_1 = arith.constant 0 : i32
    return %c0_i32, %c0_i32_0 : i32, i32
  }
  func.func @transform_4(%arg0: i32) -> (i32, i32) {
    %c0_i32 = arith.constant 0 : i32
    %c0_i32_0 = arith.constant 0 : i32
    %c0_i32_1 = arith.constant 0 : i32
    return %c0_i32, %c0_i32_0 : i32, i32
  }
  func.func @transform_5(%arg0: i32) -> (i32, i32) {
    %c0_i32 = arith.constant 0 : i32
    %c0_i32_0 = arith.constant 0 : i32
    %c0_i32_1 = arith.constant 0 : i32
    return %c0_i32, %c0_i32_0 : i32, i32
  }
  func.func @transform_6(%arg0: i32) -> (i32, i32) {
    %c0_i32 = arith.constant 0 : i32
    %c0_i32_0 = arith.constant 0 : i32
    %c0_i32_1 = arith.constant 0 : i32
    return %c0_i32, %c0_i32_0 : i32, i32
  }
  func.func @transform_7(%arg0: i32) -> (i32, i32, i32) {
    %c0_i32 = arith.constant 0 : i32
    %c0_i32_0 = arith.constant 0 : i32
    %c0_i32_1 = arith.constant 0 : i32
    return %arg0, %c0_i32, %c0_i32_0 : i32, i32, i32
  }
  func.func @transform_8(%arg0: i32) -> (i32, i32, i32) {
    %c0_i32 = arith.constant 0 : i32
    %c0_i32_0 = arith.constant 0 : i32
    %c0_i32_1 = arith.constant 0 : i32
    return %arg0, %c0_i32, %c0_i32_0 : i32, i32, i32
  }
}

module attributes {stable_mosaic.version = 11 : i64} {
  func.func @_attn_kernel(%arg0: i32, %arg1: memref<6x8x8xf32, #tpu.memory_space<vmem>>, %arg2: memref<8x32xbf16, #tpu.memory_space<vmem>>, %arg3: memref<1x32xf32, #tpu.memory_space<vmem>>, %arg4: memref<32x96xbf16, #tpu.memory_space<vmem>>, %arg5: memref<32x32xbf16, #tpu.memory_space<vmem>>, %arg6: memref<6x8x32xf32, #tpu.memory_space<vmem>>, %arg7: memref<1x2x32xf32, #tpu.memory_space<vmem>>) attributes {dimension_semantics = [#tpu.dimension_semantics<parallel>], iteration_bounds = array<i64: 2>, scalar_prefetch = 0 : i64, scratch_operands = 0 : i64, tpu.core_type = #tpu.core_type<tc>, window_params = [{transform_indices = @transform_0, window_bounds = array<i64: 6, 8, 8>}, {pipeline_mode = #tpu.pipeline_mode<synchronous>, transform_indices = @transform_1, window_bounds = array<i64: 8, 32>}, {pipeline_mode = #tpu.pipeline_mode<synchronous>, transform_indices = @transform_2, window_bounds = array<i64: 1, 32>}, {pipeline_mode = #tpu.pipeline_mode<synchronous>, transform_indices = @transform_3, window_bounds = array<i64: 32, 96>}, {pipeline_mode = #tpu.pipeline_mode<synchronous>, transform_indices = @transform_4, window_bounds = array<i64: 32, 32>}, {transform_indices = @transform_5, window_bounds = array<i64: 6, 8, 32>}, {transform_indices = @transform_6, window_bounds = array<i64: 1, 2, 32>}]} {
    %c0 = arith.constant 0 : index
    %c0_0 = arith.constant 0 : index
    %c0_1 = arith.constant 0 : index
    %0 = vector.load %arg1[%c0, %c0_0, %c0_1] : memref<6x8x8xf32, #tpu.memory_space<vmem>>, vector<6x8x8xf32>
    %1 = vector.shape_cast %0 : vector<6x8x8xf32> to vector<48x8xf32>
    %2 = arith.truncf %1 : vector<48x8xf32> to vector<48x8xbf16>
    %c0_2 = arith.constant 0 : index
    %c0_3 = arith.constant 0 : index
    %3 = vector.load %arg2[%c0_2, %c0_3] : memref<8x32xbf16, #tpu.memory_space<vmem>>, vector<8x32xbf16>
    %cst = arith.constant dense<0.000000e+00> : vector<48x32xf32>
    %4 = tpu.matmul %2, %3, %cst {dimension_numbers = #tpu.dot_dimension_numbers<[1], [0], [0], [1], [0, 0, 1, 1], [], []>} : vector<48x8xbf16>, vector<8x32xbf16>, vector<48x32xf32> -> vector<48x32xf32>
    %c0_4 = arith.constant 0 : index
    %c0_5 = arith.constant 0 : index
    %5 = vector.load %arg3[%c0_4, %c0_5] : memref<1x32xf32, #tpu.memory_space<vmem>>, vector<1x32xf32>
    %6 = vector.broadcast %5 : vector<1x32xf32> to vector<48x32xf32>
    %7 = arith.addf %4, %6 : vector<48x32xf32>
    %8 = arith.truncf %7 : vector<48x32xf32> to vector<48x32xbf16>
    %c0_6 = arith.constant 0 : index
    %c0_7 = arith.constant 0 : index
    %9 = vector.load %arg4[%c0_6, %c0_7] : memref<32x96xbf16, #tpu.memory_space<vmem>>, vector<32x96xbf16>
    %cst_8 = arith.constant dense<0.000000e+00> : vector<48x96xf32>
    %10 = tpu.matmul %8, %9, %cst_8 {dimension_numbers = #tpu.dot_dimension_numbers<[1], [0], [0], [1], [0, 0, 1, 1], [], []>} : vector<48x32xbf16>, vector<32x96xbf16>, vector<48x96xf32> -> vector<48x96xf32>
    %11 = vector.extract_strided_slice %10 {offsets = [0, 0], sizes = [48, 8], strides = [1, 1]} : vector<48x96xf32> to vector<48x8xf32>
    %12 = vector.shape_cast %11 : vector<48x8xf32> to vector<6x8x8xf32>
    %13 = arith.truncf %12 : vector<6x8x8xf32> to vector<6x8x8xbf16>
    %14 = vector.extract_strided_slice %10 {offsets = [0, 32], sizes = [48, 8], strides = [1, 1]} : vector<48x96xf32> to vector<48x8xf32>
    %15 = vector.shape_cast %14 : vector<48x8xf32> to vector<6x8x8xf32>
    %16 = arith.truncf %15 : vector<6x8x8xf32> to vector<6x8x8xbf16>
    %17 = vector.extract_strided_slice %10 {offsets = [0, 64], sizes = [48, 8], strides = [1, 1]} : vector<48x96xf32> to vector<48x8xf32>
    %18 = vector.shape_cast %17 : vector<48x8xf32> to vector<6x8x8xf32>
    "tpu.trace_start"() <{level = 10 : i32, message = "bqd,bkd->bqk"}> : () -> ()
    %cst_9 = arith.constant dense<0.000000e+00> : vector<6x8x8xf32>
    %19 = tpu.matmul %13, %16, %cst_9 {dimension_numbers = #tpu.dot_dimension_numbers<[2], [2], [1], [1], [0, 0, 0, 1, 1, 1], [0], [0]>} : vector<6x8x8xbf16>, vector<6x8x8xbf16>, vector<6x8x8xf32> -> vector<6x8x8xf32>
    "tpu.trace_stop"() : () -> ()
    %cst_10 = arith.constant 0.353553385 : f32
    %20 = vector.broadcast %cst_10 : f32 to vector<6x8x8xf32>
    %21 = arith.mulf %19, %20 : vector<6x8x8xf32>
    %cst_11 = arith.constant dense<0xFF800000> : vector<6x8xf32>
    %22 = vector.multi_reduction <maximumf>, %21, %cst_11 [2] : vector<6x8x8xf32> to vector<6x8xf32>
    %23 = vector.shape_cast %22 : vector<6x8xf32> to vector<6x8x1xf32>
    %24 = vector.broadcast %23 : vector<6x8x1xf32> to vector<6x8x8xf32>
    %25 = arith.subf %21, %24 : vector<6x8x8xf32>
    %26 = math.exp %25 : vector<6x8x8xf32>
    %cst_12 = arith.constant dense<0.000000e+00> : vector<6x8xf32>
    %27 = vector.multi_reduction <add>, %26, %cst_12 [2] : vector<6x8x8xf32> to vector<6x8xf32>
    %28 = vector.shape_cast %27 : vector<6x8xf32> to vector<6x8x1xf32>
    %29 = tpu.reciprocal %28 {approx = true} : vector<6x8x1xf32> -> vector<6x8x1xf32>
    %30 = vector.broadcast %29 : vector<6x8x1xf32> to vector<6x8x8xf32>
    %31 = arith.mulf %26, %30 : vector<6x8x8xf32>
    %32 = arith.truncf %31 : vector<6x8x8xf32> to vector<6x8x8xbf16>
    %33 = arith.truncf %18 : vector<6x8x8xf32> to vector<6x8x8xbf16>
    "tpu.trace_start"() <{level = 10 : i32, message = "bqk,bkd->bqd"}> : () -> ()
    %cst_13 = arith.constant dense<0.000000e+00> : vector<6x8x8xf32>
    %34 = tpu.matmul %32, %33, %cst_13 {dimension_numbers = #tpu.dot_dimension_numbers<[2], [1], [1], [2], [0, 0, 0, 1, 1, 2], [0], [0]>} : vector<6x8x8xbf16>, vector<6x8x8xbf16>, vector<6x8x8xf32> -> vector<6x8x8xf32>
    "tpu.trace_stop"() : () -> ()
    %35 = vector.extract_strided_slice %10 {offsets = [0, 8], sizes = [48, 8], strides = [1, 1]} : vector<48x96xf32> to vector<48x8xf32>
    %36 = vector.shape_cast %35 : vector<48x8xf32> to vector<6x8x8xf32>
    %37 = arith.truncf %36 : vector<6x8x8xf32> to vector<6x8x8xbf16>
    %38 = vector.extract_strided_slice %10 {offsets = [0, 40], sizes = [48, 8], strides = [1, 1]} : vector<48x96xf32> to vector<48x8xf32>
    %39 = vector.shape_cast %38 : vector<48x8xf32> to vector<6x8x8xf32>
    %40 = arith.truncf %39 : vector<6x8x8xf32> to vector<6x8x8xbf16>
    %41 = vector.extract_strided_slice %10 {offsets = [0, 72], sizes = [48, 8], strides = [1, 1]} : vector<48x96xf32> to vector<48x8xf32>
    %42 = vector.shape_cast %41 : vector<48x8xf32> to vector<6x8x8xf32>
    "tpu.trace_start"() <{level = 10 : i32, message = "bqd,bkd->bqk"}> : () -> ()
    %cst_14 = arith.constant dense<0.000000e+00> : vector<6x8x8xf32>
    %43 = tpu.matmul %37, %40, %cst_14 {dimension_numbers = #tpu.dot_dimension_numbers<[2], [2], [1], [1], [0, 0, 0, 1, 1, 1], [0], [0]>} : vector<6x8x8xbf16>, vector<6x8x8xbf16>, vector<6x8x8xf32> -> vector<6x8x8xf32>
    "tpu.trace_stop"() : () -> ()
    %cst_15 = arith.constant 0.353553385 : f32
    %44 = vector.broadcast %cst_15 : f32 to vector<6x8x8xf32>
    %45 = arith.mulf %43, %44 : vector<6x8x8xf32>
    %cst_16 = arith.constant dense<0xFF800000> : vector<6x8xf32>
    %46 = vector.multi_reduction <maximumf>, %45, %cst_16 [2] : vector<6x8x8xf32> to vector<6x8xf32>
    %47 = vector.shape_cast %46 : vector<6x8xf32> to vector<6x8x1xf32>
    %48 = vector.broadcast %47 : vector<6x8x1xf32> to vector<6x8x8xf32>
    %49 = arith.subf %45, %48 : vector<6x8x8xf32>
    %50 = math.exp %49 : vector<6x8x8xf32>
    %cst_17 = arith.constant dense<0.000000e+00> : vector<6x8xf32>
    %51 = vector.multi_reduction <add>, %50, %cst_17 [2] : vector<6x8x8xf32> to vector<6x8xf32>
    %52 = vector.shape_cast %51 : vector<6x8xf32> to vector<6x8x1xf32>
    %53 = tpu.reciprocal %52 {approx = true} : vector<6x8x1xf32> -> vector<6x8x1xf32>
    %54 = vector.broadcast %53 : vector<6x8x1xf32> to vector<6x8x8xf32>
    %55 = arith.mulf %50, %54 : vector<6x8x8xf32>
    %56 = arith.truncf %55 : vector<6x8x8xf32> to vector<6x8x8xbf16>
    %57 = arith.truncf %42 : vector<6x8x8xf32> to vector<6x8x8xbf16>
    "tpu.trace_start"() <{level = 10 : i32, message = "bqk,bkd->bqd"}> : () -> ()
    %cst_18 = arith.constant dense<0.000000e+00> : vector<6x8x8xf32>
    %58 = tpu.matmul %56, %57, %cst_18 {dimension_numbers = #tpu.dot_dimension_numbers<[2], [1], [1], [2], [0, 0, 0, 1, 1, 2], [0], [0]>} : vector<6x8x8xbf16>, vector<6x8x8xbf16>, vector<6x8x8xf32> -> vector<6x8x8xf32>
    "tpu.trace_stop"() : () -> ()
    %59 = vector.extract_strided_slice %10 {offsets = [0, 16], sizes = [48, 8], strides = [1, 1]} : vector<48x96xf32> to vector<48x8xf32>
    %60 = vector.shape_cast %59 : vector<48x8xf32> to vector<6x8x8xf32>
    %61 = arith.truncf %60 : vector<6x8x8xf32> to vector<6x8x8xbf16>
    %62 = vector.extract_strided_slice %10 {offsets = [0, 48], sizes = [48, 8], strides = [1, 1]} : vector<48x96xf32> to vector<48x8xf32>
    %63 = vector.shape_cast %62 : vector<48x8xf32> to vector<6x8x8xf32>
    %64 = arith.truncf %63 : vector<6x8x8xf32> to vector<6x8x8xbf16>
    %65 = vector.extract_strided_slice %10 {offsets = [0, 80], sizes = [48, 8], strides = [1, 1]} : vector<48x96xf32> to vector<48x8xf32>
    %66 = vector.shape_cast %65 : vector<48x8xf32> to vector<6x8x8xf32>
    "tpu.trace_start"() <{level = 10 : i32, message = "bqd,bkd->bqk"}> : () -> ()
    %cst_19 = arith.constant dense<0.000000e+00> : vector<6x8x8xf32>
    %67 = tpu.matmul %61, %64, %cst_19 {dimension_numbers = #tpu.dot_dimension_numbers<[2], [2], [1], [1], [0, 0, 0, 1, 1, 1], [0], [0]>} : vector<6x8x8xbf16>, vector<6x8x8xbf16>, vector<6x8x8xf32> -> vector<6x8x8xf32>
    "tpu.trace_stop"() : () -> ()
    %cst_20 = arith.constant 0.353553385 : f32
    %68 = vector.broadcast %cst_20 : f32 to vector<6x8x8xf32>
    %69 = arith.mulf %67, %68 : vector<6x8x8xf32>
    %cst_21 = arith.constant dense<0xFF800000> : vector<6x8xf32>
    %70 = vector.multi_reduction <maximumf>, %69, %cst_21 [2] : vector<6x8x8xf32> to vector<6x8xf32>
    %71 = vector.shape_cast %70 : vector<6x8xf32> to vector<6x8x1xf32>
    %72 = vector.broadcast %71 : vector<6x8x1xf32> to vector<6x8x8xf32>
    %73 = arith.subf %69, %72 : vector<6x8x8xf32>
    %74 = math.exp %73 : vector<6x8x8xf32>
    %cst_22 = arith.constant dense<0.000000e+00> : vector<6x8xf32>
    %75 = vector.multi_reduction <add>, %74, %cst_22 [2] : vector<6x8x8xf32> to vector<6x8xf32>
    %76 = vector.shape_cast %75 : vector<6x8xf32> to vector<6x8x1xf32>
    %77 = tpu.reciprocal %76 {approx = true} : vector<6x8x1xf32> -> vector<6x8x1xf32>
    %78 = vector.broadcast %77 : vector<6x8x1xf32> to vector<6x8x8xf32>
    %79 = arith.mulf %74, %78 : vector<6x8x8xf32>
    %80 = arith.truncf %79 : vector<6x8x8xf32> to vector<6x8x8xbf16>
    %81 = arith.truncf %66 : vector<6x8x8xf32> to vector<6x8x8xbf16>
    "tpu.trace_start"() <{level = 10 : i32, message = "bqk,bkd->bqd"}> : () -> ()
    %cst_23 = arith.constant dense<0.000000e+00> : vector<6x8x8xf32>
    %82 = tpu.matmul %80, %81, %cst_23 {dimension_numbers = #tpu.dot_dimension_numbers<[2], [1], [1], [2], [0, 0, 0, 1, 1, 2], [0], [0]>} : vector<6x8x8xbf16>, vector<6x8x8xbf16>, vector<6x8x8xf32> -> vector<6x8x8xf32>
    "tpu.trace_stop"() : () -> ()
    %83 = vector.extract_strided_slice %10 {offsets = [0, 24], sizes = [48, 8], strides = [1, 1]} : vector<48x96xf32> to vector<48x8xf32>
    %84 = vector.shape_cast %83 : vector<48x8xf32> to vector<6x8x8xf32>
    %85 = arith.truncf %84 : vector<6x8x8xf32> to vector<6x8x8xbf16>
    %86 = vector.extract_strided_slice %10 {offsets = [0, 56], sizes = [48, 8], strides = [1, 1]} : vector<48x96xf32> to vector<48x8xf32>
    %87 = vector.shape_cast %86 : vector<48x8xf32> to vector<6x8x8xf32>
    %88 = arith.truncf %87 : vector<6x8x8xf32> to vector<6x8x8xbf16>
    %89 = vector.extract_strided_slice %10 {offsets = [0, 88], sizes = [48, 8], strides = [1, 1]} : vector<48x96xf32> to vector<48x8xf32>
    %90 = vector.shape_cast %89 : vector<48x8xf32> to vector<6x8x8xf32>
    "tpu.trace_start"() <{level = 10 : i32, message = "bqd,bkd->bqk"}> : () -> ()
    %cst_24 = arith.constant dense<0.000000e+00> : vector<6x8x8xf32>
    %91 = tpu.matmul %85, %88, %cst_24 {dimension_numbers = #tpu.dot_dimension_numbers<[2], [2], [1], [1], [0, 0, 0, 1, 1, 1], [0], [0]>} : vector<6x8x8xbf16>, vector<6x8x8xbf16>, vector<6x8x8xf32> -> vector<6x8x8xf32>
    "tpu.trace_stop"() : () -> ()
    %cst_25 = arith.constant 0.353553385 : f32
    %92 = vector.broadcast %cst_25 : f32 to vector<6x8x8xf32>
    %93 = arith.mulf %91, %92 : vector<6x8x8xf32>
    %cst_26 = arith.constant dense<0xFF800000> : vector<6x8xf32>
    %94 = vector.multi_reduction <maximumf>, %93, %cst_26 [2] : vector<6x8x8xf32> to vector<6x8xf32>
    %95 = vector.shape_cast %94 : vector<6x8xf32> to vector<6x8x1xf32>
    %96 = vector.broadcast %95 : vector<6x8x1xf32> to vector<6x8x8xf32>
    %97 = arith.subf %93, %96 : vector<6x8x8xf32>
    %98 = math.exp %97 : vector<6x8x8xf32>
    %cst_27 = arith.constant dense<0.000000e+00> : vector<6x8xf32>
    %99 = vector.multi_reduction <add>, %98, %cst_27 [2] : vector<6x8x8xf32> to vector<6x8xf32>
    %100 = vector.shape_cast %99 : vector<6x8xf32> to vector<6x8x1xf32>
    %101 = tpu.reciprocal %100 {approx = true} : vector<6x8x1xf32> -> vector<6x8x1xf32>
    %102 = vector.broadcast %101 : vector<6x8x1xf32> to vector<6x8x8xf32>
    %103 = arith.mulf %98, %102 : vector<6x8x8xf32>
    %104 = arith.truncf %103 : vector<6x8x8xf32> to vector<6x8x8xbf16>
    %105 = arith.truncf %90 : vector<6x8x8xf32> to vector<6x8x8xbf16>
    "tpu.trace_start"() <{level = 10 : i32, message = "bqk,bkd->bqd"}> : () -> ()
    %cst_28 = arith.constant dense<0.000000e+00> : vector<6x8x8xf32>
    %106 = tpu.matmul %104, %105, %cst_28 {dimension_numbers = #tpu.dot_dimension_numbers<[2], [1], [1], [2], [0, 0, 0, 1, 1, 2], [0], [0]>} : vector<6x8x8xbf16>, vector<6x8x8xbf16>, vector<6x8x8xf32> -> vector<6x8x8xf32>
    "tpu.trace_stop"() : () -> ()
    %107 = tpu.concatenate %34, %58, %82, %106 in 2 : vector<6x8x8xf32>, vector<6x8x8xf32>, vector<6x8x8xf32>, vector<6x8x8xf32> -> vector<6x8x32xf32>
    %108 = vector.shape_cast %107 : vector<6x8x32xf32> to vector<48x32xf32>
    %109 = arith.truncf %108 : vector<48x32xf32> to vector<48x32xbf16>
    %c0_29 = arith.constant 0 : index
    %c0_30 = arith.constant 0 : index
    %110 = vector.load %arg5[%c0_29, %c0_30] : memref<32x32xbf16, #tpu.memory_space<vmem>>, vector<32x32xbf16>
    %cst_31 = arith.constant dense<0.000000e+00> : vector<48x32xf32>
    %111 = tpu.matmul %109, %110, %cst_31 {dimension_numbers = #tpu.dot_dimension_numbers<[1], [0], [0], [1], [0, 0, 1, 1], [], []>} : vector<48x32xbf16>, vector<32x32xbf16>, vector<48x32xf32> -> vector<48x32xf32>
    %112 = arith.addf %7, %111 : vector<48x32xf32>
    %113 = vector.shape_cast %112 : vector<48x32xf32> to vector<6x8x32xf32>
    %c0_32 = arith.constant 0 : index
    %c0_33 = arith.constant 0 : index
    %c0_34 = arith.constant 0 : index
    %114 = vector.load %arg6[%c0_32, %c0_33, %c0_34] : memref<6x8x32xf32, #tpu.memory_space<vmem>>, vector<6x8x32xf32>
    tpu.vector_store %arg6[%c0_32, %c0_33, %c0_34], %113 {strides = array<i32>} : memref<6x8x32xf32, #tpu.memory_space<vmem>>, vector<6x8x32xf32>,
    %cst_35 = arith.constant dense<0.000000e+00> : vector<32xf32>
    %115 = vector.multi_reduction <add>, %112, %cst_35 [0] : vector<48x32xf32> to vector<32xf32>
    %116 = vector.shape_cast %115 : vector<32xf32> to vector<1x32xf32>
    %117 = arith.mulf %112, %112 : vector<48x32xf32>
    %cst_36 = arith.constant dense<0.000000e+00> : vector<32xf32>
    %118 = vector.multi_reduction <add>, %117, %cst_36 [0] : vector<48x32xf32> to vector<32xf32>
    %119 = vector.shape_cast %118 : vector<32xf32> to vector<1x32xf32>
    %120 = tpu.concatenate %116, %119 in 0 : vector<1x32xf32>, vector<1x32xf32> -> vector<2x32xf32>
    %121 = vector.shape_cast %120 : vector<2x32xf32> to vector<1x2x32xf32>
    %c0_37 = arith.constant 0 : index
    %c0_38 = arith.constant 0 : index
    %c0_39 = arith.constant 0 : index
    %122 = vector.load %arg7[%c0_37, %c0_38, %c0_39] : memref<1x2x32xf32, #tpu.memory_space<vmem>>, vector<1x2x32xf32>
    tpu.vector_store %arg7[%c0_37, %c0_38, %c0_39], %121 {strides = array<i32>} : memref<1x2x32xf32, #tpu.memory_space<vmem>>, vector<1x2x32xf32>,
    return
  }
  func.func @transform_0(%arg0: i32) -> (i32, i32, i32) {
    %c0_i32 = arith.constant 0 : i32
    %c0_i32_0 = arith.constant 0 : i32
    %c0_i32_1 = arith.constant 0 : i32
    return %arg0, %c0_i32, %c0_i32_0 : i32, i32, i32
  }
  func.func @transform_1(%arg0: i32) -> (i32, i32) {
    %c0_i32 = arith.constant 0 : i32
    %c0_i32_0 = arith.constant 0 : i32
    %c0_i32_1 = arith.constant 0 : i32
    return %c0_i32, %c0_i32_0 : i32, i32
  }
  func.func @transform_2(%arg0: i32) -> (i32, i32) {
    %c0_i32 = arith.constant 0 : i32
    %c0_i32_0 = arith.constant 0 : i32
    %c0_i32_1 = arith.constant 0 : i32
    return %c0_i32, %c0_i32_0 : i32, i32
  }
  func.func @transform_3(%arg0: i32) -> (i32, i32) {
    %c0_i32 = arith.constant 0 : i32
    %c0_i32_0 = arith.constant 0 : i32
    %c0_i32_1 = arith.constant 0 : i32
    return %c0_i32, %c0_i32_0 : i32, i32
  }
  func.func @transform_4(%arg0: i32) -> (i32, i32) {
    %c0_i32 = arith.constant 0 : i32
    %c0_i32_0 = arith.constant 0 : i32
    %c0_i32_1 = arith.constant 0 : i32
    return %c0_i32, %c0_i32_0 : i32, i32
  }
  func.func @transform_5(%arg0: i32) -> (i32, i32, i32) {
    %c0_i32 = arith.constant 0 : i32
    %c0_i32_0 = arith.constant 0 : i32
    %c0_i32_1 = arith.constant 0 : i32
    return %arg0, %c0_i32, %c0_i32_0 : i32, i32, i32
  }
  func.func @transform_6(%arg0: i32) -> (i32, i32, i32) {
    %c0_i32 = arith.constant 0 : i32
    %c0_i32_0 = arith.constant 0 : i32
    %c0_i32_1 = arith.constant 0 : i32
    return %arg0, %c0_i32, %c0_i32_0 : i32, i32, i32
  }
}

module attributes {stable_mosaic.version = 11 : i64} {
  func.func @_bn_ff_kernel(%arg0: i32, %arg1: memref<8x6x32xf32, #tpu.memory_space<vmem>>, %arg2: memref<2x2x32xf32, #tpu.memory_space<vmem>>, %arg3: memref<2x32xf32, #tpu.memory_space<vmem>>, %arg4: memref<32x64xbf16, #tpu.memory_space<vmem>>, %arg5: memref<1x64xf32, #tpu.memory_space<vmem>>, %arg6: memref<64x32xbf16, #tpu.memory_space<vmem>>, %arg7: memref<1x32xf32, #tpu.memory_space<vmem>>, %arg8: memref<8x6x32xf32, #tpu.memory_space<vmem>>, %arg9: memref<1x2x32xf32, #tpu.memory_space<vmem>>) attributes {dimension_semantics = [#tpu.dimension_semantics<parallel>], iteration_bounds = array<i64: 2>, scalar_prefetch = 0 : i64, scratch_operands = 0 : i64, tpu.core_type = #tpu.core_type<tc>, window_params = [{transform_indices = @transform_0, window_bounds = array<i64: 8, 6, 32>}, {pipeline_mode = #tpu.pipeline_mode<synchronous>, transform_indices = @transform_1, window_bounds = array<i64: 2, 2, 32>}, {pipeline_mode = #tpu.pipeline_mode<synchronous>, transform_indices = @transform_2, window_bounds = array<i64: 2, 32>}, {pipeline_mode = #tpu.pipeline_mode<synchronous>, transform_indices = @transform_3, window_bounds = array<i64: 32, 64>}, {pipeline_mode = #tpu.pipeline_mode<synchronous>, transform_indices = @transform_4, window_bounds = array<i64: 1, 64>}, {pipeline_mode = #tpu.pipeline_mode<synchronous>, transform_indices = @transform_5, window_bounds = array<i64: 64, 32>}, {pipeline_mode = #tpu.pipeline_mode<synchronous>, transform_indices = @transform_6, window_bounds = array<i64: 1, 32>}, {transform_indices = @transform_7, window_bounds = array<i64: 8, 6, 32>}, {transform_indices = @transform_8, window_bounds = array<i64: 1, 2, 32>}]} {
    %c0 = arith.constant 0 : index
    %c0_0 = arith.constant 0 : index
    %c0_1 = arith.constant 0 : index
    %0 = vector.load %arg1[%c0, %c0_0, %c0_1] : memref<8x6x32xf32, #tpu.memory_space<vmem>>, vector<8x6x32xf32>
    %1 = vector.shape_cast %0 : vector<8x6x32xf32> to vector<48x32xf32>
    %c0_2 = arith.constant 0 : index
    %c0_3 = arith.constant 0 : index
    %c0_4 = arith.constant 0 : index
    %2 = vector.load %arg2[%c0_2, %c0_3, %c0_4] : memref<2x2x32xf32, #tpu.memory_space<vmem>>, vector<2x2x32xf32>
    %cst = arith.constant dense<0.000000e+00> : vector<2x32xf32>
    %3 = vector.multi_reduction <add>, %2, %cst [0] : vector<2x2x32xf32> to vector<2x32xf32>
    %4 = vector.extract_strided_slice %3 {offsets = [0, 0], sizes = [1, 32], strides = [1, 1]} : vector<2x32xf32> to vector<1x32xf32>
    %cst_5 = arith.constant 0.010416667 : f32
    %5 = vector.broadcast %cst_5 : f32 to vector<1x32xf32>
    %6 = arith.mulf %4, %5 : vector<1x32xf32>
    %7 = vector.extract_strided_slice %3 {offsets = [1, 0], sizes = [1, 32], strides = [1, 1]} : vector<2x32xf32> to vector<1x32xf32>
    %cst_6 = arith.constant 0.010416667 : f32
    %8 = vector.broadcast %cst_6 : f32 to vector<1x32xf32>
    %9 = arith.mulf %7, %8 : vector<1x32xf32>
    %10 = arith.mulf %6, %6 : vector<1x32xf32>
    %11 = arith.subf %9, %10 : vector<1x32xf32>
    %12 = vector.broadcast %6 : vector<1x32xf32> to vector<48x32xf32>
    %13 = arith.subf %1, %12 : vector<48x32xf32>
    %cst_7 = arith.constant 9.99999974E-6 : f32
    %14 = vector.broadcast %cst_7 : f32 to vector<1x32xf32>
    %15 = arith.addf %11, %14 : vector<1x32xf32>
    %16 = math.rsqrt %15 : vector<1x32xf32>
    %17 = vector.broadcast %16 : vector<1x32xf32> to vector<48x32xf32>
    %18 = arith.mulf %13, %17 : vector<48x32xf32>
    %c0_8 = arith.constant 0 : index
    %c0_9 = arith.constant 0 : index
    %19 = vector.load %arg3[%c0_8, %c0_9] : memref<2x32xf32, #tpu.memory_space<vmem>>, vector<1x32xf32>
    %20 = vector.broadcast %19 : vector<1x32xf32> to vector<48x32xf32>
    %21 = arith.mulf %18, %20 : vector<48x32xf32>
    %c1 = arith.constant 1 : index
    %c0_10 = arith.constant 0 : index
    %22 = vector.load %arg3[%c1, %c0_10] : memref<2x32xf32, #tpu.memory_space<vmem>>, vector<1x32xf32>
    %23 = vector.broadcast %22 : vector<1x32xf32> to vector<48x32xf32>
    %24 = arith.addf %21, %23 : vector<48x32xf32>
    %25 = arith.truncf %24 : vector<48x32xf32> to vector<48x32xbf16>
    %c0_11 = arith.constant 0 : index
    %c0_12 = arith.constant 0 : index
    %26 = vector.load %arg4[%c0_11, %c0_12] : memref<32x64xbf16, #tpu.memory_space<vmem>>, vector<32x64xbf16>
    %cst_13 = arith.constant dense<0.000000e+00> : vector<48x64xf32>
    %27 = tpu.matmul %25, %26, %cst_13 {dimension_numbers = #tpu.dot_dimension_numbers<[1], [0], [0], [1], [0, 0, 1, 1], [], []>} : vector<48x32xbf16>, vector<32x64xbf16>, vector<48x64xf32> -> vector<48x64xf32>
    %c0_14 = arith.constant 0 : index
    %c0_15 = arith.constant 0 : index
    %28 = vector.load %arg5[%c0_14, %c0_15] : memref<1x64xf32, #tpu.memory_space<vmem>>, vector<1x64xf32>
    %29 = vector.broadcast %28 : vector<1x64xf32> to vector<48x64xf32>
    %30 = arith.addf %27, %29 : vector<48x64xf32>
    %cst_16 = arith.constant 0.000000e+00 : f32
    %31 = vector.broadcast %cst_16 : f32 to vector<48x64xf32>
    %32 = arith.maximumf %30, %31 : vector<48x64xf32>
    %33 = arith.truncf %32 : vector<48x64xf32> to vector<48x64xbf16>
    %c0_17 = arith.constant 0 : index
    %c0_18 = arith.constant 0 : index
    %34 = vector.load %arg6[%c0_17, %c0_18] : memref<64x32xbf16, #tpu.memory_space<vmem>>, vector<64x32xbf16>
    %cst_19 = arith.constant dense<0.000000e+00> : vector<48x32xf32>
    %35 = tpu.matmul %33, %34, %cst_19 {dimension_numbers = #tpu.dot_dimension_numbers<[1], [0], [0], [1], [0, 0, 1, 1], [], []>} : vector<48x64xbf16>, vector<64x32xbf16>, vector<48x32xf32> -> vector<48x32xf32>
    %c0_20 = arith.constant 0 : index
    %c0_21 = arith.constant 0 : index
    %36 = vector.load %arg7[%c0_20, %c0_21] : memref<1x32xf32, #tpu.memory_space<vmem>>, vector<1x32xf32>
    %37 = vector.broadcast %36 : vector<1x32xf32> to vector<48x32xf32>
    %38 = arith.addf %35, %37 : vector<48x32xf32>
    %39 = arith.addf %24, %38 : vector<48x32xf32>
    %40 = vector.shape_cast %39 : vector<48x32xf32> to vector<8x6x32xf32>
    %c0_22 = arith.constant 0 : index
    %c0_23 = arith.constant 0 : index
    %c0_24 = arith.constant 0 : index
    %41 = vector.load %arg8[%c0_22, %c0_23, %c0_24] : memref<8x6x32xf32, #tpu.memory_space<vmem>>, vector<8x6x32xf32>
    tpu.vector_store %arg8[%c0_22, %c0_23, %c0_24], %40 {strides = array<i32>} : memref<8x6x32xf32, #tpu.memory_space<vmem>>, vector<8x6x32xf32>,
    %cst_25 = arith.constant dense<0.000000e+00> : vector<32xf32>
    %42 = vector.multi_reduction <add>, %39, %cst_25 [0] : vector<48x32xf32> to vector<32xf32>
    %43 = vector.shape_cast %42 : vector<32xf32> to vector<1x32xf32>
    %44 = arith.mulf %39, %39 : vector<48x32xf32>
    %cst_26 = arith.constant dense<0.000000e+00> : vector<32xf32>
    %45 = vector.multi_reduction <add>, %44, %cst_26 [0] : vector<48x32xf32> to vector<32xf32>
    %46 = vector.shape_cast %45 : vector<32xf32> to vector<1x32xf32>
    %47 = tpu.concatenate %43, %46 in 0 : vector<1x32xf32>, vector<1x32xf32> -> vector<2x32xf32>
    %48 = vector.shape_cast %47 : vector<2x32xf32> to vector<1x2x32xf32>
    %c0_27 = arith.constant 0 : index
    %c0_28 = arith.constant 0 : index
    %c0_29 = arith.constant 0 : index
    %49 = vector.load %arg9[%c0_27, %c0_28, %c0_29] : memref<1x2x32xf32, #tpu.memory_space<vmem>>, vector<1x2x32xf32>
    tpu.vector_store %arg9[%c0_27, %c0_28, %c0_29], %48 {strides = array<i32>} : memref<1x2x32xf32, #tpu.memory_space<vmem>>, vector<1x2x32xf32>,
    return
  }
  func.func @transform_0(%arg0: i32) -> (i32, i32, i32) {
    %c0_i32 = arith.constant 0 : i32
    %c0_i32_0 = arith.constant 0 : i32
    %c0_i32_1 = arith.constant 0 : i32
    return %arg0, %c0_i32, %c0_i32_0 : i32, i32, i32
  }
  func.func @transform_1(%arg0: i32) -> (i32, i32, i32) {
    %c0_i32 = arith.constant 0 : i32
    %c0_i32_0 = arith.constant 0 : i32
    %c0_i32_1 = arith.constant 0 : i32
    %c0_i32_2 = arith.constant 0 : i32
    return %c0_i32, %c0_i32_0, %c0_i32_1 : i32, i32, i32
  }
  func.func @transform_2(%arg0: i32) -> (i32, i32) {
    %c0_i32 = arith.constant 0 : i32
    %c0_i32_0 = arith.constant 0 : i32
    %c0_i32_1 = arith.constant 0 : i32
    return %c0_i32, %c0_i32_0 : i32, i32
  }
  func.func @transform_3(%arg0: i32) -> (i32, i32) {
    %c0_i32 = arith.constant 0 : i32
    %c0_i32_0 = arith.constant 0 : i32
    %c0_i32_1 = arith.constant 0 : i32
    return %c0_i32, %c0_i32_0 : i32, i32
  }
  func.func @transform_4(%arg0: i32) -> (i32, i32) {
    %c0_i32 = arith.constant 0 : i32
    %c0_i32_0 = arith.constant 0 : i32
    %c0_i32_1 = arith.constant 0 : i32
    return %c0_i32, %c0_i32_0 : i32, i32
  }
  func.func @transform_5(%arg0: i32) -> (i32, i32) {
    %c0_i32 = arith.constant 0 : i32
    %c0_i32_0 = arith.constant 0 : i32
    %c0_i32_1 = arith.constant 0 : i32
    return %c0_i32, %c0_i32_0 : i32, i32
  }
  func.func @transform_6(%arg0: i32) -> (i32, i32) {
    %c0_i32 = arith.constant 0 : i32
    %c0_i32_0 = arith.constant 0 : i32
    %c0_i32_1 = arith.constant 0 : i32
    return %c0_i32, %c0_i32_0 : i32, i32
  }
  func.func @transform_7(%arg0: i32) -> (i32, i32, i32) {
    %c0_i32 = arith.constant 0 : i32
    %c0_i32_0 = arith.constant 0 : i32
    %c0_i32_1 = arith.constant 0 : i32
    return %arg0, %c0_i32, %c0_i32_0 : i32, i32, i32
  }
  func.func @transform_8(%arg0: i32) -> (i32, i32, i32) {
    %c0_i32 = arith.constant 0 : i32
    %c0_i32_0 = arith.constant 0 : i32
    %c0_i32_1 = arith.constant 0 : i32
    return %arg0, %c0_i32, %c0_i32_0 : i32, i32, i32
  }
}

module attributes {stable_mosaic.version = 11 : i64} {
  func.func @_attn_kernel(%arg0: i32, %arg1: memref<8x6x32xf32, #tpu.memory_space<vmem>>, %arg2: memref<2x2x32xf32, #tpu.memory_space<vmem>>, %arg3: memref<2x32xf32, #tpu.memory_space<vmem>>, %arg4: memref<32x96xbf16, #tpu.memory_space<vmem>>, %arg5: memref<32x32xbf16, #tpu.memory_space<vmem>>, %arg6: memref<8x6x32xf32, #tpu.memory_space<vmem>>, %arg7: memref<1x2x32xf32, #tpu.memory_space<vmem>>) attributes {dimension_semantics = [#tpu.dimension_semantics<parallel>], iteration_bounds = array<i64: 2>, scalar_prefetch = 0 : i64, scratch_operands = 0 : i64, tpu.core_type = #tpu.core_type<tc>, window_params = [{transform_indices = @transform_0, window_bounds = array<i64: 8, 6, 32>}, {pipeline_mode = #tpu.pipeline_mode<synchronous>, transform_indices = @transform_1, window_bounds = array<i64: 2, 2, 32>}, {pipeline_mode = #tpu.pipeline_mode<synchronous>, transform_indices = @transform_2, window_bounds = array<i64: 2, 32>}, {pipeline_mode = #tpu.pipeline_mode<synchronous>, transform_indices = @transform_3, window_bounds = array<i64: 32, 96>}, {pipeline_mode = #tpu.pipeline_mode<synchronous>, transform_indices = @transform_4, window_bounds = array<i64: 32, 32>}, {transform_indices = @transform_5, window_bounds = array<i64: 8, 6, 32>}, {transform_indices = @transform_6, window_bounds = array<i64: 1, 2, 32>}]} {
    %c0 = arith.constant 0 : index
    %c0_0 = arith.constant 0 : index
    %c0_1 = arith.constant 0 : index
    %0 = vector.load %arg2[%c0, %c0_0, %c0_1] : memref<2x2x32xf32, #tpu.memory_space<vmem>>, vector<2x2x32xf32>
    %cst = arith.constant dense<0.000000e+00> : vector<2x32xf32>
    %1 = vector.multi_reduction <add>, %0, %cst [0] : vector<2x2x32xf32> to vector<2x32xf32>
    %2 = vector.extract_strided_slice %1 {offsets = [0, 0], sizes = [1, 32], strides = [1, 1]} : vector<2x32xf32> to vector<1x32xf32>
    %cst_2 = arith.constant 0.010416667 : f32
    %3 = vector.broadcast %cst_2 : f32 to vector<1x32xf32>
    %4 = arith.mulf %2, %3 : vector<1x32xf32>
    %5 = vector.extract_strided_slice %1 {offsets = [1, 0], sizes = [1, 32], strides = [1, 1]} : vector<2x32xf32> to vector<1x32xf32>
    %cst_3 = arith.constant 0.010416667 : f32
    %6 = vector.broadcast %cst_3 : f32 to vector<1x32xf32>
    %7 = arith.mulf %5, %6 : vector<1x32xf32>
    %8 = arith.mulf %4, %4 : vector<1x32xf32>
    %9 = arith.subf %7, %8 : vector<1x32xf32>
    %c0_4 = arith.constant 0 : index
    %c0_5 = arith.constant 0 : index
    %c0_6 = arith.constant 0 : index
    %10 = vector.load %arg1[%c0_4, %c0_5, %c0_6] : memref<8x6x32xf32, #tpu.memory_space<vmem>>, vector<8x6x32xf32>
    %11 = vector.shape_cast %10 : vector<8x6x32xf32> to vector<48x32xf32>
    %12 = vector.broadcast %4 : vector<1x32xf32> to vector<48x32xf32>
    %13 = arith.subf %11, %12 : vector<48x32xf32>
    %cst_7 = arith.constant 9.99999974E-6 : f32
    %14 = vector.broadcast %cst_7 : f32 to vector<1x32xf32>
    %15 = arith.addf %9, %14 : vector<1x32xf32>
    %16 = math.rsqrt %15 : vector<1x32xf32>
    %17 = vector.broadcast %16 : vector<1x32xf32> to vector<48x32xf32>
    %18 = arith.mulf %13, %17 : vector<48x32xf32>
    %c0_8 = arith.constant 0 : index
    %c0_9 = arith.constant 0 : index
    %19 = vector.load %arg3[%c0_8, %c0_9] : memref<2x32xf32, #tpu.memory_space<vmem>>, vector<1x32xf32>
    %20 = vector.broadcast %19 : vector<1x32xf32> to vector<48x32xf32>
    %21 = arith.mulf %18, %20 : vector<48x32xf32>
    %c1 = arith.constant 1 : index
    %c0_10 = arith.constant 0 : index
    %22 = vector.load %arg3[%c1, %c0_10] : memref<2x32xf32, #tpu.memory_space<vmem>>, vector<1x32xf32>
    %23 = vector.broadcast %22 : vector<1x32xf32> to vector<48x32xf32>
    %24 = arith.addf %21, %23 : vector<48x32xf32>
    %25 = arith.truncf %24 : vector<48x32xf32> to vector<48x32xbf16>
    %c0_11 = arith.constant 0 : index
    %c0_12 = arith.constant 0 : index
    %26 = vector.load %arg4[%c0_11, %c0_12] : memref<32x96xbf16, #tpu.memory_space<vmem>>, vector<32x96xbf16>
    %cst_13 = arith.constant dense<0.000000e+00> : vector<48x96xf32>
    %27 = tpu.matmul %25, %26, %cst_13 {dimension_numbers = #tpu.dot_dimension_numbers<[1], [0], [0], [1], [0, 0, 1, 1], [], []>} : vector<48x32xbf16>, vector<32x96xbf16>, vector<48x96xf32> -> vector<48x96xf32>
    %28 = vector.extract_strided_slice %27 {offsets = [0, 0], sizes = [48, 8], strides = [1, 1]} : vector<48x96xf32> to vector<48x8xf32>
    %29 = vector.shape_cast %28 : vector<48x8xf32> to vector<8x6x8xf32>
    %30 = arith.truncf %29 : vector<8x6x8xf32> to vector<8x6x8xbf16>
    %31 = vector.extract_strided_slice %27 {offsets = [0, 32], sizes = [48, 8], strides = [1, 1]} : vector<48x96xf32> to vector<48x8xf32>
    %32 = vector.shape_cast %31 : vector<48x8xf32> to vector<8x6x8xf32>
    %33 = arith.truncf %32 : vector<8x6x8xf32> to vector<8x6x8xbf16>
    %34 = vector.extract_strided_slice %27 {offsets = [0, 64], sizes = [48, 8], strides = [1, 1]} : vector<48x96xf32> to vector<48x8xf32>
    %35 = vector.shape_cast %34 : vector<48x8xf32> to vector<8x6x8xf32>
    "tpu.trace_start"() <{level = 10 : i32, message = "bqd,bkd->bqk"}> : () -> ()
    %cst_14 = arith.constant dense<0.000000e+00> : vector<8x6x6xf32>
    %36 = tpu.matmul %30, %33, %cst_14 {dimension_numbers = #tpu.dot_dimension_numbers<[2], [2], [1], [1], [0, 0, 0, 1, 1, 1], [0], [0]>} : vector<8x6x8xbf16>, vector<8x6x8xbf16>, vector<8x6x6xf32> -> vector<8x6x6xf32>
    "tpu.trace_stop"() : () -> ()
    %cst_15 = arith.constant 0.353553385 : f32
    %37 = vector.broadcast %cst_15 : f32 to vector<8x6x6xf32>
    %38 = arith.mulf %36, %37 : vector<8x6x6xf32>
    %cst_16 = arith.constant dense<0xFF800000> : vector<8x6xf32>
    %39 = vector.multi_reduction <maximumf>, %38, %cst_16 [2] : vector<8x6x6xf32> to vector<8x6xf32>
    %40 = vector.shape_cast %39 : vector<8x6xf32> to vector<8x6x1xf32>
    %41 = vector.broadcast %40 : vector<8x6x1xf32> to vector<8x6x6xf32>
    %42 = arith.subf %38, %41 : vector<8x6x6xf32>
    %43 = math.exp %42 : vector<8x6x6xf32>
    %cst_17 = arith.constant dense<0.000000e+00> : vector<8x6xf32>
    %44 = vector.multi_reduction <add>, %43, %cst_17 [2] : vector<8x6x6xf32> to vector<8x6xf32>
    %45 = vector.shape_cast %44 : vector<8x6xf32> to vector<8x6x1xf32>
    %46 = tpu.reciprocal %45 {approx = true} : vector<8x6x1xf32> -> vector<8x6x1xf32>
    %47 = vector.broadcast %46 : vector<8x6x1xf32> to vector<8x6x6xf32>
    %48 = arith.mulf %43, %47 : vector<8x6x6xf32>
    %49 = arith.truncf %48 : vector<8x6x6xf32> to vector<8x6x6xbf16>
    %50 = arith.truncf %35 : vector<8x6x8xf32> to vector<8x6x8xbf16>
    "tpu.trace_start"() <{level = 10 : i32, message = "bqk,bkd->bqd"}> : () -> ()
    %cst_18 = arith.constant dense<0.000000e+00> : vector<8x6x8xf32>
    %51 = tpu.matmul %49, %50, %cst_18 {dimension_numbers = #tpu.dot_dimension_numbers<[2], [1], [1], [2], [0, 0, 0, 1, 1, 2], [0], [0]>} : vector<8x6x6xbf16>, vector<8x6x8xbf16>, vector<8x6x8xf32> -> vector<8x6x8xf32>
    "tpu.trace_stop"() : () -> ()
    %52 = vector.extract_strided_slice %27 {offsets = [0, 8], sizes = [48, 8], strides = [1, 1]} : vector<48x96xf32> to vector<48x8xf32>
    %53 = vector.shape_cast %52 : vector<48x8xf32> to vector<8x6x8xf32>
    %54 = arith.truncf %53 : vector<8x6x8xf32> to vector<8x6x8xbf16>
    %55 = vector.extract_strided_slice %27 {offsets = [0, 40], sizes = [48, 8], strides = [1, 1]} : vector<48x96xf32> to vector<48x8xf32>
    %56 = vector.shape_cast %55 : vector<48x8xf32> to vector<8x6x8xf32>
    %57 = arith.truncf %56 : vector<8x6x8xf32> to vector<8x6x8xbf16>
    %58 = vector.extract_strided_slice %27 {offsets = [0, 72], sizes = [48, 8], strides = [1, 1]} : vector<48x96xf32> to vector<48x8xf32>
    %59 = vector.shape_cast %58 : vector<48x8xf32> to vector<8x6x8xf32>
    "tpu.trace_start"() <{level = 10 : i32, message = "bqd,bkd->bqk"}> : () -> ()
    %cst_19 = arith.constant dense<0.000000e+00> : vector<8x6x6xf32>
    %60 = tpu.matmul %54, %57, %cst_19 {dimension_numbers = #tpu.dot_dimension_numbers<[2], [2], [1], [1], [0, 0, 0, 1, 1, 1], [0], [0]>} : vector<8x6x8xbf16>, vector<8x6x8xbf16>, vector<8x6x6xf32> -> vector<8x6x6xf32>
    "tpu.trace_stop"() : () -> ()
    %cst_20 = arith.constant 0.353553385 : f32
    %61 = vector.broadcast %cst_20 : f32 to vector<8x6x6xf32>
    %62 = arith.mulf %60, %61 : vector<8x6x6xf32>
    %cst_21 = arith.constant dense<0xFF800000> : vector<8x6xf32>
    %63 = vector.multi_reduction <maximumf>, %62, %cst_21 [2] : vector<8x6x6xf32> to vector<8x6xf32>
    %64 = vector.shape_cast %63 : vector<8x6xf32> to vector<8x6x1xf32>
    %65 = vector.broadcast %64 : vector<8x6x1xf32> to vector<8x6x6xf32>
    %66 = arith.subf %62, %65 : vector<8x6x6xf32>
    %67 = math.exp %66 : vector<8x6x6xf32>
    %cst_22 = arith.constant dense<0.000000e+00> : vector<8x6xf32>
    %68 = vector.multi_reduction <add>, %67, %cst_22 [2] : vector<8x6x6xf32> to vector<8x6xf32>
    %69 = vector.shape_cast %68 : vector<8x6xf32> to vector<8x6x1xf32>
    %70 = tpu.reciprocal %69 {approx = true} : vector<8x6x1xf32> -> vector<8x6x1xf32>
    %71 = vector.broadcast %70 : vector<8x6x1xf32> to vector<8x6x6xf32>
    %72 = arith.mulf %67, %71 : vector<8x6x6xf32>
    %73 = arith.truncf %72 : vector<8x6x6xf32> to vector<8x6x6xbf16>
    %74 = arith.truncf %59 : vector<8x6x8xf32> to vector<8x6x8xbf16>
    "tpu.trace_start"() <{level = 10 : i32, message = "bqk,bkd->bqd"}> : () -> ()
    %cst_23 = arith.constant dense<0.000000e+00> : vector<8x6x8xf32>
    %75 = tpu.matmul %73, %74, %cst_23 {dimension_numbers = #tpu.dot_dimension_numbers<[2], [1], [1], [2], [0, 0, 0, 1, 1, 2], [0], [0]>} : vector<8x6x6xbf16>, vector<8x6x8xbf16>, vector<8x6x8xf32> -> vector<8x6x8xf32>
    "tpu.trace_stop"() : () -> ()
    %76 = vector.extract_strided_slice %27 {offsets = [0, 16], sizes = [48, 8], strides = [1, 1]} : vector<48x96xf32> to vector<48x8xf32>
    %77 = vector.shape_cast %76 : vector<48x8xf32> to vector<8x6x8xf32>
    %78 = arith.truncf %77 : vector<8x6x8xf32> to vector<8x6x8xbf16>
    %79 = vector.extract_strided_slice %27 {offsets = [0, 48], sizes = [48, 8], strides = [1, 1]} : vector<48x96xf32> to vector<48x8xf32>
    %80 = vector.shape_cast %79 : vector<48x8xf32> to vector<8x6x8xf32>
    %81 = arith.truncf %80 : vector<8x6x8xf32> to vector<8x6x8xbf16>
    %82 = vector.extract_strided_slice %27 {offsets = [0, 80], sizes = [48, 8], strides = [1, 1]} : vector<48x96xf32> to vector<48x8xf32>
    %83 = vector.shape_cast %82 : vector<48x8xf32> to vector<8x6x8xf32>
    "tpu.trace_start"() <{level = 10 : i32, message = "bqd,bkd->bqk"}> : () -> ()
    %cst_24 = arith.constant dense<0.000000e+00> : vector<8x6x6xf32>
    %84 = tpu.matmul %78, %81, %cst_24 {dimension_numbers = #tpu.dot_dimension_numbers<[2], [2], [1], [1], [0, 0, 0, 1, 1, 1], [0], [0]>} : vector<8x6x8xbf16>, vector<8x6x8xbf16>, vector<8x6x6xf32> -> vector<8x6x6xf32>
    "tpu.trace_stop"() : () -> ()
    %cst_25 = arith.constant 0.353553385 : f32
    %85 = vector.broadcast %cst_25 : f32 to vector<8x6x6xf32>
    %86 = arith.mulf %84, %85 : vector<8x6x6xf32>
    %cst_26 = arith.constant dense<0xFF800000> : vector<8x6xf32>
    %87 = vector.multi_reduction <maximumf>, %86, %cst_26 [2] : vector<8x6x6xf32> to vector<8x6xf32>
    %88 = vector.shape_cast %87 : vector<8x6xf32> to vector<8x6x1xf32>
    %89 = vector.broadcast %88 : vector<8x6x1xf32> to vector<8x6x6xf32>
    %90 = arith.subf %86, %89 : vector<8x6x6xf32>
    %91 = math.exp %90 : vector<8x6x6xf32>
    %cst_27 = arith.constant dense<0.000000e+00> : vector<8x6xf32>
    %92 = vector.multi_reduction <add>, %91, %cst_27 [2] : vector<8x6x6xf32> to vector<8x6xf32>
    %93 = vector.shape_cast %92 : vector<8x6xf32> to vector<8x6x1xf32>
    %94 = tpu.reciprocal %93 {approx = true} : vector<8x6x1xf32> -> vector<8x6x1xf32>
    %95 = vector.broadcast %94 : vector<8x6x1xf32> to vector<8x6x6xf32>
    %96 = arith.mulf %91, %95 : vector<8x6x6xf32>
    %97 = arith.truncf %96 : vector<8x6x6xf32> to vector<8x6x6xbf16>
    %98 = arith.truncf %83 : vector<8x6x8xf32> to vector<8x6x8xbf16>
    "tpu.trace_start"() <{level = 10 : i32, message = "bqk,bkd->bqd"}> : () -> ()
    %cst_28 = arith.constant dense<0.000000e+00> : vector<8x6x8xf32>
    %99 = tpu.matmul %97, %98, %cst_28 {dimension_numbers = #tpu.dot_dimension_numbers<[2], [1], [1], [2], [0, 0, 0, 1, 1, 2], [0], [0]>} : vector<8x6x6xbf16>, vector<8x6x8xbf16>, vector<8x6x8xf32> -> vector<8x6x8xf32>
    "tpu.trace_stop"() : () -> ()
    %100 = vector.extract_strided_slice %27 {offsets = [0, 24], sizes = [48, 8], strides = [1, 1]} : vector<48x96xf32> to vector<48x8xf32>
    %101 = vector.shape_cast %100 : vector<48x8xf32> to vector<8x6x8xf32>
    %102 = arith.truncf %101 : vector<8x6x8xf32> to vector<8x6x8xbf16>
    %103 = vector.extract_strided_slice %27 {offsets = [0, 56], sizes = [48, 8], strides = [1, 1]} : vector<48x96xf32> to vector<48x8xf32>
    %104 = vector.shape_cast %103 : vector<48x8xf32> to vector<8x6x8xf32>
    %105 = arith.truncf %104 : vector<8x6x8xf32> to vector<8x6x8xbf16>
    %106 = vector.extract_strided_slice %27 {offsets = [0, 88], sizes = [48, 8], strides = [1, 1]} : vector<48x96xf32> to vector<48x8xf32>
    %107 = vector.shape_cast %106 : vector<48x8xf32> to vector<8x6x8xf32>
    "tpu.trace_start"() <{level = 10 : i32, message = "bqd,bkd->bqk"}> : () -> ()
    %cst_29 = arith.constant dense<0.000000e+00> : vector<8x6x6xf32>
    %108 = tpu.matmul %102, %105, %cst_29 {dimension_numbers = #tpu.dot_dimension_numbers<[2], [2], [1], [1], [0, 0, 0, 1, 1, 1], [0], [0]>} : vector<8x6x8xbf16>, vector<8x6x8xbf16>, vector<8x6x6xf32> -> vector<8x6x6xf32>
    "tpu.trace_stop"() : () -> ()
    %cst_30 = arith.constant 0.353553385 : f32
    %109 = vector.broadcast %cst_30 : f32 to vector<8x6x6xf32>
    %110 = arith.mulf %108, %109 : vector<8x6x6xf32>
    %cst_31 = arith.constant dense<0xFF800000> : vector<8x6xf32>
    %111 = vector.multi_reduction <maximumf>, %110, %cst_31 [2] : vector<8x6x6xf32> to vector<8x6xf32>
    %112 = vector.shape_cast %111 : vector<8x6xf32> to vector<8x6x1xf32>
    %113 = vector.broadcast %112 : vector<8x6x1xf32> to vector<8x6x6xf32>
    %114 = arith.subf %110, %113 : vector<8x6x6xf32>
    %115 = math.exp %114 : vector<8x6x6xf32>
    %cst_32 = arith.constant dense<0.000000e+00> : vector<8x6xf32>
    %116 = vector.multi_reduction <add>, %115, %cst_32 [2] : vector<8x6x6xf32> to vector<8x6xf32>
    %117 = vector.shape_cast %116 : vector<8x6xf32> to vector<8x6x1xf32>
    %118 = tpu.reciprocal %117 {approx = true} : vector<8x6x1xf32> -> vector<8x6x1xf32>
    %119 = vector.broadcast %118 : vector<8x6x1xf32> to vector<8x6x6xf32>
    %120 = arith.mulf %115, %119 : vector<8x6x6xf32>
    %121 = arith.truncf %120 : vector<8x6x6xf32> to vector<8x6x6xbf16>
    %122 = arith.truncf %107 : vector<8x6x8xf32> to vector<8x6x8xbf16>
    "tpu.trace_start"() <{level = 10 : i32, message = "bqk,bkd->bqd"}> : () -> ()
    %cst_33 = arith.constant dense<0.000000e+00> : vector<8x6x8xf32>
    %123 = tpu.matmul %121, %122, %cst_33 {dimension_numbers = #tpu.dot_dimension_numbers<[2], [1], [1], [2], [0, 0, 0, 1, 1, 2], [0], [0]>} : vector<8x6x6xbf16>, vector<8x6x8xbf16>, vector<8x6x8xf32> -> vector<8x6x8xf32>
    "tpu.trace_stop"() : () -> ()
    %124 = tpu.concatenate %51, %75, %99, %123 in 2 : vector<8x6x8xf32>, vector<8x6x8xf32>, vector<8x6x8xf32>, vector<8x6x8xf32> -> vector<8x6x32xf32>
    %125 = vector.shape_cast %124 : vector<8x6x32xf32> to vector<48x32xf32>
    %126 = arith.truncf %125 : vector<48x32xf32> to vector<48x32xbf16>
    %c0_34 = arith.constant 0 : index
    %c0_35 = arith.constant 0 : index
    %127 = vector.load %arg5[%c0_34, %c0_35] : memref<32x32xbf16, #tpu.memory_space<vmem>>, vector<32x32xbf16>
    %cst_36 = arith.constant dense<0.000000e+00> : vector<48x32xf32>
    %128 = tpu.matmul %126, %127, %cst_36 {dimension_numbers = #tpu.dot_dimension_numbers<[1], [0], [0], [1], [0, 0, 1, 1], [], []>} : vector<48x32xbf16>, vector<32x32xbf16>, vector<48x32xf32> -> vector<48x32xf32>
    %129 = arith.addf %24, %128 : vector<48x32xf32>
    %130 = vector.shape_cast %129 : vector<48x32xf32> to vector<8x6x32xf32>
    %c0_37 = arith.constant 0 : index
    %c0_38 = arith.constant 0 : index
    %c0_39 = arith.constant 0 : index
    %131 = vector.load %arg6[%c0_37, %c0_38, %c0_39] : memref<8x6x32xf32, #tpu.memory_space<vmem>>, vector<8x6x32xf32>
    tpu.vector_store %arg6[%c0_37, %c0_38, %c0_39], %130 {strides = array<i32>} : memref<8x6x32xf32, #tpu.memory_space<vmem>>, vector<8x6x32xf32>,
    %cst_40 = arith.constant dense<0.000000e+00> : vector<32xf32>
    %132 = vector.multi_reduction <add>, %129, %cst_40 [0] : vector<48x32xf32> to vector<32xf32>
    %133 = vector.shape_cast %132 : vector<32xf32> to vector<1x32xf32>
    %134 = arith.mulf %129, %129 : vector<48x32xf32>
    %cst_41 = arith.constant dense<0.000000e+00> : vector<32xf32>
    %135 = vector.multi_reduction <add>, %134, %cst_41 [0] : vector<48x32xf32> to vector<32xf32>
    %136 = vector.shape_cast %135 : vector<32xf32> to vector<1x32xf32>
    %137 = tpu.concatenate %133, %136 in 0 : vector<1x32xf32>, vector<1x32xf32> -> vector<2x32xf32>
    %138 = vector.shape_cast %137 : vector<2x32xf32> to vector<1x2x32xf32>
    %c0_42 = arith.constant 0 : index
    %c0_43 = arith.constant 0 : index
    %c0_44 = arith.constant 0 : index
    %139 = vector.load %arg7[%c0_42, %c0_43, %c0_44] : memref<1x2x32xf32, #tpu.memory_space<vmem>>, vector<1x2x32xf32>
    tpu.vector_store %arg7[%c0_42, %c0_43, %c0_44], %138 {strides = array<i32>} : memref<1x2x32xf32, #tpu.memory_space<vmem>>, vector<1x2x32xf32>,
    return
  }
  func.func @transform_0(%arg0: i32) -> (i32, i32, i32) {
    %c0_i32 = arith.constant 0 : i32
    %c0_i32_0 = arith.constant 0 : i32
    %c0_i32_1 = arith.constant 0 : i32
    return %arg0, %c0_i32, %c0_i32_0 : i32, i32, i32
  }
  func.func @transform_1(%arg0: i32) -> (i32, i32, i32) {
    %c0_i32 = arith.constant 0 : i32
    %c0_i32_0 = arith.constant 0 : i32
    %c0_i32_1 = arith.constant 0 : i32
    %c0_i32_2 = arith.constant 0 : i32
    return %c0_i32, %c0_i32_0, %c0_i32_1 : i32, i32, i32
  }
  func.func @transform_2(%arg0: i32) -> (i32, i32) {
    %c0_i32 = arith.constant 0 : i32
    %c0_i32_0 = arith.constant 0 : i32
    %c0_i32_1 = arith.constant 0 : i32
    return %c0_i32, %c0_i32_0 : i32, i32
  }
  func.func @transform_3(%arg0: i32) -> (i32, i32) {
    %c0_i32 = arith.constant 0 : i32
    %c0_i32_0 = arith.constant 0 : i32
    %c0_i32_1 = arith.constant 0 : i32
    return %c0_i32, %c0_i32_0 : i32, i32
  }
  func.func @transform_4(%arg0: i32) -> (i32, i32) {
    %c0_i32 = arith.constant 0 : i32
    %c0_i32_0 = arith.constant 0 : i32
    %c0_i32_1 = arith.constant 0 : i32
    return %c0_i32, %c0_i32_0 : i32, i32
  }
  func.func @transform_5(%arg0: i32) -> (i32, i32, i32) {
    %c0_i32 = arith.constant 0 : i32
    %c0_i32_0 = arith.constant 0 : i32
    %c0_i32_1 = arith.constant 0 : i32
    return %arg0, %c0_i32, %c0_i32_0 : i32, i32, i32
  }
  func.func @transform_6(%arg0: i32) -> (i32, i32, i32) {
    %c0_i32 = arith.constant 0 : i32
    %c0_i32_0 = arith.constant 0 : i32
    %c0_i32_1 = arith.constant 0 : i32
    return %arg0, %c0_i32, %c0_i32_0 : i32, i32, i32
  }
}

module attributes {stable_mosaic.version = 11 : i64} {
  func.func @_attn_kernel(%arg0: i32, %arg1: memref<6x8x32xf32, #tpu.memory_space<vmem>>, %arg2: memref<2x2x32xf32, #tpu.memory_space<vmem>>, %arg3: memref<2x32xf32, #tpu.memory_space<vmem>>, %arg4: memref<32x96xbf16, #tpu.memory_space<vmem>>, %arg5: memref<32x32xbf16, #tpu.memory_space<vmem>>, %arg6: memref<6x8x32xf32, #tpu.memory_space<vmem>>, %arg7: memref<1x2x32xf32, #tpu.memory_space<vmem>>) attributes {dimension_semantics = [#tpu.dimension_semantics<parallel>], iteration_bounds = array<i64: 2>, scalar_prefetch = 0 : i64, scratch_operands = 0 : i64, tpu.core_type = #tpu.core_type<tc>, window_params = [{transform_indices = @transform_0, window_bounds = array<i64: 6, 8, 32>}, {pipeline_mode = #tpu.pipeline_mode<synchronous>, transform_indices = @transform_1, window_bounds = array<i64: 2, 2, 32>}, {pipeline_mode = #tpu.pipeline_mode<synchronous>, transform_indices = @transform_2, window_bounds = array<i64: 2, 32>}, {pipeline_mode = #tpu.pipeline_mode<synchronous>, transform_indices = @transform_3, window_bounds = array<i64: 32, 96>}, {pipeline_mode = #tpu.pipeline_mode<synchronous>, transform_indices = @transform_4, window_bounds = array<i64: 32, 32>}, {transform_indices = @transform_5, window_bounds = array<i64: 6, 8, 32>}, {transform_indices = @transform_6, window_bounds = array<i64: 1, 2, 32>}]} {
    %c0 = arith.constant 0 : index
    %c0_0 = arith.constant 0 : index
    %c0_1 = arith.constant 0 : index
    %0 = vector.load %arg2[%c0, %c0_0, %c0_1] : memref<2x2x32xf32, #tpu.memory_space<vmem>>, vector<2x2x32xf32>
    %cst = arith.constant dense<0.000000e+00> : vector<2x32xf32>
    %1 = vector.multi_reduction <add>, %0, %cst [0] : vector<2x2x32xf32> to vector<2x32xf32>
    %2 = vector.extract_strided_slice %1 {offsets = [0, 0], sizes = [1, 32], strides = [1, 1]} : vector<2x32xf32> to vector<1x32xf32>
    %cst_2 = arith.constant 0.010416667 : f32
    %3 = vector.broadcast %cst_2 : f32 to vector<1x32xf32>
    %4 = arith.mulf %2, %3 : vector<1x32xf32>
    %5 = vector.extract_strided_slice %1 {offsets = [1, 0], sizes = [1, 32], strides = [1, 1]} : vector<2x32xf32> to vector<1x32xf32>
    %cst_3 = arith.constant 0.010416667 : f32
    %6 = vector.broadcast %cst_3 : f32 to vector<1x32xf32>
    %7 = arith.mulf %5, %6 : vector<1x32xf32>
    %8 = arith.mulf %4, %4 : vector<1x32xf32>
    %9 = arith.subf %7, %8 : vector<1x32xf32>
    %c0_4 = arith.constant 0 : index
    %c0_5 = arith.constant 0 : index
    %c0_6 = arith.constant 0 : index
    %10 = vector.load %arg1[%c0_4, %c0_5, %c0_6] : memref<6x8x32xf32, #tpu.memory_space<vmem>>, vector<6x8x32xf32>
    %11 = vector.shape_cast %10 : vector<6x8x32xf32> to vector<48x32xf32>
    %12 = vector.broadcast %4 : vector<1x32xf32> to vector<48x32xf32>
    %13 = arith.subf %11, %12 : vector<48x32xf32>
    %cst_7 = arith.constant 9.99999974E-6 : f32
    %14 = vector.broadcast %cst_7 : f32 to vector<1x32xf32>
    %15 = arith.addf %9, %14 : vector<1x32xf32>
    %16 = math.rsqrt %15 : vector<1x32xf32>
    %17 = vector.broadcast %16 : vector<1x32xf32> to vector<48x32xf32>
    %18 = arith.mulf %13, %17 : vector<48x32xf32>
    %c0_8 = arith.constant 0 : index
    %c0_9 = arith.constant 0 : index
    %19 = vector.load %arg3[%c0_8, %c0_9] : memref<2x32xf32, #tpu.memory_space<vmem>>, vector<1x32xf32>
    %20 = vector.broadcast %19 : vector<1x32xf32> to vector<48x32xf32>
    %21 = arith.mulf %18, %20 : vector<48x32xf32>
    %c1 = arith.constant 1 : index
    %c0_10 = arith.constant 0 : index
    %22 = vector.load %arg3[%c1, %c0_10] : memref<2x32xf32, #tpu.memory_space<vmem>>, vector<1x32xf32>
    %23 = vector.broadcast %22 : vector<1x32xf32> to vector<48x32xf32>
    %24 = arith.addf %21, %23 : vector<48x32xf32>
    %25 = arith.truncf %24 : vector<48x32xf32> to vector<48x32xbf16>
    %c0_11 = arith.constant 0 : index
    %c0_12 = arith.constant 0 : index
    %26 = vector.load %arg4[%c0_11, %c0_12] : memref<32x96xbf16, #tpu.memory_space<vmem>>, vector<32x96xbf16>
    %cst_13 = arith.constant dense<0.000000e+00> : vector<48x96xf32>
    %27 = tpu.matmul %25, %26, %cst_13 {dimension_numbers = #tpu.dot_dimension_numbers<[1], [0], [0], [1], [0, 0, 1, 1], [], []>} : vector<48x32xbf16>, vector<32x96xbf16>, vector<48x96xf32> -> vector<48x96xf32>
    %28 = vector.extract_strided_slice %27 {offsets = [0, 0], sizes = [48, 8], strides = [1, 1]} : vector<48x96xf32> to vector<48x8xf32>
    %29 = vector.shape_cast %28 : vector<48x8xf32> to vector<6x8x8xf32>
    %30 = arith.truncf %29 : vector<6x8x8xf32> to vector<6x8x8xbf16>
    %31 = vector.extract_strided_slice %27 {offsets = [0, 32], sizes = [48, 8], strides = [1, 1]} : vector<48x96xf32> to vector<48x8xf32>
    %32 = vector.shape_cast %31 : vector<48x8xf32> to vector<6x8x8xf32>
    %33 = arith.truncf %32 : vector<6x8x8xf32> to vector<6x8x8xbf16>
    %34 = vector.extract_strided_slice %27 {offsets = [0, 64], sizes = [48, 8], strides = [1, 1]} : vector<48x96xf32> to vector<48x8xf32>
    %35 = vector.shape_cast %34 : vector<48x8xf32> to vector<6x8x8xf32>
    "tpu.trace_start"() <{level = 10 : i32, message = "bqd,bkd->bqk"}> : () -> ()
    %cst_14 = arith.constant dense<0.000000e+00> : vector<6x8x8xf32>
    %36 = tpu.matmul %30, %33, %cst_14 {dimension_numbers = #tpu.dot_dimension_numbers<[2], [2], [1], [1], [0, 0, 0, 1, 1, 1], [0], [0]>} : vector<6x8x8xbf16>, vector<6x8x8xbf16>, vector<6x8x8xf32> -> vector<6x8x8xf32>
    "tpu.trace_stop"() : () -> ()
    %cst_15 = arith.constant 0.353553385 : f32
    %37 = vector.broadcast %cst_15 : f32 to vector<6x8x8xf32>
    %38 = arith.mulf %36, %37 : vector<6x8x8xf32>
    %cst_16 = arith.constant dense<0xFF800000> : vector<6x8xf32>
    %39 = vector.multi_reduction <maximumf>, %38, %cst_16 [2] : vector<6x8x8xf32> to vector<6x8xf32>
    %40 = vector.shape_cast %39 : vector<6x8xf32> to vector<6x8x1xf32>
    %41 = vector.broadcast %40 : vector<6x8x1xf32> to vector<6x8x8xf32>
    %42 = arith.subf %38, %41 : vector<6x8x8xf32>
    %43 = math.exp %42 : vector<6x8x8xf32>
    %cst_17 = arith.constant dense<0.000000e+00> : vector<6x8xf32>
    %44 = vector.multi_reduction <add>, %43, %cst_17 [2] : vector<6x8x8xf32> to vector<6x8xf32>
    %45 = vector.shape_cast %44 : vector<6x8xf32> to vector<6x8x1xf32>
    %46 = tpu.reciprocal %45 {approx = true} : vector<6x8x1xf32> -> vector<6x8x1xf32>
    %47 = vector.broadcast %46 : vector<6x8x1xf32> to vector<6x8x8xf32>
    %48 = arith.mulf %43, %47 : vector<6x8x8xf32>
    %49 = arith.truncf %48 : vector<6x8x8xf32> to vector<6x8x8xbf16>
    %50 = arith.truncf %35 : vector<6x8x8xf32> to vector<6x8x8xbf16>
    "tpu.trace_start"() <{level = 10 : i32, message = "bqk,bkd->bqd"}> : () -> ()
    %cst_18 = arith.constant dense<0.000000e+00> : vector<6x8x8xf32>
    %51 = tpu.matmul %49, %50, %cst_18 {dimension_numbers = #tpu.dot_dimension_numbers<[2], [1], [1], [2], [0, 0, 0, 1, 1, 2], [0], [0]>} : vector<6x8x8xbf16>, vector<6x8x8xbf16>, vector<6x8x8xf32> -> vector<6x8x8xf32>
    "tpu.trace_stop"() : () -> ()
    %52 = vector.extract_strided_slice %27 {offsets = [0, 8], sizes = [48, 8], strides = [1, 1]} : vector<48x96xf32> to vector<48x8xf32>
    %53 = vector.shape_cast %52 : vector<48x8xf32> to vector<6x8x8xf32>
    %54 = arith.truncf %53 : vector<6x8x8xf32> to vector<6x8x8xbf16>
    %55 = vector.extract_strided_slice %27 {offsets = [0, 40], sizes = [48, 8], strides = [1, 1]} : vector<48x96xf32> to vector<48x8xf32>
    %56 = vector.shape_cast %55 : vector<48x8xf32> to vector<6x8x8xf32>
    %57 = arith.truncf %56 : vector<6x8x8xf32> to vector<6x8x8xbf16>
    %58 = vector.extract_strided_slice %27 {offsets = [0, 72], sizes = [48, 8], strides = [1, 1]} : vector<48x96xf32> to vector<48x8xf32>
    %59 = vector.shape_cast %58 : vector<48x8xf32> to vector<6x8x8xf32>
    "tpu.trace_start"() <{level = 10 : i32, message = "bqd,bkd->bqk"}> : () -> ()
    %cst_19 = arith.constant dense<0.000000e+00> : vector<6x8x8xf32>
    %60 = tpu.matmul %54, %57, %cst_19 {dimension_numbers = #tpu.dot_dimension_numbers<[2], [2], [1], [1], [0, 0, 0, 1, 1, 1], [0], [0]>} : vector<6x8x8xbf16>, vector<6x8x8xbf16>, vector<6x8x8xf32> -> vector<6x8x8xf32>
    "tpu.trace_stop"() : () -> ()
    %cst_20 = arith.constant 0.353553385 : f32
    %61 = vector.broadcast %cst_20 : f32 to vector<6x8x8xf32>
    %62 = arith.mulf %60, %61 : vector<6x8x8xf32>
    %cst_21 = arith.constant dense<0xFF800000> : vector<6x8xf32>
    %63 = vector.multi_reduction <maximumf>, %62, %cst_21 [2] : vector<6x8x8xf32> to vector<6x8xf32>
    %64 = vector.shape_cast %63 : vector<6x8xf32> to vector<6x8x1xf32>
    %65 = vector.broadcast %64 : vector<6x8x1xf32> to vector<6x8x8xf32>
    %66 = arith.subf %62, %65 : vector<6x8x8xf32>
    %67 = math.exp %66 : vector<6x8x8xf32>
    %cst_22 = arith.constant dense<0.000000e+00> : vector<6x8xf32>
    %68 = vector.multi_reduction <add>, %67, %cst_22 [2] : vector<6x8x8xf32> to vector<6x8xf32>
    %69 = vector.shape_cast %68 : vector<6x8xf32> to vector<6x8x1xf32>
    %70 = tpu.reciprocal %69 {approx = true} : vector<6x8x1xf32> -> vector<6x8x1xf32>
    %71 = vector.broadcast %70 : vector<6x8x1xf32> to vector<6x8x8xf32>
    %72 = arith.mulf %67, %71 : vector<6x8x8xf32>
    %73 = arith.truncf %72 : vector<6x8x8xf32> to vector<6x8x8xbf16>
    %74 = arith.truncf %59 : vector<6x8x8xf32> to vector<6x8x8xbf16>
    "tpu.trace_start"() <{level = 10 : i32, message = "bqk,bkd->bqd"}> : () -> ()
    %cst_23 = arith.constant dense<0.000000e+00> : vector<6x8x8xf32>
    %75 = tpu.matmul %73, %74, %cst_23 {dimension_numbers = #tpu.dot_dimension_numbers<[2], [1], [1], [2], [0, 0, 0, 1, 1, 2], [0], [0]>} : vector<6x8x8xbf16>, vector<6x8x8xbf16>, vector<6x8x8xf32> -> vector<6x8x8xf32>
    "tpu.trace_stop"() : () -> ()
    %76 = vector.extract_strided_slice %27 {offsets = [0, 16], sizes = [48, 8], strides = [1, 1]} : vector<48x96xf32> to vector<48x8xf32>
    %77 = vector.shape_cast %76 : vector<48x8xf32> to vector<6x8x8xf32>
    %78 = arith.truncf %77 : vector<6x8x8xf32> to vector<6x8x8xbf16>
    %79 = vector.extract_strided_slice %27 {offsets = [0, 48], sizes = [48, 8], strides = [1, 1]} : vector<48x96xf32> to vector<48x8xf32>
    %80 = vector.shape_cast %79 : vector<48x8xf32> to vector<6x8x8xf32>
    %81 = arith.truncf %80 : vector<6x8x8xf32> to vector<6x8x8xbf16>
    %82 = vector.extract_strided_slice %27 {offsets = [0, 80], sizes = [48, 8], strides = [1, 1]} : vector<48x96xf32> to vector<48x8xf32>
    %83 = vector.shape_cast %82 : vector<48x8xf32> to vector<6x8x8xf32>
    "tpu.trace_start"() <{level = 10 : i32, message = "bqd,bkd->bqk"}> : () -> ()
    %cst_24 = arith.constant dense<0.000000e+00> : vector<6x8x8xf32>
    %84 = tpu.matmul %78, %81, %cst_24 {dimension_numbers = #tpu.dot_dimension_numbers<[2], [2], [1], [1], [0, 0, 0, 1, 1, 1], [0], [0]>} : vector<6x8x8xbf16>, vector<6x8x8xbf16>, vector<6x8x8xf32> -> vector<6x8x8xf32>
    "tpu.trace_stop"() : () -> ()
    %cst_25 = arith.constant 0.353553385 : f32
    %85 = vector.broadcast %cst_25 : f32 to vector<6x8x8xf32>
    %86 = arith.mulf %84, %85 : vector<6x8x8xf32>
    %cst_26 = arith.constant dense<0xFF800000> : vector<6x8xf32>
    %87 = vector.multi_reduction <maximumf>, %86, %cst_26 [2] : vector<6x8x8xf32> to vector<6x8xf32>
    %88 = vector.shape_cast %87 : vector<6x8xf32> to vector<6x8x1xf32>
    %89 = vector.broadcast %88 : vector<6x8x1xf32> to vector<6x8x8xf32>
    %90 = arith.subf %86, %89 : vector<6x8x8xf32>
    %91 = math.exp %90 : vector<6x8x8xf32>
    %cst_27 = arith.constant dense<0.000000e+00> : vector<6x8xf32>
    %92 = vector.multi_reduction <add>, %91, %cst_27 [2] : vector<6x8x8xf32> to vector<6x8xf32>
    %93 = vector.shape_cast %92 : vector<6x8xf32> to vector<6x8x1xf32>
    %94 = tpu.reciprocal %93 {approx = true} : vector<6x8x1xf32> -> vector<6x8x1xf32>
    %95 = vector.broadcast %94 : vector<6x8x1xf32> to vector<6x8x8xf32>
    %96 = arith.mulf %91, %95 : vector<6x8x8xf32>
    %97 = arith.truncf %96 : vector<6x8x8xf32> to vector<6x8x8xbf16>
    %98 = arith.truncf %83 : vector<6x8x8xf32> to vector<6x8x8xbf16>
    "tpu.trace_start"() <{level = 10 : i32, message = "bqk,bkd->bqd"}> : () -> ()
    %cst_28 = arith.constant dense<0.000000e+00> : vector<6x8x8xf32>
    %99 = tpu.matmul %97, %98, %cst_28 {dimension_numbers = #tpu.dot_dimension_numbers<[2], [1], [1], [2], [0, 0, 0, 1, 1, 2], [0], [0]>} : vector<6x8x8xbf16>, vector<6x8x8xbf16>, vector<6x8x8xf32> -> vector<6x8x8xf32>
    "tpu.trace_stop"() : () -> ()
    %100 = vector.extract_strided_slice %27 {offsets = [0, 24], sizes = [48, 8], strides = [1, 1]} : vector<48x96xf32> to vector<48x8xf32>
    %101 = vector.shape_cast %100 : vector<48x8xf32> to vector<6x8x8xf32>
    %102 = arith.truncf %101 : vector<6x8x8xf32> to vector<6x8x8xbf16>
    %103 = vector.extract_strided_slice %27 {offsets = [0, 56], sizes = [48, 8], strides = [1, 1]} : vector<48x96xf32> to vector<48x8xf32>
    %104 = vector.shape_cast %103 : vector<48x8xf32> to vector<6x8x8xf32>
    %105 = arith.truncf %104 : vector<6x8x8xf32> to vector<6x8x8xbf16>
    %106 = vector.extract_strided_slice %27 {offsets = [0, 88], sizes = [48, 8], strides = [1, 1]} : vector<48x96xf32> to vector<48x8xf32>
    %107 = vector.shape_cast %106 : vector<48x8xf32> to vector<6x8x8xf32>
    "tpu.trace_start"() <{level = 10 : i32, message = "bqd,bkd->bqk"}> : () -> ()
    %cst_29 = arith.constant dense<0.000000e+00> : vector<6x8x8xf32>
    %108 = tpu.matmul %102, %105, %cst_29 {dimension_numbers = #tpu.dot_dimension_numbers<[2], [2], [1], [1], [0, 0, 0, 1, 1, 1], [0], [0]>} : vector<6x8x8xbf16>, vector<6x8x8xbf16>, vector<6x8x8xf32> -> vector<6x8x8xf32>
    "tpu.trace_stop"() : () -> ()
    %cst_30 = arith.constant 0.353553385 : f32
    %109 = vector.broadcast %cst_30 : f32 to vector<6x8x8xf32>
    %110 = arith.mulf %108, %109 : vector<6x8x8xf32>
    %cst_31 = arith.constant dense<0xFF800000> : vector<6x8xf32>
    %111 = vector.multi_reduction <maximumf>, %110, %cst_31 [2] : vector<6x8x8xf32> to vector<6x8xf32>
    %112 = vector.shape_cast %111 : vector<6x8xf32> to vector<6x8x1xf32>
    %113 = vector.broadcast %112 : vector<6x8x1xf32> to vector<6x8x8xf32>
    %114 = arith.subf %110, %113 : vector<6x8x8xf32>
    %115 = math.exp %114 : vector<6x8x8xf32>
    %cst_32 = arith.constant dense<0.000000e+00> : vector<6x8xf32>
    %116 = vector.multi_reduction <add>, %115, %cst_32 [2] : vector<6x8x8xf32> to vector<6x8xf32>
    %117 = vector.shape_cast %116 : vector<6x8xf32> to vector<6x8x1xf32>
    %118 = tpu.reciprocal %117 {approx = true} : vector<6x8x1xf32> -> vector<6x8x1xf32>
    %119 = vector.broadcast %118 : vector<6x8x1xf32> to vector<6x8x8xf32>
    %120 = arith.mulf %115, %119 : vector<6x8x8xf32>
    %121 = arith.truncf %120 : vector<6x8x8xf32> to vector<6x8x8xbf16>
    %122 = arith.truncf %107 : vector<6x8x8xf32> to vector<6x8x8xbf16>
    "tpu.trace_start"() <{level = 10 : i32, message = "bqk,bkd->bqd"}> : () -> ()
    %cst_33 = arith.constant dense<0.000000e+00> : vector<6x8x8xf32>
    %123 = tpu.matmul %121, %122, %cst_33 {dimension_numbers = #tpu.dot_dimension_numbers<[2], [1], [1], [2], [0, 0, 0, 1, 1, 2], [0], [0]>} : vector<6x8x8xbf16>, vector<6x8x8xbf16>, vector<6x8x8xf32> -> vector<6x8x8xf32>
    "tpu.trace_stop"() : () -> ()
    %124 = tpu.concatenate %51, %75, %99, %123 in 2 : vector<6x8x8xf32>, vector<6x8x8xf32>, vector<6x8x8xf32>, vector<6x8x8xf32> -> vector<6x8x32xf32>
    %125 = vector.shape_cast %124 : vector<6x8x32xf32> to vector<48x32xf32>
    %126 = arith.truncf %125 : vector<48x32xf32> to vector<48x32xbf16>
    %c0_34 = arith.constant 0 : index
    %c0_35 = arith.constant 0 : index
    %127 = vector.load %arg5[%c0_34, %c0_35] : memref<32x32xbf16, #tpu.memory_space<vmem>>, vector<32x32xbf16>
    %cst_36 = arith.constant dense<0.000000e+00> : vector<48x32xf32>
    %128 = tpu.matmul %126, %127, %cst_36 {dimension_numbers = #tpu.dot_dimension_numbers<[1], [0], [0], [1], [0, 0, 1, 1], [], []>} : vector<48x32xbf16>, vector<32x32xbf16>, vector<48x32xf32> -> vector<48x32xf32>
    %129 = arith.addf %24, %128 : vector<48x32xf32>
    %130 = vector.shape_cast %129 : vector<48x32xf32> to vector<6x8x32xf32>
    %c0_37 = arith.constant 0 : index
    %c0_38 = arith.constant 0 : index
    %c0_39 = arith.constant 0 : index
    %131 = vector.load %arg6[%c0_37, %c0_38, %c0_39] : memref<6x8x32xf32, #tpu.memory_space<vmem>>, vector<6x8x32xf32>
    tpu.vector_store %arg6[%c0_37, %c0_38, %c0_39], %130 {strides = array<i32>} : memref<6x8x32xf32, #tpu.memory_space<vmem>>, vector<6x8x32xf32>,
    %cst_40 = arith.constant dense<0.000000e+00> : vector<32xf32>
    %132 = vector.multi_reduction <add>, %129, %cst_40 [0] : vector<48x32xf32> to vector<32xf32>
    %133 = vector.shape_cast %132 : vector<32xf32> to vector<1x32xf32>
    %134 = arith.mulf %129, %129 : vector<48x32xf32>
    %cst_41 = arith.constant dense<0.000000e+00> : vector<32xf32>
    %135 = vector.multi_reduction <add>, %134, %cst_41 [0] : vector<48x32xf32> to vector<32xf32>
    %136 = vector.shape_cast %135 : vector<32xf32> to vector<1x32xf32>
    %137 = tpu.concatenate %133, %136 in 0 : vector<1x32xf32>, vector<1x32xf32> -> vector<2x32xf32>
    %138 = vector.shape_cast %137 : vector<2x32xf32> to vector<1x2x32xf32>
    %c0_42 = arith.constant 0 : index
    %c0_43 = arith.constant 0 : index
    %c0_44 = arith.constant 0 : index
    %139 = vector.load %arg7[%c0_42, %c0_43, %c0_44] : memref<1x2x32xf32, #tpu.memory_space<vmem>>, vector<1x2x32xf32>
    tpu.vector_store %arg7[%c0_42, %c0_43, %c0_44], %138 {strides = array<i32>} : memref<1x2x32xf32, #tpu.memory_space<vmem>>, vector<1x2x32xf32>,
    return
  }
  func.func @transform_0(%arg0: i32) -> (i32, i32, i32) {
    %c0_i32 = arith.constant 0 : i32
    %c0_i32_0 = arith.constant 0 : i32
    %c0_i32_1 = arith.constant 0 : i32
    return %arg0, %c0_i32, %c0_i32_0 : i32, i32, i32
  }
  func.func @transform_1(%arg0: i32) -> (i32, i32, i32) {
    %c0_i32 = arith.constant 0 : i32
    %c0_i32_0 = arith.constant 0 : i32
    %c0_i32_1 = arith.constant 0 : i32
    %c0_i32_2 = arith.constant 0 : i32
    return %c0_i32, %c0_i32_0, %c0_i32_1 : i32, i32, i32
  }
  func.func @transform_2(%arg0: i32) -> (i32, i32) {
    %c0_i32 = arith.constant 0 : i32
    %c0_i32_0 = arith.constant 0 : i32
    %c0_i32_1 = arith.constant 0 : i32
    return %c0_i32, %c0_i32_0 : i32, i32
  }
  func.func @transform_3(%arg0: i32) -> (i32, i32) {
    %c0_i32 = arith.constant 0 : i32
    %c0_i32_0 = arith.constant 0 : i32
    %c0_i32_1 = arith.constant 0 : i32
    return %c0_i32, %c0_i32_0 : i32, i32
  }
  func.func @transform_4(%arg0: i32) -> (i32, i32) {
    %c0_i32 = arith.constant 0 : i32
    %c0_i32_0 = arith.constant 0 : i32
    %c0_i32_1 = arith.constant 0 : i32
    return %c0_i32, %c0_i32_0 : i32, i32
  }
  func.func @transform_5(%arg0: i32) -> (i32, i32, i32) {
    %c0_i32 = arith.constant 0 : i32
    %c0_i32_0 = arith.constant 0 : i32
    %c0_i32_1 = arith.constant 0 : i32
    return %arg0, %c0_i32, %c0_i32_0 : i32, i32, i32
  }
  func.func @transform_6(%arg0: i32) -> (i32, i32, i32) {
    %c0_i32 = arith.constant 0 : i32
    %c0_i32_0 = arith.constant 0 : i32
    %c0_i32_1 = arith.constant 0 : i32
    return %arg0, %c0_i32, %c0_i32_0 : i32, i32, i32
  }
}

module attributes {stable_mosaic.version = 11 : i64} {
  func.func @_pool_head_kernel(%arg0: i32, %arg1: memref<2x6x8x32xf32, #tpu.memory_space<vmem>>, %arg2: memref<2x2x32xf32, #tpu.memory_space<vmem>>, %arg3: memref<2x32xf32, #tpu.memory_space<vmem>>, %arg4: memref<1x32xf32, #tpu.memory_space<vmem>>, %arg5: memref<1x1xf32, #tpu.memory_space<vmem>>, %arg6: memref<1x12xf32, #tpu.memory_space<vmem>>, %arg7: memref<1x12xf32, #tpu.memory_space<vmem>>) attributes {dimension_semantics = [#tpu.dimension_semantics<arbitrary>], iteration_bounds = array<i64: 1>, scalar_prefetch = 0 : i64, scratch_operands = 0 : i64, tpu.core_type = #tpu.core_type<tc>, window_params = [{pipeline_mode = #tpu.pipeline_mode<synchronous>, transform_indices = @transform_0, window_bounds = array<i64: 2, 6, 8, 32>}, {pipeline_mode = #tpu.pipeline_mode<synchronous>, transform_indices = @transform_1, window_bounds = array<i64: 2, 2, 32>}, {pipeline_mode = #tpu.pipeline_mode<synchronous>, transform_indices = @transform_2, window_bounds = array<i64: 2, 32>}, {pipeline_mode = #tpu.pipeline_mode<synchronous>, transform_indices = @transform_3, window_bounds = array<i64: 1, 32>}, {pipeline_mode = #tpu.pipeline_mode<synchronous>, transform_indices = @transform_4, window_bounds = array<i64: 1, 1>}, {pipeline_mode = #tpu.pipeline_mode<synchronous>, transform_indices = @transform_5, window_bounds = array<i64: 1, 12>}, {pipeline_mode = #tpu.pipeline_mode<synchronous>, transform_indices = @transform_6, window_bounds = array<i64: 1, 12>}]} {
    %c0 = arith.constant 0 : index
    %c0_0 = arith.constant 0 : index
    %c0_1 = arith.constant 0 : index
    %0 = vector.load %arg2[%c0, %c0_0, %c0_1] : memref<2x2x32xf32, #tpu.memory_space<vmem>>, vector<2x2x32xf32>
    %cst = arith.constant dense<0.000000e+00> : vector<2x32xf32>
    %1 = vector.multi_reduction <add>, %0, %cst [0] : vector<2x2x32xf32> to vector<2x32xf32>
    %2 = vector.extract_strided_slice %1 {offsets = [0, 0], sizes = [1, 32], strides = [1, 1]} : vector<2x32xf32> to vector<1x32xf32>
    %cst_2 = arith.constant 0.010416667 : f32
    %3 = vector.broadcast %cst_2 : f32 to vector<1x32xf32>
    %4 = arith.mulf %2, %3 : vector<1x32xf32>
    %5 = vector.extract_strided_slice %1 {offsets = [1, 0], sizes = [1, 32], strides = [1, 1]} : vector<2x32xf32> to vector<1x32xf32>
    %cst_3 = arith.constant 0.010416667 : f32
    %6 = vector.broadcast %cst_3 : f32 to vector<1x32xf32>
    %7 = arith.mulf %5, %6 : vector<1x32xf32>
    %8 = arith.mulf %4, %4 : vector<1x32xf32>
    %9 = arith.subf %7, %8 : vector<1x32xf32>
    %c0_4 = arith.constant 0 : index
    %c0_5 = arith.constant 0 : index
    %c0_6 = arith.constant 0 : index
    %c0_7 = arith.constant 0 : index
    %10 = vector.load %arg1[%c0_4, %c0_5, %c0_6, %c0_7] : memref<2x6x8x32xf32, #tpu.memory_space<vmem>>, vector<2x6x8x32xf32>
    %cst_8 = arith.constant dense<0.000000e+00> : vector<2x6x32xf32>
    %11 = vector.multi_reduction <add>, %10, %cst_8 [2] : vector<2x6x8x32xf32> to vector<2x6x32xf32>
    %cst_9 = arith.constant 8.000000e+00 : f32
    %12 = vector.broadcast %cst_9 : f32 to vector<2x6x32xf32>
    %13 = arith.divf %11, %12 : vector<2x6x32xf32>
    %14 = vector.shape_cast %13 : vector<2x6x32xf32> to vector<12x32xf32>
    %15 = vector.broadcast %4 : vector<1x32xf32> to vector<12x32xf32>
    %16 = arith.subf %14, %15 : vector<12x32xf32>
    %cst_10 = arith.constant 9.99999974E-6 : f32
    %17 = vector.broadcast %cst_10 : f32 to vector<1x32xf32>
    %18 = arith.addf %9, %17 : vector<1x32xf32>
    %19 = math.rsqrt %18 : vector<1x32xf32>
    %20 = vector.broadcast %19 : vector<1x32xf32> to vector<12x32xf32>
    %21 = arith.mulf %16, %20 : vector<12x32xf32>
    %c0_11 = arith.constant 0 : index
    %c0_12 = arith.constant 0 : index
    %22 = vector.load %arg3[%c0_11, %c0_12] : memref<2x32xf32, #tpu.memory_space<vmem>>, vector<1x32xf32>
    %23 = vector.broadcast %22 : vector<1x32xf32> to vector<12x32xf32>
    %24 = arith.mulf %21, %23 : vector<12x32xf32>
    %c1 = arith.constant 1 : index
    %c0_13 = arith.constant 0 : index
    %25 = vector.load %arg3[%c1, %c0_13] : memref<2x32xf32, #tpu.memory_space<vmem>>, vector<1x32xf32>
    %26 = vector.broadcast %25 : vector<1x32xf32> to vector<12x32xf32>
    %27 = arith.addf %24, %26 : vector<12x32xf32>
    %c0_14 = arith.constant 0 : index
    %c0_15 = arith.constant 0 : index
    %28 = vector.load %arg4[%c0_14, %c0_15] : memref<1x32xf32, #tpu.memory_space<vmem>>, vector<1x32xf32>
    %29 = tpu.transpose %27, [1, 0] : vector<12x32xf32> -> vector<32x12xf32>
    %cst_16 = arith.constant dense<0.000000e+00> : vector<1x12xf32>
    %30 = tpu.matmul %28, %29, %cst_16 {dimension_numbers = #tpu.dot_dimension_numbers<[1], [0], [0], [1], [0, 0, 1, 1], [], []>} : vector<1x32xf32>, vector<32x12xf32>, vector<1x12xf32> -> vector<1x12xf32>
    %c0_17 = arith.constant 0 : index
    %c0_18 = arith.constant 0 : index
    %31 = vector.load %arg5[%c0_17, %c0_18] : memref<1x1xf32, #tpu.memory_space<vmem>>, vector<1x1xf32>
    %32 = vector.broadcast %31 : vector<1x1xf32> to vector<1x12xf32>
    %33 = arith.addf %30, %32 : vector<1x12xf32>
    %c0_19 = arith.constant 0 : index
    %c0_20 = arith.constant 0 : index
    %34 = vector.load %arg6[%c0_19, %c0_20] : memref<1x12xf32, #tpu.memory_space<vmem>>, vector<1x12xf32>
    %cst_21 = arith.constant 5.000000e-01 : f32
    %35 = vector.broadcast %cst_21 : f32 to vector<1x12xf32>
    %36 = arith.cmpf ogt, %34, %35 : vector<1x12xf32>
    %cst_22 = arith.constant 0xFF800000 : f32
    %37 = vector.broadcast %cst_22 : f32 to vector<1x12xf32>
    %38 = arith.select %36, %37, %33 : vector<1x12xi1>, vector<1x12xf32>
    %c0_23 = arith.constant 0 : index
    %c0_24 = arith.constant 0 : index
    %39 = vector.load %arg7[%c0_23, %c0_24] : memref<1x12xf32, #tpu.memory_space<vmem>>, vector<1x12xf32>
    tpu.vector_store %arg7[%c0_23, %c0_24], %38 {strides = array<i32>} : memref<1x12xf32, #tpu.memory_space<vmem>>, vector<1x12xf32>,
    return
  }
  func.func @transform_0(%arg0: i32) -> (i32, i32, i32, i32) {
    %c0_i32 = arith.constant 0 : i32
    %c0_i32_0 = arith.constant 0 : i32
    %c0_i32_1 = arith.constant 0 : i32
    %c0_i32_2 = arith.constant 0 : i32
    %c0_i32_3 = arith.constant 0 : i32
    return %c0_i32, %c0_i32_0, %c0_i32_1, %c0_i32_2 : i32, i32, i32, i32
  }
  func.func @transform_1(%arg0: i32) -> (i32, i32, i32) {
    %c0_i32 = arith.constant 0 : i32
    %c0_i32_0 = arith.constant 0 : i32
    %c0_i32_1 = arith.constant 0 : i32
    %c0_i32_2 = arith.constant 0 : i32
    return %c0_i32, %c0_i32_0, %c0_i32_1 : i32, i32, i32
  }
  func.func @transform_2(%arg0: i32) -> (i32, i32) {
    %c0_i32 = arith.constant 0 : i32
    %c0_i32_0 = arith.constant 0 : i32
    %c0_i32_1 = arith.constant 0 : i32
    return %c0_i32, %c0_i32_0 : i32, i32
  }
  func.func @transform_3(%arg0: i32) -> (i32, i32) {
    %c0_i32 = arith.constant 0 : i32
    %c0_i32_0 = arith.constant 0 : i32
    %c0_i32_1 = arith.constant 0 : i32
    return %c0_i32, %c0_i32_0 : i32, i32
  }
  func.func @transform_4(%arg0: i32) -> (i32, i32) {
    %c0_i32 = arith.constant 0 : i32
    %c0_i32_0 = arith.constant 0 : i32
    %c0_i32_1 = arith.constant 0 : i32
    return %c0_i32, %c0_i32_0 : i32, i32
  }
  func.func @transform_5(%arg0: i32) -> (i32, i32) {
    %c0_i32 = arith.constant 0 : i32
    %c0_i32_0 = arith.constant 0 : i32
    %c0_i32_1 = arith.constant 0 : i32
    return %c0_i32, %c0_i32_0 : i32, i32
  }
  func.func @transform_6(%arg0: i32) -> (i32, i32) {
    %c0_i32 = arith.constant 0 : i32
    %c0_i32_0 = arith.constant 0 : i32
    %c0_i32_1 = arith.constant 0 : i32
    return %c0_i32, %c0_i32_0 : i32, i32
  }
}

</mosaic_0001>

<bundles_post_ra>
// kernel: dba_agent_forward.10
= control target key start
LH: loop header
LB: loop body
LE: loop exit
PB: predicated region body
PF: predicated region fallthrough
CT: control target
= control target key end

     0   :  { %s781_s27 = smov 0   ;;  %s904_s0 = inlined_call_operand.vmem [shape: f32[12,8,32], index: 0, kind: input, shape index: {}]   ;;  %s905_s1 = inlined_call_operand.vmem [shape: f32[2,2,32], index: 1, kind: input, shape index: {}]   ;;  %s906_s2 = inlined_call_operand.vmem [shape: f32[2,32], index: 2, kind: input, shape index: {}]   ;;  %s907_s3 = inlined_call_operand.vmem [shape: bf16[32,64], index: 3, kind: input, shape index: {}]   ;;  %s908_s4 = inlined_call_operand.vmem [shape: f32[1,64], index: 4, kind: input, shape index: {}]   ;;  %s909_s5 = inlined_call_operand.vmem [shape: bf16[64,32], index: 5, kind: input, shape index: {}]   ;;  %s910_s6 = inlined_call_operand.vmem [shape: f32[1,32], index: 6, kind: input, shape index: {}]   ;;  %s911_s7 = inlined_call_operand.vmem [shape: f32[12,8,32], index: 7, kind: output, shape index: {0}]   ;;  %s912_s8 = inlined_call_operand.vmem [shape: f32[2,2,32], index: 8, kind: output, shape index: {1}]  }
   0x1 LB: > { %s787_s28 = sadd.s32 4294967295, %s734_s27   ;;  %p662_p0 = scmp.ge.s32.totalorder %s734_s27, 1  ;;  %s734_s27 = sphi %s781_s27, %s19_s27  }
   0x2   : > { %p266_p1 = scmp.lt.s32.totalorder %s734_s27, 3 }
   0x4   : > { %p267_p2 = pnand %p662_p0, %p266_p1 }
   0x5   : > { %s304_s15 = smul.u32 (!%p267_p2), 6, %s787_s28  ;;  %p316_p4 = scmp.lt.s32.totalorder (!%p267_p2), %s787_s28, 1 }
   0x6   : > { %270 = sbr.rel (%p267_p2) target bundleno = 378 (0x17a), region = 48 }
   0x7   : > { %p305_p3 = scmp.lt.s32.totalorder (!%p267_p2), %s304_s15, 11 }
   0xb   : > { %v699_v0 = vld [vmem:[%s907_s3 + $0x8] sm:$0xff]  ;;  %v327_v1 = vld [vmem:[%s905_s1] sm:$0x3]  ;;  %vm329_vm0 = vcmask 254976   ;;  %v328_v2 = vld [vmem:[%s905_s1 + $0x2] sm:$0x3] }
   0xc   : > { %v330_v3 = vsel %vm329_vm0, %v327_v1, 0.0  ;;  %419 = vmatpush.bf16.msra.mxu0 %v699_v0  ;;  %704 = vmatpush.bf16.msra.mxu3 %v699_v0  ;;  %v698_v4 = vld [vmem:[%s907_s3] sm:$0xff]  ;;  %v331_v5 = vsel %vm329_vm0, %v328_v2, 0.0  ;;  %s914_s15 = smov (!%p305_p3, %s304_s15), 11  ;;  %vm403_vm4 = vcmask 261120   ;;  %v703_v56 = vld [vmem:[%s909_s5 + $0x18] sm:$0xff] }
   0xd   : > { %v332_v6 = vadd.f32 %v331_v5, %v330_v3  ;;  %s663_s16 = sshll.u32 %s914_s15, 3  ;;  %v722_v29 = vld [vmem:[%s906_s2] ss:$0 sm:$0xff]  ;;  %v723_v32 = vld [vmem:[%s906_s2 + $0x1] ss:$0 sm:$0xff]  ;;  %706 = vmatpush.bf16.msra.mxu1 %v703_v56  ;;  %707 = vmatpush.bf16.msra.mxu2 %v703_v56  ;;  %v702_v57 = vld [vmem:[%s909_s5 + $0x10] sm:$0xff] }
   0xe   : > { %s308_s19 = scalar_lea.vmem %s904_s0, %s663_s16  ;;  %v701_v58 = vld [vmem:[%s909_s5 + $0x8] sm:$0xff]  ;;  %v700_v59 = vld [vmem:[%s909_s5] sm:$0xff]  ;;  %vm482_vm5 = vcmask 523264   ;;  %s864_s20 = scalar_lea.vmem %s911_s7, %s663_s16  ;;  %vm568_vm6 = vcmask 1040384  }
   0xf   : > { %v333_v7 = vmul.f32 0.010416667, %v332_v6  ;;  %v321_v16 = vld [vmem:[%s308_s19] sm:$0xff]  ;;  %v322_v18 = vld [vmem:[%s308_s19 + $0x8] sm:$0xff]  ;;  %v323_v20 = vld [vmem:[%s308_s19 + $0x10] sm:$0xff]  ;;  %s916_s28 = smov (!%p316_p4, %s787_s28), 1 }
  0x10   : > { %420 = vmatpush.bf16.msra.mxu0 %v698_v4  ;;  %705 = vmatpush.bf16.msra.mxu3 %v698_v4  ;;  %v324_v21 = vld [vmem:[%s308_s19 + $0x18] sm:$0xff]  ;;  %v325_v35 = vld [vmem:[%s308_s19 + $0x20] sm:$0xff]  ;;  %v326_v36 = vld [vmem:[%s308_s19 + $0x28] sm:$0xff]  ;;  %s665_s15 = sshll.u32 %s916_s28, 1 }
  0x11   : > { %v334_v8 = vmul.f32 %v333_v7, %v333_v7  ;;  %v339_v17 = vperm.slane %v333_v7, 0  ;;  %708 = vmatpush.bf16.msra.mxu1 %v702_v57  ;;  %709 = vmatpush.bf16.msra.mxu2 %v702_v57  ;;  %v724_v61 = vld [vmem:[%s908_s4] ss:$0 sm:$0xff]  ;;  %s319_s22 = scalar_lea.vmem %s912_s8, %s665_s15 }
  0x13   : > { %v336_v9 = vrot.slane %v334_v8, 7  ;;  %v340_v23 = vsub.f32 %v321_v16, %v339_v17  ;;  %v341_v24 = vsub.f32 %v322_v18, %v339_v17  ;;  %v342_v25 = vsub.f32 %v323_v20, %v339_v17  ;;  %v725_v18 = vld [vmem:[%s910_s6] ss:$0 sm:$0xff] }
  0x14   : > { %v343_v26 = vsub.f32 %v324_v21, %v339_v17  ;;  %v344_v41 = vsub.f32 %v325_v35, %v339_v17  ;;  %v345_v42 = vsub.f32 %v326_v36, %v339_v17  ;;  %496 = vmatpush.bf16.msrb.mxu0 %v703_v56 }
  0x15   : > { %v338_v10 = vsub.f32 %v333_v7, %v336_v9  ;;  %710 = vmatpush.bf16.msra.mxu1 %v701_v58  ;;  %711 = vmatpush.bf16.msra.mxu2 %v701_v58 }
  0x17   : > { %v346_v11 = vadd.f32 1e-05, %v338_v10 }
  0x18   : > { %497 = vmatpush.bf16.msrb.mxu0 %v702_v57 }
  0x19   : > { %726 = vrsqrt.f32 %v346_v11  ;;  %vm353_vm1 = vweird.f32 %v346_v11  ;;  %712 = vmatpush.bf16.msra.mxu1 %v700_v59  ;;  %713 = vmatpush.bf16.msra.mxu2 %v700_v59 }
  0x1c   : > { %498 = vmatpush.bf16.msrb.mxu0 %v701_v58 }
  0x1f   : > { %v727_v12 = vpop.eup %726 }
  0x20   : > { %v348_v13 = vmul.f32 %v727_v12, %v346_v11  ;;  %vm354_vm2 = vweird.f32 %v727_v12  ;;  %499 = vmatpush.bf16.msrb.mxu0 %v700_v59 }
  0x21   : > { %vm355_vm3 = vmor %vm353_vm1, %vm354_vm2 }
  0x22   : > { %v349_v14 = vmul.f32 %v727_v12, %v348_v13 }
  0x24   : > { %v350_v15 = vmul.f32 0.5, %v349_v14 }
  0x26   : > { %v351_v19 = vsub.f32 1.5, %v350_v15 }
  0x28   : > { %v352_v22 = vmul.f32 %v727_v12, %v351_v19 }
  0x2a   : > { %v356_v27 = vsel %vm355_vm3, %v727_v12, %v352_v22 }
  0x2b   : > { %v357_v28 = vperm.slane %v356_v27, 1 }
  0x2d   : > { %v358_v30 = vmul.f32 %v357_v28, %v340_v23  ;;  %v359_v31 = vmul.f32 %v357_v28, %v341_v24  ;;  %v360_v33 = vmul.f32 %v357_v28, %v342_v25  ;;  %v361_v34 = vmul.f32 %v357_v28, %v343_v26 }
  0x2e   : > { %v362_v49 = vmul.f32 %v357_v28, %v344_v41  ;;  %v363_v50 = vmul.f32 %v357_v28, %v345_v42 }
  0x2f   : > { %v366_v37 = vmul.f32 %v722_v29, %v358_v30  ;;  %v367_v38 = vmul.f32 %v722_v29, %v359_v31  ;;  %v368_v39 = vmul.f32 %v722_v29, %v360_v33  ;;  %v369_v40 = vmul.f32 %v722_v29, %v361_v34 }
  0x30   : > { %v370_v51 = vmul.f32 %v722_v29, %v362_v49  ;;  %v371_v52 = vmul.f32 %v722_v29, %v363_v50 }
  0x31   : > { %v374_v43 = vadd.f32 %v723_v32, %v366_v37  ;;  %v820_v44 = vadd.f32 %v723_v32, %v367_v38  ;;  %v822_v45 = vadd.f32 %v723_v32, %v368_v39  ;;  %v824_v46 = vadd.f32 %v723_v32, %v369_v40 }
  0x32   : > { %v831_v53 = vadd.f32 %v723_v32, %v370_v51  ;;  %v833_v54 = vadd.f32 %v723_v32, %v371_v52 }
  0x33   : > { %v380_v47 = vpack.c.bf16 %v820_v44, %v374_v43  ;;  %v381_v48 = vpack.c.bf16 %v824_v46, %v822_v45 }
  0x34   : > { %v382_v55 = vpack.c.bf16 %v833_v54, %v831_v53 }
  0x35   : > { %674 = vmatmul.msk.bf16.vlgmr.msra.gmra.mxu0 %vm403_vm4, %v380_v47  ;;  %675 = vmatmul.msk.bf16.vlgmr.msra.gmra.mxu3 %vm403_vm4, %v381_v48 }
  0x45   : > { %676 = vmatmul.msk.bf16.gmra.mxu3 %vm403_vm4, %v382_v55 }
  0xb2   : > { %v422_v60 = vpop.f32.mrf.mxu0 }
  0xb3   : > { %v423_v62 = vadd.f32 %v724_v61, %v422_v60 }
  0xb5   : > { %v437_v1 = vmax.f32 %v423_v62, 0.0 }
  0xb8   : > { %v427_v63 = vpop.f32.mrf.mxu3 }
  0xb9   : > { %v428_v4 = vadd.f32 %v724_v61, %v427_v63 }
  0xba   : > { %v424_v0 = vpop.f32.mrf.mxu0 }
  0xbb   : > { %v425_v2 = vadd.f32 %v724_v61, %v424_v0  ;;  %v439_v8 = vmax.f32 %v428_v4, 0.0 }
  0xbd   : > { %v438_v3 = vmax.f32 %v425_v2, 0.0 }
  0xbf   : > { %v443_v5 = vpack.c.bf16 %v438_v3, %v437_v1 }
  0xc0   : > { %v429_v6 = vpop.f32.mrf.mxu3 }
  0xc1   : > { %v430_v7 = vadd.f32 %v724_v61, %v429_v6  ;;  %693 = vmatmul.msk.bf16.vlgmr.msrb.gmra.mxu0 %vm482_vm5, %v443_v5 }
  0xc3   : > { %v440_v9 = vmax.f32 %v430_v7, 0.0 }
  0xc5   : > { %v444_v10 = vpack.c.bf16 %v440_v9, %v439_v8 }
  0xc7   : > { %694 = vmatmul.msk.bf16.vlgmr.msra.gmra.mxu1 %vm482_vm5, %v444_v10 }
  0xc8   : > { %v432_v11 = vpop.f32.mrf.mxu3 }
  0xc9   : > { %v433_v12 = vadd.f32 %v724_v61, %v432_v11 }
  0xcb   : > { %v441_v15 = vmax.f32 %v433_v12, 0.0 }
  0xd0   : > { %v434_v13 = vpop.f32.mrf.mxu3 }
  0xd1   : > { %v435_v14 = vadd.f32 %v724_v61, %v434_v13 }
  0xd3   : > { %v442_v16 = vmax.f32 %v435_v14, 0.0 }
  0xd5   : > { %v445_v17 = vpack.c.bf16 %v442_v16, %v441_v15 }
  0xd7   : > { %695 = vmatmul.msk.bf16.vlgmr.msra.gmra.mxu2 %vm482_vm5, %v445_v17 }
 0x13e   : > { %v501_v19 = vpop.f32.mrf.mxu0 }
 0x13f   : > { %v502_v20 = vadd.f32 %v725_v18, %v501_v19 }
 0x141   : > { %v516_v21 = vadd.f32 %v502_v20, %v374_v43 }
 0x143   : > { %522 = vst.msk [vmem:[%s864_s20] sm:$0xff] %vm403_vm4, %v516_v21  ;;  %v545_v31 = vmul.f32 %v516_v21, %v516_v21  ;;  %v528_v34 = vsel %vm403_vm4, %v516_v21, 0.0 }
 0x144   : > { %v506_v22 = vpop.f32.mrf.mxu1 }
 0x145   : > { %v507_v23 = vadd.f32 %v725_v18, %v506_v22  ;;  %v551_v37 = vsel %vm403_vm4, %v545_v31, 0.0 }
 0x146   : > { %v503_v24 = vpop.f32.mrf.mxu0 }
 0x147   : > { %v518_v25 = vadd.f32 %v507_v23, %v822_v45  ;;  %v504_v26 = vadd.f32 %v725_v18, %v503_v24 }
 0x149   : > { %524 = vst.msk [vmem:[%s864_s20 + $0x10] sm:$0xff] %vm403_vm4, %v518_v25  ;;  %v517_v27 = vadd.f32 %v504_v26, %v820_v44  ;;  %v547_v41 = vmul.f32 %v518_v25, %v518_v25  ;;  %v531_v44 = vsel %vm403_vm4, %v518_v25, 0.0 }
 0x14b   : > { %523 = vst.msk [vmem:[%s864_s20 + $0x8] sm:$0xff] %vm403_vm4, %v517_v27  ;;  %v546_v32 = vmul.f32 %v517_v27, %v517_v27  ;;  %v529_v35 = vsel %vm403_vm4, %v517_v27, 0.0  ;;  %v554_v49 = vsel %vm403_vm4, %v547_v41, 0.0 }
 0x14c   : > { %v508_v28 = vpop.f32.mrf.mxu1  ;;  %v530_v40 = vadd.f32 %v529_v35, %v528_v34 }
 0x14d   : > { %v509_v29 = vadd.f32 %v725_v18, %v508_v28  ;;  %v552_v38 = vsel %vm403_vm4, %v546_v32, 0.0 }
 0x14e   : > { %v553_v43 = vadd.f32 %v552_v38, %v551_v37  ;;  %v532_v47 = vadd.f32 %v531_v44, %v530_v40 }
 0x14f   : > { %v519_v30 = vadd.f32 %v509_v29, %v824_v46 }
 0x150   : > { %v555_v55 = vadd.f32 %v554_v49, %v553_v43 }
 0x151   : > { %525 = vst.msk [vmem:[%s864_s20 + $0x18] sm:$0xff] %vm403_vm4, %v519_v30  ;;  %v548_v42 = vmul.f32 %v519_v30, %v519_v30  ;;  %v533_v45 = vsel %vm403_vm4, %v519_v30, 0.0 }
 0x153   : > { %v556_v50 = vsel %vm403_vm4, %v548_v42, 0.0 }
 0x154   : > { %v557_v58 = vadd.f32 %v556_v50, %v555_v55 }
 0x15a   : > { %v511_v33 = vpop.f32.mrf.mxu2 }
 0x15b   : > { %v512_v36 = vadd.f32 %v725_v18, %v511_v33 }
 0x15d   : > { %v520_v39 = vadd.f32 %v512_v36, %v831_v53  ;;  %v534_v53 = vadd.f32 %v533_v45, %v532_v47 }
 0x15f   : > { %526 = vst.msk [vmem:[%s864_s20 + $0x20] sm:$0xff] %vm403_vm4, %v520_v39  ;;  %v549_v46 = vmul.f32 %v520_v39, %v520_v39  ;;  %v535_v51 = vsel %vm403_vm4, %v520_v39, 0.0 }
 0x160   : > { %v536_v59 = vadd.f32 %v535_v51, %v534_v53 }
 0x161   : > { %v558_v56 = vsel %vm403_vm4, %v549_v46, 0.0 }
 0x162   : > { %v513_v48 = vpop.f32.mrf.mxu2  ;;  %v559_v62 = vadd.f32 %v558_v56, %v557_v58 }
 0x163   : > { %v514_v52 = vadd.f32 %v725_v18, %v513_v48 }
 0x165   : > { %v521_v57 = vadd.f32 %v514_v52, %v833_v54 }
 0x167   : > { %527 = vst.msk [vmem:[%s864_s20 + $0x28] sm:$0xff] %vm403_vm4, %v521_v57  ;;  %v537_v60 = vsel %vm403_vm4, %v521_v57, 0.0  ;;  %v550_v61 = vmul.f32 %v521_v57, %v521_v57 }
 0x168   : > { %v538_v63 = vadd.f32 %v537_v60, %v536_v59 }
 0x169   : > { %v560_v0 = vsel %vm403_vm4, %v550_v61, 0.0 }
 0x16a   : > { %v539_v1 = vrot.slane %v538_v63, 4  ;;  %v561_v2 = vadd.f32 %v560_v0, %v559_v62 }
 0x16c   : > { %v540_v3 = vadd.f32 %v539_v1, %v538_v63  ;;  %v562_v4 = vrot.slane %v561_v2, 4 }
 0x16e   : > { %v541_v5 = vrot.slane %v540_v3, 2  ;;  %v563_v6 = vadd.f32 %v562_v4, %v561_v2 }
 0x170   : > { %v542_v54 = vadd.f32 %v541_v5, %v540_v3  ;;  %v564_v7 = vrot.slane %v563_v6, 2 }
 0x172   : > { %v543_v8 = vrot.slane %v542_v54, 1  ;;  %v565_v9 = vadd.f32 %v564_v7, %v563_v6 }
 0x174   : > { %v566_v10 = vrot.slane %v565_v9, 1  ;;  %v544_v11 = vadd.f32 %v543_v8, %v542_v54 }
 0x176   : > { %v567_v12 = vadd.f32 %v566_v10, %v565_v9 }
 0x178   : > { %v569_v13 = vsel %vm568_vm6, %v544_v11, %v567_v12 }
 0x179   : > { %570 = vst.msk [vmem:[%s319_s22] sm:$0x3] %vm329_vm0, %v569_v13 }
 0x17a PF: > { %s19_s27 = sadd.s32 1, %s734_s27  }
 0x17b   : > { %p16_p5 = scmp.ge.s32.totalorder %s19_s27, 4  }
 0x17d   :  { %18 = sbr.rel (!%p16_p5) target bundleno = 1 (0x1), region = 90 }

// kernel: dba_agent_forward.12
= control target key start
LH: loop header
LB: loop body
LE: loop exit
PB: predicated region body
PF: predicated region fallthrough
CT: control target
= control target key end

     0   :  { %s1252_s27 = smov 0   ;;  %s1763_s0 = inlined_call_operand.vmem [shape: f32[16,6,32], index: 0, kind: input, shape index: {}]   ;;  %s1764_s1 = inlined_call_operand.vmem [shape: f32[2,2,32], index: 1, kind: input, shape index: {}]   ;;  %s1765_s2 = inlined_call_operand.vmem [shape: f32[2,32], index: 2, kind: input, shape index: {}]   ;;  %s1766_s3 = inlined_call_operand.vmem [shape: bf16[32,64], index: 3, kind: input, shape index: {}]   ;;  %s1767_s4 = inlined_call_operand.vmem [shape: f32[1,64], index: 4, kind: input, shape index: {}]   ;;  %s1768_s5 = inlined_call_operand.vmem [shape: bf16[64,32], index: 5, kind: input, shape index: {}]   ;;  %s1769_s6 = inlined_call_operand.vmem [shape: f32[1,32], index: 6, kind: input, shape index: {}]   ;;  %s1770_s7 = inlined_call_operand.vmem [shape: f32[16,6,32], index: 7, kind: output, shape index: {0}]   ;;  %s1771_s8 = inlined_call_operand.vmem [shape: f32[2,2,32], index: 8, kind: output, shape index: {1}]  }
   0x1 LB: > { %s1258_s28 = sadd.s32 4294967295, %s1205_s27   ;;  %p1131_p0 = scmp.ge.s32.totalorder %s1205_s27, 1  ;;  %s1205_s27 = sphi %s1252_s27, %s19_s27  }
   0x2   : > { %p266_p1 = scmp.lt.s32.totalorder %s1205_s27, 3 }
   0x4   : > { %p267_p2 = pnand %p1131_p0, %p266_p1 }
   0x5   : > { %s1132_s15 = sshll.u32 (!%p267_p2), %s1258_s28, 3  ;;  %p316_p4 = scmp.lt.s32.totalorder (!%p267_p2), %s1258_s28, 1 }
   0x6   : > { %270 = sbr.rel (%p267_p2) target bundleno = 483 (0x1e3), region = 48  ;;  %p305_p3 = scmp.lt.s32.totalorder (!%p267_p2), %s1132_s15, 15 }
   0xb   : > { %v1170_v0 = vld [vmem:[%s1766_s3 + $0x8] sm:$0xff]  ;;  %v369_v1 = vld [vmem:[%s1764_s1] sm:$0x3]  ;;  %vm371_vm0 = vcmask 254976   ;;  %v370_v2 = vld [vmem:[%s1764_s1 + $0x2] sm:$0x3] }
   0xc   : > { %v372_v3 = vsel %vm371_vm0, %v369_v1, 0.0  ;;  %628 = vmatpush.bf16.msra.mxu0 %v1170_v0  ;;  %v1169_v4 = vld [vmem:[%s1766_s3] sm:$0xff]  ;;  %v373_v5 = vsel %vm371_vm0, %v370_v2, 0.0  ;;  %1175 = vmatpush.bf16.msra.mxu3 %v1170_v0  ;;  %s1775_s15 = smov (!%p305_p3, %s1132_s15), 15  ;;  %vm612_vm4 = vcmask 261120   ;;  %vm691_vm5 = vcmask 523264  }
   0xd   : > { %v374_v6 = vadd.f32 %v373_v5, %v372_v3  ;;  %s1133_s16 = sshll.u32 %s1775_s15, 3  ;;  %v1294_v18 = vld [vmem:[%s1765_s2] ss:$0 sm:$0xff]  ;;  %v1300_v21 = vld [vmem:[%s1765_s2 + $0x1] ss:$0 sm:$0xff]  ;;  %vm860_vm6 = vcmask 259072  }
   0xe   : > { %s1285_s19 = scalar_lea.vmem %s1763_s0, %s1133_s16  ;;  %v1316_v32 = vrot.slane %v1294_v18, 2  ;;  %v1319_v33 = vrot.slane %v1294_v18, 4  ;;  %v1322_v34 = vrot.slane %v1294_v18, 6  ;;  %v1326_v37 = vrot.slane %v1300_v21, 2  ;;  %s1582_s20 = scalar_lea.vmem %s1770_s7, %s1133_s16 }
   0xf   : > { %v375_v7 = vmul.f32 0.010416667, %v374_v6  ;;  %v321_v15 = vld [vmem:[%s1285_s19] sm:$0x3f]  ;;  %v322_v16 = vld [vmem:[%s1285_s19 + $0x8] sm:$0x3f] }
  0x10   : > { %629 = vmatpush.bf16.msra.mxu0 %v1169_v4  ;;  %1176 = vmatpush.bf16.msra.mxu3 %v1169_v4  ;;  %v323_v19 = vld [vmem:[%s1285_s19 + $0x10] sm:$0x3f]  ;;  %v337_v22 = vrot.slane %v321_v15, 2  ;;  %v338_v23 = vrot.slane %v321_v15, 4  ;;  %v339_v24 = vrot.slane %v322_v16, 2  ;;  %v340_v26 = vrot.slane %v322_v16, 4 }
  0x11   : > { %v376_v8 = vmul.f32 %v375_v7, %v375_v7  ;;  %v1287_v14 = vperm.slane %v375_v7, 0  ;;  %v341_v30 = vrot.slane %v323_v19, 2  ;;  %v324_v35 = vld [vmem:[%s1285_s19 + $0x18] sm:$0x3f]  ;;  %v1329_v38 = vrot.slane %v1300_v21, 4  ;;  %s1777_s28 = smov (!%p316_p4, %s1258_s28), 1 }
  0x12   : > { %v342_v39 = vrot.slane %v323_v19, 4  ;;  %v1335_v43 = vrot.slane %v1300_v21, 6  ;;  %v325_v44 = vld [vmem:[%s1285_s19 + $0x20] sm:$0x3f]  ;;  %v343_v48 = vrot.slane %v324_v35, 2  ;;  %v344_v53 = vrot.slane %v324_v35, 4 }
  0x13   : > { %v378_v9 = vrot.slane %v376_v8, 7  ;;  %v1303_v25 = vrot.slane %v1287_v14, 2  ;;  %v1306_v27 = vrot.slane %v1287_v14, 4  ;;  %v1309_v28 = vrot.slane %v1287_v14, 6  ;;  %s1136_s15 = sshll.u32 %s1777_s28, 1 }
  0x14   : > { %v389_v40 = vsub.f32 %v321_v15, %v1287_v14  ;;  %v393_v42 = vsub.f32 %v339_v24, %v1287_v14  ;;  %v345_v54 = vrot.slane %v325_v44, 2  ;;  %v346_v55 = vrot.slane %v325_v44, 4  ;;  %v326_v24 = vld [vmem:[%s1285_s19 + $0x28] sm:$0x3f]  ;;  %s319_s22 = scalar_lea.vmem %s1771_s8, %s1136_s15 }
  0x15   : > { %v380_v10 = vsub.f32 %v375_v7, %v378_v9  ;;  %v390_v41 = vsub.f32 %v337_v22, %v1303_v25  ;;  %v391_v45 = vsub.f32 %v338_v23, %v1306_v27  ;;  %v392_v46 = vsub.f32 %v322_v16, %v1309_v28 }
  0x16   : > { %v394_v49 = vsub.f32 %v340_v26, %v1303_v25  ;;  %v395_v50 = vsub.f32 %v323_v19, %v1306_v27  ;;  %v396_v51 = vsub.f32 %v341_v30, %v1309_v28  ;;  %v397_v56 = vsub.f32 %v342_v39, %v1287_v14 }
  0x17   : > { %v413_v11 = vadd.f32 1e-05, %v380_v10  ;;  %v398_v62 = vsub.f32 %v324_v35, %v1303_v25  ;;  %v399_v63 = vsub.f32 %v343_v48, %v1306_v27  ;;  %v401_v0 = vsub.f32 %v325_v44, %v1287_v14 }
  0x18   : > { %v400_v16 = vsub.f32 %v344_v53, %v1309_v28  ;;  %v403_v35 = vsub.f32 %v346_v55, %v1306_v27  ;;  %v347_v44 = vrot.slane %v326_v24, 2  ;;  %v348_v48 = vrot.slane %v326_v24, 4 }
  0x19   : > { %1197 = vrsqrt.f32 %v413_v11  ;;  %vm420_vm1 = vweird.f32 %v413_v11  ;;  %vm1037_vm7 = vcmask 1040384  }
  0x1f   : > { %v1198_v12 = vpop.eup %1197 }
  0x20   : > { %v415_v13 = vmul.f32 %v1198_v12, %v413_v11  ;;  %vm421_vm2 = vweird.f32 %v1198_v12 }
  0x21   : > { %vm1311_vm3 = vmor %vm420_vm1, %vm421_vm2 }
  0x22   : > { %v416_v17 = vmul.f32 %v1198_v12, %v415_v13 }
  0x24   : > { %v417_v20 = vmul.f32 0.5, %v416_v17 }
  0x26   : > { %v418_v29 = vsub.f32 1.5, %v417_v20 }
  0x28   : > { %v419_v36 = vmul.f32 %v1198_v12, %v418_v29  ;;  %v402_v29 = vsub.f32 %v345_v54, %v1303_v25  ;;  %v328_v54 = vld [vmem:[%s1285_s19 + $0x38] sm:$0x3f] }
  0x2a   : > { %v423_v47 = vsel %vm1311_vm3, %v1198_v12, %v419_v36 }
  0x2b   : > { %v1345_v52 = vperm.slane %v423_v47, 1 }
  0x2d   : > { %v1349_v57 = vrot.slane %v1345_v52, 2  ;;  %v1352_v58 = vrot.slane %v1345_v52, 4  ;;  %v1355_v59 = vrot.slane %v1345_v52, 6  ;;  %v432_v60 = vmul.f32 %v1345_v52, %v389_v40 }
  0x2e   : > { %v436_v61 = vmul.f32 %v1345_v52, %v393_v42  ;;  %v440_v17 = vmul.f32 %v1345_v52, %v397_v56  ;;  %v404_v40 = vsub.f32 %v326_v24, %v1309_v28  ;;  %v327_v42 = vld [vmem:[%s1285_s19 + $0x30] sm:$0x3f] }
  0x2f   : > { %v433_v1 = vmul.f32 %v1349_v57, %v390_v41  ;;  %v434_v2 = vmul.f32 %v1352_v58, %v391_v45  ;;  %v435_v3 = vmul.f32 %v1355_v59, %v392_v46  ;;  %v437_v4 = vmul.f32 %v1349_v57, %v394_v49 }
  0x30   : > { %v438_v5 = vmul.f32 %v1352_v58, %v395_v50  ;;  %v439_v6 = vmul.f32 %v1355_v59, %v396_v51  ;;  %v465_v7 = vmul.f32 %v1294_v18, %v432_v60  ;;  %v469_v8 = vmul.f32 %v1294_v18, %v436_v61 }
  0x31   : > { %v466_v9 = vmul.f32 %v1316_v32, %v433_v1  ;;  %v467_v10 = vmul.f32 %v1319_v33, %v434_v2  ;;  %v468_v11 = vmul.f32 %v1322_v34, %v435_v3  ;;  %v470_v12 = vmul.f32 %v1316_v32, %v437_v4 }
  0x32   : > { %v471_v13 = vmul.f32 %v1319_v33, %v438_v5  ;;  %v1376_v15 = vadd.f32 %v1300_v21, %v465_v7  ;;  %v472_v19 = vmul.f32 %v1322_v34, %v439_v6  ;;  %v1392_v26 = vadd.f32 %v1300_v21, %v469_v8 }
  0x33   : > { %v1382_v20 = vadd.f32 %v1326_v37, %v466_v9  ;;  %v1385_v22 = vadd.f32 %v1329_v38, %v467_v10  ;;  %v1388_v23 = vadd.f32 %v1335_v43, %v468_v11  ;;  %v441_v30 = vmul.f32 %v1349_v57, %v398_v62 }
  0x34   : > { %546 = vst [vmem:[#allocation1] ss:$4 sm:$0xff] %v1376_v15  ;;  %v1398_v31 = vadd.f32 %v1326_v37, %v470_v12  ;;  %v442_v36 = vmul.f32 %v1352_v58, %v399_v63  ;;  %v1404_v39 = vadd.f32 %v1329_v38, %v471_v13  ;;  %v443_v41 = vmul.f32 %v1355_v59, %v400_v16 }
  0x35   : > { %548 = vst [vmem:[#allocation1 + $0x1] ss:$4 sm:$0xff] %v1382_v20  ;;  %v1411_v45 = vadd.f32 %v1335_v43, %v472_v19  ;;  %v444_v46 = vmul.f32 %v1345_v52, %v401_v0  ;;  %v473_v47 = vmul.f32 %v1294_v18, %v440_v17  ;;  %v445_v49 = vmul.f32 %v1349_v57, %v402_v29 }
  0x36   : > { %550 = vst [vmem:[#allocation1 + $0x2] ss:$4 sm:$0xff] %v1385_v22  ;;  %v474_v50 = vmul.f32 %v1316_v32, %v441_v30  ;;  %v446_v51 = vmul.f32 %v1352_v58, %v403_v35  ;;  %v475_v53 = vmul.f32 %v1319_v33, %v442_v36  ;;  %v349_v55 = vrot.slane %v327_v42, 2 }
  0x37   : > { %552 = vst [vmem:[#allocation1 + $0x3] ss:$4 sm:$0xff] %v1388_v23  ;;  %v447_v56 = vmul.f32 %v1355_v59, %v404_v40  ;;  %v476_v60 = vmul.f32 %v1322_v34, %v443_v41  ;;  %v350_v61 = vrot.slane %v327_v42, 4  ;;  %v405_v62 = vsub.f32 %v347_v44, %v1287_v14 }
  0x38   : > { %554 = vst [vmem:[#allocation1 + $0x20] ss:$4 sm:$0xff] %v1392_v26  ;;  %v477_v63 = vmul.f32 %v1294_v18, %v444_v46  ;;  %v1430_v0 = vadd.f32 %v1300_v21, %v473_v47  ;;  %v406_v1 = vsub.f32 %v348_v48, %v1303_v25  ;;  %v478_v2 = vmul.f32 %v1316_v32, %v445_v49 }
  0x39   : > { %556 = vst [vmem:[#allocation1 + $0x21] ss:$4 sm:$0xff] %v1398_v31  ;;  %v1435_v3 = vadd.f32 %v1326_v37, %v474_v50  ;;  %v351_v4 = vrot.slane %v328_v54, 2  ;;  %v407_v5 = vsub.f32 %v327_v42, %v1306_v27  ;;  %v479_v6 = vmul.f32 %v1319_v33, %v446_v51 }
  0x3a   : > { %558 = vst [vmem:[#allocation1 + $0x22] ss:$4 sm:$0xff] %v1404_v39  ;;  %v1440_v7 = vadd.f32 %v1329_v38, %v475_v53  ;;  %v352_v8 = vrot.slane %v328_v54, 4  ;;  %v408_v9 = vsub.f32 %v349_v55, %v1309_v28  ;;  %v480_v11 = vmul.f32 %v1322_v34, %v447_v56 }
  0x3b   : > { %560 = vst [vmem:[#allocation1 + $0x23] ss:$4 sm:$0xff] %v1411_v45  ;;  %v1445_v12 = vadd.f32 %v1335_v43, %v476_v60  ;;  %v409_v13 = vsub.f32 %v350_v61, %v1287_v14  ;;  %v448_v16 = vmul.f32 %v1345_v52, %v405_v62  ;;  %v1450_v17 = vadd.f32 %v1300_v21, %v477_v63  ;;  %v1173_v62 = vld [vmem:[%s1768_s5 + $0x10] sm:$0xff]  ;;  %v1172_v63 = vld [vmem:[%s1768_s5 + $0x8] sm:$0xff] }
  0x3c   : > { %v410_v19 = vsub.f32 %v328_v54, %v1303_v25  ;;  %v449_v24 = vmul.f32 %v1349_v57, %v406_v1  ;;  %v1456_v29 = vadd.f32 %v1326_v37, %v478_v2  ;;  %v411_v30 = vsub.f32 %v351_v4, %v1306_v27  ;;  %v1171_v1 = vld [vmem:[%s1768_s5] sm:$0xff] }
  0x3d   : > { %v450_v14 = vmul.f32 %v1352_v58, %v407_v5  ;;  %v1462_v35 = vadd.f32 %v1329_v38, %v479_v6  ;;  %v412_v36 = vsub.f32 %v352_v8, %v1309_v28  ;;  %v451_v25 = vmul.f32 %v1355_v59, %v408_v9  ;;  %v1195_v4 = vld [vmem:[%s1767_s4] ss:$0 sm:$0xff] }
  0x3e   : > { %v561_v10 = vld.sshfl [vmem:[#allocation1] sm:$0xff pattern:$0x73625140]  ;;  %v1468_v41 = vadd.f32 %v1335_v43, %v480_v11  ;;  %v452_v27 = vmul.f32 %v1345_v52, %v409_v13  ;;  %v481_v42 = vmul.f32 %v1294_v18, %v448_v16  ;;  %v453_v46 = vmul.f32 %v1349_v57, %v410_v19 }
  0x3f   : > { %563 = vst [vmem:[#allocation1] ss:$4 sm:$0xff] %v1430_v0  ;;  %v482_v28 = vmul.f32 %v1316_v32, %v449_v24  ;;  %v454_v47 = vmul.f32 %v1352_v58, %v411_v30  ;;  %v483_v48 = vmul.f32 %v1319_v33, %v450_v14  ;;  %v455_v52 = vmul.f32 %v1355_v59, %v412_v36 }
  0x40   : > { %564 = vst [vmem:[#allocation1 + $0x1] ss:$4 sm:$0xff] %v1435_v3  ;;  %v484_v49 = vmul.f32 %v1322_v34, %v451_v25  ;;  %v485_v57 = vmul.f32 %v1294_v18, %v452_v27  ;;  %v1486_v50 = vadd.f32 %v1300_v21, %v481_v42  ;;  %v486_v51 = vmul.f32 %v1316_v32, %v453_v46 }
  0x41   : > { %565 = vst [vmem:[#allocation1 + $0x2] ss:$4 sm:$0xff] %v1440_v7  ;;  %v1490_v58 = vadd.f32 %v1326_v37, %v482_v28  ;;  %v487_v53 = vmul.f32 %v1319_v33, %v454_v47  ;;  %v1494_v54 = vadd.f32 %v1329_v38, %v483_v48  ;;  %v488_v55 = vmul.f32 %v1322_v34, %v455_v52  ;;  %v1543_v47 = vld [vmem:[%s1769_s6] ss:$0 sm:$0xff] }
  0x42   : > { %v562_v40 = vld.sshfl [vmem:[#allocation1 + $0x20] sm:$0xff pattern:$0x73625140]  ;;  %566 = vst [vmem:[#allocation1 + $0x3] ss:$4 sm:$0xff] %v1445_v12  ;;  %v1498_v56 = vadd.f32 %v1335_v43, %v484_v49  ;;  %v1501_v18 = vadd.f32 %v1300_v21, %v485_v57  ;;  %v1505_v32 = vadd.f32 %v1326_v37, %v486_v51 }
  0x43   : > { %v589_v44 = vpack.c.bf16 %v562_v40, %v561_v10  ;;  %567 = vst [vmem:[#allocation1 + $0x20] ss:$4 sm:$0xff] %v1450_v17  ;;  %v1509_v33 = vadd.f32 %v1329_v38, %v487_v53  ;;  %v1513_v34 = vadd.f32 %v1335_v43, %v488_v55  ;;  %v1174_v43 = vld [vmem:[%s1768_s5 + $0x18] sm:$0xff] }
  0x44   : > { %568 = vst [vmem:[#allocation1 + $0x21] ss:$4 sm:$0xff] %v1456_v29  ;;  %705 = vmatpush.bf16.msrb.mxu0 %v1174_v43  ;;  %1177 = vmatpush.bf16.msra.mxu1 %v1174_v43 }
  0x45   : > { %1145 = vmatmul.msk.bf16.vlgmr.msra.gmra.mxu0 %vm612_vm4, %v589_v44  ;;  %569 = vst [vmem:[#allocation1 + $0x22] ss:$4 sm:$0xff] %v1462_v35  ;;  %1178 = vmatpush.bf16.msra.mxu2 %v1174_v43 }
  0x46   : > { %570 = vst [vmem:[#allocation1 + $0x23] ss:$4 sm:$0xff] %v1468_v41 }
  0x48   : > { %706 = vmatpush.bf16.msrb.mxu0 %v1173_v62  ;;  %1179 = vmatpush.bf16.msra.mxu1 %v1173_v62 }
  0x49   : > { %v571_v59 = vld.sshfl [vmem:[#allocation1] sm:$0xff pattern:$0x73625140]  ;;  %1180 = vmatpush.bf16.msra.mxu2 %v1173_v62 }
  0x4a   : > { %573 = vst [vmem:[#allocation1] ss:$4 sm:$0xff] %v1486_v50 }
  0x4b   : > { %574 = vst [vmem:[#allocation1 + $0x1] ss:$4 sm:$0xff] %v1490_v58 }
  0x4c   : > { %575 = vst [vmem:[#allocation1 + $0x2] ss:$4 sm:$0xff] %v1494_v54  ;;  %707 = vmatpush.bf16.msrb.mxu0 %v1172_v63  ;;  %1181 = vmatpush.bf16.msra.mxu1 %v1172_v63 }
  0x4d   : > { %v572_v60 = vld.sshfl [vmem:[#allocation1 + $0x20] sm:$0xff pattern:$0x73625140]  ;;  %576 = vst [vmem:[#allocation1 + $0x3] ss:$4 sm:$0xff] %v1498_v56  ;;  %1182 = vmatpush.bf16.msra.mxu2 %v1172_v63 }
  0x4e   : > { %v590_v21 = vpack.c.bf16 %v572_v60, %v571_v59  ;;  %577 = vst [vmem:[#allocation1 + $0x20] ss:$4 sm:$0xff] %v1501_v18 }
  0x4f   : > { %578 = vst [vmem:[#allocation1 + $0x21] ss:$4 sm:$0xff] %v1505_v32 }
  0x50   : > { %1146 = vmatmul.msk.bf16.vlgmr.msra.gmra.mxu3 %vm612_vm4, %v590_v21  ;;  %579 = vst [vmem:[#allocation1 + $0x22] ss:$4 sm:$0xff] %v1509_v33  ;;  %708 = vmatpush.bf16.msrb.mxu0 %v1171_v1 }
  0x51   : > { %580 = vst [vmem:[#allocation1 + $0x23] ss:$4 sm:$0xff] %v1513_v34  ;;  %1183 = vmatpush.bf16.msra.mxu1 %v1171_v1  ;;  %1184 = vmatpush.bf16.msra.mxu2 %v1171_v1 }
  0x54   : > { %v581_v37 = vld.sshfl [vmem:[#allocation1] sm:$0xff pattern:$0x73625140] }
  0x58   : > { %v582_v38 = vld.sshfl [vmem:[#allocation1 + $0x20] sm:$0xff pattern:$0x73625140] }
  0x59   : > { %v591_v61 = vpack.c.bf16 %v582_v38, %v581_v37 }
  0x60   : > { %1147 = vmatmul.msk.bf16.gmra.mxu3 %vm612_vm4, %v591_v61 }
  0xc2   : > { %v631_v2 = vpop.f32.mrf.mxu0 }
  0xc3   : > { %v632_v5 = vadd.f32 %v1195_v4, %v631_v2 }
  0xc5   : > { %v646_v8 = vmax.f32 %v632_v5, 0.0 }
  0xca   : > { %v633_v6 = vpop.f32.mrf.mxu0 }
  0xcb   : > { %v634_v9 = vadd.f32 %v1195_v4, %v633_v6 }
  0xcd   : > { %v647_v10 = vmax.f32 %v634_v9, 0.0 }
  0xcf   : > { %v652_v11 = vpack.c.bf16 %v647_v10, %v646_v8 }
  0xd1   : > { %1164 = vmatmul.msk.bf16.vlgmr.msrb.gmra.mxu0 %vm691_vm5, %v652_v11 }
  0xd3   : > { %v636_v13 = vpop.f32.mrf.mxu3 }
  0xd4   : > { %v637_v16 = vadd.f32 %v1195_v4, %v636_v13 }
  0xd6   : > { %v648_v30 = vmax.f32 %v637_v16, 0.0 }
  0xdb   : > { %v638_v19 = vpop.f32.mrf.mxu3 }
  0xdc   : > { %v639_v24 = vadd.f32 %v1195_v4, %v638_v19 }
  0xde   : > { %v649_v14 = vmax.f32 %v639_v24, 0.0 }
  0xe0   : > { %v653_v36 = vpack.c.bf16 %v649_v14, %v648_v30 }
  0xe2   : > { %1165 = vmatmul.msk.bf16.vlgmr.msra.gmra.mxu1 %vm691_vm5, %v653_v36 }
  0xe3   : > { %v641_v25 = vpop.f32.mrf.mxu3 }
  0xe4   : > { %v642_v40 = vadd.f32 %v1195_v4, %v641_v25 }
  0xe6   : > { %v650_v44 = vmax.f32 %v642_v40, 0.0 }
  0xeb   : > { %v643_v27 = vpop.f32.mrf.mxu3 }
  0xec   : > { %v644_v42 = vadd.f32 %v1195_v4, %v643_v27 }
  0xee   : > { %v651_v46 = vmax.f32 %v644_v42, 0.0 }
  0xf0   : > { %v654_v28 = vpack.c.bf16 %v651_v46, %v650_v44 }
  0xf2   : > { %1166 = vmatmul.msk.bf16.vlgmr.msra.gmra.mxu2 %vm691_vm5, %v654_v28 }
 0x14e   : > { %v710_v48 = vpop.f32.mrf.mxu0 }
 0x14f   : > { %v711_v52 = vadd.f32 %v1543_v47, %v710_v48 }
 0x151   : > { %v731_v49 = vrot.slane %v711_v52, 2  ;;  %v732_v57 = vrot.slane %v711_v52, 4  ;;  %v733_v51 = vrot.slane %v711_v52, 6  ;;  %v1547_v53 = vadd.f32 %v711_v52, %v1376_v15 }
 0x153   : > { %v1550_v59 = vadd.f32 %v731_v49, %v1382_v20  ;;  %v1553_v55 = vadd.f32 %v732_v57, %v1385_v22  ;;  %v1556_v60 = vadd.f32 %v733_v51, %v1388_v23  ;;  %815 = vst [vmem:[#allocation1] ss:$4 sm:$0xff] %v1547_v53  ;;  %v929_v49 = vmul.f32 %v1547_v53, %v1547_v53 }
 0x155   : > { %817 = vst [vmem:[#allocation1 + $0x1] ss:$4 sm:$0xff] %v1550_v59  ;;  %v930_v57 = vmul.f32 %v1550_v59, %v1550_v59 }
 0x156   : > { %819 = vst [vmem:[#allocation1 + $0x2] ss:$4 sm:$0xff] %v1553_v55  ;;  %v712_v21 = vpop.f32.mrf.mxu0 }
 0x157   : > { %822 = vst [vmem:[#allocation1 + $0x20] ss:$4 sm:$0xff] %v1556_v60  ;;  %v713_v15 = vadd.f32 %v1543_v47, %v712_v21  ;;  %v931_v21 = vmul.f32 %v1553_v55, %v1553_v55 }
 0x159   : > { %v734_v20 = vrot.slane %v713_v15, 2  ;;  %v735_v37 = vrot.slane %v713_v15, 4  ;;  %v736_v38 = vrot.slane %v713_v15, 6  ;;  %v1564_v22 = vadd.f32 %v713_v15, %v1392_v26 }
 0x15a   : > { %v932_v15 = vmul.f32 %v1556_v60, %v1556_v60 }
 0x15b   : > { %v1567_v23 = vadd.f32 %v734_v20, %v1398_v31  ;;  %v1570_v61 = vadd.f32 %v735_v37, %v1404_v39  ;;  %v1573_v43 = vadd.f32 %v736_v38, %v1411_v45  ;;  %824 = vst [vmem:[#allocation1 + $0x21] ss:$4 sm:$0xff] %v1564_v22  ;;  %v933_v20 = vmul.f32 %v1564_v22, %v1564_v22 }
 0x15d   : > { %v820_v62 = vld.sshfl [vmem:[#allocation1] sm:$0xff pattern:$0x73625140]  ;;  %826 = vst [vmem:[#allocation1 + $0x22] ss:$4 sm:$0xff] %v1567_v23  ;;  %v934_v37 = vmul.f32 %v1567_v23, %v1567_v23 }
 0x15e   : > { %828 = vst [vmem:[#allocation1] ss:$4 sm:$0xff] %v1570_v61 }
 0x15f   : > { %829 = vst [vmem:[#allocation1 + $0x1] ss:$4 sm:$0xff] %v1573_v43  ;;  %v715_v26 = vpop.f32.mrf.mxu1 }
 0x160   : > { %v716_v31 = vadd.f32 %v1543_v47, %v715_v26  ;;  %861 = vst.msk [vmem:[%s1582_s20] sm:$0x3f] %vm860_vm6, %v820_v62 }
 0x162   : > { %v737_v39 = vrot.slane %v716_v31, 2  ;;  %v738_v45 = vrot.slane %v716_v31, 4  ;;  %v739_v63 = vrot.slane %v716_v31, 6  ;;  %v1590_v1 = vadd.f32 %v716_v31, %v1430_v0 }
 0x164   : > { %v827_v2 = vld.sshfl [vmem:[#allocation1 + $0x20] sm:$0xff pattern:$0x73625140]  ;;  %v1593_v4 = vadd.f32 %v737_v39, %v1435_v3  ;;  %830 = vst [vmem:[#allocation1 + $0x2] ss:$4 sm:$0xff] %v1590_v1  ;;  %v1597_v5 = vadd.f32 %v738_v45, %v1440_v7  ;;  %v1602_v6 = vadd.f32 %v739_v63, %v1445_v12 }
 0x165   : > { %862 = vst.msk [vmem:[%s1582_s20 + $0x8] sm:$0x3f] %vm860_vm6, %v827_v2 }
 0x166   : > { %832 = vst [vmem:[#allocation1 + $0x20] ss:$4 sm:$0xff] %v1593_v4  ;;  %v938_v38 = vmul.f32 %v1593_v4, %v1593_v4 }
 0x167   : > { %833 = vst [vmem:[#allocation1 + $0x21] ss:$4 sm:$0xff] %v1597_v5  ;;  %v717_v0 = vpop.f32.mrf.mxu1 }
 0x168   : > { %834 = vst [vmem:[#allocation1 + $0x22] ss:$4 sm:$0xff] %v1602_v6  ;;  %v718_v3 = vadd.f32 %v1543_v47, %v717_v0 }
 0x16a   : > { %v740_v8 = vrot.slane %v718_v3, 2  ;;  %v741_v9 = vrot.slane %v718_v3, 4  ;;  %v742_v7 = vrot.slane %v718_v3, 6  ;;  %v1609_v10 = vadd.f32 %v718_v3, %v1450_v17 }
 0x16b   : > { %v831_v11 = vld.sshfl [vmem:[#allocation1] sm:$0xff pattern:$0x73625140] }
 0x16c   : > { %v1612_v12 = vadd.f32 %v740_v8, %v1456_v29  ;;  %v1615_v13 = vadd.f32 %v741_v9, %v1462_v35  ;;  %836 = vst [vmem:[#allocation1] ss:$4 sm:$0xff] %v1609_v10  ;;  %v1621_v16 = vadd.f32 %v742_v7, %v1468_v41 }
 0x16d   : > { %863 = vst.msk [vmem:[%s1582_s20 + $0x10] sm:$0x3f] %vm860_vm6, %v831_v11 }
 0x16e   : > { %837 = vst [vmem:[#allocation1 + $0x1] ss:$4 sm:$0xff] %v1612_v12  ;;  %v942_v39 = vmul.f32 %v1612_v12, %v1612_v12  ;;  %v944_v2 = vmul.f32 %v1621_v16, %v1621_v16 }
 0x16f   : > { %v835_v19 = vld.sshfl [vmem:[#allocation1 + $0x20] sm:$0xff pattern:$0x73625140]  ;;  %838 = vst [vmem:[#allocation1 + $0x2] ss:$4 sm:$0xff] %v1615_v13 }
 0x170   : > { %840 = vst [vmem:[#allocation1 + $0x20] ss:$4 sm:$0xff] %v1621_v16 }
 0x171   : > { %864 = vst.msk [vmem:[%s1582_s20 + $0x18] sm:$0x3f] %vm860_vm6, %v835_v19 }
 0x175   : > { %v720_v17 = vpop.f32.mrf.mxu2 }
 0x176   : > { %v839_v29 = vld.sshfl [vmem:[#allocation1] sm:$0xff pattern:$0x73625140]  ;;  %v721_v35 = vadd.f32 %v1543_v47, %v720_v17 }
 0x177   : > { %865 = vst.msk [vmem:[%s1582_s20 + $0x20] sm:$0x3f] %vm860_vm6, %v839_v29 }
 0x178   : > { %v743_v24 = vrot.slane %v721_v35, 2  ;;  %v744_v30 = vrot.slane %v721_v35, 4  ;;  %v745_v14 = vrot.slane %v721_v35, 6  ;;  %v1632_v41 = vadd.f32 %v721_v35, %v1486_v50 }
 0x17a   : > { %v1635_v36 = vadd.f32 %v743_v24, %v1490_v58  ;;  %v1638_v25 = vadd.f32 %v744_v30, %v1494_v54  ;;  %v1641_v40 = vadd.f32 %v745_v14, %v1498_v56  ;;  %841 = vst [vmem:[#allocation1 + $0x21] ss:$4 sm:$0xff] %v1632_v41  ;;  %v945_v0 = vmul.f32 %v1632_v41, %v1632_v41 }
 0x17c   : > { %842 = vst [vmem:[#allocation1 + $0x22] ss:$4 sm:$0xff] %v1635_v36  ;;  %v946_v8 = vmul.f32 %v1635_v36, %v1635_v36  ;;  %v947_v7 = vmul.f32 %v1638_v25, %v1638_v25  ;;  %v948_v11 = vmul.f32 %v1641_v40, %v1641_v40 }
 0x17d   : > { %844 = vst [vmem:[#allocation1] ss:$4 sm:$0xff] %v1638_v25  ;;  %v722_v27 = vpop.f32.mrf.mxu2 }
 0x17e   : > { %845 = vst [vmem:[#allocation1 + $0x1] ss:$4 sm:$0xff] %v1641_v40  ;;  %v723_v50 = vadd.f32 %v1543_v47, %v722_v27 }
 0x180   : > { %v746_v58 = vrot.slane %v723_v50, 2  ;;  %v747_v42 = vrot.slane %v723_v50, 4  ;;  %v748_v54 = vrot.slane %v723_v50, 6  ;;  %v1649_v44 = vadd.f32 %v723_v50, %v1501_v18 }
 0x182   : > { %v1652_v56 = vadd.f32 %v746_v58, %v1505_v32  ;;  %v1655_v46 = vadd.f32 %v747_v42, %v1509_v33  ;;  %v1658_v28 = vadd.f32 %v748_v54, %v1513_v34  ;;  %846 = vst [vmem:[#allocation1 + $0x2] ss:$4 sm:$0xff] %v1649_v44 }
 0x183   : > { %v843_v48 = vld.sshfl [vmem:[#allocation1 + $0x20] sm:$0xff pattern:$0x73625140] }
 0x184   : > { %848 = vst [vmem:[#allocation1 + $0x20] ss:$4 sm:$0xff] %v1652_v56  ;;  %v950_v17 = vmul.f32 %v1652_v56, %v1652_v56  ;;  %v951_v30 = vmul.f32 %v1655_v46, %v1655_v46 }
 0x185   : > { %849 = vst [vmem:[#allocation1 + $0x21] ss:$4 sm:$0xff] %v1655_v46 }
 0x186   : > { %850 = vst [vmem:[#allocation1 + $0x22] ss:$4 sm:$0xff] %v1658_v28 }
 0x187   : > { %866 = vst.msk [vmem:[%s1582_s20 + $0x28] sm:$0x3f] %vm860_vm6, %v843_v48 }
 0x189   : > { %v847_v18 = vld.sshfl [vmem:[#allocation1] sm:$0xff pattern:$0x73625140] }
 0x18a   : > { %867 = vst.msk [vmem:[%s1582_s20 + $0x30] sm:$0x3f] %vm860_vm6, %v847_v18 }
 0x18b   : > { %869 = vst [vmem:[#allocation1] ss:$4 sm:$0xff] %v1547_v53 }
 0x18c   : > { %871 = vst [vmem:[#allocation1 + $0x1] ss:$4 sm:$0xff] %v1550_v59  ;;  %v935_v59 = vmul.f32 %v1570_v61, %v1570_v61 }
 0x18d   : > { %v851_v32 = vld.sshfl [vmem:[#allocation1 + $0x20] sm:$0xff pattern:$0x73625140]  ;;  %873 = vst [vmem:[#allocation1 + $0x2] ss:$4 sm:$0xff] %v1553_v55  ;;  %v936_v55 = vmul.f32 %v1573_v43, %v1573_v43 }
 0x18e   : > { %868 = vst.msk [vmem:[%s1582_s20 + $0x38] sm:$0x3f] %vm860_vm6, %v851_v32 }
 0x18f   : > { %875 = vst [vmem:[#allocation1 + $0x3] ss:$4 sm:$0xff] %v1556_v60  ;;  %v937_v60 = vmul.f32 %v1590_v1, %v1590_v1 }
 0x190   : > { %877 = vst [vmem:[#allocation1 + $0x20] ss:$4 sm:$0xff] %v1564_v22 }
 0x191   : > { %879 = vst [vmem:[#allocation1 + $0x21] ss:$4 sm:$0xff] %v1567_v23  ;;  %v939_v23 = vmul.f32 %v1597_v5, %v1597_v5 }
 0x192   : > { %881 = vst [vmem:[#allocation1 + $0x22] ss:$4 sm:$0xff] %v1570_v61  ;;  %v940_v61 = vmul.f32 %v1602_v6, %v1602_v6 }
 0x193   : > { %883 = vst [vmem:[#allocation1 + $0x23] ss:$4 sm:$0xff] %v1573_v43  ;;  %v941_v43 = vmul.f32 %v1609_v10, %v1609_v10 }
 0x196   : > { %v884_v33 = vld.sshfl [vmem:[#allocation1] sm:$0xff pattern:$0x73625140] }
 0x197   : > { %886 = vst [vmem:[#allocation1] ss:$4 sm:$0xff] %v1590_v1  ;;  %v912_v26 = vsel %vm612_vm4, %v884_v33, 0.0  ;;  %v943_v1 = vmul.f32 %v1615_v13, %v1615_v13 }
 0x198   : > { %887 = vst [vmem:[#allocation1 + $0x1] ss:$4 sm:$0xff] %v1593_v4 }
 0x199   : > { %888 = vst [vmem:[#allocation1 + $0x2] ss:$4 sm:$0xff] %v1597_v5 }
 0x19a   : > { %v885_v34 = vld.sshfl [vmem:[#allocation1 + $0x20] sm:$0xff pattern:$0x73625140]  ;;  %889 = vst [vmem:[#allocation1 + $0x3] ss:$4 sm:$0xff] %v1602_v6 }
 0x19b   : > { %890 = vst [vmem:[#allocation1 + $0x20] ss:$4 sm:$0xff] %v1609_v10  ;;  %v913_v62 = vsel %vm612_vm4, %v885_v34, 0.0 }
 0x19c   : > { %891 = vst [vmem:[#allocation1 + $0x21] ss:$4 sm:$0xff] %v1612_v12  ;;  %v914_v45 = vadd.f32 %v913_v62, %v912_v26 }
 0x19d   : > { %892 = vst [vmem:[#allocation1 + $0x22] ss:$4 sm:$0xff] %v1615_v13 }
 0x19e   : > { %893 = vst [vmem:[#allocation1 + $0x23] ss:$4 sm:$0xff] %v1621_v16  ;;  %v949_v16 = vmul.f32 %v1649_v44, %v1649_v44 }
 0x1a1   : > { %v894_v47 = vld.sshfl [vmem:[#allocation1] sm:$0xff pattern:$0x73625140] }
 0x1a2   : > { %896 = vst [vmem:[#allocation1] ss:$4 sm:$0xff] %v1632_v41  ;;  %v915_v31 = vsel %vm612_vm4, %v894_v47, 0.0  ;;  %v952_v41 = vmul.f32 %v1658_v28, %v1658_v28 }
 0x1a3   : > { %897 = vst [vmem:[#allocation1 + $0x1] ss:$4 sm:$0xff] %v1635_v36  ;;  %v916_v4 = vadd.f32 %v915_v31, %v914_v45 }
 0x1a4   : > { %898 = vst [vmem:[#allocation1 + $0x2] ss:$4 sm:$0xff] %v1638_v25 }
 0x1a5   : > { %v895_v52 = vld.sshfl [vmem:[#allocation1 + $0x20] sm:$0xff pattern:$0x73625140]  ;;  %899 = vst [vmem:[#allocation1 + $0x3] ss:$4 sm:$0xff] %v1641_v40 }
 0x1a6   : > { %900 = vst [vmem:[#allocation1 + $0x20] ss:$4 sm:$0xff] %v1649_v44  ;;  %v917_v5 = vsel %vm612_vm4, %v895_v52, 0.0 }
 0x1a7   : > { %901 = vst [vmem:[#allocation1 + $0x21] ss:$4 sm:$0xff] %v1652_v56  ;;  %v918_v3 = vadd.f32 %v917_v5, %v916_v4 }
 0x1a8   : > { %902 = vst [vmem:[#allocation1 + $0x22] ss:$4 sm:$0xff] %v1655_v46 }
 0x1a9   : > { %903 = vst [vmem:[#allocation1 + $0x23] ss:$4 sm:$0xff] %v1658_v28 }
 0x1ac   : > { %v904_v51 = vld.sshfl [vmem:[#allocation1] sm:$0xff pattern:$0x73625140] }
 0x1ad   : > { %977 = vst [vmem:[#allocation1] ss:$4 sm:$0xff] %v929_v49  ;;  %v919_v6 = vsel %vm612_vm4, %v904_v51, 0.0 }
 0x1ae   : > { %979 = vst [vmem:[#allocation1 + $0x1] ss:$4 sm:$0xff] %v930_v57  ;;  %v920_v10 = vadd.f32 %v919_v6, %v918_v3 }
 0x1af   : > { %981 = vst [vmem:[#allocation1 + $0x2] ss:$4 sm:$0xff] %v931_v21 }
 0x1b0   : > { %v905_v53 = vld.sshfl [vmem:[#allocation1 + $0x20] sm:$0xff pattern:$0x73625140]  ;;  %983 = vst [vmem:[#allocation1 + $0x3] ss:$4 sm:$0xff] %v932_v15 }
 0x1b1   : > { %985 = vst [vmem:[#allocation1 + $0x20] ss:$4 sm:$0xff] %v933_v20  ;;  %v921_v12 = vsel %vm612_vm4, %v905_v53, 0.0 }
 0x1b2   : > { %987 = vst [vmem:[#allocation1 + $0x21] ss:$4 sm:$0xff] %v934_v37  ;;  %v922_v24 = vadd.f32 %v921_v12, %v920_v10 }
 0x1b3   : > { %989 = vst [vmem:[#allocation1 + $0x22] ss:$4 sm:$0xff] %v935_v59 }
 0x1b4   : > { %991 = vst [vmem:[#allocation1 + $0x23] ss:$4 sm:$0xff] %v936_v55  ;;  %v923_v40 = vrot.slane %v922_v24, 4 }
 0x1b6   : > { %v924_v42 = vadd.f32 %v923_v40, %v922_v24 }
 0x1b7   : > { %v992_v22 = vld.sshfl [vmem:[#allocation1] sm:$0xff pattern:$0x73625140] }
 0x1b8   : > { %994 = vst [vmem:[#allocation1] ss:$4 sm:$0xff] %v937_v60  ;;  %v1020_v19 = vsel %vm612_vm4, %v992_v22, 0.0  ;;  %v925_v46 = vrot.slane %v924_v42, 2 }
 0x1b9   : > { %995 = vst [vmem:[#allocation1 + $0x1] ss:$4 sm:$0xff] %v938_v38 }
 0x1ba   : > { %996 = vst [vmem:[#allocation1 + $0x2] ss:$4 sm:$0xff] %v939_v23  ;;  %v926_v18 = vadd.f32 %v925_v46, %v924_v42 }
 0x1bb   : > { %v993_v63 = vld.sshfl [vmem:[#allocation1 + $0x20] sm:$0xff pattern:$0x73625140]  ;;  %997 = vst [vmem:[#allocation1 + $0x3] ss:$4 sm:$0xff] %v940_v61 }
 0x1bc   : > { %998 = vst [vmem:[#allocation1 + $0x20] ss:$4 sm:$0xff] %v941_v43  ;;  %v1021_v13 = vsel %vm612_vm4, %v993_v63, 0.0  ;;  %v927_v34 = vrot.slane %v926_v18, 1 }
 0x1bd   : > { %999 = vst [vmem:[#allocation1 + $0x21] ss:$4 sm:$0xff] %v942_v39  ;;  %v1022_v14 = vadd.f32 %v1021_v13, %v1020_v19 }
 0x1be   : > { %1000 = vst [vmem:[#allocation1 + $0x22] ss:$4 sm:$0xff] %v943_v1  ;;  %v928_v49 = vadd.f32 %v927_v34, %v926_v18 }
 0x1bf   : > { %1001 = vst [vmem:[#allocation1 + $0x23] ss:$4 sm:$0xff] %v944_v2 }
 0x1c2   : > { %v1002_v9 = vld.sshfl [vmem:[#allocation1] sm:$0xff pattern:$0x73625140] }
 0x1c3   : > { %1004 = vst [vmem:[#allocation1] ss:$4 sm:$0xff] %v945_v0  ;;  %v1023_v35 = vsel %vm612_vm4, %v1002_v9, 0.0 }
 0x1c4   : > { %1005 = vst [vmem:[#allocation1 + $0x1] ss:$4 sm:$0xff] %v946_v8  ;;  %v1024_v36 = vadd.f32 %v1023_v35, %v1022_v14 }
 0x1c5   : > { %1006 = vst [vmem:[#allocation1 + $0x2] ss:$4 sm:$0xff] %v947_v7 }
 0x1c6   : > { %v1003_v29 = vld.sshfl [vmem:[#allocation1 + $0x20] sm:$0xff pattern:$0x73625140]  ;;  %1007 = vst [vmem:[#allocation1 + $0x3] ss:$4 sm:$0xff] %v948_v11 }
 0x1c7   : > { %1008 = vst [vmem:[#allocation1 + $0x20] ss:$4 sm:$0xff] %v949_v16  ;;  %v1025_v25 = vsel %vm612_vm4, %v1003_v29, 0.0 }
 0x1c8   : > { %1009 = vst [vmem:[#allocation1 + $0x21] ss:$4 sm:$0xff] %v950_v17  ;;  %v1026_v50 = vadd.f32 %v1025_v25, %v1024_v36 }
 0x1c9   : > { %1010 = vst [vmem:[#allocation1 + $0x22] ss:$4 sm:$0xff] %v951_v30 }
 0x1ca   : > { %1011 = vst [vmem:[#allocation1 + $0x23] ss:$4 sm:$0xff] %v952_v41 }
 0x1cd   : > { %v1012_v27 = vld.sshfl [vmem:[#allocation1] sm:$0xff pattern:$0x73625140] }
 0x1ce   : > { %v1027_v58 = vsel %vm612_vm4, %v1012_v27, 0.0 }
 0x1cf   : > { %v1028_v54 = vadd.f32 %v1027_v58, %v1026_v50 }
 0x1d1   : > { %v1013_v44 = vld.sshfl [vmem:[#allocation1 + $0x20] sm:$0xff pattern:$0x73625140] }
 0x1d2   : > { %v1029_v56 = vsel %vm612_vm4, %v1013_v44, 0.0 }
 0x1d3   : > { %v1030_v28 = vadd.f32 %v1029_v56, %v1028_v54 }
 0x1d5   : > { %v1031_v48 = vrot.slane %v1030_v28, 4 }
 0x1d7   : > { %v1032_v32 = vadd.f32 %v1031_v48, %v1030_v28 }
 0x1d9   : > { %v1033_v33 = vrot.slane %v1032_v32, 2 }
 0x1db   : > { %v1034_v47 = vadd.f32 %v1033_v33, %v1032_v32 }
 0x1dd   : > { %v1035_v52 = vrot.slane %v1034_v47, 1 }
 0x1df   : > { %v1036_v57 = vadd.f32 %v1035_v52, %v1034_v47 }
 0x1e1   : > { %v1038_v51 = vsel %vm1037_vm7, %v928_v49, %v1036_v57 }
 0x1e2   : > { %1039 = vst.msk [vmem:[%s319_s22] sm:$0x3] %vm371_vm0, %v1038_v51 }
 0x1e3 PF: > { %s19_s27 = sadd.s32 1, %s1205_s27  }
 0x1e4   : > { %p16_p5 = scmp.ge.s32.totalorder %s19_s27, 4  }
 0x1e6   :  { %18 = sbr.rel (!%p16_p5) target bundleno = 1 (0x1), region = 116 }

// kernel: dba_agent_forward.9
= control target key start
LH: loop header
LB: loop body
LE: loop exit
PB: predicated region body
PF: predicated region fallthrough
CT: control target
= control target key end

     0   :  { %s2347_s21 = smov 0   ;;  %s2857_s0 = inlined_call_operand.vmem [shape: f32[12,8,8], index: 0, kind: input, shape index: {}]   ;;  %s2858_s1 = inlined_call_operand.vmem [shape: bf16[8,32], index: 1, kind: input, shape index: {}]   ;;  %s2859_s2 = inlined_call_operand.vmem [shape: f32[1,32], index: 2, kind: input, shape index: {}]   ;;  %s2860_s3 = inlined_call_operand.vmem [shape: bf16[32,96], index: 3, kind: input, shape index: {}]   ;;  %s2861_s4 = inlined_call_operand.vmem [shape: bf16[32,32], index: 4, kind: input, shape index: {}]   ;;  %s2862_s5 = inlined_call_operand.vmem [shape: f32[12,8,32], index: 5, kind: output, shape index: {0}]   ;;  %s2863_s6 = inlined_call_operand.vmem [shape: f32[2,2,32], index: 6, kind: output, shape index: {1}]  }
   0x1 LB: > { %s2353_s22 = sadd.s32 4294967295, %s2296_s21   ;;  %p2043_p0 = scmp.ge.s32.totalorder %s2296_s21, 1  ;;  %s2296_s21 = sphi %s2347_s21, %s17_s21  }
   0x2   : > { %p216_p1 = scmp.lt.s32.totalorder %s2296_s21, 3 }
   0x4   : > { %p217_p2 = pnand %p2043_p0, %p216_p1 }
   0x5   : > { %s250_s25 = smul.u32 (!%p217_p2), 6, %s2353_s22  ;;  %s2298_s12 = smov (!%p217_p2), 96  }
   0x6   : > { %220 = sbr.rel (%p217_p2) target bundleno = 2622 (0xa3e), region = 40  ;;  %s2299_s13 = smov (!%p217_p2), 64  }
   0x7   : > { %p251_p3 = scmp.lt.s32.totalorder (!%p217_p2), %s250_s25, 11  ;;  %s2300_s14 = smov (!%p217_p2), 88  }
   0x8   : > { %s2301_s15 = smov (!%p217_p2), 120   ;;  %s2302_s16 = smov (!%p217_p2), 56  }
   0x9   : > { %s2303_s17 = smov (!%p217_p2), 80   ;;  %s2304_s18 = smov (!%p217_p2), 112  }
   0xa   : > { %s2305_s19 = smov (!%p217_p2), 48   ;;  %s2306_s20 = smov (!%p217_p2), 72  }
   0xb   : > { %v276_v0 = vld [vmem:[%s2858_s1] sm:$0xf]  ;;  %vm291_vm0 = vcmask 1043456   ;;  %s2865_s25 = smov (!%p251_p3, %s250_s25), 11  ;;  %vm281_vm1 = vcmask 64512   ;;  %v2123_v11 = vld [vmem:[%s2860_s3 + $0x8] sm:$0xff] }
   0xc   : > { %v293_v1 = vsel %vm291_vm0, %v276_v0, 0  ;;  %s2044_s26 = sshll.u32 %s2865_s25, 3  ;;  %354 = vmatpush.bf16.msra.mxu1 %v2123_v11  ;;  %v2122_v12 = vld [vmem:[%s2860_s3] sm:$0xff]  ;;  %vm338_vm2 = vcmask 261120   ;;  %s2307_s23 = smov 104   ;;  %vm1830_vm3 = vcmask 130048  }
   0xd   : > { %302 = vmatpush.bf16.msra.mxu0 %v293_v1  ;;  %s254_s29 = scalar_lea.vmem %s2857_s0, %s2044_s26  ;;  %v2193_v14 = vld [vmem:[%s2859_s2] ss:$0 sm:$0xff]  ;;  %s2308_s24 = smov 40   ;;  %vm1837_vm4 = vcmask 195584   ;;  %vm1948_vm5 = vcmask 1040384   ;;  %vm1950_vm6 = vcmask 254976  }
   0xe   : > { %v267_v2 = vld [vmem:[%s254_s29] sm:$0xff]  ;;  %v268_v3 = vld [vmem:[%s254_s29 + $0x8] sm:$0xff]  ;;  %v269_v5 = vld [vmem:[%s254_s29 + $0x10] sm:$0xff]  ;;  %s2309_s27 = smov 16   ;;  %s2310_s28 = smov 8  }
   0xf   : > { %v273_v4 = vpack.c.bf16 %v268_v3, %v267_v2  ;;  %v270_v6 = vld [vmem:[%s254_s29 + $0x18] sm:$0xff]  ;;  %v271_v8 = vld [vmem:[%s254_s29 + $0x20] sm:$0xff]  ;;  %v272_v9 = vld [vmem:[%s254_s29 + $0x28] sm:$0xff]  ;;  %s2311_s29 = smov 24   ;;  %p262_p4 = scmp.lt.s32.totalorder %s2353_s22, 1 }
  0x10   : > { %v274_v7 = vpack.c.bf16 %v270_v6, %v269_v5  ;;  %v275_v10 = vpack.c.bf16 %v272_v9, %v271_v8  ;;  %355 = vmatpush.bf16.msra.mxu1 %v2122_v12 }
  0x11   : > { %2047 = vmatmul.msk.bf16.vlgmr.msra.gmra.mxu0 %vm281_vm1, %v273_v4  ;;  %s2867_s22 = smov (!%p262_p4, %s2353_s22), 1 }
  0x12   : > { %s2046_s25 = sshll.u32 %s2867_s22, 1 }
  0x21   : > { %2048 = vmatmul.msk.bf16.gmra.mxu0 %vm281_vm1, %v274_v7 }
  0x31   : > { %2049 = vmatmul.msk.bf16.gmra.mxu0 %vm281_vm1, %v275_v10 }
  0x8e   : > { %v304_v13 = vpop.f32.mrf.mxu0 }
  0x8f   : > { %v2382_v16 = vadd.f32 %v2193_v14, %v304_v13 }
  0x96   : > { %v306_v15 = vpop.f32.mrf.mxu0 }
  0x97   : > { %v2384_v17 = vadd.f32 %v2193_v14, %v306_v15 }
  0x99   : > { %v319_v18 = vpack.c.bf16 %v2384_v17, %v2382_v16 }
  0x9b   : > { %2058 = vmatmul.msk.bf16.vlgmr.msra.gmra.mxu1 %vm338_vm2, %v319_v18 }
  0x9e   : > { %v309_v19 = vpop.f32.mrf.mxu0 }
  0x9f   : > { %v2389_v20 = vadd.f32 %v2193_v14, %v309_v19 }
  0xa6   : > { %v311_v21 = vpop.f32.mrf.mxu0 }
  0xa7   : > { %v2391_v22 = vadd.f32 %v2193_v14, %v311_v21 }
  0xa9   : > { %v320_v23 = vpack.c.bf16 %v2391_v22, %v2389_v20 }
  0xab   : > { %2059 = vmatmul.msk.bf16.gmra.mxu1 %vm338_vm2, %v320_v23 }
  0xae   : > { %v314_v24 = vpop.f32.mrf.mxu0 }
  0xaf   : > { %v2396_v25 = vadd.f32 %v2193_v14, %v314_v24 }
  0xb6   : > { %v316_v26 = vpop.f32.mrf.mxu0 }
  0xb7   : > { %v2398_v27 = vadd.f32 %v2193_v14, %v316_v26 }
  0xb9   : > { %v321_v28 = vpack.c.bf16 %v2398_v27, %v2396_v25 }
  0xbb   : > { %2060 = vmatmul.msk.bf16.gmra.mxu1 %vm338_vm2, %v321_v28 }
 0x118   : > { %v357_v29 = vpop.f32.mrf.mxu1 }
 0x119   : > { %v372_v30 = vpack.c.bf16 %v357_v29, %v357_v29 }
 0x11b   : > { %v379_v31 = vunpack.c.l.b16 %v372_v30 }
 0x11d   : > { %v2403_v32 = vpack.c.b16 %v379_v31, %v379_v31 }
 0x11f   : > { %381 = vrot.lane.b32.xlu0 %v2403_v32, %s2298_s12 }
 0x120   : > { %v359_v33 = vpop.f32.mrf.mxu1 }
 0x121   : > { %v373_v34 = vpack.c.bf16 %v359_v33, %v359_v33 }
 0x123   : > { %v403_v35 = vunpack.c.l.b16 %v373_v34 }
 0x125   : > { %v2407_v36 = vpack.c.b16 %v403_v35, %v403_v35 }
 0x127   : > { %405 = vrot.lane.b32.xlu0 %v2407_v36, %s2298_s12 }
 0x128   : > { %v362_v37 = vpop.f32.mrf.mxu1 }
 0x129   : > { %v374_v41 = vpack.c.bf16 %v362_v37, %v362_v37 }
 0x12b   : > { %v427_v44 = vunpack.c.l.b16 %v374_v41 }
 0x12d   : > { %v2422_v47 = vpack.c.b16 %v427_v44, %v427_v44 }
 0x12f   : > { %600 = vrot.lane.b32.xlu0 %v2403_v32, %s2299_s13 }
 0x130   : > { %v364_v38 = vpop.f32.mrf.mxu1 }
 0x131   : > { %v2413_v39 = vpack.c.bf16 %v364_v38, %v364_v38 }
 0x133   : > { %v451_v40 = vunpack.c.l.b16 %v2413_v39 }
 0x135   : > { %v2416_v42 = vpack.c.b16 %v451_v40, %v451_v40 }
 0x137   : > { %663 = vrot.lane.b32.xlu0 %v2416_v42, %s2299_s13  ;;  %453 = vrot.lane.b32.xlu1 %v2416_v42, %s2298_s12 }
 0x138   : > { %v367_v43 = vpop.f32.mrf.mxu1 }
 0x139   : > { %v376_v45 = vpack.c.bf16 %v367_v43, %v367_v43 }
 0x13b   : > { %v475_v46 = vunpack.c.l.b16 %v376_v45 }
 0x13d   : > { %v2424_v48 = vpack.c.b16 %v475_v46, %v475_v46 }
 0x13f   : > { %429 = vrot.lane.b32.xlu1 %v2422_v47, %s2298_s12  ;;  %477 = vrot.lane.b32.xlu2 %v2424_v48, %s2298_s12 }
 0x140   : > { %v369_v49 = vpop.f32.mrf.mxu1 }
 0x141   : > { %v377_v50 = vpack.c.bf16 %v369_v49, %v369_v49 }
 0x143   : > { %v499_v51 = vunpack.c.l.b16 %v377_v50 }
 0x145   : > { %v2430_v52 = vpack.c.b16 %v499_v51, %v499_v51 }
 0x147   : > { %621 = vrot.lane.b32.xlu1 %v2407_v36, %s2299_s13  ;;  %501 = vrot.lane.b32.xlu2 %v2430_v52, %s2298_s12  ;;  %s2817_s12 = scalar_lea.vmem %s2862_s5, %s2044_s26 }
 0x14f   : > { %642 = vrot.lane.b32.xlu2 %v2422_v47, %s2299_s13 }
 0x157   : > { %728 = vrot.lane.b32.xlu2 %v2403_v32, %s2300_s14 }
 0x15f   : > { %751 = vrot.lane.b32.xlu2 %v2407_v36, %s2300_s14 }
 0x167   : > { %684 = vrot.lane.b32.xlu2 %v2424_v48, %s2299_s13 }
 0x16f   : > { %726 = vrot.lane.b32.xlu2 %v2403_v32, %s2301_s15 }
 0x177   : > { %705 = vrot.lane.b32.xlu2 %v2430_v52, %s2299_s13 }
 0x191   : > { %v382_v53 = vpop.permute.xlu0 %381 }
 0x192   : > { %v387_v54 = vsel %vm281_vm1, %v382_v53, 0 }
 0x193   : > { %396 = vmatpush.bf16.xpose.msra.mxu3 %v387_v54 }
 0x199   : > { %v406_v55 = vpop.permute.xlu0 %405  ;;  %v478_v56 = vpop.permute.xlu2 %477 }
 0x19a   : > { %2061 = vmatmul.msk.bf16.vlgmr.msra.gmra.mxu3 %vm281_vm1, %v372_v30  ;;  %v411_v57 = vsel %vm281_vm1, %v406_v55, 0  ;;  %v483_v58 = vsel %vm281_vm1, %v478_v56, 0 }
 0x19b   : > { %420 = vmatpush.bf16.xpose.msrb.mxu3 %v411_v57  ;;  %492 = vmatpush.bf16.xpose.msra.mxu2 %v483_v58 }
 0x1a1   : > { %v502_v59 = vpop.permute.xlu2 %501  ;;  %v601_v1 = vpop.permute.xlu0 %600 }
 0x1a2   : > { %2065 = vmatmul.msk.bf16.vlgmr.msra.gmra.mxu2 %vm281_vm1, %v376_v45  ;;  %v507_v60 = vsel %vm281_vm1, %v502_v59, 0  ;;  %v606_v5 = vsel %vm291_vm0, %v601_v1, 0 }
 0x1a9   : > { %v454_v61 = vpop.permute.xlu1 %453  ;;  %v643_v63 = vpop.permute.xlu2 %642 }
 0x1aa   : > { %v459_v62 = vsel %vm281_vm1, %v454_v61, 0  ;;  %2062 = vmatmul.msk.bf16.vlgmr.msrb.gmra.mxu3 %vm281_vm1, %v373_v34  ;;  %v648_v0 = vsel %vm291_vm0, %v643_v63, 0  ;;  %v664_v7 = vpop.permute.xlu0 %663 }
 0x1ab   : > { %468 = vmatpush.bf16.xpose.msra.mxu3 %v459_v62  ;;  %657 = vmatpush.bf16.msrb.mxu2 %v648_v0  ;;  %v669_v9 = vsel %vm291_vm0, %v664_v7, 0 }
 0x1b1   : > { %v430_v2 = vpop.permute.xlu1 %429  ;;  %v729_v3 = vpop.permute.xlu2 %728 }
 0x1b2   : > { %v435_v4 = vsel %vm281_vm1, %v430_v2, 0  ;;  %v734_v6 = vsel %vm281_vm1, %v729_v3, 0 }
 0x1b3   : > { %516 = vmatpush.bf16.xpose.msrb.mxu3 %v507_v60  ;;  %444 = vmatpush.bf16.xpose.msrb.mxu0 %v435_v4 }
 0x1b4   : > { %743 = vmatpush.bf16.xpose.msra.mxu2 %v734_v6 }
 0x1b9   : > { %v622_v8 = vpop.permute.xlu1 %621  ;;  %v752_v10 = vpop.permute.xlu2 %751 }
 0x1ba   : > { %2063 = vmatmul.msk.bf16.vlgmr.msrb.gmra.mxu0 %vm281_vm1, %v374_v41  ;;  %2064 = vmatmul.msk.bf16.vlgmr.msra.gmra.mxu3 %vm281_vm1, %v2413_v39  ;;  %v627_v11 = vsel %vm291_vm0, %v622_v8, 0  ;;  %v757_v14 = vsel %vm281_vm1, %v752_v10, 0 }
 0x1bb   : > { %615 = vmatpush.bf16.msra.mxu0 %v606_v5  ;;  %678 = vmatpush.bf16.msra.mxu3 %v669_v9 }
 0x1bc   : > { %636 = vmatpush.bf16.msrb.mxu1 %v627_v11 }
 0x1c1   : > { %v685_v12 = vpop.permute.xlu2 %684 }
 0x1c2   : > { %v690_v13 = vsel %vm291_vm0, %v685_v12, 0 }
 0x1c3   : > { %699 = vmatpush.bf16.msrb.mxu0 %v690_v13 }
 0x1c9   : > { %v2467_v15 = vpop.permute.xlu2 %726 }
 0x1ca   : > { %2066 = vmatmul.msk.bf16.vlgmr.msrb.gmra.mxu3 %vm281_vm1, %v377_v50 }
 0x1cb   : > { %766 = vmatpush.bf16.xpose.msrb.mxu3 %v757_v14 }
 0x1d1   : > { %v706_v18 = vpop.permute.xlu2 %705 }
 0x1d2   : > { %v711_v19 = vsel %vm291_vm0, %v706_v18, 0 }
 0x1d3   : > { %720 = vmatpush.bf16.msra.mxu1 %v711_v19 }
 0x21d   : > { %v398_v21 = vpop.f32.mrf.mxu3 }
 0x21e   : > { %v522_v23 = vmul.f32 0.35355338, %v398_v21 }
 0x220   : > { %v528_v24 = vsel %vm281_vm1, %v522_v23, -inf }
 0x221   : > { %529 = vmax.xlane.f32.xlu0 %v528_v24 }
 0x225   : > { %v400_v26 = vpop.f32.mrf.mxu3  ;;  %v494_v28 = vpop.f32.mrf.mxu2 }
 0x226   : > { %v526_v29 = vmul.f32 0.35355338, %v494_v28 }
 0x228   : > { %v540_v30 = vsel %vm281_vm1, %v526_v29, -inf }
 0x229   : > { %541 = vmax.xlane.f32.xlu0 %v540_v30 }
 0x22d   : > { %v422_v31 = vpop.f32.mrf.mxu3  ;;  %v496_v33 = vpop.f32.mrf.mxu2 }
 0x22e   : > { %v523_v34 = vmul.f32 0.35355338, %v422_v31 }
 0x230   : > { %v531_v35 = vsel %vm281_vm1, %v523_v34, -inf }
 0x231   : > { %532 = vmax.xlane.f32.xlu1 %v531_v35 }
 0x235   : > { %v424_v37 = vpop.f32.mrf.mxu3 }
 0x237   : > { %v446_v38 = vpop.f32.mrf.mxu0 }
 0x238   : > { %v524_v39 = vmul.f32 0.35355338, %v446_v38 }
 0x23a   : > { %v534_v40 = vsel %vm281_vm1, %v524_v39, -inf }
 0x23b   : > { %535 = vmax.xlane.f32.xlu2 %v534_v40 }
 0x23d   : > { %v470_v41 = vpop.f32.mrf.mxu3  ;;  %774 = vrot.lane.b32.xlu0 %v2422_v47, %s2300_s14 }
 0x23e   : > { %v525_v43 = vmul.f32 0.35355338, %v470_v41 }
 0x23f   : > { %v448_v44 = vpop.f32.mrf.mxu0 }
 0x240   : > { %v537_v45 = vsel %vm281_vm1, %v525_v43, -inf }
 0x243   : > { %538 = vmax.xlane.f32.xlu2 %v537_v45 }
 0x245   : > { %v472_v46 = vpop.f32.mrf.mxu3 }
 0x24d   : > { %v518_v49 = vpop.f32.mrf.mxu3 }
 0x24e   : > { %v527_v50 = vmul.f32 0.35355338, %v518_v49 }
 0x250   : > { %v543_v51 = vsel %vm281_vm1, %v527_v50, -inf }
 0x251   : > { %544 = vmax.xlane.f32.xlu1 %v543_v51 }
 0x255   : > { %v520_v53 = vpop.f32.mrf.mxu3 }
 0x25b   : > { %797 = vrot.lane.b32.xlu2 %v2416_v42, %s2300_s14 }
 0x263   : > { %820 = vrot.lane.b32.xlu2 %v2424_v48, %s2300_s14 }
 0x26a   : > { %749 = vrot.lane.b32.xlu1 %v2407_v36, %s2301_s15 }
 0x294   : > { %v530_v54 = vpop.xlane.xlu0 %529 }
 0x295   : > { %v546_v55 = vsub.f32 %v522_v23, %v530_v54 }
 0x297   : > { %v552_v56 = vmul.f32 1.442695, %v546_v55 }
 0x299   : > { %2194 = vpow2.f32 %v552_v56 }
 0x29c   : > { %v542_v62 = vpop.xlane.xlu0 %541 }
 0x29d   : > { %v550_v3 = vsub.f32 %v526_v29, %v542_v62 }
 0x29f   : > { %v2195_v57 = vpop.eup %2194  ;;  %v560_v5 = vmul.f32 1.442695, %v550_v3 }
 0x2a0   : > { %v564_v58 = vsel %vm281_vm1, %v2195_v57, 0.0 }
 0x2a1   : > { %565 = vadd.xlane.f32.xlu2 %v564_v58 }
 0x2a4   : > { %v533_v59 = vpop.xlane.xlu1 %532 }
 0x2a5   : > { %v547_v60 = vsub.f32 %v523_v34, %v533_v59 }
 0x2a7   : > { %v554_v61 = vmul.f32 1.442695, %v547_v60 }
 0x2a9   : > { %2196 = vpow2.f32 %v554_v61 }
 0x2ae   : > { %v536_v63 = vpop.xlane.xlu2 %535 }
 0x2af   : > { %v2197_v0 = vpop.eup %2196  ;;  %v548_v1 = vsub.f32 %v524_v39, %v536_v63  ;;  %v775_v31 = vpop.permute.xlu0 %774 }
 0x2b0   : > { %v567_v2 = vsel %vm281_vm1, %v2197_v0, 0.0  ;;  %v780_v35 = vsel %vm281_vm1, %v775_v31, 0 }
 0x2b1   : > { %v556_v4 = vmul.f32 1.442695, %v548_v1  ;;  %568 = vadd.xlane.f32.xlu0 %v567_v2 }
 0x2b3   : > { %2198 = vpow2.f32 %v556_v4 }
 0x2b4   : > { %2200 = vpow2.f32 %v560_v5 }
 0x2b6   : > { %v539_v6 = vpop.xlane.xlu2 %538 }
 0x2b7   : > { %v549_v7 = vsub.f32 %v525_v43, %v539_v6 }
 0x2b9   : > { %v2199_v8 = vpop.eup %2198  ;;  %v558_v9 = vmul.f32 1.442695, %v549_v7 }
 0x2ba   : > { %v570_v10 = vsel %vm281_vm1, %v2199_v8, 0.0  ;;  %v2201_v11 = vpop.eup %2200 }
 0x2bb   : > { %2202 = vpow2.f32 %v558_v9  ;;  %571 = vadd.xlane.f32.xlu1 %v570_v10  ;;  %v576_v13 = vsel %vm281_vm1, %v2201_v11, 0.0 }
 0x2be   : > { %v798_v26 = vpop.permute.xlu2 %797 }
 0x2bf   : > { %v803_v44 = vsel %vm281_vm1, %v798_v26, 0 }
 0x2c1   : > { %v2488_v12 = vpop.eup %2202 }
 0x2c2   : > { %v573_v14 = vsel %vm281_vm1, %v2488_v12, 0.0 }
 0x2c3   : > { %577 = vadd.xlane.f32.xlu1 %v576_v13  ;;  %574 = vadd.xlane.f32.xlu2 %v573_v14 }
 0x2c4   : > { %v545_v18 = vpop.xlane.xlu1 %544 }
 0x2c5   : > { %772 = vrot.lane.b32.xlu0 %v2422_v47, %s2301_s15  ;;  %v551_v19 = vsub.f32 %v527_v50, %v545_v18 }
 0x2c6   : > { %v821_v28 = vpop.permute.xlu2 %820 }
 0x2c7   : > { %v562_v21 = vmul.f32 1.442695, %v551_v19  ;;  %v826_v53 = vsel %vm281_vm1, %v821_v28, 0 }
 0x2c9   : > { %2204 = vpow2.f32 %v562_v21 }
 0x2cf   : > { %v2502_v23 = vpop.eup %2204 }
 0x2d0   : > { %v579_v24 = vsel %vm281_vm1, %v2502_v23, 0.0 }
 0x2db   : > { %843 = vrot.lane.b32.xlu2 %v2430_v52, %s2300_s14  ;;  %s265_s14 = scalar_lea.vmem %s2863_s6, %s2046_s25 }
 0x2dc   : > { %795 = vrot.lane.b32.xlu1 %v2416_v42, %s2301_s15  ;;  %v750_v38 = vpop.permute.xlu1 %749 }
 0x2e3   : > { %818 = vrot.lane.b32.xlu2 %v2424_v48, %s2301_s15 }
 0x2e4   : > { %963 = vrot.lane.b32.xlu1 %v2407_v36, %s2302_s16 }
 0x2eb   : > { %1005 = vrot.lane.b32.xlu2 %v2416_v42, %s2302_s16 }
 0x2ec   : > { %984 = vrot.lane.b32.xlu1 %v2422_v47, %s2302_s16 }
 0x2ef   : > { %580 = vadd.xlane.f32.xlu0 %v579_v24 }
 0x2f3   : > { %1093 = vrot.lane.b32.xlu2 %v2407_v36, %s2303_s17 }
 0x2f4   : > { %1026 = vrot.lane.b32.xlu1 %v2424_v48, %s2302_s16 }
 0x2fc   : > { %1047 = vrot.lane.b32.xlu1 %v2430_v52, %s2302_s16 }
 0x303   : > { %841 = vrot.lane.b32.xlu0 %v2430_v52, %s2301_s15 }
 0x304   : > { %1070 = vrot.lane.b32.xlu1 %v2403_v32, %s2303_s17 }
 0x30b   : > { %942 = vrot.lane.b32.xlu0 %v2403_v32, %s2302_s16 }
 0x314   : > { %v566_v29 = vpop.xlane.xlu2 %565 }
 0x315   : > { %2206 = vrcp.f32 %v566_v29 }
 0x31b   : > { %v2207_v30 = vpop.eup %2206 }
 0x31c   : > { %v588_v33 = vmul.f32 %v2207_v30, %v2195_v57 }
 0x31e   : > { %v594_v34 = vpack.c.bf16 %v588_v33, %v588_v33 }
 0x320   : > { %2067 = vmatmul.msk.bf16.vlgmr.msra.gmra.mxu0 %vm281_vm1, %v594_v34 }
 0x321   : > { %789 = vmatpush.bf16.xpose.msra.mxu0 %v780_v35 }
 0x324   : > { %v569_v37 = vpop.xlane.xlu0 %568 }
 0x325   : > { %2208 = vrcp.f32 %v569_v37 }
 0x32b   : > { %v2209_v39 = vpop.eup %2208 }
 0x32c   : > { %v589_v40 = vmul.f32 %v2209_v39, %v2197_v0 }
 0x32e   : > { %v572_v41 = vpop.xlane.xlu1 %571  ;;  %v595_v43 = vpack.c.bf16 %v589_v40, %v589_v40 }
 0x32f   : > { %2210 = vrcp.f32 %v572_v41 }
 0x330   : > { %2068 = vmatmul.msk.bf16.vlgmr.msrb.gmra.mxu1 %vm281_vm1, %v595_v43 }
 0x331   : > { %812 = vmatpush.bf16.xpose.msrb.mxu1 %v803_v44 }
 0x335   : > { %v2211_v45 = vpop.eup %2210 }
 0x336   : > { %v590_v46 = vmul.f32 %v2211_v45, %v2199_v8  ;;  %v578_v49 = vpop.xlane.xlu1 %577  ;;  %v575_v50 = vpop.xlane.xlu2 %574 }
 0x337   : > { %2212 = vrcp.f32 %v578_v49  ;;  %v773_v1 = vpop.permute.xlu0 %772 }
 0x338   : > { %2214 = vrcp.f32 %v575_v50  ;;  %v596_v51 = vpack.c.bf16 %v590_v46, %v590_v46 }
 0x33a   : > { %2069 = vmatmul.msk.bf16.vlgmr.msrb.gmra.mxu2 %vm281_vm1, %v596_v51 }
 0x33b   : > { %835 = vmatpush.bf16.xpose.msrb.mxu2 %v826_v53 }
 0x33d   : > { %v2213_v54 = vpop.eup %2212 }
 0x33e   : > { %v2215_v55 = vpop.eup %2214  ;;  %v592_v56 = vmul.f32 %v2213_v54, %v2201_v11  ;;  %v844_v57 = vpop.permute.xlu2 %843 }
 0x33f   : > { %v591_v58 = vmul.f32 %v2215_v55, %v2488_v12  ;;  %v849_v61 = vsel %vm281_vm1, %v844_v57, 0 }
 0x340   : > { %v598_v59 = vpack.c.bf16 %v592_v56, %v592_v56 }
 0x341   : > { %v597_v60 = vpack.c.bf16 %v591_v58, %v591_v58 }
 0x342   : > { %2071 = vmatmul.msk.bf16.vlgmr.msrb.gmra.mxu0 %vm281_vm1, %v598_v59 }
 0x343   : > { %2070 = vmatmul.msk.bf16.vlgmr.msra.gmra.mxu3 %vm281_vm1, %v597_v60 }
 0x344   : > { %858 = vmatpush.bf16.xpose.msra.mxu3 %v849_v61 }
 0x346   : > { %v819_v62 = vpop.permute.xlu2 %818 }
 0x34a   : > { %2073 = vmatmul.msk.bf16.vlgmr.msra.gmra.mxu2 %vm281_vm1, %v2467_v15 }
 0x34e   : > { %v796_v63 = vpop.permute.xlu1 %795  ;;  %v1006_v0 = vpop.permute.xlu2 %1005 }
 0x34f   : > { %v1011_v2 = vsel %vm291_vm0, %v1006_v0, 0 }
 0x352   : > { %2075 = vmatmul.msk.bf16.vlgmr.msra.gmra.mxu0 %vm281_vm1, %v773_v1 }
 0x353   : > { %2074 = vmatmul.msk.bf16.vlgmr.msrb.gmra.mxu3 %vm281_vm1, %v750_v38 }
 0x354   : > { %1020 = vmatpush.bf16.msrb.mxu3 %v1011_v2 }
 0x356   : > { %v964_v3 = vpop.permute.xlu1 %963  ;;  %v1094_v12 = vpop.permute.xlu2 %1093 }
 0x357   : > { %v969_v10 = vsel %vm291_vm0, %v964_v3, 0  ;;  %v1099_v14 = vsel %vm281_vm1, %v1094_v12, 0 }
 0x35a   : > { %2077 = vmatmul.msk.bf16.vlgmr.msrb.gmra.mxu2 %vm281_vm1, %v819_v62 }
 0x35e   : > { %v985_v4 = vpop.permute.xlu1 %984 }
 0x35f   : > { %v990_v5 = vsel %vm291_vm0, %v985_v4, 0 }
 0x360   : > { %999 = vmatpush.bf16.msra.mxu2 %v990_v5 }
 0x362   : > { %v581_v6 = vpop.xlane.xlu0 %580 }
 0x363   : > { %2216 = vrcp.f32 %v581_v6 }
 0x366   : > { %v1027_v15 = vpop.permute.xlu1 %1026 }
 0x367   : > { %v1032_v26 = vsel %vm291_vm0, %v1027_v15, 0 }
 0x369   : > { %v2217_v7 = vpop.eup %2216 }
 0x36a   : > { %v593_v8 = vmul.f32 %v2217_v7, %v2502_v23 }
 0x36c   : > { %v599_v9 = vpack.c.bf16 %v593_v8, %v593_v8 }
 0x36e   : > { %2072 = vmatmul.msk.bf16.vlgmr.msra.gmra.mxu1 %vm281_vm1, %v599_v9  ;;  %v1048_v11 = vpop.permute.xlu1 %1047 }
 0x36f   : > { %978 = vmatpush.bf16.msra.mxu1 %v969_v10  ;;  %v1053_v23 = vsel %vm291_vm0, %v1048_v11, 0 }
 0x375   : > { %v842_v13 = vpop.permute.xlu0 %841 }
 0x376   : > { %v1071_v18 = vpop.permute.xlu1 %1070  ;;  %2078 = vmatmul.msk.bf16.vlgmr.msra.gmra.mxu3 %vm281_vm1, %v842_v13 }
 0x377   : > { %v1076_v19 = vsel %vm281_vm1, %v1071_v18, 0  ;;  %1108 = vmatpush.bf16.xpose.msra.mxu3 %v1099_v14 }
 0x378   : > { %1085 = vmatpush.bf16.xpose.msrb.mxu2 %v1076_v19 }
 0x37d   : > { %v943_v21 = vpop.permute.xlu0 %942 }
 0x37e   : > { %v948_v24 = vsel %vm291_vm0, %v943_v21, 0  ;;  %2076 = vmatmul.msk.bf16.vlgmr.msrb.gmra.mxu1 %vm281_vm1, %v796_v63 }
 0x37f   : > { %1062 = vmatpush.bf16.msrb.mxu1 %v1053_v23  ;;  %957 = vmatpush.bf16.msrb.mxu0 %v948_v24 }
 0x383   : > { %1041 = vmatpush.bf16.msra.mxu0 %v1032_v26 }
 0x39d   : > { %v2544_v28 = vpop.f32.mrf.mxu0 }
 0x3a5   : > { %v619_v29 = vpop.f32.mrf.mxu0 }
 0x3ad   : > { %v2546_v30 = vpop.f32.mrf.mxu1 }
 0x3b5   : > { %v640_v31 = vpop.f32.mrf.mxu1 }
 0x3bd   : > { %v2548_v33 = vpop.f32.mrf.mxu2 }
 0x3bf   : > { %v2550_v34 = vpop.f32.mrf.mxu0 }
 0x3c5   : > { %v661_v35 = vpop.f32.mrf.mxu2 }
 0x3c6   : > { %v2552_v37 = vpop.f32.mrf.mxu3 }
 0x3c7   : > { %v703_v38 = vpop.f32.mrf.mxu0 }
 0x3cd   : > { %v745_v39 = vpop.f32.mrf.mxu2 }
 0x3ce   : > { %v682_v40 = vpop.f32.mrf.mxu3  ;;  %v864_v41 = vmul.f32 0.35355338, %v745_v39 }
 0x3cf   : > { %v791_v43 = vpop.f32.mrf.mxu0 }
 0x3d0   : > { %v866_v44 = vmul.f32 0.35355338, %v791_v43  ;;  %v870_v45 = vsel %vm281_vm1, %v864_v41, -inf }
 0x3d1   : > { %871 = vmax.xlane.f32.xlu1 %v870_v45 }
 0x3d2   : > { %v876_v46 = vsel %vm281_vm1, %v866_v44, -inf }
 0x3d3   : > { %877 = vmax.xlane.f32.xlu0 %v876_v46 }
 0x3d5   : > { %v747_v49 = vpop.f32.mrf.mxu2 }
 0x3d6   : > { %v768_v50 = vpop.f32.mrf.mxu3 }
 0x3d7   : > { %v793_v51 = vpop.f32.mrf.mxu0  ;;  %v865_v57 = vmul.f32 0.35355338, %v768_v50 }
 0x3d9   : > { %v873_v59 = vsel %vm281_vm1, %v865_v57, -inf }
 0x3dd   : > { %v837_v53 = vpop.f32.mrf.mxu2 }
 0x3de   : > { %v770_v54 = vpop.f32.mrf.mxu3  ;;  %v868_v55 = vmul.f32 0.35355338, %v837_v53 }
 0x3e0   : > { %v882_v56 = vsel %vm281_vm1, %v868_v55, -inf }
 0x3e1   : > { %883 = vmax.xlane.f32.xlu2 %v882_v56 }
 0x3e5   : > { %v839_v58 = vpop.f32.mrf.mxu2 }
 0x3e9   : > { %874 = vmax.xlane.f32.xlu2 %v873_v59 }
 0x3eb   : > { %v2558_v60 = vpop.f32.mrf.mxu1 }
 0x3f3   : > { %v724_v61 = vpop.f32.mrf.mxu1 }
 0x3f9   : > { %v860_v62 = vpop.f32.mrf.mxu3 }
 0x3fa   : > { %v869_v63 = vmul.f32 0.35355338, %v860_v62 }
 0x3fb   : > { %v814_v0 = vpop.f32.mrf.mxu1 }
 0x3fc   : > { %v867_v1 = vmul.f32 0.35355338, %v814_v0  ;;  %v885_v2 = vsel %vm281_vm1, %v869_v63, -inf }
 0x3fd   : > { %886 = vmax.xlane.f32.xlu0 %v885_v2 }
 0x3fe   : > { %v879_v3 = vsel %vm281_vm1, %v867_v1, -inf }
 0x3ff   : > { %880 = vmax.xlane.f32.xlu1 %v879_v3 }
 0x401   : > { %v862_v4 = vpop.f32.mrf.mxu3  ;;  %1139 = vrot.lane.b32.xlu2 %v2416_v42, %s2303_s17 }
 0x403   : > { %v816_v5 = vpop.f32.mrf.mxu1 }
 0x409   : > { %1114 = vrot.lane.b32.xlu2 %v2422_v47, %s2304_s18 }
 0x411   : > { %1068 = vrot.lane.b32.xlu0 %v2403_v32, %s2304_s18  ;;  %1162 = vrot.lane.b32.xlu2 %v2424_v48, %s2303_s17 }
 0x418   : > { %1116 = vrot.lane.b32.xlu1 %v2422_v47, %s2303_s17 }
 0x444   : > { %v872_v6 = vpop.xlane.xlu1 %871 }
 0x445   : > { %v888_v15 = vsub.f32 %v864_v41, %v872_v6 }
 0x446   : > { %v878_v7 = vpop.xlane.xlu0 %877 }
 0x447   : > { %v894_v8 = vmul.f32 1.442695, %v888_v15  ;;  %v890_v9 = vsub.f32 %v866_v44, %v878_v7 }
 0x449   : > { %2218 = vpow2.f32 %v894_v8  ;;  %v898_v10 = vmul.f32 1.442695, %v890_v9 }
 0x44b   : > { %2220 = vpow2.f32 %v898_v10 }
 0x44f   : > { %v2219_v11 = vpop.eup %2218 }
 0x450   : > { %v906_v12 = vsel %vm281_vm1, %v2219_v11, 0.0 }
 0x451   : > { %v2221_v13 = vpop.eup %2220  ;;  %907 = vadd.xlane.f32.xlu1 %v906_v12 }
 0x452   : > { %v912_v14 = vsel %vm281_vm1, %v2221_v13, 0.0 }
 0x453   : > { %913 = vadd.xlane.f32.xlu2 %v912_v14 }
 0x454   : > { %v884_v18 = vpop.xlane.xlu2 %883 }
 0x455   : > { %v892_v19 = vsub.f32 %v868_v55, %v884_v18 }
 0x457   : > { %v902_v21 = vmul.f32 1.442695, %v892_v19 }
 0x459   : > { %2222 = vpow2.f32 %v902_v21 }
 0x45c   : > { %v875_v23 = vpop.xlane.xlu2 %874 }
 0x45d   : > { %v889_v24 = vsub.f32 %v865_v57, %v875_v23 }
 0x45f   : > { %v2223_v26 = vpop.eup %2222  ;;  %v896_v29 = vmul.f32 1.442695, %v889_v24 }
 0x460   : > { %v918_v31 = vsel %vm281_vm1, %v2223_v26, 0.0 }
 0x461   : > { %2224 = vpow2.f32 %v896_v29  ;;  %919 = vadd.xlane.f32.xlu0 %v918_v31 }
 0x464   : > { %v1140_v53 = vpop.permute.xlu2 %1139 }
 0x465   : > { %v1145_v18 = vsel %vm281_vm1, %v1140_v53, 0 }
 0x467   : > { %v2575_v35 = vpop.eup %2224 }
 0x468   : > { %v909_v38 = vsel %vm281_vm1, %v2575_v35, 0.0 }
 0x469   : > { %910 = vadd.xlane.f32.xlu2 %v909_v38 }
 0x46a   : > { %1091 = vrot.lane.b32.xlu1 %v2407_v36, %s2304_s18 }
 0x46c   : > { %v1115_v54 = vpop.permute.xlu2 %1114 }
 0x470   : > { %v887_v39 = vpop.xlane.xlu0 %886 }
 0x471   : > { %v893_v43 = vsub.f32 %v869_v63, %v887_v39 }
 0x472   : > { %1137 = vrot.lane.b32.xlu1 %v2416_v42, %s2304_s18  ;;  %v881_v40 = vpop.xlane.xlu1 %880 }
 0x473   : > { %v891_v41 = vsub.f32 %v867_v1, %v881_v40  ;;  %v904_v45 = vmul.f32 1.442695, %v893_v43 }
 0x474   : > { %v1163_v56 = vpop.permute.xlu2 %1162 }
 0x475   : > { %v900_v44 = vmul.f32 1.442695, %v891_v41  ;;  %1185 = vrot.lane.b32.xlu0 %v2430_v52, %s2303_s17  ;;  %v1168_v4 = vsel %vm281_vm1, %v1163_v56, 0 }
 0x477   : > { %2226 = vpow2.f32 %v900_v44 }
 0x478   : > { %2228 = vpow2.f32 %v904_v45 }
 0x47a   : > { %1160 = vrot.lane.b32.xlu1 %v2424_v48, %s2304_s18 }
 0x47d   : > { %v2587_v46 = vpop.eup %2226  ;;  %1326 = vrot.lane.b32.xlu0 %v2422_v47, %s2305_s19 }
 0x47e   : > { %v915_v49 = vsel %vm281_vm1, %v2587_v46, 0.0  ;;  %v2593_v50 = vpop.eup %2228 }
 0x47f   : > { %916 = vadd.xlane.f32.xlu2 %v915_v49  ;;  %v921_v51 = vsel %vm281_vm1, %v2593_v50, 0.0 }
 0x482   : > { %1284 = vrot.lane.b32.xlu1 %v2403_v32, %s2305_s19 }
 0x483   : > { %v1069_v61 = vpop.permute.xlu0 %1068 }
 0x487   : > { %922 = vadd.xlane.f32.xlu2 %v921_v51 }
 0x48a   : > { %v1117_v55 = vpop.permute.xlu1 %1116 }
 0x48b   : > { %v1122_v2 = vsel %vm281_vm1, %v1117_v55, 0 }
 0x49f   : > { %1183 = vrot.lane.b32.xlu2 %v2430_v52, %s2304_s18 }
 0x4a7   : > { %1305 = vrot.lane.b32.xlu2 %v2407_v36, %s2305_s19 }
 0x4af   : > { %1347 = vrot.lane.b32.xlu2 %v2416_v42, %s2305_s19 }
 0x4b7   : > { %1412 = vrot.lane.b32.xlu2 %v2403_v32, %s2306_s20 }
 0x4bf   : > { %1435 = vrot.lane.b32.xlu2 %v2407_v36, %s2306_s20 }
 0x4c4   : > { %v908_v57 = vpop.xlane.xlu1 %907 }
 0x4c5   : > { %2230 = vrcp.f32 %v908_v57 }
 0x4c6   : > { %v914_v58 = vpop.xlane.xlu2 %913 }
 0x4c7   : > { %2232 = vrcp.f32 %v914_v58  ;;  %1368 = vrot.lane.b32.xlu2 %v2424_v48, %s2305_s19 }
 0x4cb   : > { %v2231_v59 = vpop.eup %2230 }
 0x4cc   : > { %v930_v62 = vmul.f32 %v2231_v59, %v2219_v11 }
 0x4cd   : > { %v2233_v63 = vpop.eup %2232 }
 0x4ce   : > { %v936_v0 = vpack.c.bf16 %v930_v62, %v930_v62  ;;  %v932_v1 = vmul.f32 %v2233_v63, %v2221_v13 }
 0x4cf   : > { %1389 = vrot.lane.b32.xlu2 %v2430_v52, %s2305_s19 }
 0x4d0   : > { %v938_v3 = vpack.c.bf16 %v932_v1, %v932_v1  ;;  %2079 = vmatmul.msk.bf16.vlgmr.msrb.gmra.mxu0 %vm281_vm1, %v936_v0 }
 0x4d1   : > { %1131 = vmatpush.bf16.xpose.msrb.mxu0 %v1122_v2 }
 0x4d2   : > { %2081 = vmatmul.msk.bf16.vlgmr.msra.gmra.mxu2 %vm281_vm1, %v938_v3 }
 0x4d3   : > { %1177 = vmatpush.bf16.xpose.msra.mxu2 %v1168_v4 }
 0x4d4   : > { %v920_v5 = vpop.xlane.xlu0 %919 }
 0x4d5   : > { %2234 = vrcp.f32 %v920_v5 }
 0x4db   : > { %v2235_v6 = vpop.eup %2234 }
 0x4dc   : > { %v934_v15 = vmul.f32 %v2235_v6, %v2223_v26  ;;  %v1092_v7 = vpop.permute.xlu1 %1091  ;;  %v911_v8 = vpop.xlane.xlu2 %910 }
 0x4dd   : > { %2236 = vrcp.f32 %v911_v8 }
 0x4de   : > { %v940_v9 = vpack.c.bf16 %v934_v15, %v934_v15 }
 0x4e0   : > { %2083 = vmatmul.msk.bf16.vlgmr.msra.gmra.mxu0 %vm281_vm1, %v940_v9 }
 0x4e2   : > { %2085 = vmatmul.msk.bf16.vlgmr.msrb.gmra.mxu2 %vm281_vm1, %v1069_v61 }
 0x4e3   : > { %v2237_v10 = vpop.eup %2236 }
 0x4e4   : > { %v931_v11 = vmul.f32 %v2237_v10, %v2575_v35  ;;  %v1138_v12 = vpop.permute.xlu1 %1137 }
 0x4e6   : > { %v937_v13 = vpack.c.bf16 %v931_v11, %v931_v11 }
 0x4e7   : > { %v1186_v14 = vpop.permute.xlu0 %1185 }
 0x4e8   : > { %2080 = vmatmul.msk.bf16.vlgmr.msra.gmra.mxu1 %vm281_vm1, %v937_v13  ;;  %v1191_v40 = vsel %vm281_vm1, %v1186_v14, 0 }
 0x4e9   : > { %1154 = vmatpush.bf16.xpose.msra.mxu1 %v1145_v18 }
 0x4ec   : > { %v1161_v19 = vpop.permute.xlu1 %1160 }
 0x4ef   : > { %v1327_v21 = vpop.permute.xlu0 %1326 }
 0x4f0   : > { %v1332_v23 = vsel %vm291_vm0, %v1327_v21, 0  ;;  %2087 = vmatmul.msk.bf16.vlgmr.msrb.gmra.mxu0 %vm281_vm1, %v1115_v54 }
 0x4f1   : > { %1341 = vmatpush.bf16.msrb.mxu2 %v1332_v23 }
 0x4f2   : > { %2089 = vmatmul.msk.bf16.vlgmr.msra.gmra.mxu2 %vm281_vm1, %v1161_v19  ;;  %v917_v24 = vpop.xlane.xlu2 %916 }
 0x4f3   : > { %2238 = vrcp.f32 %v917_v24 }
 0x4f4   : > { %v1285_v26 = vpop.permute.xlu1 %1284 }
 0x4f5   : > { %v1290_v29 = vsel %vm291_vm0, %v1285_v26, 0 }
 0x4f6   : > { %1299 = vmatpush.bf16.msra.mxu0 %v1290_v29 }
 0x4f9   : > { %v2239_v31 = vpop.eup %2238 }
 0x4fa   : > { %v933_v35 = vmul.f32 %v2239_v31, %v2587_v46  ;;  %v923_v38 = vpop.xlane.xlu2 %922 }
 0x4fb   : > { %2240 = vrcp.f32 %v923_v38 }
 0x4fc   : > { %v939_v39 = vpack.c.bf16 %v933_v35, %v933_v35 }
 0x4fe   : > { %2082 = vmatmul.msk.bf16.vlgmr.msrb.gmra.mxu3 %vm281_vm1, %v939_v39 }
 0x4ff   : > { %1200 = vmatpush.bf16.xpose.msrb.mxu3 %v1191_v40 }
 0x501   : > { %v2241_v41 = vpop.eup %2240 }
 0x502   : > { %v935_v43 = vmul.f32 %v2241_v41, %v2593_v50  ;;  %v1184_v44 = vpop.permute.xlu2 %1183 }
 0x504   : > { %v941_v45 = vpack.c.bf16 %v935_v43, %v935_v43 }
 0x506   : > { %2084 = vmatmul.msk.bf16.vlgmr.msrb.gmra.mxu1 %vm281_vm1, %v941_v45 }
 0x50a   : > { %v1306_v49 = vpop.permute.xlu2 %1305 }
 0x50b   : > { %v1311_v51 = vsel %vm291_vm0, %v1306_v49, 0 }
 0x50c   : > { %1320 = vmatpush.bf16.msrb.mxu1 %v1311_v51 }
 0x50e   : > { %2086 = vmatmul.msk.bf16.vlgmr.msra.gmra.mxu3 %vm281_vm1, %v1092_v7 }
 0x512   : > { %v1348_v46 = vpop.permute.xlu2 %1347 }
 0x513   : > { %v1353_v53 = vsel %vm291_vm0, %v1348_v46, 0 }
 0x514   : > { %1362 = vmatpush.bf16.msra.mxu3 %v1353_v53 }
 0x516   : > { %2088 = vmatmul.msk.bf16.vlgmr.msra.gmra.mxu1 %vm281_vm1, %v1138_v12 }
 0x51a   : > { %v1413_v54 = vpop.permute.xlu2 %1412 }
 0x51b   : > { %v1418_v55 = vsel %vm281_vm1, %v1413_v54, 0 }
 0x51c   : > { %1427 = vmatpush.bf16.xpose.msra.mxu2 %v1418_v55 }
 0x51e   : > { %2090 = vmatmul.msk.bf16.vlgmr.msrb.gmra.mxu3 %vm281_vm1, %v1184_v44 }
 0x522   : > { %v1436_v50 = vpop.permute.xlu2 %1435 }
 0x523   : > { %v1441_v56 = vsel %vm281_vm1, %v1436_v50, 0 }
 0x524   : > { %1450 = vmatpush.bf16.xpose.msrb.mxu3 %v1441_v56 }
 0x52a   : > { %v1369_v57 = vpop.permute.xlu2 %1368 }
 0x52b   : > { %v1374_v58 = vsel %vm291_vm0, %v1369_v57, 0 }
 0x52c   : > { %1383 = vmatpush.bf16.msrb.mxu0 %v1374_v58 }
 0x532   : > { %v1390_v59 = vpop.permute.xlu2 %1389 }
 0x533   : > { %v1395_v61 = vsel %vm291_vm0, %v1390_v59, 0 }
 0x534   : > { %1404 = vmatpush.bf16.msra.mxu1 %v1395_v61 }
 0x54d   : > { %v2634_v62 = vpop.f32.mrf.mxu0 }
 0x555   : > { %v961_v63 = vpop.f32.mrf.mxu0  ;;  %v2636_v0 = vpop.f32.mrf.mxu2 }
 0x55d   : > { %v1003_v1 = vpop.f32.mrf.mxu2  ;;  %v2638_v2 = vpop.f32.mrf.mxu0 }
 0x565   : > { %v2640_v3 = vpop.f32.mrf.mxu1  ;;  %v1045_v4 = vpop.f32.mrf.mxu0 }
 0x566   : > { %v2148_v5 = vpack.i.bf16 %v2640_v3, %v2634_v62  ;;  %v1087_v6 = vpop.f32.mrf.mxu2 }
 0x567   : > { %v1206_v15 = vmul.f32 0.35355338, %v1087_v6 }
 0x569   : > { %v1212_v7 = vsel %vm281_vm1, %v1206_v15, -inf }
 0x56a   : > { %1213 = vmax.xlane.f32.xlu0 %v1212_v7 }
 0x56d   : > { %v982_v8 = vpop.f32.mrf.mxu1  ;;  %v1133_v9 = vpop.f32.mrf.mxu0 }
 0x56e   : > { %v1089_v10 = vpop.f32.mrf.mxu2  ;;  %v1208_v11 = vmul.f32 0.35355338, %v1133_v9 }
 0x570   : > { %v1218_v12 = vsel %vm281_vm1, %v1208_v11, -inf }
 0x571   : > { %1219 = vmax.xlane.f32.xlu2 %v1218_v12 }
 0x575   : > { %v1135_v13 = vpop.f32.mrf.mxu0 }
 0x576   : > { %v1179_v14 = vpop.f32.mrf.mxu2 }
 0x577   : > { %v1210_v43 = vmul.f32 0.35355338, %v1179_v14 }
 0x579   : > { %v1224_v49 = vsel %vm281_vm1, %v1210_v43, -inf }
 0x57e   : > { %v1181_v18 = vpop.f32.mrf.mxu2 }
 0x581   : > { %v2646_v19 = vpop.f32.mrf.mxu3 }
 0x582   : > { %v2163_v21 = vpack.i.bf16 %v2646_v19, %v2636_v0 }
 0x583   : > { %v2650_v23 = vpop.f32.mrf.mxu1 }
 0x584   : > { %v2178_v24 = vpack.i.bf16 %v2650_v23, %v2638_v2 }
 0x589   : > { %v1024_v26 = vpop.f32.mrf.mxu3 }
 0x58b   : > { %v1066_v29 = vpop.f32.mrf.mxu1 }
 0x591   : > { %v1110_v31 = vpop.f32.mrf.mxu3 }
 0x592   : > { %v1207_v35 = vmul.f32 0.35355338, %v1110_v31 }
 0x593   : > { %v1156_v38 = vpop.f32.mrf.mxu1 }
 0x594   : > { %v1209_v39 = vmul.f32 0.35355338, %v1156_v38  ;;  %v1215_v40 = vsel %vm281_vm1, %v1207_v35, -inf }
 0x595   : > { %1216 = vmax.xlane.f32.xlu1 %v1215_v40 }
 0x596   : > { %v1221_v41 = vsel %vm281_vm1, %v1209_v39, -inf }
 0x597   : > { %1222 = vmax.xlane.f32.xlu0 %v1221_v41 }
 0x599   : > { %v1112_v44 = vpop.f32.mrf.mxu3 }
 0x59b   : > { %v1158_v45 = vpop.f32.mrf.mxu1 }
 0x59d   : > { %1225 = vmax.xlane.f32.xlu1 %v1224_v49 }
 0x5a1   : > { %v1202_v51 = vpop.f32.mrf.mxu3 }
 0x5a2   : > { %v1211_v46 = vmul.f32 0.35355338, %v1202_v51 }
 0x5a4   : > { %v1227_v53 = vsel %vm281_vm1, %v1211_v46, -inf }
 0x5a5   : > { %1228 = vmax.xlane.f32.xlu2 %v1227_v53 }
 0x5a9   : > { %v1204_v54 = vpop.f32.mrf.mxu3 }
 0x5bd   : > { %1410 = vrot.lane.b32.xlu2 %v2403_v32, %s2307_s23 }
 0x5dd   : > { %v1214_v55 = vpop.xlane.xlu0 %1213 }
 0x5de   : > { %v1230_v50 = vsub.f32 %v1206_v15, %v1214_v55 }
 0x5e0   : > { %v1236_v56 = vmul.f32 1.442695, %v1230_v50 }
 0x5e2   : > { %2242 = vpow2.f32 %v1236_v56 }
 0x5e4   : > { %v1220_v57 = vpop.xlane.xlu2 %1219 }
 0x5e5   : > { %v1232_v58 = vsub.f32 %v1208_v11, %v1220_v57 }
 0x5e7   : > { %v1240_v59 = vmul.f32 1.442695, %v1232_v58 }
 0x5e8   : > { %v2243_v61 = vpop.eup %2242 }
 0x5e9   : > { %2244 = vpow2.f32 %v1240_v59  ;;  %v1248_v63 = vsel %vm281_vm1, %v2243_v61, 0.0 }
 0x5ea   : > { %1249 = vadd.xlane.f32.xlu0 %v1248_v63 }
 0x5ef   : > { %v2245_v1 = vpop.eup %2244 }
 0x5f0   : > { %v1254_v4 = vsel %vm281_vm1, %v2245_v1, 0.0 }
 0x5f1   : > { %1255 = vadd.xlane.f32.xlu2 %v1254_v4 }
 0x608   : > { %v1217_v6 = vpop.xlane.xlu1 %1216 }
 0x609   : > { %v1231_v7 = vsub.f32 %v1207_v35, %v1217_v6  ;;  %1481 = vrot.lane.b32.xlu2 %v2416_v42, %s2306_s20 }
 0x60a   : > { %v1223_v15 = vpop.xlane.xlu0 %1222 }
 0x60b   : > { %v1238_v8 = vmul.f32 1.442695, %v1231_v7  ;;  %v1233_v9 = vsub.f32 %v1209_v39, %v1223_v15 }
 0x60d   : > { %2246 = vpow2.f32 %v1238_v8  ;;  %v1242_v10 = vmul.f32 1.442695, %v1233_v9 }
 0x60f   : > { %2248 = vpow2.f32 %v1242_v10 }
 0x610   : > { %v1226_v26 = vpop.xlane.xlu1 %1225 }
 0x611   : > { %1456 = vrot.lane.b32.xlu2 %v2422_v47, %s2307_s23  ;;  %v1234_v31 = vsub.f32 %v1210_v43, %v1226_v26 }
 0x613   : > { %v2247_v11 = vpop.eup %2246  ;;  %v1244_v38 = vmul.f32 1.442695, %v1234_v31 }
 0x614   : > { %v1251_v12 = vsel %vm281_vm1, %v2247_v11, 0.0 }
 0x615   : > { %v2249_v13 = vpop.eup %2248  ;;  %1252 = vadd.xlane.f32.xlu1 %v1251_v12 }
 0x616   : > { %v1257_v14 = vsel %vm281_vm1, %v2249_v13, 0.0 }
 0x617   : > { %1258 = vadd.xlane.f32.xlu0 %v1257_v14 }
 0x618   : > { %v1229_v18 = vpop.xlane.xlu2 %1228 }
 0x619   : > { %1479 = vrot.lane.b32.xlu2 %v2416_v42, %s2307_s23  ;;  %v1235_v29 = vsub.f32 %v1211_v46, %v1229_v18 }
 0x61b   : > { %v1246_v35 = vmul.f32 1.442695, %v1235_v29 }
 0x61d   : > { %2250 = vpow2.f32 %v1246_v35 }
 0x61e   : > { %2252 = vpow2.f32 %v1244_v38 }
 0x620   : > { %v1411_v45 = vpop.permute.xlu2 %1410 }
 0x621   : > { %1502 = vrot.lane.b32.xlu2 %v2424_v48, %s2307_s23 }
 0x623   : > { %v2251_v39 = vpop.eup %2250 }
 0x624   : > { %v2253_v40 = vpop.eup %2252  ;;  %v1263_v41 = vsel %vm281_vm1, %v2251_v39, 0.0 }
 0x625   : > { %v1260_v44 = vsel %vm281_vm1, %v2253_v40, 0.0 }
 0x62b   : > { %1458 = vrot.lane.b32.xlu0 %v2422_v47, %s2306_s20 }
 0x62e   : > { %1433 = vrot.lane.b32.xlu1 %v2407_v36, %s2307_s23 }
 0x655   : > { %1264 = vadd.xlane.f32.xlu0 %v1263_v41 }
 0x658   : > { %1261 = vadd.xlane.f32.xlu1 %v1260_v44 }
 0x65d   : > { %v1250_v49 = vpop.xlane.xlu0 %1249 }
 0x65e   : > { %2254 = vrcp.f32 %v1250_v49 }
 0x664   : > { %v2255_v51 = vpop.eup %2254  ;;  %v1256_v53 = vpop.xlane.xlu2 %1255 }
 0x665   : > { %v1272_v54 = vmul.f32 %v2255_v51, %v2243_v61  ;;  %2256 = vrcp.f32 %v1256_v53 }
 0x667   : > { %v1278_v43 = vpack.c.bf16 %v1272_v54, %v1272_v54 }
 0x669   : > { %2091 = vmatmul.msk.bf16.vlgmr.msra.gmra.mxu0 %vm281_vm1, %v1278_v43  ;;  %1504 = vrot.lane.b32.xlu0 %v2424_v48, %s2306_s20 }
 0x66b   : > { %v2257_v46 = vpop.eup %2256 }
 0x66c   : > { %v1274_v55 = vmul.f32 %v2257_v46, %v2245_v1  ;;  %v1482_v63 = vpop.permute.xlu2 %1481 }
 0x66d   : > { %v1487_v6 = vsel %vm281_vm1, %v1482_v63, 0 }
 0x66e   : > { %v1280_v50 = vpack.c.bf16 %v1274_v55, %v1274_v55 }
 0x670   : > { %2093 = vmatmul.msk.bf16.vlgmr.msrb.gmra.mxu2 %vm281_vm1, %v1280_v50 }
 0x671   : > { %1527 = vrot.lane.b32.xlu1 %v2430_v52, %s2306_s20  ;;  %1525 = vrot.lane.b32.xlu0 %v2430_v52, %s2307_s23 }
 0x680   : > { %2097 = vmatmul.msk.bf16.vlgmr.msra.gmra.mxu2 %vm281_vm1, %v1411_v45 }
 0x688   : > { %v1253_v56 = vpop.xlane.xlu1 %1252 }
 0x689   : > { %2258 = vrcp.f32 %v1253_v56 }
 0x68a   : > { %v1259_v57 = vpop.xlane.xlu0 %1258 }
 0x68b   : > { %2260 = vrcp.f32 %v1259_v57 }
 0x68f   : > { %v2259_v58 = vpop.eup %2258 }
 0x690   : > { %v1273_v59 = vmul.f32 %v2259_v58, %v2247_v11 }
 0x691   : > { %v2261_v61 = vpop.eup %2260 }
 0x692   : > { %v1279_v1 = vpack.c.bf16 %v1273_v59, %v1273_v59  ;;  %v1275_v4 = vmul.f32 %v2261_v61, %v2249_v13  ;;  %v1457_v13 = vpop.permute.xlu2 %1456 }
 0x694   : > { %v1281_v7 = vpack.c.bf16 %v1275_v4, %v1275_v4  ;;  %2092 = vmatmul.msk.bf16.vlgmr.msrb.gmra.mxu1 %vm281_vm1, %v1279_v1 }
 0x695   : > { %1496 = vmatpush.bf16.xpose.msrb.mxu1 %v1487_v6 }
 0x696   : > { %2094 = vmatmul.msk.bf16.vlgmr.msra.gmra.mxu3 %vm281_vm1, %v1281_v7 }
 0x69a   : > { %v1480_v35 = vpop.permute.xlu2 %1479 }
 0x69d   : > { %v1459_v15 = vpop.permute.xlu0 %1458 }
 0x69e   : > { %v1464_v8 = vsel %vm281_vm1, %v1459_v15, 0 }
 0x69f   : > { %1473 = vmatpush.bf16.xpose.msra.mxu0 %v1464_v8 }
 0x6a0   : > { %v1434_v9 = vpop.permute.xlu1 %1433 }
 0x6a2   : > { %v1503_v44 = vpop.permute.xlu2 %1502 }
 0x6a6   : > { %2098 = vmatmul.msk.bf16.vlgmr.msrb.gmra.mxu3 %vm281_vm1, %v1434_v9 }
 0x6c8   : > { %v1265_v10 = vpop.xlane.xlu0 %1264 }
 0x6c9   : > { %2262 = vrcp.f32 %v1265_v10 }
 0x6cb   : > { %v1262_v11 = vpop.xlane.xlu1 %1261 }
 0x6cc   : > { %2264 = vrcp.f32 %v1262_v11 }
 0x6cf   : > { %v2263_v12 = vpop.eup %2262 }
 0x6d0   : > { %v1277_v14 = vmul.f32 %v2263_v12, %v2251_v39 }
 0x6d2   : > { %v2265_v18 = vpop.eup %2264  ;;  %v1283_v26 = vpack.c.bf16 %v1277_v14, %v1277_v14 }
 0x6d3   : > { %v1276_v29 = vmul.f32 %v2265_v18, %v2253_v40 }
 0x6d4   : > { %2096 = vmatmul.msk.bf16.vlgmr.msra.gmra.mxu1 %vm281_vm1, %v1283_v26 }
 0x6d5   : > { %v1282_v31 = vpack.c.bf16 %v1276_v29, %v1276_v29 }
 0x6d7   : > { %2095 = vmatmul.msk.bf16.vlgmr.msrb.gmra.mxu0 %vm281_vm1, %v1282_v31 }
 0x6db   : > { %v1505_v38 = vpop.permute.xlu0 %1504 }
 0x6dc   : > { %v1510_v41 = vsel %vm281_vm1, %v1505_v38, 0 }
 0x6dd   : > { %1519 = vmatpush.bf16.xpose.msrb.mxu2 %v1510_v41 }
 0x6e3   : > { %v1528_v45 = vpop.permute.xlu1 %1527  ;;  %v1526_v40 = vpop.permute.xlu0 %1525 }
 0x6e4   : > { %v1533_v49 = vsel %vm281_vm1, %v1528_v45, 0  ;;  %2100 = vmatmul.msk.bf16.vlgmr.msrb.gmra.mxu1 %vm281_vm1, %v1480_v35  ;;  %2101 = vmatmul.msk.bf16.vlgmr.msrb.gmra.mxu2 %vm281_vm1, %v1503_v44 }
 0x6e5   : > { %1542 = vmatpush.bf16.xpose.msra.mxu3 %v1533_v49 }
 0x6e6   : > { %v2698_v39 = vpop.f32.mrf.mxu0 }
 0x6e7   : > { %2099 = vmatmul.msk.bf16.vlgmr.msra.gmra.mxu0 %vm281_vm1, %v1457_v13 }
 0x6ec   : > { %2102 = vmatmul.msk.bf16.vlgmr.msra.gmra.mxu3 %vm281_vm1, %v1526_v40 }
 0x6ee   : > { %v1303_v51 = vpop.f32.mrf.mxu0 }
 0x6f3   : > { %v2702_v53 = vpop.f32.mrf.mxu2 }
 0x6fb   : > { %v1345_v54 = vpop.f32.mrf.mxu2 }
 0x703   : > { %v1429_v43 = vpop.f32.mrf.mxu2 }
 0x704   : > { %v1548_v46 = vmul.f32 0.35355338, %v1429_v43 }
 0x706   : > { %v1554_v55 = vsel %vm281_vm1, %v1548_v46, -inf }
 0x707   : > { %1555 = vmax.xlane.f32.xlu1 %v1554_v55 }
 0x70b   : > { %v1431_v50 = vpop.f32.mrf.mxu2 }
 0x711   : > { %v2705_v56 = vpop.f32.mrf.mxu1 }
 0x712   : > { %v2153_v57 = vpack.i.bf16 %v2705_v56, %v2698_v39 }
 0x719   : > { %v1324_v58 = vpop.f32.mrf.mxu1  ;;  %v2709_v59 = vpop.f32.mrf.mxu3 }
 0x71a   : > { %v2168_v61 = vpack.i.bf16 %v2709_v59, %v2702_v53 }
 0x721   : > { %v1366_v63 = vpop.f32.mrf.mxu3 }
 0x729   : > { %v1452_v1 = vpop.f32.mrf.mxu3 }
 0x72a   : > { %v1549_v41 = vmul.f32 0.35355338, %v1452_v1 }
 0x72c   : > { %v1557_v49 = vsel %vm281_vm1, %v1549_v41, -inf }
 0x731   : > { %v1454_v4 = vpop.f32.mrf.mxu3 }
 0x751   : > { %v2713_v6 = vpop.f32.mrf.mxu1 }
 0x754   : > { %v2715_v7 = vpop.f32.mrf.mxu0 }
 0x755   : > { %v2183_v15 = vpack.i.bf16 %v2713_v6, %v2715_v7 }
 0x759   : > { %v1408_v8 = vpop.f32.mrf.mxu1 }
 0x75c   : > { %v1387_v9 = vpop.f32.mrf.mxu0 }
 0x761   : > { %v1498_v10 = vpop.f32.mrf.mxu1 }
 0x762   : > { %v1551_v11 = vmul.f32 0.35355338, %v1498_v10 }
 0x764   : > { %v1475_v12 = vpop.f32.mrf.mxu0  ;;  %v1563_v13 = vsel %vm281_vm1, %v1551_v11, -inf }
 0x765   : > { %v1550_v14 = vmul.f32 0.35355338, %v1475_v12  ;;  %1564 = vmax.xlane.f32.xlu1 %v1563_v13 }
 0x767   : > { %v1521_v18 = vpop.f32.mrf.mxu2  ;;  %v1560_v26 = vsel %vm281_vm1, %v1550_v14, -inf }
 0x768   : > { %v1552_v29 = vmul.f32 0.35355338, %v1521_v18  ;;  %1561 = vmax.xlane.f32.xlu0 %v1560_v26 }
 0x769   : > { %v1500_v31 = vpop.f32.mrf.mxu1 }
 0x76a   : > { %v1566_v35 = vsel %vm281_vm1, %v1552_v29, -inf }
 0x76b   : > { %1567 = vmax.xlane.f32.xlu2 %v1566_v35 }
 0x76c   : > { %v1477_v38 = vpop.f32.mrf.mxu0 }
 0x76f   : > { %v1523_v44 = vpop.f32.mrf.mxu2  ;;  %v1544_v45 = vpop.f32.mrf.mxu3 }
 0x770   : > { %v1553_v58 = vmul.f32 0.35355338, %v1544_v45 }
 0x772   : > { %v1569_v63 = vsel %vm281_vm1, %v1553_v58, -inf }
 0x773   : > { %1558 = vmax.xlane.f32.xlu2 %v1557_v49 }
 0x777   : > { %v1546_v40 = vpop.f32.mrf.mxu3 }
 0x77a   : > { %v1556_v51 = vpop.xlane.xlu1 %1555 }
 0x77b   : > { %v1572_v54 = vsub.f32 %v1548_v46, %v1556_v51 }
 0x77c   : > { %1626 = vrot.lane.b32.xlu0 %v2403_v32, %s2308_s24 }
 0x77d   : > { %v1578_v43 = vmul.f32 1.442695, %v1572_v54 }
 0x77f   : > { %2266 = vpow2.f32 %v1578_v43 }
 0x785   : > { %v2267_v55 = vpop.eup %2266 }
 0x786   : > { %v1590_v50 = vsel %vm281_vm1, %v2267_v55, 0.0 }
 0x787   : > { %1591 = vadd.xlane.f32.xlu1 %v1590_v50 }
 0x78b   : > { %1689 = vrot.lane.b32.xlu2 %v2416_v42, %s2308_s24 }
 0x7a0   : > { %1647 = vrot.lane.b32.xlu1 %v2407_v36, %s2308_s24 }
 0x7a6   : > { %1570 = vmax.xlane.f32.xlu0 %v1569_v63 }
 0x7ba   : > { %1668 = vrot.lane.b32.xlu0 %v2422_v47, %s2308_s24 }
 0x7d8   : > { %v1565_v42 = vpop.xlane.xlu1 %1564 }
 0x7d9   : > { %v1575_v26 = vsub.f32 %v1551_v11, %v1565_v42 }
 0x7db   : > { %v1562_v32 = vpop.xlane.xlu0 %1561 }
 0x7dc   : > { %v1574_v46 = vsub.f32 %v1550_v14, %v1562_v32  ;;  %v1584_v14 = vmul.f32 1.442695, %v1575_v26 }
 0x7de   : > { %v1582_v1 = vmul.f32 1.442695, %v1574_v46  ;;  %v1568_v4 = vpop.xlane.xlu2 %1567 }
 0x7df   : > { %v1576_v8 = vsub.f32 %v1552_v29, %v1568_v4 }
 0x7e0   : > { %2268 = vpow2.f32 %v1582_v1 }
 0x7e1   : > { %v1586_v9 = vmul.f32 1.442695, %v1576_v8 }
 0x7e3   : > { %2270 = vpow2.f32 %v1586_v9 }
 0x7e6   : > { %v2269_v10 = vpop.eup %2268  ;;  %v1559_v12 = vpop.xlane.xlu2 %1558 }
 0x7e7   : > { %v1573_v13 = vsub.f32 %v1549_v41, %v1559_v12  ;;  %v1596_v36 = vsel %vm281_vm1, %v2269_v10, 0.0 }
 0x7e8   : > { %1597 = vadd.xlane.f32.xlu2 %v1596_v36 }
 0x7e9   : > { %v2734_v18 = vpop.eup %2270  ;;  %v1580_v31 = vmul.f32 1.442695, %v1573_v13 }
 0x7ea   : > { %v1602_v47 = vsel %vm281_vm1, %v2734_v18, 0.0 }
 0x7eb   : > { %2272 = vpow2.f32 %v1580_v31  ;;  %1603 = vadd.xlane.f32.xlu0 %v1602_v47 }
 0x7ec   : > { %2274 = vpow2.f32 %v1584_v14 }
 0x7ee   : > { %v1627_v29 = vpop.permute.xlu0 %1626  ;;  %v1690_v35 = vpop.permute.xlu2 %1689 }
 0x7ef   : > { %v1632_v38 = vsel %vm291_vm0, %v1627_v29, 0  ;;  %v1695_v44 = vsel %vm291_vm0, %v1690_v35, 0 }
 0x7f0   : > { %1641 = vmatpush.bf16.msrb.mxu0 %v1632_v38  ;;  %1704 = vmatpush.bf16.msrb.mxu3 %v1695_v44 }
 0x7f1   : > { %v2273_v41 = vpop.eup %2272 }
 0x7f2   : > { %v1593_v45 = vsel %vm281_vm1, %v2273_v41, 0.0  ;;  %v2275_v11 = vpop.eup %2274 }
 0x7f3   : > { %1594 = vadd.xlane.f32.xlu2 %v1593_v45  ;;  %v1599_v40 = vsel %vm281_vm1, %v2275_v11, 0.0 }
 0x7fa   : > { %v1592_v49 = vpop.xlane.xlu1 %1591 }
 0x7fb   : > { %2276 = vrcp.f32 %v1592_v49  ;;  %1600 = vadd.xlane.f32.xlu2 %v1599_v40 }
 0x7ff   : > { %2154 = vrot.lane.b32.xlu0 %v2153_v57, %s2309_s27 }
 0x801   : > { %v2277_v51 = vpop.eup %2276 }
 0x802   : > { %v1614_v54 = vmul.f32 %v2277_v51, %v2267_v55 }
 0x804   : > { %v1620_v43 = vpack.c.bf16 %v1614_v54, %v1614_v54 }
 0x806   : > { %2103 = vmatmul.msk.bf16.vlgmr.msrb.gmra.mxu0 %vm281_vm1, %v1620_v43  ;;  %v2125_v43 = vld [vmem:[%s2861_s4 + $0x8] sm:$0xff] }
 0x807   : > { %2179 = vrot.lane.b32.xlu0 %v2178_v24, %s2310_s28 }
 0x812   : > { %v1648_v50 = vpop.permute.xlu1 %1647 }
 0x813   : > { %v1653_v63 = vsel %vm291_vm0, %v1648_v50, 0  ;;  %1710 = vrot.lane.b32.xlu2 %v2424_v48, %s2308_s24  ;;  %v2124_v50 = vld [vmem:[%s2861_s4] sm:$0xff] }
 0x814   : > { %1662 = vmatpush.bf16.msra.mxu1 %v1653_v63 }
 0x819   : > { %v1571_v32 = vpop.xlane.xlu0 %1570 }
 0x81a   : > { %v1577_v39 = vsub.f32 %v1553_v58, %v1571_v32 }
 0x81b   : > { %1731 = vrot.lane.b32.xlu2 %v2430_v52, %s2308_s24 }
 0x81c   : > { %v1588_v56 = vmul.f32 1.442695, %v1577_v39 }
 0x81e   : > { %2278 = vpow2.f32 %v1588_v56 }
 0x823   : > { %2149 = vrot.lane.b32.xlu2 %v2148_v5, %s2310_s28 }
 0x824   : > { %v2279_v2 = vpop.eup %2278 }
 0x825   : > { %v1605_v23 = vsel %vm281_vm1, %v2279_v2, 0.0 }
 0x826   : > { %1606 = vadd.xlane.f32.xlu1 %v1605_v23 }
 0x82b   : > { %2164 = vrot.lane.b32.xlu2 %v2163_v21, %s2310_s28 }
 0x82c   : > { %v1669_v48 = vpop.permute.xlu0 %1668 }
 0x82d   : > { %v1674_v24 = vsel %vm291_vm0, %v1669_v48, 0 }
 0x82e   : > { %1683 = vmatpush.bf16.msra.mxu2 %v1674_v24 }
 0x832   : > { %1878 = vmatpush.bf16.msrb.mxu2 %v2125_v43 }
 0x833   : > { %2169 = vrot.lane.b32.xlu2 %v2168_v61, %s2309_s27 }
 0x836   : > { %1879 = vmatpush.bf16.msrb.mxu2 %v2124_v50 }
 0x85b   : > { %v1598_v52 = vpop.xlane.xlu2 %1597 }
 0x85c   : > { %2280 = vrcp.f32 %v1598_v52 }
 0x85e   : > { %v1604_v0 = vpop.xlane.xlu0 %1603 }
 0x862   : > { %v2281_v62 = vpop.eup %2280 }
 0x863   : > { %v1616_v3 = vmul.f32 %v2281_v62, %v2269_v10 }
 0x865   : > { %v1622_v5 = vpack.c.bf16 %v1616_v3, %v1616_v3 }
 0x866   : > { %v1595_v57 = vpop.xlane.xlu2 %1594 }
 0x867   : > { %2282 = vrcp.f32 %v1595_v57  ;;  %2105 = vmatmul.msk.bf16.vlgmr.msra.gmra.mxu2 %vm281_vm1, %v1622_v5 }
 0x868   : > { %2284 = vrcp.f32 %v1604_v0 }
 0x86d   : > { %v2283_v19 = vpop.eup %2282 }
 0x86e   : > { %v1615_v21 = vmul.f32 %v2283_v19, %v2273_v41  ;;  %v1601_v55 = vpop.xlane.xlu2 %1600  ;;  %v2285_v46 = vpop.eup %2284 }
 0x86f   : > { %2286 = vrcp.f32 %v1601_v55  ;;  %v1618_v59 = vmul.f32 %v2285_v46, %v2734_v18 }
 0x870   : > { %v1621_v58 = vpack.c.bf16 %v1615_v21, %v1615_v21 }
 0x871   : > { %v1624_v9 = vpack.c.bf16 %v1618_v59, %v1618_v59  ;;  %v2155_v6 = vpop.permute.xlu0 %2154 }
 0x872   : > { %2104 = vmatmul.msk.bf16.vlgmr.msra.gmra.mxu1 %vm281_vm1, %v1621_v58  ;;  %v2156_v23 = vunpack.i.l.bf16 %v2155_v6 }
 0x875   : > { %v2287_v53 = vpop.eup %2286 }
 0x876   : > { %v1617_v61 = vmul.f32 %v2287_v53, %v2275_v11  ;;  %v1711_v1 = vpop.permute.xlu2 %1710 }
 0x877   : > { %v1716_v4 = vsel %vm291_vm0, %v1711_v1, 0 }
 0x878   : > { %v1623_v8 = vpack.c.bf16 %v1617_v61, %v1617_v61  ;;  %1725 = vmatpush.bf16.msra.mxu0 %v1716_v4 }
 0x87a   : > { %2106 = vmatmul.msk.bf16.vlgmr.msrb.gmra.mxu3 %vm281_vm1, %v1623_v8 }
 0x87b   : > { %2107 = vmatmul.msk.bf16.vlgmr.msra.gmra.mxu0 %vm281_vm1, %v1624_v9 }
 0x87e   : > { %v1732_v10 = vpop.permute.xlu2 %1731 }
 0x87f   : > { %v1737_v42 = vsel %vm291_vm0, %v1732_v10, 0 }
 0x880   : > { %1746 = vmatpush.bf16.msrb.mxu1 %v1737_v42  ;;  %v2180_v42 = vpop.permute.xlu0 %2179 }
 0x883   : > { %v1643_v12 = vpop.f32.mrf.mxu0 }
 0x886   : > { %v2150_v63 = vpop.permute.xlu2 %2149 }
 0x887   : > { %v2152_v39 = vunpack.i.h.bf16 %v2150_v63  ;;  %v2151_v56 = vunpack.i.l.bf16 %v2150_v63 }
 0x889   : > { %v1825_v7 = vsel %vm281_vm1, %v2546_v30, %v2152_v39 }
 0x88b   : > { %v1645_v13 = vpop.f32.mrf.mxu0 }
 0x88c   : > { %v2182_v13 = vunpack.i.h.bf16 %v2180_v42 }
 0x88e   : > { %v2165_v32 = vpop.permute.xlu2 %2164 }
 0x88f   : > { %v2167_v19 = vunpack.i.h.bf16 %v2165_v32  ;;  %v2166_v21 = vunpack.i.l.bf16 %v2165_v32 }
 0x891   : > { %v1827_v59 = vsel %vm281_vm1, %v2552_v37, %v2167_v19  ;;  %v1826_v61 = vsel %vm281_vm1, %v2548_v33, %v2166_v21  ;;  %v1829_v33 = vsel %vm281_vm1, %v2558_v60, %v2182_v13 }
 0x896   : > { %v2170_v62 = vpop.permute.xlu2 %2169 }
 0x897   : > { %v2172_v55 = vunpack.i.h.bf16 %v2170_v62  ;;  %v2171_v58 = vunpack.i.l.bf16 %v2170_v62 }
 0x899   : > { %v1607_v36 = vpop.xlane.xlu1 %1606  ;;  %v1833_v1 = vsel %vm1830_vm3, %v1826_v61, %v2171_v58  ;;  %v1834_v4 = vsel %vm1830_vm3, %v1827_v59, %v2172_v55 }
 0x89a   : > { %2288 = vrcp.f32 %v1607_v36  ;;  %v2181_v36 = vunpack.i.l.bf16 %v2180_v42 }
 0x8a0   : > { %v2289_v18 = vpop.eup %2288 }
 0x8a1   : > { %v1619_v26 = vmul.f32 %v2289_v18, %v2279_v2  ;;  %v2157_v2 = vunpack.i.h.bf16 %v2155_v6 }
 0x8a3   : > { %v1625_v31 = vpack.c.bf16 %v1619_v26, %v1619_v26  ;;  %v1832_v5 = vsel %vm1830_vm3, %v1825_v7, %v2157_v2 }
 0x8a5   : > { %2108 = vmatmul.msk.bf16.vlgmr.msrb.gmra.mxu1 %vm281_vm1, %v1625_v31  ;;  %v1828_v31 = vsel %vm281_vm1, %v2550_v34, %v2181_v36 }
 0x8ea   : > { %v1685_v47 = vpop.f32.mrf.mxu2 }
 0x8ef   : > { %v1664_v14 = vpop.f32.mrf.mxu1 }
 0x8f0   : > { %v2158_v29 = vpack.i.bf16 %v1664_v14, %v1643_v12 }
 0x8f2   : > { %2159 = vrot.lane.b32.xlu1 %v2158_v29, %s2311_s29  ;;  %v1687_v35 = vpop.f32.mrf.mxu2 }
 0x8f7   : > { %v1666_v38 = vpop.f32.mrf.mxu1 }
 0x8f8   : > { %v1727_v44 = vpop.f32.mrf.mxu0 }
 0x8fd   : > { %v1706_v41 = vpop.f32.mrf.mxu3 }
 0x8fe   : > { %v2173_v45 = vpack.i.bf16 %v1706_v41, %v1685_v47 }
 0x900   : > { %v1729_v11 = vpop.f32.mrf.mxu0  ;;  %2174 = vrot.lane.b32.xlu2 %v2173_v45, %s2311_s29 }
 0x905   : > { %v1708_v49 = vpop.f32.mrf.mxu3 }
 0x908   : > { %2184 = vrot.lane.b32.xlu2 %v2183_v15, %s2309_s27  ;;  %v1824_v15 = vsel %vm281_vm1, %v2544_v28, %v2151_v56 }
 0x909   : > { %v1831_v3 = vsel %vm1830_vm3, %v1824_v15, %v2156_v23 }
 0x922   : > { %v1748_v40 = vpop.f32.mrf.mxu1 }
 0x923   : > { %v2188_v51 = vpack.i.bf16 %v1748_v40, %v1727_v44 }
 0x925   : > { %2189 = vrot.lane.b32.xlu1 %v2188_v51, %s2311_s29 }
 0x92a   : > { %v1750_v54 = vpop.f32.mrf.mxu1 }
 0x95a   : > { %v2175_v28 = vpop.permute.xlu2 %2174 }
 0x95b   : > { %v2177_v46 = vunpack.i.h.bf16 %v2175_v28  ;;  %v2176_v53 = vunpack.i.l.bf16 %v2175_v28 }
 0x95d   : > { %v1841_v8 = vsel %vm1837_vm4, %v1834_v4, %v2177_v46  ;;  %v1840_v9 = vsel %vm1837_vm4, %v1833_v1, %v2176_v53 }
 0x95e   : > { %v1845_v10 = vpack.c.bf16 %v1841_v8, %v1840_v9 }
 0x962   : > { %v2185_v12 = vpop.permute.xlu2 %2184 }
 0x963   : > { %v2187_v37 = vunpack.i.h.bf16 %v2185_v12  ;;  %v2186_v18 = vunpack.i.l.bf16 %v2185_v12 }
 0x964   : > { %v2160_v48 = vpop.permute.xlu1 %2159 }
 0x965   : > { %v2162_v24 = vunpack.i.h.bf16 %v2160_v48  ;;  %v2161_v52 = vunpack.i.l.bf16 %v2160_v48  ;;  %v1836_v29 = vsel %vm1830_vm3, %v1829_v33, %v2187_v37  ;;  %v1835_v35 = vsel %vm1830_vm3, %v1828_v31, %v2186_v18 }
 0x967   : > { %v1838_v57 = vsel %vm1837_vm4, %v1831_v3, %v2161_v52  ;;  %v1839_v0 = vsel %vm1837_vm4, %v1832_v5, %v2162_v24 }
 0x968   : > { %v1844_v30 = vpack.c.bf16 %v1839_v0, %v1838_v57 }
 0x96a   : > { %2117 = vmatmul.msk.bf16.vlgmr.msrb.gmra.mxu2 %vm338_vm2, %v1844_v30 }
 0x97a   : > { %2118 = vmatmul.msk.bf16.gmra.mxu2 %vm338_vm2, %v1845_v10 }
 0x997   : > { %v2190_v26 = vpop.permute.xlu1 %2189 }
 0x998   : > { %v2192_v47 = vunpack.i.h.bf16 %v2190_v26  ;;  %v2191_v14 = vunpack.i.l.bf16 %v2190_v26 }
 0x99a   : > { %v1842_v38 = vsel %vm1837_vm4, %v1835_v35, %v2191_v14  ;;  %v1843_v44 = vsel %vm1837_vm4, %v1836_v29, %v2192_v47 }
 0x99b   : > { %v1846_v41 = vpack.c.bf16 %v1843_v44, %v1842_v38 }
 0x99d   : > { %2119 = vmatmul.msk.bf16.gmra.mxu2 %vm338_vm2, %v1846_v41 }
 0x9ed   : > { %v1881_v34 = vpop.f32.mrf.mxu2 }
 0x9ee   : > { %v1896_v60 = vadd.f32 %v1881_v34, %v2382_v16 }
 0x9f0   : > { %1902 = vst.msk [vmem:[%s2817_s12] sm:$0xff] %vm338_vm2, %v1896_v60  ;;  %v1925_v50 = vmul.f32 %v1896_v60, %v1896_v60  ;;  %v1908_v39 = vsel %vm338_vm2, %v1896_v60, 0.0 }
 0x9f2   : > { %v1931_v7 = vsel %vm338_vm2, %v1925_v50, 0.0 }
 0x9f5   : > { %v1883_v45 = vpop.f32.mrf.mxu2 }
 0x9f6   : > { %v1897_v11 = vadd.f32 %v1883_v45, %v2384_v17 }
 0x9f8   : > { %1903 = vst.msk [vmem:[%s2817_s12 + $0x8] sm:$0xff] %vm338_vm2, %v1897_v11  ;;  %v1926_v43 = vmul.f32 %v1897_v11, %v1897_v11  ;;  %v1909_v63 = vsel %vm338_vm2, %v1897_v11, 0.0 }
 0x9fa   : > { %v1932_v56 = vsel %vm338_vm2, %v1926_v43, 0.0 }
 0x9fb   : > { %v1933_v48 = vadd.f32 %v1932_v56, %v1931_v7 }
 0x9fd   : > { %v1886_v49 = vpop.f32.mrf.mxu2 }
 0x9fe   : > { %v1898_v40 = vadd.f32 %v1886_v49, %v2389_v20 }
 0xa00   : > { %1904 = vst.msk [vmem:[%s2817_s12 + $0x10] sm:$0xff] %vm338_vm2, %v1898_v40  ;;  %v1927_v32 = vmul.f32 %v1898_v40, %v1898_v40  ;;  %v1911_v20 = vsel %vm338_vm2, %v1898_v40, 0.0 }
 0xa02   : > { %v1934_v15 = vsel %vm338_vm2, %v1927_v32, 0.0 }
 0xa03   : > { %v1935_v62 = vadd.f32 %v1934_v15, %v1933_v48 }
 0xa05   : > { %v1888_v51 = vpop.f32.mrf.mxu2 }
 0xa06   : > { %v1899_v54 = vadd.f32 %v1888_v51, %v2391_v22  ;;  %v1910_v22 = vadd.f32 %v1909_v63, %v1908_v39 }
 0xa08   : > { %1905 = vst.msk [vmem:[%s2817_s12 + $0x18] sm:$0xff] %vm338_vm2, %v1899_v54  ;;  %v1928_v6 = vmul.f32 %v1899_v54, %v1899_v54  ;;  %v1913_v2 = vsel %vm338_vm2, %v1899_v54, 0.0 }
 0xa0a   : > { %v1936_v24 = vsel %vm338_vm2, %v1928_v6, 0.0 }
 0xa0b   : > { %v1937_v30 = vadd.f32 %v1936_v24, %v1935_v62 }
 0xa20   : > { %v1891_v16 = vpop.f32.mrf.mxu2 }
 0xa21   : > { %v1900_v17 = vadd.f32 %v1891_v16, %v2396_v25  ;;  %v1912_v25 = vadd.f32 %v1911_v20, %v1910_v22 }
 0xa23   : > { %1906 = vst.msk [vmem:[%s2817_s12 + $0x20] sm:$0xff] %vm338_vm2, %v1900_v17  ;;  %v1929_v23 = vmul.f32 %v1900_v17, %v1900_v17  ;;  %v1915_v52 = vsel %vm338_vm2, %v1900_v17, 0.0  ;;  %v1914_v3 = vadd.f32 %v1913_v2, %v1912_v25 }
 0xa25   : > { %v1938_v57 = vsel %vm338_vm2, %v1929_v23, 0.0  ;;  %v1916_v28 = vadd.f32 %v1915_v52, %v1914_v3 }
 0xa26   : > { %v1939_v55 = vadd.f32 %v1938_v57, %v1937_v30 }
 0xa28   : > { %v1893_v5 = vpop.f32.mrf.mxu2 }
 0xa29   : > { %v1901_v0 = vadd.f32 %v1893_v5, %v2398_v27 }
 0xa2b   : > { %1907 = vst.msk [vmem:[%s2817_s12 + $0x28] sm:$0xff] %vm338_vm2, %v1901_v0  ;;  %v1917_v19 = vsel %vm338_vm2, %v1901_v0, 0.0  ;;  %v1930_v21 = vmul.f32 %v1901_v0, %v1901_v0 }
 0xa2c   : > { %v1918_v58 = vadd.f32 %v1917_v19, %v1916_v28 }
 0xa2d   : > { %v1940_v46 = vsel %vm338_vm2, %v1930_v21, 0.0 }
 0xa2e   : > { %v1919_v53 = vrot.slane %v1918_v58, 4  ;;  %v1941_v59 = vadd.f32 %v1940_v46, %v1939_v55 }
 0xa30   : > { %v1920_v61 = vadd.f32 %v1919_v53, %v1918_v58  ;;  %v1942_v1 = vrot.slane %v1941_v59, 4 }
 0xa32   : > { %v1921_v4 = vrot.slane %v1920_v61, 2  ;;  %v1943_v8 = vadd.f32 %v1942_v1, %v1941_v59 }
 0xa34   : > { %v1922_v27 = vadd.f32 %v1921_v4, %v1920_v61  ;;  %v1944_v9 = vrot.slane %v1943_v8, 2 }
 0xa36   : > { %v1923_v10 = vrot.slane %v1922_v27, 1  ;;  %v1945_v42 = vadd.f32 %v1944_v9, %v1943_v8 }
 0xa38   : > { %v1946_v12 = vrot.slane %v1945_v42, 1  ;;  %v1924_v13 = vadd.f32 %v1923_v10, %v1922_v27 }
 0xa3a   : > { %v1947_v36 = vadd.f32 %v1946_v12, %v1945_v42 }
 0xa3c   : > { %v1949_v37 = vsel %vm1948_vm5, %v1924_v13, %v1947_v36 }
 0xa3d   : > { %1951 = vst.msk [vmem:[%s265_s14] sm:$0x3] %vm1950_vm6, %v1949_v37 }
 0xa3e PF: > { %s17_s21 = sadd.s32 1, %s2296_s21  }
 0xa3f   : > { %p14_p5 = scmp.ge.s32.totalorder %s17_s21, 4  }
 0xa41   :  { %16 = sbr.rel (!%p14_p5) target bundleno = 1 (0x1), region = 82 }

// kernel: dba_agent_forward.17
= control target key start
LH: loop header
LB: loop body
LE: loop exit
PB: predicated region body
PF: predicated region fallthrough
CT: control target
= control target key end

     0   :  { %vm27_vm0 = vcmask 254976   ;;  %vm49_vm1 = vcmask 261120   ;;  %v313_v26 = vmov 8.0   ;;  %vm239_vm6 = vcmask 1041409   ;;  %s479_s0 = inlined_call_operand.vmem [shape: f32[2,6,8,32], index: 0, kind: input, shape index: {}]   ;;  %s480_s1 = inlined_call_operand.vmem [shape: f32[2,2,32], index: 1, kind: input, shape index: {}]   ;;  %s481_s2 = inlined_call_operand.vmem [shape: f32[2,32], index: 2, kind: input, shape index: {}]   ;;  %s482_s4 = inlined_call_operand.<no memory space> [shape: f32[1,1], index: 4, kind: input, shape index: {}]   ;;  %s483_s3 = inlined_call_operand.vmem [shape: f32[1,32], index: 3, kind: input, shape index: {}]   ;;  %s484_s5 = inlined_call_operand.vmem [shape: f32[1,12], index: 5, kind: input, shape index: {}]   ;;  %s485_s6 = inlined_call_operand.vmem [shape: f32[1,12], index: 6, kind: output, shape index: {}]  }
   0x1   :  { %v25_v0 = vld [vmem:[%s480_s1] sm:$0x3]  ;;  %v26_v1 = vld [vmem:[%s480_s1 + $0x2] sm:$0x3]  ;;  %v38_v5 = vld [vmem:[%s479_s0 + $0x8] sm:$0xff]  ;;  %309 = vrcp.f32 %v313_v26  ;;  %vm242_vm7 = vcmask 1042434  }
   0x2   :  { %v37_v2 = vld [vmem:[%s479_s0] sm:$0xff]  ;;  %v28_v3 = vsel %vm27_vm0, %v25_v0, 0.0  ;;  %v29_v4 = vsel %vm27_vm0, %v26_v1, 0.0  ;;  %v39_v6 = vld [vmem:[%s479_s0 + $0x10] sm:$0xff]  ;;  %v40_v7 = vld [vmem:[%s479_s0 + $0x18] sm:$0xff]  ;;  %v57_v13 = vsel %vm49_vm1, %v38_v5, 0.0 }
   0x3   :  { %v50_v8 = vsel %vm49_vm1, %v37_v2, 0.0  ;;  %v30_v9 = vadd.f32 %v29_v4, %v28_v3  ;;  %v41_v10 = vld [vmem:[%s479_s0 + $0x20] sm:$0xff]  ;;  %v46_v12 = vld [vmem:[%s479_s0 + $0x48] sm:$0xff]  ;;  %v64_v14 = vsel %vm49_vm1, %v39_v6, 0.0  ;;  %v71_v15 = vsel %vm49_vm1, %v40_v7, 0.0  ;;  %v47_v31 = vld [vmem:[%s479_s0 + $0x50] sm:$0xff] }
   0x4   :  { %v45_v11 = vld [vmem:[%s479_s0 + $0x40] sm:$0xff]  ;;  %v78_v16 = vsel %vm49_vm1, %v41_v10, 0.0  ;;  %v51_v18 = vrot.slane %v50_v8, 4  ;;  %v58_v19 = vrot.slane %v57_v13, 4  ;;  %v65_v20 = vrot.slane %v64_v14, 4  ;;  %v48_v37 = vld [vmem:[%s479_s0 + $0x58] sm:$0xff] }
   0x5   :  { %v382_v17 = vmul.f32 0.010416667, %v30_v9  ;;  %v72_v21 = vrot.slane %v71_v15, 4  ;;  %v106_v22 = vsel %vm49_vm1, %v45_v11, 0.0  ;;  %v113_v23 = vsel %vm49_vm1, %v46_v12, 0.0  ;;  %v42_v60 = vld [vmem:[%s479_s0 + $0x28] sm:$0xff] }
   0x6   :  { %v79_v25 = vrot.slane %v78_v16, 4  ;;  %v107_v27 = vrot.slane %v106_v22, 4  ;;  %v114_v28 = vrot.slane %v113_v23, 4  ;;  %v52_v30 = vadd.f32 %v51_v18, %v50_v8  ;;  %v43_v61 = vld [vmem:[%s479_s0 + $0x30] sm:$0xff] }
   0x7   :  { %v32_v24 = vmul.f32 %v382_v17, %v382_v17  ;;  %v59_v32 = vadd.f32 %v58_v19, %v57_v13  ;;  %v66_v33 = vadd.f32 %v65_v20, %v64_v14  ;;  %v73_v34 = vadd.f32 %v72_v21, %v71_v15  ;;  %v310_v39 = vpop.eup %309 }
   0x8   :  { %v80_v35 = vadd.f32 %v79_v25, %v78_v16  ;;  %v108_v36 = vadd.f32 %v107_v27, %v106_v22  ;;  %v115_v38 = vadd.f32 %v114_v28, %v113_v23  ;;  %v53_v41 = vrot.slane %v52_v30, 2  ;;  %v44_v22 = vld [vmem:[%s479_s0 + $0x38] sm:$0xff] }
   0x9   :  { %v34_v29 = vrot.slane %v32_v24, 7  ;;  %v120_v42 = vsel %vm49_vm1, %v47_v31, 0.0  ;;  %v60_v43 = vrot.slane %v59_v32, 2  ;;  %v67_v44 = vrot.slane %v66_v33, 2 }
   0xa   :  { %v74_v45 = vrot.slane %v73_v34, 2  ;;  %v81_v46 = vrot.slane %v80_v35, 2  ;;  %v109_v47 = vrot.slane %v108_v36, 2  ;;  %v121_v48 = vrot.slane %v120_v42, 4 }
   0xb   :  { %v36_v40 = vsub.f32 %v382_v17, %v34_v29  ;;  %v127_v49 = vsel %vm49_vm1, %v48_v37, 0.0  ;;  %v116_v50 = vrot.slane %v115_v38, 2  ;;  %v135_v52 = vmul.f32 8.0, %v310_v39 }
   0xc   :  { %v128_v51 = vrot.slane %v127_v49, 4  ;;  %v54_v53 = vadd.f32 %v53_v41, %v52_v30  ;;  %v122_v54 = vadd.f32 %v121_v48, %v120_v42  ;;  %v61_v56 = vadd.f32 %v60_v43, %v59_v32 }
   0xd   :  { %v397_v55 = vadd.f32 1e-05, %v36_v40  ;;  %v68_v57 = vadd.f32 %v67_v44, %v66_v33  ;;  %v136_v59 = vsub.f32 1.0, %v135_v52  ;;  %v75_v62 = vadd.f32 %v74_v45, %v73_v34 }
   0xe   :  { %v129_v58 = vadd.f32 %v128_v51, %v127_v49  ;;  %v82_v63 = vadd.f32 %v81_v46, %v80_v35  ;;  %v110_v0 = vadd.f32 %v109_v47, %v108_v36  ;;  %v123_v1 = vrot.slane %v122_v54, 2 }
   0xf   :  { %v117_v2 = vadd.f32 %v116_v50, %v115_v38  ;;  %v137_v4 = vmul.f32 %v310_v39, %v136_v59  ;;  %311 = vrsqrt.f32 %v397_v55  ;;  %v55_v5 = vrot.slane %v54_v53, 1 }
  0x10   :  { %v130_v3 = vrot.slane %v129_v58, 2  ;;  %v124_v6 = vadd.f32 %v123_v1, %v122_v54  ;;  %v85_v7 = vsel %vm49_vm1, %v42_v60, 0.0  ;;  %v92_v8 = vsel %vm49_vm1, %v43_v61, 0.0 }
  0x11   :  { %v62_v9 = vrot.slane %v61_v56, 1  ;;  %v69_v10 = vrot.slane %v68_v57, 1  ;;  %v86_v11 = vrot.slane %v85_v7, 4  ;;  %v93_v12 = vrot.slane %v92_v8, 4 }
  0x12   :  { %v76_v13 = vrot.slane %v75_v62, 1  ;;  %v83_v14 = vrot.slane %v82_v63, 1  ;;  %v131_v15 = vadd.f32 %v130_v3, %v129_v58  ;;  %v138_v16 = vadd.f32 %v310_v39, %v137_v4 }
  0x13   :  { %v111_v18 = vrot.slane %v110_v0, 1  ;;  %v118_v19 = vrot.slane %v117_v2, 1  ;;  %vm139_vm2 = vweird.f32 %v310_v39  ;;  %v56_v20 = vadd.f32 %v55_v5, %v54_v53 }
  0x14   :  { %v125_v21 = vrot.slane %v124_v6, 1  ;;  %v63_v24 = vadd.f32 %v62_v9, %v61_v56  ;;  %v70_v25 = vadd.f32 %v69_v10, %v68_v57  ;;  %v87_v26 = vadd.f32 %v86_v11, %v85_v7 }
  0x15   :  { %v312_v23 = vpop.eup %311  ;;  %v94_v27 = vadd.f32 %v93_v12, %v92_v8  ;;  %v77_v28 = vadd.f32 %v76_v13, %v75_v62  ;;  %v84_v29 = vadd.f32 %v83_v14, %v82_v63  ;;  %v132_v30 = vrot.slane %v131_v15, 1 }
  0x16   :  { %v411_v31 = vsel %vm139_vm2, %v310_v39, %v138_v16  ;;  %v112_v32 = vadd.f32 %v111_v18, %v110_v0  ;;  %v119_v33 = vadd.f32 %v118_v19, %v117_v2  ;;  %v414_v34 = vperm.slane %v382_v17, 0  ;;  %v307_v16 = vld [vmem:[%s481_s2] ss:$0 sm:$0xff] }
  0x17   :  { %v99_v35 = vsel %vm49_vm1, %v44_v22, 0.0  ;;  %v126_v36 = vadd.f32 %v125_v21, %v124_v6  ;;  %v141_v37 = vmul.f32 %v411_v31, %v56_v20  ;;  %v168_v38 = vmul.f32 %v312_v23, %v397_v55 }
  0x18   :  { %vm173_vm3 = vweird.f32 %v397_v55  ;;  %v142_v40 = vmul.f32 %v411_v31, %v63_v24  ;;  %v143_v41 = vmul.f32 %v411_v31, %v70_v25  ;;  %v88_v39 = vrot.slane %v87_v26, 2 }
  0x19   :  { %v95_v42 = vrot.slane %v94_v27, 2  ;;  %v133_v43 = vadd.f32 %v132_v30, %v131_v15  ;;  %v144_v44 = vmul.f32 %v411_v31, %v77_v28  ;;  %v169_v17 = vmul.f32 %v312_v23, %v168_v38 }
  0x1a   :  { %v100_v45 = vrot.slane %v99_v35, 4  ;;  %v145_v46 = vmul.f32 %v411_v31, %v84_v29  ;;  %vm174_vm4 = vweird.f32 %v312_v23  ;;  %v89_v47 = vadd.f32 %v88_v39, %v87_v26  ;;  %v308_v26 = vld [vmem:[%s481_s2 + $0x1] ss:$0 sm:$0xff] }
  0x1b   :  { %v96_v48 = vadd.f32 %v95_v42, %v94_v27  ;;  %v170_v49 = vmul.f32 0.5, %v169_v17  ;;  %v11_v51 = vstv %s482_s4  ;;  %v149_v52 = vmul.f32 %v411_v31, %v112_v32  ;;  %vm436_vm5 = vmor %vm173_vm3, %vm174_vm4 }
  0x1c   :  { %v101_v50 = vadd.f32 %v100_v45, %v99_v35  ;;  %v150_v53 = vmul.f32 %v411_v31, %v119_v33  ;;  %v90_v54 = vrot.slane %v89_v47, 1  ;;  %v314_v57 = vmov 0   ;;  %12 = vst [vmem:[#allocation2] sm:$0x1] %v11_v51 }
  0x1d   :  { %v97_v56 = vrot.slane %v96_v48, 1  ;;  %306 = vset.pattern.permute.xlu0 %v314_v57  ;;  %v151_v58 = vmul.f32 %v411_v31, %v126_v36  ;;  %v154_v59 = vsub.f32 %v141_v37, %v414_v34  ;;  %v171_v60 = vsub.f32 1.5, %v170_v49 }
  0x1e   :  { %v102_v61 = vrot.slane %v101_v50, 2  ;;  %v152_v62 = vmul.f32 %v411_v31, %v133_v43  ;;  %v155_v63 = vsub.f32 %v142_v40, %v414_v34  ;;  %v91_v1 = vadd.f32 %v90_v54, %v89_v47 }
  0x1f   :  { %v98_v2 = vadd.f32 %v97_v56, %v96_v48  ;;  %v156_v3 = vsub.f32 %v143_v41, %v414_v34  ;;  %v157_v4 = vsub.f32 %v144_v44, %v414_v34  ;;  %v172_v5 = vmul.f32 %v312_v23, %v171_v60 }
  0x20   :  { %v103_v6 = vadd.f32 %v102_v61, %v101_v50  ;;  %v158_v7 = vsub.f32 %v145_v46, %v414_v34  ;;  %v162_v8 = vsub.f32 %v149_v52, %v414_v34  ;;  %v146_v9 = vmul.f32 %v411_v31, %v91_v1 }
  0x21   :  { %v147_v55 = vmul.f32 %v411_v31, %v98_v2  ;;  %v163_v10 = vsub.f32 %v150_v53, %v414_v34  ;;  %v164_v11 = vsub.f32 %v151_v58, %v414_v34  ;;  %v176_v12 = vsel %vm436_vm5, %v312_v23, %v172_v5 }
  0x22   :  { %v104_v13 = vrot.slane %v103_v6, 1  ;;  %v165_v14 = vsub.f32 %v152_v62, %v414_v34  ;;  %v177_v15 = vperm.slane %v176_v12, 1  ;;  %v159_v19 = vsub.f32 %v146_v9, %v414_v34 }
  0x23   :  { %v160_v20 = vsub.f32 %v147_v55, %v414_v34  ;;  %v219_v21 = vld [vmem:[#allocation2] sm:$0x1]  ;;  %vm245_vm8 = vcmask 1043459   ;;  %vm248_vm9 = vcmask 1044484   ;;  %vm251_vm10 = vcmask 1045509  }
  0x24   :  { %v105_v18 = vadd.f32 %v104_v13, %v103_v6  ;;  %v178_v22 = vmul.f32 %v177_v15, %v154_v59  ;;  %v179_v24 = vmul.f32 %v177_v15, %v155_v63  ;;  %v180_v25 = vmul.f32 %v177_v15, %v156_v3  ;;  %222 = vperm.xlu0 %306, %v219_v21  }
  0x25   :  { %v181_v23 = vmul.f32 %v177_v15, %v157_v4  ;;  %v182_v27 = vmul.f32 %v177_v15, %v158_v7  ;;  %v186_v28 = vmul.f32 %v177_v15, %v162_v8  ;;  %v187_v29 = vmul.f32 %v177_v15, %v163_v10 }
  0x26   :  { %v188_v30 = vmul.f32 %v177_v15, %v164_v11  ;;  %v189_v32 = vmul.f32 %v177_v15, %v165_v14  ;;  %v192_v33 = vmul.f32 %v307_v16, %v178_v22  ;;  %v193_v35 = vmul.f32 %v307_v16, %v179_v24 }
  0x27   :  { %v194_v36 = vmul.f32 %v307_v16, %v180_v25  ;;  %v195_v37 = vmul.f32 %v307_v16, %v181_v23  ;;  %v196_v38 = vmul.f32 %v307_v16, %v182_v27  ;;  %v200_v40 = vmul.f32 %v307_v16, %v186_v28 }
  0x28   :  { %v201_v41 = vmul.f32 %v307_v16, %v187_v29  ;;  %v202_v39 = vmul.f32 %v307_v16, %v188_v30  ;;  %v203_v42 = vmul.f32 %v307_v16, %v189_v32  ;;  %v206_v43 = vadd.f32 %v308_v26, %v192_v33 }
  0x29   :  { %v207_v44 = vadd.f32 %v308_v26, %v193_v35  ;;  %v208_v17 = vadd.f32 %v308_v26, %v194_v36  ;;  %v209_v45 = vadd.f32 %v308_v26, %v195_v37  ;;  %v210_v46 = vadd.f32 %v308_v26, %v196_v38 }
  0x2a   :  { %v214_v47 = vadd.f32 %v308_v26, %v200_v40  ;;  %v215_v48 = vadd.f32 %v308_v26, %v201_v41  ;;  %v216_v49 = vadd.f32 %v308_v26, %v202_v39  ;;  %v217_v50 = vadd.f32 %v308_v26, %v203_v42 }
  0x2b   :  { %v238_v51 = vrot.slane %v207_v44, 7  ;;  %v241_v52 = vrot.slane %v208_v17, 6  ;;  %v244_v53 = vrot.slane %v209_v45, 5  ;;  %v148_v54 = vmul.f32 %v411_v31, %v105_v18  ;;  %v218_v18 = vld [vmem:[%s483_s3] sm:$0x1] }
  0x2c   :  { %v259_v57 = vrot.slane %v215_v48, 7  ;;  %v261_v58 = vrot.slane %v216_v49, 6  ;;  %v263_v59 = vrot.slane %v217_v50, 5  ;;  %v183_v62 = vmul.f32 %v177_v15, %v159_v19 }
  0x2d   :  { %v240_v56 = vsel %vm239_vm6, %v238_v51, %v206_v43  ;;  %v161_v61 = vsub.f32 %v148_v54, %v414_v34  ;;  %v184_v63 = vmul.f32 %v177_v15, %v160_v20  ;;  %v247_v0 = vrot.slane %v210_v46, 4  ;;  %v292_v20 = vld [vmem:[%s484_s5] sm:$0x1] }
  0x2e   :  { %v243_v60 = vsel %vm242_vm7, %v241_v52, %v240_v56  ;;  %v260_v1 = vsel %vm239_vm6, %v259_v57, %v214_v47  ;;  %v197_v4 = vmul.f32 %v307_v16, %v183_v62  ;;  %vm254_vm11 = vcmask 1046534  }
  0x2f   :  { %v246_v2 = vsel %vm245_vm8, %v244_v53, %v243_v60  ;;  %v262_v3 = vsel %vm242_vm7, %v261_v58, %v260_v1  ;;  %v185_v31 = vmul.f32 %v177_v15, %v161_v61  ;;  %v198_v6 = vmul.f32 %v307_v16, %v184_v63 }
  0x30   :  { %v264_v5 = vsel %vm245_vm8, %v263_v59, %v262_v3  ;;  %v211_v8 = vadd.f32 %v308_v26, %v197_v4  ;;  %v249_v34 = vsel %vm248_vm9, %v247_v0, %v246_v2  ;;  %vm257_vm12 = vcmask 1047559  }
  0x31   :  { %301 = vmatpush.xpose.msk.msra.mxu0 %vm49_vm1, %v264_v5  ;;  %v199_v7 = vmul.f32 %v307_v16, %v185_v31  ;;  %v212_v9 = vadd.f32 %v308_v26, %v198_v6  ;;  %vm293_vm13 = vcmp.gt.f32.partialorder %v292_v20, 0.5  ;;  %vm295_vm14 = vcmask 90112  }
  0x32   :  { %v250_v10 = vrot.slane %v211_v8, 3 }
  0x33   :  { %v213_v55 = vadd.f32 %v308_v26, %v199_v7  ;;  %v253_v11 = vrot.slane %v212_v9, 2 }
  0x34   :  { %v252_v12 = vsel %vm251_vm10, %v250_v10, %v249_v34 }
  0x35   :  { %v256_v13 = vrot.slane %v213_v55, 1  ;;  %v255_v14 = vsel %vm254_vm11, %v253_v11, %v252_v12 }
  0x37   :  { %v258_v15 = vsel %vm257_vm12, %v256_v13, %v255_v14 }
  0x38   :  { %302 = vmatpush.xpose.msk.msra.mxu0 %vm49_vm1, %v258_v15 }
  0x3b   :  { %303 = vmatmul.msk.f32.vlgmr.msra.gmra.mxu0 %vm49_vm1, %v218_v18 }
  0x96   :  { %v223_v16 = vpop.permute.xlu0 %222 }
  0x97   :  { %v225_v19 = vperm.slane %v223_v16, 0 }
  0xb8   :  { %v289_v21 = vpop.f32.mrf.mxu0 }
  0xb9   :  { %v290_v22 = vadd.f32 %v289_v21, %v225_v19 }
  0xbb   :  { %v294_v24 = vsel %vm293_vm13, -inf, %v290_v22 }
  0xbc   :  { %296 = vst.msk [vmem:[%s485_s6] sm:$0x1] %vm295_vm14, %v294_v24 }

// kernel: dba_agent_forward.11
= control target key start
LH: loop header
LB: loop body
LE: loop exit
PB: predicated region body
PF: predicated region fallthrough
CT: control target
= control target key end

     0   :  { %s4280_s21 = smov 0   ;;  %s6088_s0 = inlined_call_operand.vmem [shape: f32[16,6,32], index: 0, kind: input, shape index: {}]   ;;  %s6089_s1 = inlined_call_operand.vmem [shape: f32[2,2,32], index: 1, kind: input, shape index: {}]   ;;  %s6090_s2 = inlined_call_operand.vmem [shape: f32[2,32], index: 2, kind: input, shape index: {}]   ;;  %s6091_s3 = inlined_call_operand.vmem [shape: bf16[32,96], index: 3, kind: input, shape index: {}]   ;;  %s6092_s4 = inlined_call_operand.vmem [shape: bf16[32,32], index: 4, kind: input, shape index: {}]   ;;  %s6093_s5 = inlined_call_operand.vmem [shape: f32[16,6,32], index: 5, kind: output, shape index: {0}]   ;;  %s6094_s6 = inlined_call_operand.vmem [shape: f32[2,2,32], index: 6, kind: output, shape index: {1}]  }
   0x1 LB: > { %s4286_s22 = sadd.s32 4294967295, %s4229_s21   ;;  %p3971_p0 = scmp.ge.s32.totalorder %s4229_s21, 1  ;;  %s4229_s21 = sphi %s4280_s21, %s17_s21  }
   0x2   : > { %p216_p1 = scmp.lt.s32.totalorder %s4229_s21, 3 }
   0x4   : > { %p217_p2 = pnand %p3971_p0, %p216_p1 }
   0x6   : > { %220 = sbr.rel (%p217_p2) target bundleno = 2844 (0xb1c), region = 40 }
   0xb   : > { %v4066_v0 = vld [vmem:[%s6091_s3 + $0x8] sm:$0xff]  ;;  %v267_v1 = vld [vmem:[%s6089_s1] sm:$0x3]  ;;  %vm269_vm0 = vcmask 254976   ;;  %v268_v2 = vld [vmem:[%s6089_s1 + $0x2] sm:$0x3] }
   0xc   : > { %v270_v3 = vsel %vm269_vm0, %v267_v1, 0.0  ;;  %570 = vmatpush.bf16.msra.mxu0 %v4066_v0  ;;  %v4065_v4 = vld [vmem:[%s6091_s3] sm:$0xff]  ;;  %v271_v5 = vsel %vm269_vm0, %v268_v2, 0.0  ;;  %s3972_s7 = sshll.u32 %s4286_s22, 3  ;;  %vm554_vm4 = vcmask 261120   ;;  %s4231_s16 = smov 96  }
   0xd   : > { %v272_v6 = vadd.f32 %v271_v5, %v270_v3  ;;  %p251_p3 = scmp.lt.s32.totalorder %s3972_s7, 15  ;;  %v4323_v19 = vld [vmem:[%s6090_s2] ss:$0 sm:$0xff]  ;;  %v4328_v20 = vld [vmem:[%s6090_s2 + $0x1] ss:$0 sm:$0xff]  ;;  %s4232_s17 = smov 64  }
   0xe   : > { %v4344_v32 = vrot.slane %v4323_v19, 2  ;;  %v4347_v33 = vrot.slane %v4323_v19, 4  ;;  %v4350_v34 = vrot.slane %v4323_v19, 6  ;;  %v4353_v35 = vrot.slane %v4328_v20, 2  ;;  %s4233_s18 = smov 120   ;;  %s4234_s19 = smov 88  }
   0xf   : > { %v273_v7 = vmul.f32 0.010416667, %v272_v6  ;;  %s6220_s7 = smov (!%p251_p3, %s3972_s7), 15  ;;  %v4358_v39 = vrot.slane %v4328_v20, 4  ;;  %v4364_v44 = vrot.slane %v4328_v20, 6  ;;  %vm723_vm5 = vcmask 64512  }
  0x10   : > { %571 = vmatpush.bf16.msra.mxu0 %v4065_v4  ;;  %s3973_s8 = sshll.u32 %s6220_s7, 3  ;;  %vm1078_vm6 = vcmask 1042432   ;;  %vm919_vm7 = vcmask 46080   ;;  %s4235_s20 = smov 56   ;;  %vm1074_vm8 = vcmask 48128   ;;  %vm3437_vm9 = vcmask 195584  }
  0x11   : > { %v274_v8 = vmul.f32 %v273_v7, %v273_v7  ;;  %s4313_s11 = scalar_lea.vmem %s6088_s0, %s3973_s8  ;;  %v4316_v15 = vperm.slane %v273_v7, 0  ;;  %s4236_s23 = smov 80   ;;  %vm3428_vm10 = vcmask 130048   ;;  %vm3700_vm11 = vcmask 259072  }
  0x12   : > { %v279_v14 = vld [vmem:[%s4313_s11] sm:$0x3f]  ;;  %v280_v16 = vld [vmem:[%s4313_s11 + $0x8] sm:$0x3f]  ;;  %v281_v18 = vld [vmem:[%s4313_s11 + $0x10] sm:$0x3f] }
  0x13   : > { %v276_v9 = vrot.slane %v274_v8, 7  ;;  %v295_v21 = vrot.slane %v279_v14, 2  ;;  %v296_v23 = vrot.slane %v279_v14, 4  ;;  %v297_v24 = vrot.slane %v280_v16, 2  ;;  %v282_v36 = vld [vmem:[%s4313_s11 + $0x18] sm:$0x3f] }
  0x14   : > { %v4331_v25 = vrot.slane %v4316_v15, 2  ;;  %v4334_v26 = vrot.slane %v4316_v15, 4  ;;  %v298_v27 = vrot.slane %v280_v16, 4  ;;  %v299_v28 = vrot.slane %v281_v18, 2  ;;  %v283_v45 = vld [vmem:[%s4313_s11 + $0x20] sm:$0x3f] }
  0x15   : > { %v278_v10 = vsub.f32 %v273_v7, %v276_v9  ;;  %v4337_v29 = vrot.slane %v4316_v15, 6  ;;  %v335_v37 = vsub.f32 %v279_v14, %v4316_v15  ;;  %v300_v40 = vrot.slane %v281_v18, 4  ;;  %s4237_s24 = smov 112   ;;  %s4238_s25 = smov 48  }
  0x16   : > { %v336_v41 = vsub.f32 %v295_v21, %v4331_v25  ;;  %v337_v42 = vsub.f32 %v296_v23, %v4334_v26  ;;  %v339_v43 = vsub.f32 %v297_v24, %v4316_v15  ;;  %v301_v48 = vrot.slane %v282_v36, 2  ;;  %s4239_s26 = smov 72   ;;  %s4240_s27 = smov 104  }
  0x17   : > { %v359_v11 = vadd.f32 1e-05, %v278_v10  ;;  %v338_v46 = vsub.f32 %v280_v16, %v4337_v29  ;;  %v302_v49 = vrot.slane %v282_v36, 4  ;;  %v340_v50 = vsub.f32 %v298_v27, %v4331_v25  ;;  %s4241_s28 = smov 40   ;;  %s4242_s29 = smov 8  }
  0x18   : > { %v341_v51 = vsub.f32 %v281_v18, %v4334_v26  ;;  %v342_v52 = vsub.f32 %v299_v28, %v4337_v29  ;;  %v303_v54 = vrot.slane %v283_v45, 2  ;;  %v304_v55 = vrot.slane %v283_v45, 4  ;;  %s4243_s30 = smov 16   ;;  %s4244_s9 = smov 24  }
  0x19   : > { %4093 = vrsqrt.f32 %v359_v11  ;;  %vm366_vm1 = vweird.f32 %v359_v11  ;;  %v343_v56 = vsub.f32 %v300_v40, %v4316_v15  ;;  %v344_v57 = vsub.f32 %v282_v36, %v4331_v25  ;;  %p262_p4 = scmp.lt.s32.totalorder %s4286_s22, 1 }
  0x1a   : > { %v345_v63 = vsub.f32 %v301_v48, %v4334_v26  ;;  %v346_v0 = vsub.f32 %v302_v49, %v4337_v29  ;;  %v347_v1 = vsub.f32 %v283_v45, %v4316_v15  ;;  %v348_v18 = vsub.f32 %v303_v54, %v4331_v25  ;;  %v285_v48 = vld [vmem:[%s4313_s11 + $0x30] sm:$0x3f]  ;;  %v286_v54 = vld [vmem:[%s4313_s11 + $0x38] sm:$0x3f] }
  0x1b   : > { %s6222_s22 = smov (!%p262_p4, %s4286_s22), 1  ;;  %vm3877_vm12 = vcmask 1040384  }
  0x1c   : > { %s3976_s7 = sshll.u32 %s6222_s22, 1 }
  0x1f   : > { %v4094_v12 = vpop.eup %4093 }
  0x20   : > { %v361_v13 = vmul.f32 %v4094_v12, %v359_v11  ;;  %vm367_vm2 = vweird.f32 %v4094_v12 }
  0x21   : > { %vm4339_vm3 = vmor %vm366_vm1, %vm367_vm2 }
  0x22   : > { %v362_v17 = vmul.f32 %v4094_v12, %v361_v13 }
  0x24   : > { %v363_v22 = vmul.f32 0.5, %v362_v17  ;;  %v284_v17 = vld [vmem:[%s4313_s11 + $0x28] sm:$0x3f] }
  0x26   : > { %v364_v30 = vsub.f32 1.5, %v363_v22 }
  0x28   : > { %v365_v38 = vmul.f32 %v4094_v12, %v364_v30  ;;  %v349_v30 = vsub.f32 %v304_v55, %v4334_v26  ;;  %v305_v55 = vrot.slane %v284_v17, 2 }
  0x2a   : > { %v369_v47 = vsel %vm4339_vm3, %v4094_v12, %v365_v38 }
  0x2b   : > { %v4373_v53 = vperm.slane %v369_v47, 1 }
  0x2d   : > { %v4378_v58 = vrot.slane %v4373_v53, 2  ;;  %v4381_v59 = vrot.slane %v4373_v53, 4  ;;  %v4384_v60 = vrot.slane %v4373_v53, 6  ;;  %v378_v61 = vmul.f32 %v4373_v53, %v335_v37 }
  0x2e   : > { %v382_v62 = vmul.f32 %v4373_v53, %v339_v43  ;;  %v386_v21 = vmul.f32 %v4373_v53, %v343_v56  ;;  %v350_v37 = vsub.f32 %v284_v17, %v4337_v29  ;;  %v306_v56 = vrot.slane %v284_v17, 4 }
  0x2f   : > { %v379_v2 = vmul.f32 %v4378_v58, %v336_v41  ;;  %v380_v3 = vmul.f32 %v4381_v59, %v337_v42  ;;  %v381_v4 = vmul.f32 %v4384_v60, %v338_v46  ;;  %v383_v5 = vmul.f32 %v4378_v58, %v340_v50 }
  0x30   : > { %v384_v6 = vmul.f32 %v4381_v59, %v341_v51  ;;  %v385_v7 = vmul.f32 %v4384_v60, %v342_v52  ;;  %v411_v8 = vmul.f32 %v4323_v19, %v378_v61  ;;  %v415_v9 = vmul.f32 %v4323_v19, %v382_v62 }
  0x31   : > { %v412_v10 = vmul.f32 %v4344_v32, %v379_v2  ;;  %v413_v11 = vmul.f32 %v4347_v33, %v380_v3  ;;  %v414_v12 = vmul.f32 %v4350_v34, %v381_v4  ;;  %v416_v13 = vmul.f32 %v4344_v32, %v383_v5 }
  0x32   : > { %v417_v14 = vmul.f32 %v4347_v33, %v384_v6  ;;  %v4405_v16 = vadd.f32 %v4328_v20, %v411_v8  ;;  %v418_v22 = vmul.f32 %v4350_v34, %v385_v7  ;;  %v4421_v28 = vadd.f32 %v4328_v20, %v415_v9 }
  0x33   : > { %v4412_v23 = vadd.f32 %v4353_v35, %v412_v10  ;;  %v4415_v24 = vadd.f32 %v4358_v39, %v413_v11  ;;  %v4418_v27 = vadd.f32 %v4364_v44, %v414_v12  ;;  %v387_v31 = vmul.f32 %v4378_v58, %v344_v57 }
  0x34   : > { %6121 = vst [vmem:[#allocation2_spill] sm:$0xff] %v4405_v16  ;;  %v4427_v36 = vadd.f32 %v4353_v35, %v416_v13  ;;  %v388_v38 = vmul.f32 %v4381_v59, %v345_v63  ;;  %v389_v40 = vmul.f32 %v4384_v60, %v346_v0  ;;  %v4434_v41 = vadd.f32 %v4358_v39, %v417_v14 }
  0x35   : > { %6122 = vst [vmem:[#allocation3_spill] sm:$0xff] %v4412_v23  ;;  %v390_v42 = vmul.f32 %v4373_v53, %v347_v1  ;;  %v4439_v43 = vadd.f32 %v4364_v44, %v418_v22  ;;  %v391_v45 = vmul.f32 %v4378_v58, %v348_v18  ;;  %v419_v46 = vmul.f32 %v4323_v19, %v386_v21 }
  0x36   : > { %6123 = vst [vmem:[#allocation4_spill] sm:$0xff] %v4415_v24  ;;  %v420_v47 = vmul.f32 %v4344_v32, %v387_v31  ;;  %v392_v49 = vmul.f32 %v4381_v59, %v349_v30  ;;  %v393_v50 = vmul.f32 %v4384_v60, %v350_v37  ;;  %v421_v51 = vmul.f32 %v4347_v33, %v388_v38 }
  0x37   : > { %6124 = vst [vmem:[#allocation5_spill] sm:$0xff] %v4418_v27  ;;  %v422_v52 = vmul.f32 %v4350_v34, %v389_v40  ;;  %v307_v57 = vrot.slane %v285_v48, 2  ;;  %v308_v61 = vrot.slane %v285_v48, 4  ;;  %v423_v62 = vmul.f32 %v4323_v19, %v390_v42 }
  0x38   : > { %6125 = vst [vmem:[#allocation6_spill] sm:$0xff] %v4421_v28  ;;  %v424_v63 = vmul.f32 %v4344_v32, %v391_v45  ;;  %v4458_v0 = vadd.f32 %v4328_v20, %v419_v46  ;;  %v4461_v1 = vadd.f32 %v4353_v35, %v420_v47  ;;  %v309_v2 = vrot.slane %v286_v54, 2 }
  0x39   : > { %492 = vst [vmem:[#allocation1] ss:$4 sm:$0xff] %v4405_v16  ;;  %v351_v3 = vsub.f32 %v305_v55, %v4316_v15  ;;  %v352_v4 = vsub.f32 %v306_v56, %v4331_v25  ;;  %v353_v5 = vsub.f32 %v285_v48, %v4334_v26  ;;  %v425_v6 = vmul.f32 %v4347_v33, %v392_v49 }
  0x3a   : > { %6126 = vst [vmem:[#allocation7_spill] sm:$0xff] %v4427_v36  ;;  %v4468_v7 = vadd.f32 %v4358_v39, %v421_v51  ;;  %v310_v8 = vrot.slane %v286_v54, 4  ;;  %v354_v9 = vsub.f32 %v307_v57, %v4337_v29  ;;  %v426_v11 = vmul.f32 %v4350_v34, %v393_v50 }
  0x3b   : > { %494 = vst [vmem:[#allocation1 + $0x1] ss:$4 sm:$0xff] %v4412_v23  ;;  %v4473_v12 = vadd.f32 %v4364_v44, %v422_v52  ;;  %v355_v13 = vsub.f32 %v308_v61, %v4316_v15  ;;  %v394_v14 = vmul.f32 %v4373_v53, %v351_v3  ;;  %v4478_v17 = vadd.f32 %v4328_v20, %v423_v62 }
  0x3c   : > { %6127 = vst [vmem:[#allocation8_spill] sm:$0xff] %v4434_v41  ;;  %v356_v18 = vsub.f32 %v286_v54, %v4331_v25  ;;  %v395_v21 = vmul.f32 %v4378_v58, %v352_v4  ;;  %v4484_v22 = vadd.f32 %v4353_v35, %v424_v63  ;;  %v357_v30 = vsub.f32 %v309_v2, %v4334_v26 }
  0x3d   : > { %496 = vst [vmem:[#allocation1 + $0x2] ss:$4 sm:$0xff] %v4415_v24  ;;  %v396_v15 = vmul.f32 %v4381_v59, %v353_v5  ;;  %v4490_v31 = vadd.f32 %v4358_v39, %v425_v6  ;;  %v358_v37 = vsub.f32 %v310_v8, %v4337_v29  ;;  %v397_v25 = vmul.f32 %v4384_v60, %v354_v9 }
  0x3e   : > { %6128 = vst [vmem:[#allocation9_spill] sm:$0xff] %v4439_v43  ;;  %v4496_v40 = vadd.f32 %v4364_v44, %v426_v11  ;;  %v398_v26 = vmul.f32 %v4373_v53, %v355_v13  ;;  %v427_v42 = vmul.f32 %v4323_v19, %v394_v14  ;;  %v399_v46 = vmul.f32 %v4378_v58, %v356_v18 }
  0x3f   : > { %498 = vst [vmem:[#allocation1 + $0x3] ss:$4 sm:$0xff] %v4418_v27  ;;  %v428_v29 = vmul.f32 %v4344_v32, %v395_v21  ;;  %v400_v47 = vmul.f32 %v4381_v59, %v357_v30  ;;  %v429_v48 = vmul.f32 %v4347_v33, %v396_v15  ;;  %v401_v53 = vmul.f32 %v4384_v60, %v358_v37 }
  0x40   : > { %500 = vst [vmem:[#allocation1 + $0x20] ss:$4 sm:$0xff] %v4421_v28  ;;  %v430_v49 = vmul.f32 %v4350_v34, %v397_v25  ;;  %v431_v58 = vmul.f32 %v4323_v19, %v398_v26  ;;  %v4514_v50 = vadd.f32 %v4328_v20, %v427_v42  ;;  %v432_v51 = vmul.f32 %v4344_v32, %v399_v46 }
  0x41   : > { %502 = vst [vmem:[#allocation1 + $0x21] ss:$4 sm:$0xff] %v4427_v36  ;;  %v4518_v59 = vadd.f32 %v4353_v35, %v428_v29  ;;  %v433_v52 = vmul.f32 %v4347_v33, %v400_v47  ;;  %v4522_v54 = vadd.f32 %v4358_v39, %v429_v48  ;;  %v434_v55 = vmul.f32 %v4350_v34, %v401_v53 }
  0x42   : > { %504 = vst [vmem:[#allocation1 + $0x22] ss:$4 sm:$0xff] %v4434_v41  ;;  %v4526_v56 = vadd.f32 %v4364_v44, %v430_v49  ;;  %v4529_v19 = vadd.f32 %v4328_v20, %v431_v58  ;;  %v4533_v32 = vadd.f32 %v4353_v35, %v432_v51 }
  0x43   : > { %506 = vst [vmem:[#allocation1 + $0x23] ss:$4 sm:$0xff] %v4439_v43  ;;  %v4537_v33 = vadd.f32 %v4358_v39, %v433_v52  ;;  %v4541_v34 = vadd.f32 %v4364_v44, %v434_v55 }
  0x44   : > { %6129 = vst [vmem:[#allocation10_spill] sm:$0xff] %v4458_v0 }
  0x45   : > { %6130 = vst [vmem:[#allocation11_spill] sm:$0xff] %v4461_v1 }
  0x46   : > { %6131 = vst [vmem:[#allocation12_spill] sm:$0xff] %v4468_v7  ;;  %v507_v10 = vld.sshfl [vmem:[#allocation1] sm:$0xff pattern:$0x73625140] }
  0x47   : > { %6132 = vst [vmem:[#allocation13_spill] sm:$0xff] %v4473_v12 }
  0x48   : > { %6133 = vst [vmem:[#allocation14_spill] sm:$0xff] %v4478_v17 }
  0x49   : > { %509 = vst [vmem:[#allocation1] ss:$4 sm:$0xff] %v4458_v0 }
  0x4a   : > { %6134 = vst [vmem:[#allocation15_spill] sm:$0xff] %v4484_v22  ;;  %v508_v38 = vld.sshfl [vmem:[#allocation1 + $0x20] sm:$0xff pattern:$0x73625140] }
  0x4b   : > { %510 = vst [vmem:[#allocation1 + $0x1] ss:$4 sm:$0xff] %v4461_v1  ;;  %v535_v45 = vpack.c.bf16 %v508_v38, %v507_v10 }
  0x4c   : > { %6135 = vst [vmem:[#allocation16_spill] sm:$0xff] %v4490_v31 }
  0x4d   : > { %511 = vst [vmem:[#allocation1 + $0x2] ss:$4 sm:$0xff] %v4468_v7  ;;  %3985 = vmatmul.msk.bf16.vlgmr.msra.gmra.mxu0 %vm554_vm4, %v535_v45 }
  0x4e   : > { %6136 = vst [vmem:[#allocation17_spill] sm:$0xff] %v4496_v40 }
  0x4f   : > { %512 = vst [vmem:[#allocation1 + $0x3] ss:$4 sm:$0xff] %v4473_v12 }
  0x50   : > { %513 = vst [vmem:[#allocation1 + $0x20] ss:$4 sm:$0xff] %v4478_v17 }
  0x51   : > { %514 = vst [vmem:[#allocation1 + $0x21] ss:$4 sm:$0xff] %v4484_v22 }
  0x52   : > { %515 = vst [vmem:[#allocation1 + $0x22] ss:$4 sm:$0xff] %v4490_v31 }
  0x53   : > { %516 = vst [vmem:[#allocation1 + $0x23] ss:$4 sm:$0xff] %v4496_v40 }
  0x54   : > { %6137 = vst [vmem:[#allocation18_spill] sm:$0xff] %v4514_v50 }
  0x55   : > { %6138 = vst [vmem:[#allocation19_spill] sm:$0xff] %v4518_v59 }
  0x56   : > { %6139 = vst [vmem:[#allocation20_spill] sm:$0xff] %v4522_v54  ;;  %v517_v60 = vld.sshfl [vmem:[#allocation1] sm:$0xff pattern:$0x73625140] }
  0x57   : > { %6140 = vst [vmem:[#allocation21_spill] sm:$0xff] %v4526_v56 }
  0x58   : > { %6141 = vst [vmem:[#allocation22_spill] sm:$0xff] %v4529_v19 }
  0x59   : > { %519 = vst [vmem:[#allocation1] ss:$4 sm:$0xff] %v4514_v50 }
  0x5a   : > { %6142 = vst [vmem:[#allocation23_spill] sm:$0xff] %v4533_v32  ;;  %v518_v57 = vld.sshfl [vmem:[#allocation1 + $0x20] sm:$0xff pattern:$0x73625140] }
  0x5b   : > { %520 = vst [vmem:[#allocation1 + $0x1] ss:$4 sm:$0xff] %v4518_v59  ;;  %v536_v20 = vpack.c.bf16 %v518_v57, %v517_v60 }
  0x5c   : > { %6143 = vst [vmem:[#allocation24_spill] sm:$0xff] %v4537_v33 }
  0x5d   : > { %521 = vst [vmem:[#allocation1 + $0x2] ss:$4 sm:$0xff] %v4522_v54  ;;  %3986 = vmatmul.msk.bf16.gmra.mxu0 %vm554_vm4, %v536_v20 }
  0x5e   : > { %6144 = vst [vmem:[#allocation25_spill] sm:$0xff] %v4541_v34 }
  0x5f   : > { %522 = vst [vmem:[#allocation1 + $0x3] ss:$4 sm:$0xff] %v4526_v56 }
  0x60   : > { %523 = vst [vmem:[#allocation1 + $0x20] ss:$4 sm:$0xff] %v4529_v19 }
  0x61   : > { %524 = vst [vmem:[#allocation1 + $0x21] ss:$4 sm:$0xff] %v4533_v32 }
  0x62   : > { %525 = vst [vmem:[#allocation1 + $0x22] ss:$4 sm:$0xff] %v4537_v33 }
  0x63   : > { %526 = vst [vmem:[#allocation1 + $0x23] ss:$4 sm:$0xff] %v4541_v34 }
  0x66   : > { %v527_v35 = vld.sshfl [vmem:[#allocation1] sm:$0xff pattern:$0x73625140] }
  0x6a   : > { %v528_v39 = vld.sshfl [vmem:[#allocation1 + $0x20] sm:$0xff pattern:$0x73625140] }
  0x6b   : > { %v537_v61 = vpack.c.bf16 %v528_v39, %v527_v35 }
  0x6d   : > { %3987 = vmatmul.msk.bf16.gmra.mxu0 %vm554_vm4, %v537_v61 }
  0xca   : > { %v4550_v44 = vpop.f32.mrf.mxu0 }
  0xcb   : > { %v4553_v62 = vrot.slane %v4550_v44, 2  ;;  %v4556_v63 = vrot.slane %v4550_v44, 4  ;;  %v4559_v2 = vrot.slane %v4550_v44, 6  ;;  %612 = vst [vmem:[#allocation1] ss:$4 sm:$0xff] %v4550_v44 }
  0xcd   : > { %614 = vst [vmem:[#allocation1 + $0x1] ss:$4 sm:$0xff] %v4553_v62 }
  0xce   : > { %619 = vst [vmem:[#allocation1 + $0x20] ss:$4 sm:$0xff] %v4559_v2 }
  0xcf   : > { %616 = vst [vmem:[#allocation1 + $0x2] ss:$4 sm:$0xff] %v4556_v63 }
  0xd2   : > { %v4565_v3 = vpop.f32.mrf.mxu0 }
  0xd3   : > { %v4568_v4 = vrot.slane %v4565_v3, 2  ;;  %v4571_v5 = vrot.slane %v4565_v3, 6  ;;  %621 = vst [vmem:[#allocation1 + $0x21] ss:$4 sm:$0xff] %v4565_v3  ;;  %v4575_v6 = vrot.slane %v4565_v3, 4 }
  0xd5   : > { %623 = vst [vmem:[#allocation1 + $0x22] ss:$4 sm:$0xff] %v4568_v4 }
  0xd6   : > { %v4578_v8 = vld.sshfl [vmem:[#allocation1] sm:$0xff pattern:$0x73625140] }
  0xd7   : > { %626 = vst [vmem:[#allocation1 + $0x1] ss:$4 sm:$0xff] %v4571_v5 }
  0xd8   : > { %625 = vst [vmem:[#allocation1] ss:$4 sm:$0xff] %v4575_v6 }
  0xda   : > { %v4582_v9 = vpop.f32.mrf.mxu0 }
  0xdb   : > { %v4585_v10 = vrot.slane %v4582_v9, 2  ;;  %v4588_v11 = vrot.slane %v4582_v9, 4  ;;  %v4591_v13 = vrot.slane %v4582_v9, 6  ;;  %627 = vst [vmem:[#allocation1 + $0x2] ss:$4 sm:$0xff] %v4582_v9 }
  0xdc   : > { %v4594_v14 = vld.sshfl [vmem:[#allocation1 + $0x20] sm:$0xff pattern:$0x73625140] }
  0xdd   : > { %629 = vst [vmem:[#allocation1 + $0x20] ss:$4 sm:$0xff] %v4585_v10 }
  0xde   : > { %631 = vst [vmem:[#allocation1 + $0x22] ss:$4 sm:$0xff] %v4591_v13 }
  0xdf   : > { %630 = vst [vmem:[#allocation1 + $0x21] ss:$4 sm:$0xff] %v4588_v11 }
  0xe2   : > { %v4599_v18 = vpop.f32.mrf.mxu0  ;;  %v4601_v21 = vld.sshfl [vmem:[#allocation1] sm:$0xff pattern:$0x73625140] }
  0xe3   : > { %v4604_v30 = vrot.slane %v4599_v18, 2  ;;  %v4607_v15 = vrot.slane %v4599_v18, 4  ;;  %v4610_v37 = vrot.slane %v4599_v18, 6  ;;  %633 = vst [vmem:[#allocation1] ss:$4 sm:$0xff] %v4599_v18 }
  0xe5   : > { %634 = vst [vmem:[#allocation1 + $0x1] ss:$4 sm:$0xff] %v4604_v30 }
  0xe6   : > { %v4614_v25 = vld.sshfl [vmem:[#allocation1 + $0x20] sm:$0xff pattern:$0x73625140]  ;;  %635 = vst [vmem:[#allocation1 + $0x2] ss:$4 sm:$0xff] %v4607_v15 }
  0xe7   : > { %637 = vst [vmem:[#allocation1 + $0x20] ss:$4 sm:$0xff] %v4610_v37 }
  0xea   : > { %v4618_v38 = vpop.f32.mrf.mxu0 }
  0xeb   : > { %v4621_v26 = vrot.slane %v4618_v38, 2  ;;  %v4624_v42 = vrot.slane %v4618_v38, 4  ;;  %v4627_v45 = vrot.slane %v4618_v38, 6  ;;  %638 = vst [vmem:[#allocation1 + $0x21] ss:$4 sm:$0xff] %v4618_v38 }
  0xed   : > { %v4630_v46 = vld.sshfl [vmem:[#allocation1] sm:$0xff pattern:$0x73625140]  ;;  %639 = vst [vmem:[#allocation1 + $0x22] ss:$4 sm:$0xff] %v4621_v26 }
  0xee   : > { %641 = vst [vmem:[#allocation1] ss:$4 sm:$0xff] %v4624_v42 }
  0xef   : > { %642 = vst [vmem:[#allocation1 + $0x1] ss:$4 sm:$0xff] %v4627_v45 }
  0xf2   : > { %v4635_v29 = vpop.f32.mrf.mxu0 }
  0xf3   : > { %v4638_v47 = vrot.slane %v4635_v29, 2  ;;  %v4641_v48 = vrot.slane %v4635_v29, 4  ;;  %v4644_v53 = vrot.slane %v4635_v29, 6  ;;  %643 = vst [vmem:[#allocation1 + $0x2] ss:$4 sm:$0xff] %v4635_v29 }
  0xf4   : > { %v4647_v49 = vld.sshfl [vmem:[#allocation1 + $0x20] sm:$0xff pattern:$0x73625140] }
  0xf5   : > { %645 = vst [vmem:[#allocation1 + $0x20] ss:$4 sm:$0xff] %v4638_v47 }
  0xf6   : > { %646 = vst [vmem:[#allocation1 + $0x21] ss:$4 sm:$0xff] %v4641_v48 }
  0xf7   : > { %647 = vst [vmem:[#allocation1 + $0x22] ss:$4 sm:$0xff] %v4644_v53 }
  0xfa   : > { %v4652_v58 = vld.sshfl [vmem:[#allocation1] sm:$0xff pattern:$0x73625140] }
  0xfb   : > { %665 = vst [vmem:[#allocation1] ss:$4 sm:$0xff] %v4550_v44 }
  0xfc   : > { %667 = vst [vmem:[#allocation1 + $0x1] ss:$4 sm:$0xff] %v4553_v62 }
  0xfd   : > { %669 = vst [vmem:[#allocation1 + $0x2] ss:$4 sm:$0xff] %v4556_v63 }
  0xfe   : > { %v4657_v51 = vld.sshfl [vmem:[#allocation1 + $0x20] sm:$0xff pattern:$0x73625140] }
  0xff   : > { %672 = vst [vmem:[#allocation1 + $0x20] ss:$4 sm:$0xff] %v4559_v2 }
 0x100   : > { %674 = vst [vmem:[#allocation1 + $0x21] ss:$4 sm:$0xff] %v4565_v3 }
 0x101   : > { %676 = vst [vmem:[#allocation1 + $0x22] ss:$4 sm:$0xff] %v4568_v4 }
 0x104   : > { %v670_v52 = vld.sshfl [vmem:[#allocation1] sm:$0xff pattern:$0x73625140] }
 0x105   : > { %678 = vst [vmem:[#allocation1] ss:$4 sm:$0xff] %v4575_v6  ;;  %v710_v50 = vpack.c.bf16 %v670_v52, %v670_v52 }
 0x106   : > { %679 = vst [vmem:[#allocation1 + $0x1] ss:$4 sm:$0xff] %v4571_v5 }
 0x107   : > { %680 = vst [vmem:[#allocation1 + $0x2] ss:$4 sm:$0xff] %v4582_v9  ;;  %v719_v31 = vunpack.c.l.b16 %v710_v50 }
 0x108   : > { %v677_v60 = vld.sshfl [vmem:[#allocation1 + $0x20] sm:$0xff pattern:$0x73625140] }
 0x109   : > { %682 = vst [vmem:[#allocation1 + $0x20] ss:$4 sm:$0xff] %v4585_v10  ;;  %v711_v19 = vpack.c.bf16 %v677_v60, %v677_v60 }
 0x10a   : > { %683 = vst [vmem:[#allocation1 + $0x21] ss:$4 sm:$0xff] %v4588_v11 }
 0x10b   : > { %684 = vst [vmem:[#allocation1 + $0x22] ss:$4 sm:$0xff] %v4591_v13  ;;  %v744_v56 = vunpack.c.l.b16 %v711_v19 }
 0x10d   : > { %v745_v59 = vpack.c.b16 %v744_v56, %v744_v56  ;;  %v720_v56 = vpack.c.b16 %v719_v31, %v719_v31 }
 0x10e   : > { %v681_v55 = vld.sshfl [vmem:[#allocation1] sm:$0xff pattern:$0x73625140] }
 0x10f   : > { %686 = vst [vmem:[#allocation1] ss:$4 sm:$0xff] %v4599_v18  ;;  %746 = vrot.lane.b32.xlu0 %v745_v59, %s4231_s16  ;;  %v712_v40 = vpack.c.bf16 %v681_v55, %v681_v55 }
 0x110   : > { %687 = vst [vmem:[#allocation1 + $0x1] ss:$4 sm:$0xff] %v4604_v30 }
 0x111   : > { %688 = vst [vmem:[#allocation1 + $0x2] ss:$4 sm:$0xff] %v4607_v15  ;;  %v768_v60 = vunpack.c.l.b16 %v712_v40 }
 0x112   : > { %v4671_v57 = vld.sshfl [vmem:[#allocation1 + $0x20] sm:$0xff pattern:$0x73625140] }
 0x113   : > { %690 = vst [vmem:[#allocation1 + $0x20] ss:$4 sm:$0xff] %v4610_v37  ;;  %v769_v19 = vpack.c.b16 %v768_v60, %v768_v60  ;;  %v713_v17 = vpack.c.bf16 %v4671_v57, %v4671_v57 }
 0x114   : > { %691 = vst [vmem:[#allocation1 + $0x21] ss:$4 sm:$0xff] %v4618_v38 }
 0x115   : > { %692 = vst [vmem:[#allocation1 + $0x22] ss:$4 sm:$0xff] %v4621_v26  ;;  %770 = vrot.lane.b32.xlu2 %v769_v19, %s4231_s16 }
 0x117   : > { %721 = vrot.lane.b32.xlu0 %v720_v56, %s4231_s16 }
 0x118   : > { %v689_v20 = vld.sshfl [vmem:[#allocation1] sm:$0xff pattern:$0x73625140] }
 0x119   : > { %694 = vst [vmem:[#allocation1] ss:$4 sm:$0xff] %v4624_v42  ;;  %v714_v40 = vpack.c.bf16 %v689_v20, %v689_v20  ;;  %v792_v20 = vunpack.c.l.b16 %v713_v17 }
 0x11a   : > { %695 = vst [vmem:[#allocation1 + $0x1] ss:$4 sm:$0xff] %v4627_v45 }
 0x11b   : > { %696 = vst [vmem:[#allocation1 + $0x2] ss:$4 sm:$0xff] %v4635_v29  ;;  %v816_v50 = vunpack.c.l.b16 %v714_v40  ;;  %v793_v57 = vpack.c.b16 %v792_v20, %v792_v20 }
 0x11c   : > { %v693_v35 = vld.sshfl [vmem:[#allocation1 + $0x20] sm:$0xff pattern:$0x73625140] }
 0x11d   : > { %698 = vst [vmem:[#allocation1 + $0x20] ss:$4 sm:$0xff] %v4638_v47  ;;  %v715_v59 = vpack.c.bf16 %v693_v35, %v693_v35  ;;  %v817_v55 = vpack.c.b16 %v816_v50, %v816_v50 }
 0x11e   : > { %699 = vst [vmem:[#allocation1 + $0x21] ss:$4 sm:$0xff] %v4641_v48 }
 0x11f   : > { %700 = vst [vmem:[#allocation1 + $0x22] ss:$4 sm:$0xff] %v4644_v53  ;;  %v840_v60 = vunpack.c.l.b16 %v715_v59  ;;  %818 = vrot.lane.b32.xlu1 %v817_v55, %s4231_s16 }
 0x121   : > { %v841_v31 = vpack.c.b16 %v840_v60, %v840_v60 }
 0x122   : > { %v4682_v39 = vld.sshfl [vmem:[#allocation1] sm:$0xff pattern:$0x73625140] }
 0x123   : > { %1016 = vst [vmem:[#allocation1] ss:$4 sm:$0xff] %v4550_v44  ;;  %842 = vrot.lane.b32.xlu0 %v841_v31, %s4231_s16  ;;  %v716_v50 = vpack.c.bf16 %v4682_v39, %v4682_v39 }
 0x124   : > { %1018 = vst [vmem:[#allocation1 + $0x1] ss:$4 sm:$0xff] %v4553_v62 }
 0x125   : > { %1020 = vst [vmem:[#allocation1 + $0x2] ss:$4 sm:$0xff] %v4556_v63  ;;  %v864_v17 = vunpack.c.l.b16 %v716_v50 }
 0x126   : > { %v701_v61 = vld.sshfl [vmem:[#allocation1 + $0x20] sm:$0xff pattern:$0x73625140] }
 0x127   : > { %1023 = vst [vmem:[#allocation1 + $0x20] ss:$4 sm:$0xff] %v4559_v2  ;;  %v717_v56 = vpack.c.bf16 %v701_v61, %v701_v61  ;;  %794 = vrot.lane.b32.xlu1 %v793_v57, %s4231_s16  ;;  %v865_v39 = vpack.c.b16 %v864_v17, %v864_v17 }
 0x128   : > { %1025 = vst [vmem:[#allocation1 + $0x21] ss:$4 sm:$0xff] %v4565_v3 }
 0x129   : > { %1027 = vst [vmem:[#allocation1 + $0x22] ss:$4 sm:$0xff] %v4568_v4  ;;  %v888_v40 = vunpack.c.l.b16 %v717_v56 }
 0x12b   : > { %v889_v59 = vpack.c.b16 %v888_v40, %v888_v40 }
 0x12c   : > { %v4690_v34 = vld.sshfl [vmem:[#allocation1] sm:$0xff pattern:$0x73625140] }
 0x12d   : > { %1029 = vst [vmem:[#allocation1] ss:$4 sm:$0xff] %v4575_v6  ;;  %890 = vrot.lane.b32.xlu2 %v889_v59, %s4231_s16  ;;  %v1061_v20 = vpack.c.bf16 %v4690_v34, %v4690_v34 }
 0x12e   : > { %1030 = vst [vmem:[#allocation1 + $0x1] ss:$4 sm:$0xff] %v4571_v5 }
 0x12f   : > { %1031 = vst [vmem:[#allocation1 + $0x2] ss:$4 sm:$0xff] %v4582_v9  ;;  %866 = vrot.lane.b32.xlu1 %v865_v39, %s4231_s16  ;;  %s5900_s16 = scalar_lea.vmem %s6093_s5, %s3973_s8 }
 0x130   : > { %v4695_v33 = vld.sshfl [vmem:[#allocation1 + $0x20] sm:$0xff pattern:$0x73625140] }
 0x131   : > { %1033 = vst [vmem:[#allocation1 + $0x20] ss:$4 sm:$0xff] %v4585_v10  ;;  %v1062_v61 = vpack.c.bf16 %v4695_v33, %v4695_v33  ;;  %v1070_v33 = vunpack.c.l.b16 %v1061_v20 }
 0x132   : > { %1034 = vst [vmem:[#allocation1 + $0x21] ss:$4 sm:$0xff] %v4588_v11 }
 0x133   : > { %1035 = vst [vmem:[#allocation1 + $0x22] ss:$4 sm:$0xff] %v4591_v13  ;;  %v1096_v31 = vunpack.c.l.b16 %v1062_v61  ;;  %v1071_v34 = vpack.c.b16 %v1070_v33, %v1070_v33 }
 0x135   : > { %v1097_v56 = vpack.c.b16 %v1096_v31, %v1096_v31 }
 0x136   : > { %v4700_v32 = vld.sshfl [vmem:[#allocation1] sm:$0xff pattern:$0x73625140] }
 0x137   : > { %1037 = vst [vmem:[#allocation1] ss:$4 sm:$0xff] %v4599_v18  ;;  %1098 = vrot.lane.b32.xlu0 %v1097_v56, %s4232_s17  ;;  %v1063_v57 = vpack.c.bf16 %v4700_v32, %v4700_v32  ;;  %1072 = vrot.lane.b32.xlu1 %v1071_v34, %s4232_s17 }
 0x138   : > { %1038 = vst [vmem:[#allocation1 + $0x1] ss:$4 sm:$0xff] %v4604_v30 }
 0x139   : > { %1039 = vst [vmem:[#allocation1 + $0x2] ss:$4 sm:$0xff] %v4607_v15  ;;  %v1120_v50 = vunpack.c.l.b16 %v1063_v57 }
 0x13a   : > { %v4705_v54 = vld.sshfl [vmem:[#allocation1 + $0x20] sm:$0xff pattern:$0x73625140] }
 0x13b   : > { %1041 = vst [vmem:[#allocation1 + $0x20] ss:$4 sm:$0xff] %v4610_v37  ;;  %v1121_v59 = vpack.c.b16 %v1120_v50, %v1120_v50  ;;  %v1064_v17 = vpack.c.bf16 %v4705_v54, %v4705_v54 }
 0x13c   : > { %1042 = vst [vmem:[#allocation1 + $0x21] ss:$4 sm:$0xff] %v4618_v38 }
 0x13d   : > { %1043 = vst [vmem:[#allocation1 + $0x22] ss:$4 sm:$0xff] %v4621_v26  ;;  %1122 = vrot.lane.b32.xlu2 %v1121_v59, %s4232_s17  ;;  %v1144_v39 = vunpack.c.l.b16 %v1064_v17 }
 0x13f   : > { %v1145_v56 = vpack.c.b16 %v1144_v39, %v1144_v39 }
 0x140   : > { %v4711_v22 = vld.sshfl [vmem:[#allocation1] sm:$0xff pattern:$0x73625140] }
 0x141   : > { %1045 = vst [vmem:[#allocation1] ss:$4 sm:$0xff] %v4624_v42  ;;  %v1065_v32 = vpack.c.bf16 %v4711_v22, %v4711_v22 }
 0x142   : > { %1046 = vst [vmem:[#allocation1 + $0x1] ss:$4 sm:$0xff] %v4627_v45 }
 0x143   : > { %1047 = vst [vmem:[#allocation1 + $0x2] ss:$4 sm:$0xff] %v4635_v29  ;;  %v1168_v31 = vunpack.c.l.b16 %v1065_v32 }
 0x144   : > { %v4717_v52 = vld.sshfl [vmem:[#allocation1 + $0x20] sm:$0xff pattern:$0x73625140] }
 0x145   : > { %1049 = vst [vmem:[#allocation1 + $0x20] ss:$4 sm:$0xff] %v4638_v47  ;;  %v1169_v54 = vpack.c.b16 %v1168_v31, %v1168_v31  ;;  %v1066_v33 = vpack.c.bf16 %v4717_v52, %v4717_v52  ;;  %1146 = vrot.lane.b32.xlu2 %v1145_v56, %s4232_s17 }
 0x146   : > { %1050 = vst [vmem:[#allocation1 + $0x21] ss:$4 sm:$0xff] %v4641_v48 }
 0x147   : > { %1051 = vst [vmem:[#allocation1 + $0x22] ss:$4 sm:$0xff] %v4644_v53  ;;  %1170 = vrot.lane.b32.xlu0 %v1169_v54, %s4232_s17  ;;  %v1192_v50 = vunpack.c.l.b16 %v1066_v33 }
 0x149   : > { %v1193_v59 = vpack.c.b16 %v1192_v50, %v1192_v50 }
 0x14a   : > { %v4725_v19 = vld.sshfl [vmem:[#allocation1] sm:$0xff pattern:$0x73625140] }
 0x14b   : > { %1263 = vst [vmem:[#allocation1] ss:$4 sm:$0xff] %v4550_v44  ;;  %v1067_v57 = vpack.c.bf16 %v4725_v19, %v4725_v19 }
 0x14c   : > { %1265 = vst [vmem:[#allocation1 + $0x1] ss:$4 sm:$0xff] %v4553_v62 }
 0x14d   : > { %1267 = vst [vmem:[#allocation1 + $0x2] ss:$4 sm:$0xff] %v4556_v63  ;;  %v1216_v52 = vunpack.c.l.b16 %v1067_v57  ;;  %1194 = vrot.lane.b32.xlu2 %v1193_v59, %s4232_s17 }
 0x14e   : > { %v4732_v35 = vld.sshfl [vmem:[#allocation1 + $0x20] sm:$0xff pattern:$0x73625140] }
 0x14f   : > { %1270 = vst [vmem:[#allocation1 + $0x20] ss:$4 sm:$0xff] %v4559_v2  ;;  %v1217_v34 = vpack.c.b16 %v1216_v52, %v1216_v52  ;;  %v1068_v17 = vpack.c.bf16 %v4732_v35, %v4732_v35 }
 0x150   : > { %1272 = vst [vmem:[#allocation1 + $0x21] ss:$4 sm:$0xff] %v4565_v3 }
 0x151   : > { %1274 = vst [vmem:[#allocation1 + $0x22] ss:$4 sm:$0xff] %v4568_v4  ;;  %1218 = vrot.lane.b32.xlu1 %v1217_v34, %s4232_s17  ;;  %v1240_v19 = vunpack.c.l.b16 %v1068_v17 }
 0x153   : > { %v1241_v35 = vpack.c.b16 %v1240_v19, %v1240_v19 }
 0x154   : > { %v4740_v55 = vld.sshfl [vmem:[#allocation1] sm:$0xff pattern:$0x73625140] }
 0x155   : > { %1276 = vst [vmem:[#allocation1] ss:$4 sm:$0xff] %v4575_v6  ;;  %v1308_v31 = vpack.c.bf16 %v4740_v55, %v4740_v55 }
 0x156   : > { %1277 = vst [vmem:[#allocation1 + $0x1] ss:$4 sm:$0xff] %v4571_v5 }
 0x157   : > { %1278 = vst [vmem:[#allocation1 + $0x2] ss:$4 sm:$0xff] %v4582_v9  ;;  %v1370_v56 = vunpack.c.l.b16 %v1308_v31 }
 0x158   : > { %v4748_v60 = vld.sshfl [vmem:[#allocation1 + $0x20] sm:$0xff pattern:$0x73625140] }
 0x159   : > { %1280 = vst [vmem:[#allocation1 + $0x20] ss:$4 sm:$0xff] %v4585_v10  ;;  %1242 = vrot.lane.b32.xlu1 %v1241_v35, %s4232_s17  ;;  %v1371_v50 = vpack.c.b16 %v1370_v56, %v1370_v56 }
 0x15a   : > { %1281 = vst [vmem:[#allocation1 + $0x21] ss:$4 sm:$0xff] %v4588_v11 }
 0x15b   : > { %1282 = vst [vmem:[#allocation1 + $0x22] ss:$4 sm:$0xff] %v4591_v13 }
 0x15e   : > { %v4759_v40 = vld.sshfl [vmem:[#allocation1] sm:$0xff pattern:$0x73625140] }
 0x15f   : > { %1284 = vst [vmem:[#allocation1] ss:$4 sm:$0xff] %v4599_v18 }
 0x160   : > { %1285 = vst [vmem:[#allocation1 + $0x1] ss:$4 sm:$0xff] %v4604_v30 }
 0x161   : > { %1286 = vst [vmem:[#allocation1 + $0x2] ss:$4 sm:$0xff] %v4607_v15  ;;  %1372 = vrot.lane.b32.xlu1 %v1371_v50, %s4233_s18 }
 0x162   : > { %v1283_v61 = vld.sshfl [vmem:[#allocation1 + $0x20] sm:$0xff pattern:$0x73625140] }
 0x163   : > { %1288 = vst [vmem:[#allocation1 + $0x20] ss:$4 sm:$0xff] %v4610_v37  ;;  %v1311_v33 = vpack.c.bf16 %v1283_v61, %v1283_v61 }
 0x164   : > { %1289 = vst [vmem:[#allocation1 + $0x21] ss:$4 sm:$0xff] %v4618_v38 }
 0x165   : > { %1290 = vst [vmem:[#allocation1 + $0x22] ss:$4 sm:$0xff] %v4621_v26  ;;  %v1457_v52 = vunpack.c.l.b16 %v1311_v33 }
 0x167   : > { %v1458_v55 = vpack.c.b16 %v1457_v52, %v1457_v52 }
 0x168   : > { %v4773_v20 = vld.sshfl [vmem:[#allocation1] sm:$0xff pattern:$0x73625140] }
 0x169   : > { %1292 = vst [vmem:[#allocation1] ss:$4 sm:$0xff] %v4624_v42  ;;  %1459 = vrot.lane.b32.xlu0 %v1458_v55, %s4233_s18 }
 0x16a   : > { %1293 = vst [vmem:[#allocation1 + $0x1] ss:$4 sm:$0xff] %v4627_v45 }
 0x16b   : > { %1294 = vst [vmem:[#allocation1 + $0x2] ss:$4 sm:$0xff] %v4635_v29 }
 0x16c   : > { %v4782_v22 = vld.sshfl [vmem:[#allocation1 + $0x20] sm:$0xff pattern:$0x73625140] }
 0x16d   : > { %1296 = vst [vmem:[#allocation1 + $0x20] ss:$4 sm:$0xff] %v4638_v47 }
 0x16e   : > { %1297 = vst [vmem:[#allocation1 + $0x21] ss:$4 sm:$0xff] %v4641_v48 }
 0x16f   : > { %1298 = vst [vmem:[#allocation1 + $0x22] ss:$4 sm:$0xff] %v4644_v53 }
 0x172   : > { %v4791_v32 = vld.sshfl [vmem:[#allocation1] sm:$0xff pattern:$0x73625140] }
 0x173   : > { %1316 = vst [vmem:[#allocation1] ss:$4 sm:$0xff] %v4550_v44 }
 0x174   : > { %1318 = vst [vmem:[#allocation1 + $0x1] ss:$4 sm:$0xff] %v4553_v62 }
 0x175   : > { %1320 = vst [vmem:[#allocation1 + $0x2] ss:$4 sm:$0xff] %v4556_v63 }
 0x176   : > { %v4798_v39 = vld.sshfl [vmem:[#allocation1 + $0x20] sm:$0xff pattern:$0x73625140] }
 0x177   : > { %1323 = vst [vmem:[#allocation1 + $0x20] ss:$4 sm:$0xff] %v4559_v2 }
 0x178   : > { %1325 = vst [vmem:[#allocation1 + $0x21] ss:$4 sm:$0xff] %v4565_v3 }
 0x179   : > { %1327 = vst [vmem:[#allocation1 + $0x22] ss:$4 sm:$0xff] %v4568_v4 }
 0x17c   : > { %v1321_v54 = vld.sshfl [vmem:[#allocation1] sm:$0xff pattern:$0x73625140] }
 0x17d   : > { %1329 = vst [vmem:[#allocation1] ss:$4 sm:$0xff] %v4575_v6  ;;  %v1361_v19 = vpack.c.bf16 %v1321_v54, %v1321_v54  ;;  %v771_v54 = vpop.permute.xlu2 %770 }
 0x17e   : > { %1330 = vst [vmem:[#allocation1 + $0x1] ss:$4 sm:$0xff] %v4571_v5 }
 0x17f   : > { %1331 = vst [vmem:[#allocation1 + $0x2] ss:$4 sm:$0xff] %v4582_v9  ;;  %v1375_v35 = vunpack.c.l.b16 %v1361_v19  ;;  %v776_v19 = vsel %vm723_vm5, %v771_v54, 0 }
 0x180   : > { %v1328_v57 = vld.sshfl [vmem:[#allocation1 + $0x20] sm:$0xff pattern:$0x73625140]  ;;  %785 = vmatpush.bf16.xpose.msrb.mxu0 %v776_v19 }
 0x181   : > { %1333 = vst [vmem:[#allocation1 + $0x20] ss:$4 sm:$0xff] %v4585_v10  ;;  %v1362_v31 = vpack.c.bf16 %v1328_v57, %v1328_v57  ;;  %v1376_v56 = vpack.c.b16 %v1375_v35, %v1375_v35 }
 0x182   : > { %1334 = vst [vmem:[#allocation1 + $0x21] ss:$4 sm:$0xff] %v4588_v11 }
 0x183   : > { %1335 = vst [vmem:[#allocation1 + $0x22] ss:$4 sm:$0xff] %v4591_v13  ;;  %v1404_v33 = vunpack.c.l.b16 %v1362_v31  ;;  %1377 = vrot.lane.b32.xlu0 %v1376_v56, %s4234_s19 }
 0x185   : > { %v1405_v52 = vpack.c.b16 %v1404_v33, %v1404_v33 }
 0x186   : > { %v1332_v34 = vld.sshfl [vmem:[#allocation1] sm:$0xff pattern:$0x73625140] }
 0x187   : > { %1337 = vst [vmem:[#allocation1] ss:$4 sm:$0xff] %v4599_v18  ;;  %1406 = vrot.lane.b32.xlu1 %v1405_v52, %s4234_s19  ;;  %v1363_v55 = vpack.c.bf16 %v1332_v34, %v1332_v34  ;;  %v659_v34 = vpack.c.bf16 %v4601_v21, %v4601_v21 }
 0x188   : > { %1338 = vst [vmem:[#allocation1 + $0x1] ss:$4 sm:$0xff] %v4604_v30 }
 0x189   : > { %1339 = vst [vmem:[#allocation1 + $0x2] ss:$4 sm:$0xff] %v4607_v15  ;;  %v1433_v35 = vunpack.c.l.b16 %v1363_v55  ;;  %3990 = vmatmul.msk.bf16.vlgmr.msrb.gmra.mxu0 %vm723_vm5, %v659_v34 }
 0x18a   : > { %v1336_v61 = vld.sshfl [vmem:[#allocation1 + $0x20] sm:$0xff pattern:$0x73625140] }
 0x18b   : > { %1341 = vst [vmem:[#allocation1 + $0x20] ss:$4 sm:$0xff] %v4610_v37  ;;  %v1364_v31 = vpack.c.bf16 %v1336_v61, %v1336_v61  ;;  %v1434_v56 = vpack.c.b16 %v1433_v35, %v1433_v35 }
 0x18c   : > { %1342 = vst [vmem:[#allocation1 + $0x21] ss:$4 sm:$0xff] %v4618_v38 }
 0x18d   : > { %1343 = vst [vmem:[#allocation1 + $0x22] ss:$4 sm:$0xff] %v4621_v26  ;;  %v1462_v33 = vunpack.c.l.b16 %v1364_v31  ;;  %1435 = vrot.lane.b32.xlu2 %v1434_v56, %s4234_s19  ;;  %v891_v56 = vpop.permute.xlu2 %890 }
 0x18f   : > { %v1463_v52 = vpack.c.b16 %v1462_v33, %v1462_v33  ;;  %v658_v33 = vpack.c.bf16 %v4594_v14, %v4594_v14 }
 0x190   : > { %v1340_v59 = vld.sshfl [vmem:[#allocation1] sm:$0xff pattern:$0x73625140] }
 0x191   : > { %1345 = vst [vmem:[#allocation1] ss:$4 sm:$0xff] %v4624_v42  ;;  %1464 = vrot.lane.b32.xlu0 %v1463_v52, %s4234_s19  ;;  %v1365_v54 = vpack.c.bf16 %v1340_v59, %v1340_v59  ;;  %v747_v59 = vpop.permute.xlu0 %746 }
 0x192   : > { %1346 = vst [vmem:[#allocation1 + $0x1] ss:$4 sm:$0xff] %v4627_v45  ;;  %v752_v35 = vsel %vm723_vm5, %v747_v59, 0 }
 0x193   : > { %1347 = vst [vmem:[#allocation1 + $0x2] ss:$4 sm:$0xff] %v4635_v29  ;;  %v1491_v61 = vunpack.c.l.b16 %v1365_v54  ;;  %761 = vmatpush.bf16.xpose.msra.mxu2 %v752_v35  ;;  %v657_v35 = vpack.c.bf16 %v4578_v8, %v4578_v8 }
 0x194   : > { %v4823_v17 = vld.sshfl [vmem:[#allocation1 + $0x20] sm:$0xff pattern:$0x73625140] }
 0x195   : > { %1349 = vst [vmem:[#allocation1 + $0x20] ss:$4 sm:$0xff] %v4638_v47  ;;  %v1492_v19 = vpack.c.b16 %v1491_v61, %v1491_v61 }
 0x196   : > { %1350 = vst [vmem:[#allocation1 + $0x21] ss:$4 sm:$0xff] %v4641_v48 }
 0x197   : > { %1351 = vst [vmem:[#allocation1 + $0x22] ss:$4 sm:$0xff] %v4644_v53  ;;  %1493 = vrot.lane.b32.xlu1 %v1492_v19, %s4234_s19  ;;  %v819_v19 = vpop.permute.xlu1 %818  ;;  %v1123_v14 = vpop.permute.xlu2 %1122 }
 0x198   : > { %v824_v59 = vsel %vm723_vm5, %v819_v19, 0 }
 0x199   : > { %v722_v52 = vpop.permute.xlu0 %721 }
 0x19a   : > { %v4828_v50 = vld.sshfl [vmem:[#allocation1] sm:$0xff pattern:$0x73625140]  ;;  %3989 = vmatmul.msk.bf16.vlgmr.msra.gmra.mxu2 %vm723_vm5, %v658_v33  ;;  %v728_v54 = vsel %vm723_vm5, %v722_v52, 0  ;;  %v896_v33 = vsel %vm723_vm5, %v891_v56, 0 }
 0x19b   : > { %1705 = vst [vmem:[#allocation1] ss:$4 sm:$0xff] %v4550_v44  ;;  %737 = vmatpush.bf16.xpose.msra.mxu1 %v728_v54  ;;  %833 = vmatpush.bf16.xpose.msrb.mxu2 %v824_v59 }
 0x19c   : > { %1707 = vst [vmem:[#allocation1 + $0x1] ss:$4 sm:$0xff] %v4553_v62 }
 0x19d   : > { %1709 = vst [vmem:[#allocation1 + $0x2] ss:$4 sm:$0xff] %v4556_v63 }
 0x19e   : > { %v4835_v57 = vld.sshfl [vmem:[#allocation1 + $0x20] sm:$0xff pattern:$0x73625140] }
 0x19f   : > { %1712 = vst [vmem:[#allocation1 + $0x20] ss:$4 sm:$0xff] %v4559_v2  ;;  %v795_v8 = vpop.permute.xlu1 %794  ;;  %v1147_v19 = vpop.permute.xlu2 %1146 }
 0x1a0   : > { %1714 = vst [vmem:[#allocation1 + $0x21] ss:$4 sm:$0xff] %v4565_v3  ;;  %v1152_v59 = vsel %vm1078_vm6, %v1147_v19, 0  ;;  %v660_v19 = vpack.c.bf16 %v4614_v25, %v4614_v25 }
 0x1a1   : > { %1716 = vst [vmem:[#allocation1 + $0x22] ss:$4 sm:$0xff] %v4568_v4  ;;  %v843_v52 = vpop.permute.xlu0 %842 }
 0x1a2   : > { %3988 = vmatmul.msk.bf16.vlgmr.msra.gmra.mxu1 %vm723_vm5, %v657_v35  ;;  %v848_v54 = vsel %vm723_vm5, %v843_v52, 0  ;;  %v800_v35 = vsel %vm723_vm5, %v795_v8, 0  ;;  %v662_v52 = vpack.c.bf16 %v4647_v49, %v4647_v49 }
 0x1a3   : > { %905 = vmatpush.bf16.xpose.msra.mxu2 %v896_v33  ;;  %857 = vmatpush.bf16.xpose.msra.mxu3 %v848_v54  ;;  %v661_v33 = vpack.c.bf16 %v4630_v46, %v4630_v46 }
 0x1a4   : > { %v4842_v12 = vld.sshfl [vmem:[#allocation1] sm:$0xff pattern:$0x73625140]  ;;  %809 = vmatpush.bf16.xpose.msrb.mxu1 %v800_v35 }
 0x1a5   : > { %1718 = vst [vmem:[#allocation1] ss:$4 sm:$0xff] %v4575_v6 }
 0x1a6   : > { %1719 = vst [vmem:[#allocation1 + $0x1] ss:$4 sm:$0xff] %v4571_v5 }
 0x1a7   : > { %1720 = vst [vmem:[#allocation1 + $0x2] ss:$4 sm:$0xff] %v4582_v9  ;;  %v867_v46 = vpop.permute.xlu1 %866  ;;  %v1195_v8 = vpop.permute.xlu2 %1194 }
 0x1a8   : > { %v4851_v55 = vld.sshfl [vmem:[#allocation1 + $0x20] sm:$0xff pattern:$0x73625140]  ;;  %v872_v49 = vsel %vm723_vm5, %v867_v46, 0  ;;  %v1200_v46 = vsel %vm1078_vm6, %v1195_v8, 0 }
 0x1a9   : > { %1722 = vst [vmem:[#allocation1 + $0x20] ss:$4 sm:$0xff] %v4585_v10  ;;  %v1099_v35 = vpop.permute.xlu0 %1098 }
 0x1aa   : > { %1723 = vst [vmem:[#allocation1 + $0x21] ss:$4 sm:$0xff] %v4588_v11  ;;  %3992 = vmatmul.msk.bf16.vlgmr.msrb.gmra.mxu2 %vm723_vm5, %v661_v33  ;;  %3993 = vmatmul.msk.bf16.vlgmr.msra.gmra.mxu3 %vm723_vm5, %v662_v52  ;;  %v1104_v52 = vsel %vm1078_vm6, %v1099_v35, 0  ;;  %v664_v35 = vpack.c.bf16 %v4657_v51, %v4657_v51 }
 0x1ab   : > { %1724 = vst [vmem:[#allocation1 + $0x22] ss:$4 sm:$0xff] %v4591_v13  ;;  %1161 = vmatpush.bf16.msrb.mxu2 %v1152_v59  ;;  %v1128_v59 = vsel %vm1078_vm6, %v1123_v14, 0  ;;  %1113 = vmatpush.bf16.msra.mxu0 %v1104_v52 }
 0x1ac   : > { %881 = vmatpush.bf16.xpose.msra.mxu1 %v872_v49 }
 0x1ae   : > { %v4857_v21 = vld.sshfl [vmem:[#allocation1] sm:$0xff pattern:$0x73625140] }
 0x1af   : > { %1726 = vst [vmem:[#allocation1] ss:$4 sm:$0xff] %v4599_v18  ;;  %1209 = vmatpush.bf16.msrb.mxu0 %v1200_v46  ;;  %v1073_v25 = vpop.permute.xlu1 %1072 }
 0x1b0   : > { %1727 = vst [vmem:[#allocation1 + $0x1] ss:$4 sm:$0xff] %v4604_v30  ;;  %v1080_v14 = vsel %vm1078_vm6, %v1073_v25, 0 }
 0x1b1   : > { %1728 = vst [vmem:[#allocation1 + $0x2] ss:$4 sm:$0xff] %v4607_v15  ;;  %1089 = vmatpush.bf16.msrb.mxu3 %v1080_v14 }
 0x1b2   : > { %v4863_v31 = vld.sshfl [vmem:[#allocation1 + $0x20] sm:$0xff pattern:$0x73625140]  ;;  %3991 = vmatmul.msk.bf16.vlgmr.msrb.gmra.mxu1 %vm723_vm5, %v660_v19 }
 0x1b3   : > { %1730 = vst [vmem:[#allocation1 + $0x20] ss:$4 sm:$0xff] %v4610_v37 }
 0x1b4   : > { %1731 = vst [vmem:[#allocation1 + $0x21] ss:$4 sm:$0xff] %v4618_v38  ;;  %1137 = vmatpush.bf16.msrb.mxu1 %v1128_v59  ;;  %v663_v59 = vpack.c.bf16 %v4652_v58, %v4652_v58 }
 0x1b5   : > { %1732 = vst [vmem:[#allocation1 + $0x22] ss:$4 sm:$0xff] %v4621_v26 }
 0x1b8   : > { %v4870_v34 = vld.sshfl [vmem:[#allocation1] sm:$0xff pattern:$0x73625140] }
 0x1b9   : > { %1734 = vst [vmem:[#allocation1] ss:$4 sm:$0xff] %v4624_v42  ;;  %v1171_v19 = vpop.permute.xlu0 %1170 }
 0x1ba   : > { %1735 = vst [vmem:[#allocation1 + $0x1] ss:$4 sm:$0xff] %v4627_v45  ;;  %3995 = vmatmul.msk.bf16.vlgmr.msra.gmra.mxu2 %vm723_vm5, %v664_v35  ;;  %v1176_v51 = vsel %vm1078_vm6, %v1171_v19, 0 }
 0x1bb   : > { %1736 = vst [vmem:[#allocation1 + $0x2] ss:$4 sm:$0xff] %v4635_v29  ;;  %1185 = vmatpush.bf16.msra.mxu3 %v1176_v51 }
 0x1bc   : > { %v4877_v61 = vld.sshfl [vmem:[#allocation1 + $0x20] sm:$0xff pattern:$0x73625140] }
 0x1bd   : > { %1738 = vst [vmem:[#allocation1 + $0x20] ss:$4 sm:$0xff] %v4638_v47 }
 0x1be   : > { %1739 = vst [vmem:[#allocation1 + $0x21] ss:$4 sm:$0xff] %v4641_v48 }
 0x1bf   : > { %1740 = vst [vmem:[#allocation1 + $0x22] ss:$4 sm:$0xff] %v4644_v53 }
 0x1c2   : > { %v4888_v7 = vld.sshfl [vmem:[#allocation1] sm:$0xff pattern:$0x73625140]  ;;  %3994 = vmatmul.msk.bf16.vlgmr.msra.gmra.mxu1 %vm723_vm5, %v663_v59 }
 0x1c3   : > { %1950 = vst [vmem:[#allocation1] ss:$4 sm:$0xff] %v4550_v44  ;;  %v1219_v25 = vpop.permute.xlu1 %1218 }
 0x1c4   : > { %1952 = vst [vmem:[#allocation1 + $0x1] ss:$4 sm:$0xff] %v4553_v62  ;;  %v1224_v58 = vsel %vm1078_vm6, %v1219_v25, 0 }
 0x1c5   : > { %1954 = vst [vmem:[#allocation1 + $0x2] ss:$4 sm:$0xff] %v4556_v63  ;;  %1233 = vmatpush.bf16.msra.mxu1 %v1224_v58 }
 0x1c6   : > { %v4893_v56 = vld.sshfl [vmem:[#allocation1 + $0x20] sm:$0xff pattern:$0x73625140] }
 0x1c7   : > { %1957 = vst [vmem:[#allocation1 + $0x20] ss:$4 sm:$0xff] %v4559_v2 }
 0x1c8   : > { %1959 = vst [vmem:[#allocation1 + $0x21] ss:$4 sm:$0xff] %v4565_v3 }
 0x1c9   : > { %1961 = vst [vmem:[#allocation1 + $0x22] ss:$4 sm:$0xff] %v4568_v4 }
 0x1cb   : > { %v1243_v35 = vpop.permute.xlu1 %1242 }
 0x1cc   : > { %v4906_v54 = vld.sshfl [vmem:[#allocation1] sm:$0xff pattern:$0x73625140]  ;;  %v1248_v51 = vsel %vm1078_vm6, %v1243_v35, 0 }
 0x1cd   : > { %1963 = vst [vmem:[#allocation1] ss:$4 sm:$0xff] %v4575_v6  ;;  %1257 = vmatpush.bf16.msra.mxu2 %v1248_v51 }
 0x1ce   : > { %1964 = vst [vmem:[#allocation1 + $0x1] ss:$4 sm:$0xff] %v4571_v5 }
 0x1cf   : > { %1965 = vst [vmem:[#allocation1 + $0x2] ss:$4 sm:$0xff] %v4582_v9 }
 0x1d0   : > { %v4914_v33 = vld.sshfl [vmem:[#allocation1 + $0x20] sm:$0xff pattern:$0x73625140] }
 0x1d1   : > { %1967 = vst [vmem:[#allocation1 + $0x20] ss:$4 sm:$0xff] %v4585_v10 }
 0x1d2   : > { %1968 = vst [vmem:[#allocation1 + $0x21] ss:$4 sm:$0xff] %v4588_v11 }
 0x1d3   : > { %1969 = vst [vmem:[#allocation1 + $0x22] ss:$4 sm:$0xff] %v4591_v13 }
 0x1d6   : > { %v4923_v49 = vld.sshfl [vmem:[#allocation1] sm:$0xff pattern:$0x73625140] }
 0x1d7   : > { %6145 = vst [vmem:[#allocation26_spill] sm:$0xff] %v4923_v49 }
 0x1d8   : > { %1971 = vst [vmem:[#allocation1] ss:$4 sm:$0xff] %v4599_v18 }
 0x1d9   : > { %1972 = vst [vmem:[#allocation1 + $0x1] ss:$4 sm:$0xff] %v4604_v30 }
 0x1da   : > { %1973 = vst [vmem:[#allocation1 + $0x2] ss:$4 sm:$0xff] %v4607_v15  ;;  %v4932_v8 = vld.sshfl [vmem:[#allocation1 + $0x20] sm:$0xff pattern:$0x73625140] }
 0x1db   : > { %6146 = vst [vmem:[#allocation27_spill] sm:$0xff] %v4932_v8 }
 0x1dc   : > { %1975 = vst [vmem:[#allocation1 + $0x20] ss:$4 sm:$0xff] %v4610_v37 }
 0x1dd   : > { %1976 = vst [vmem:[#allocation1 + $0x21] ss:$4 sm:$0xff] %v4618_v38 }
 0x1de   : > { %1977 = vst [vmem:[#allocation1 + $0x22] ss:$4 sm:$0xff] %v4621_v26 }
 0x1e1   : > { %v4940_v52 = vld.sshfl [vmem:[#allocation1] sm:$0xff pattern:$0x73625140] }
 0x1e2   : > { %1979 = vst [vmem:[#allocation1] ss:$4 sm:$0xff] %v4624_v42 }
 0x1e3   : > { %1980 = vst [vmem:[#allocation1 + $0x1] ss:$4 sm:$0xff] %v4627_v45 }
 0x1e4   : > { %1981 = vst [vmem:[#allocation1 + $0x2] ss:$4 sm:$0xff] %v4635_v29 }
 0x1e5   : > { %v4946_v46 = vld.sshfl [vmem:[#allocation1 + $0x20] sm:$0xff pattern:$0x73625140] }
 0x1e6   : > { %6147 = vst [vmem:[#allocation28_spill] sm:$0xff] %v4946_v46 }
 0x1e7   : > { %1983 = vst [vmem:[#allocation1 + $0x20] ss:$4 sm:$0xff] %v4638_v47 }
 0x1e8   : > { %1984 = vst [vmem:[#allocation1 + $0x21] ss:$4 sm:$0xff] %v4641_v48 }
 0x1e9   : > { %1985 = vst [vmem:[#allocation1 + $0x22] ss:$4 sm:$0xff] %v4644_v53 }
 0x1eb   : > { %v4952_v14 = vld.sshfl [vmem:[#allocation1] sm:$0xff pattern:$0x73625140] }
 0x1ec   : > { %6148 = vst [vmem:[#allocation29_spill] sm:$0xff] %v4952_v14 }
 0x1ed   : > { %2003 = vst [vmem:[#allocation1] ss:$4 sm:$0xff] %v4550_v44 }
 0x1ee   : > { %2005 = vst [vmem:[#allocation1 + $0x1] ss:$4 sm:$0xff] %v4553_v62 }
 0x1ef   : > { %2007 = vst [vmem:[#allocation1 + $0x2] ss:$4 sm:$0xff] %v4556_v63 }
 0x1f0   : > { %v4957_v19 = vld.sshfl [vmem:[#allocation1 + $0x20] sm:$0xff pattern:$0x73625140] }
 0x1f1   : > { %6149 = vst [vmem:[#allocation30_spill] sm:$0xff] %v4957_v19 }
 0x1f2   : > { %2010 = vst [vmem:[#allocation1 + $0x20] ss:$4 sm:$0xff] %v4559_v2 }
 0x1f3   : > { %2012 = vst [vmem:[#allocation1 + $0x21] ss:$4 sm:$0xff] %v4565_v3 }
 0x1f4   : > { %2014 = vst [vmem:[#allocation1 + $0x22] ss:$4 sm:$0xff] %v4568_v4 }
 0x1f6   : > { %v4963_v59 = vld.sshfl [vmem:[#allocation1] sm:$0xff pattern:$0x73625140] }
 0x1f7   : > { %2016 = vst [vmem:[#allocation1] ss:$4 sm:$0xff] %v4575_v6 }
 0x1f8   : > { %2017 = vst [vmem:[#allocation1 + $0x1] ss:$4 sm:$0xff] %v4571_v5 }
 0x1f9   : > { %2018 = vst [vmem:[#allocation1 + $0x2] ss:$4 sm:$0xff] %v4582_v9 }
 0x1fb   : > { %v4968_v25 = vld.sshfl [vmem:[#allocation1 + $0x20] sm:$0xff pattern:$0x73625140] }
 0x1fc   : > { %2020 = vst [vmem:[#allocation1 + $0x20] ss:$4 sm:$0xff] %v4585_v10 }
 0x1fd   : > { %2021 = vst [vmem:[#allocation1 + $0x21] ss:$4 sm:$0xff] %v4588_v11 }
 0x1fe   : > { %2022 = vst [vmem:[#allocation1 + $0x22] ss:$4 sm:$0xff] %v4591_v13 }
 0x200   : > { %v4973_v58 = vld.sshfl [vmem:[#allocation1] sm:$0xff pattern:$0x73625140] }
 0x201   : > { %2024 = vst [vmem:[#allocation1] ss:$4 sm:$0xff] %v4599_v18 }
 0x202   : > { %2025 = vst [vmem:[#allocation1 + $0x1] ss:$4 sm:$0xff] %v4604_v30 }
 0x203   : > { %2026 = vst [vmem:[#allocation1 + $0x2] ss:$4 sm:$0xff] %v4607_v15 }
 0x205   : > { %v4978_v35 = vld.sshfl [vmem:[#allocation1 + $0x20] sm:$0xff pattern:$0x73625140] }
 0x206   : > { %2028 = vst [vmem:[#allocation1 + $0x20] ss:$4 sm:$0xff] %v4610_v37  ;;  %v787_v28 = vpop.f32.mrf.mxu0 }
 0x207   : > { %2029 = vst [vmem:[#allocation1 + $0x21] ss:$4 sm:$0xff] %v4618_v38 }
 0x208   : > { %2030 = vst [vmem:[#allocation1 + $0x22] ss:$4 sm:$0xff] %v4621_v26 }
 0x20a   : > { %v4983_v51 = vld.sshfl [vmem:[#allocation1] sm:$0xff pattern:$0x73625140] }
 0x20b   : > { %2032 = vst [vmem:[#allocation1] ss:$4 sm:$0xff] %v4624_v42 }
 0x20c   : > { %2033 = vst [vmem:[#allocation1 + $0x1] ss:$4 sm:$0xff] %v4627_v45 }
 0x20d   : > { %2034 = vst [vmem:[#allocation1 + $0x2] ss:$4 sm:$0xff] %v4635_v29 }
 0x20e   : > { %v789_v23 = vpop.f32.mrf.mxu0 }
 0x20f   : > { %v4988_v1 = vld.sshfl [vmem:[#allocation1 + $0x20] sm:$0xff pattern:$0x73625140] }
 0x210   : > { %6150 = vst [vmem:[#allocation31_spill] sm:$0xff] %v4988_v1 }
 0x211   : > { %2036 = vst [vmem:[#allocation1 + $0x20] ss:$4 sm:$0xff] %v4638_v47 }
 0x212   : > { %2037 = vst [vmem:[#allocation1 + $0x21] ss:$4 sm:$0xff] %v4641_v48 }
 0x213   : > { %2038 = vst [vmem:[#allocation1 + $0x22] ss:$4 sm:$0xff] %v4644_v53 }
 0x214   : > { %v4993_v0 = vld.sshfl [vmem:[#allocation1] sm:$0xff pattern:$0x73625140] }
 0x215   : > { %6151 = vst [vmem:[#allocation32_spill] sm:$0xff] %v4993_v0 }
 0x216   : > { %2392 = vst [vmem:[#allocation1] ss:$4 sm:$0xff] %v4550_v44 }
 0x217   : > { %2394 = vst [vmem:[#allocation1 + $0x1] ss:$4 sm:$0xff] %v4553_v62 }
 0x218   : > { %2396 = vst [vmem:[#allocation1 + $0x2] ss:$4 sm:$0xff] %v4556_v63 }
 0x21a   : > { %v4998_v43 = vld.sshfl [vmem:[#allocation1 + $0x20] sm:$0xff pattern:$0x73625140] }
 0x21b   : > { %6152 = vst [vmem:[#allocation33_spill] sm:$0xff] %v4998_v43 }
 0x21c   : > { %2399 = vst [vmem:[#allocation1 + $0x20] ss:$4 sm:$0xff] %v4559_v2 }
 0x21d   : > { %2401 = vst [vmem:[#allocation1 + $0x21] ss:$4 sm:$0xff] %v4565_v3 }
 0x21e   : > { %2403 = vst [vmem:[#allocation1 + $0x22] ss:$4 sm:$0xff] %v4568_v4 }
 0x21f   : > { %v5003_v41 = vld.sshfl [vmem:[#allocation1] sm:$0xff pattern:$0x73625140] }
 0x220   : > { %6153 = vst [vmem:[#allocation34_spill] sm:$0xff] %v5003_v41 }
 0x221   : > { %2405 = vst [vmem:[#allocation1] ss:$4 sm:$0xff] %v4575_v6 }
 0x222   : > { %2406 = vst [vmem:[#allocation1 + $0x1] ss:$4 sm:$0xff] %v4571_v5 }
 0x223   : > { %2407 = vst [vmem:[#allocation1 + $0x2] ss:$4 sm:$0xff] %v4582_v9 }
 0x225   : > { %v5008_v36 = vld.sshfl [vmem:[#allocation1 + $0x20] sm:$0xff pattern:$0x73625140] }
 0x226   : > { %6154 = vst [vmem:[#allocation35_spill] sm:$0xff] %v5008_v36 }
 0x227   : > { %2409 = vst [vmem:[#allocation1 + $0x20] ss:$4 sm:$0xff] %v4585_v10 }
 0x228   : > { %2410 = vst [vmem:[#allocation1 + $0x21] ss:$4 sm:$0xff] %v4588_v11 }
 0x229   : > { %2411 = vst [vmem:[#allocation1 + $0x22] ss:$4 sm:$0xff] %v4591_v13 }
 0x22a   : > { %v5013_v27 = vld.sshfl [vmem:[#allocation1] sm:$0xff pattern:$0x73625140] }
 0x22b   : > { %6155 = vst [vmem:[#allocation36_spill] sm:$0xff] %v5013_v27 }
 0x22c   : > { %2413 = vst [vmem:[#allocation1] ss:$4 sm:$0xff] %v4599_v18 }
 0x22d   : > { %2414 = vst [vmem:[#allocation1 + $0x1] ss:$4 sm:$0xff] %v4604_v30 }
 0x22e   : > { %2415 = vst [vmem:[#allocation1 + $0x2] ss:$4 sm:$0xff] %v4607_v15 }
 0x230   : > { %v5018_v24 = vld.sshfl [vmem:[#allocation1 + $0x20] sm:$0xff pattern:$0x73625140] }
 0x231   : > { %6156 = vst [vmem:[#allocation37_spill] sm:$0xff] %v5018_v24  ;;  %v763_v24 = vpop.f32.mrf.mxu2 }
 0x232   : > { %2417 = vst [vmem:[#allocation1 + $0x20] ss:$4 sm:$0xff] %v4610_v37  ;;  %v5049_v14 = vmul.f32 0.35355338, %v763_v24 }
 0x233   : > { %2418 = vst [vmem:[#allocation1 + $0x21] ss:$4 sm:$0xff] %v4618_v38 }
 0x234   : > { %2419 = vst [vmem:[#allocation1 + $0x22] ss:$4 sm:$0xff] %v4621_v26  ;;  %v923_v36 = vsel %vm919_vm7, %v5049_v14, -inf }
 0x235   : > { %v5023_v16 = vld.sshfl [vmem:[#allocation1] sm:$0xff pattern:$0x73625140] }
 0x236   : > { %6157 = vst [vmem:[#allocation38_spill] sm:$0xff] %v5023_v16  ;;  %v739_v16 = vpop.f32.mrf.mxu1 }
 0x237   : > { %2421 = vst [vmem:[#allocation1] ss:$4 sm:$0xff] %v4624_v42  ;;  %v5040_v1 = vmul.f32 0.35355338, %v739_v16 }
 0x238   : > { %2422 = vst [vmem:[#allocation1 + $0x1] ss:$4 sm:$0xff] %v4627_v45 }
 0x239   : > { %2423 = vst [vmem:[#allocation1 + $0x2] ss:$4 sm:$0xff] %v4635_v29 }
 0x23b   : > { %v5028_v41 = vld.sshfl [vmem:[#allocation1 + $0x20] sm:$0xff pattern:$0x73625140] }
 0x23c   : > { %6158 = vst [vmem:[#allocation39_spill] sm:$0xff] %v5028_v41  ;;  %v920_v41 = vsel %vm919_vm7, %v5040_v1, -inf }
 0x23d   : > { %2425 = vst [vmem:[#allocation1 + $0x20] ss:$4 sm:$0xff] %v4638_v47  ;;  %921 = vmax.xlane.f32.xlu2 %v920_v41  ;;  %v859_v41 = vpop.f32.mrf.mxu3 }
 0x23e   : > { %2426 = vst [vmem:[#allocation1 + $0x21] ss:$4 sm:$0xff] %v4641_v48  ;;  %v741_v16 = vpop.f32.mrf.mxu1 }
 0x23f   : > { %2427 = vst [vmem:[#allocation1 + $0x22] ss:$4 sm:$0xff] %v4644_v53 }
 0x240   : > { %v5033_v23 = vld.sshfl [vmem:[#allocation1] sm:$0xff pattern:$0x73625140] }
 0x241   : > { %6159 = vst [vmem:[#allocation40_spill] sm:$0xff] %v5033_v23  ;;  %v765_v23 = vpop.f32.mrf.mxu2 }
 0x242   : > { %2637 = vst [vmem:[#allocation1] ss:$4 sm:$0xff] %v4550_v44  ;;  %v5061_v23 = vmul.f32 0.35355338, %v787_v28 }
 0x243   : > { %2639 = vst [vmem:[#allocation1 + $0x1] ss:$4 sm:$0xff] %v4553_v62 }
 0x244   : > { %2641 = vst [vmem:[#allocation1 + $0x2] ss:$4 sm:$0xff] %v4556_v63  ;;  %v926_v28 = vsel %vm919_vm7, %v5061_v23, -inf }
 0x245   : > { %924 = vmax.xlane.f32.xlu2 %v923_v36 }
 0x246   : > { %v5038_v46 = vld.sshfl [vmem:[#allocation1 + $0x20] sm:$0xff pattern:$0x73625140] }
 0x247   : > { %6160 = vst [vmem:[#allocation41_spill] sm:$0xff] %v5038_v46 }
 0x248   : > { %2644 = vst [vmem:[#allocation1 + $0x20] ss:$4 sm:$0xff] %v4559_v2 }
 0x249   : > { %2646 = vst [vmem:[#allocation1 + $0x21] ss:$4 sm:$0xff] %v4565_v3  ;;  %v835_v24 = vpop.f32.mrf.mxu2 }
 0x24a   : > { %2648 = vst [vmem:[#allocation1 + $0x22] ss:$4 sm:$0xff] %v4568_v4  ;;  %v5063_v16 = vmul.f32 0.35355338, %v835_v24  ;;  %v5080_v24 = vmul.f32 0.35355338, %v859_v41 }
 0x24b   : > { %v5047_v27 = vld.sshfl [vmem:[#allocation1] sm:$0xff pattern:$0x73625140] }
 0x24c   : > { %6161 = vst [vmem:[#allocation42_spill] sm:$0xff] %v5047_v27  ;;  %v811_v27 = vpop.f32.mrf.mxu1  ;;  %v932_v19 = vsel %vm919_vm7, %v5063_v16, -inf  ;;  %v935_v43 = vsel %vm919_vm7, %v5080_v24, -inf }
 0x24d   : > { %2650 = vst [vmem:[#allocation1] ss:$4 sm:$0xff] %v4575_v6  ;;  %933 = vmax.xlane.f32.xlu1 %v932_v19  ;;  %927 = vmax.xlane.f32.xlu2 %v926_v28  ;;  %v861_v19 = vpop.f32.mrf.mxu3 }
 0x24e   : > { %2651 = vst [vmem:[#allocation1 + $0x1] ss:$4 sm:$0xff] %v4571_v5 }
 0x24f   : > { %2652 = vst [vmem:[#allocation1 + $0x2] ss:$4 sm:$0xff] %v4582_v9 }
 0x251   : > { %v5054_v46 = vld.sshfl [vmem:[#allocation1 + $0x20] sm:$0xff pattern:$0x73625140] }
 0x252   : > { %6162 = vst [vmem:[#allocation43_spill] sm:$0xff] %v5054_v46  ;;  %v5067_v46 = vmul.f32 0.35355338, %v811_v27 }
 0x253   : > { %2654 = vst [vmem:[#allocation1 + $0x20] ss:$4 sm:$0xff] %v4585_v10 }
 0x254   : > { %2655 = vst [vmem:[#allocation1 + $0x21] ss:$4 sm:$0xff] %v4588_v11  ;;  %v929_v36 = vsel %vm919_vm7, %v5067_v46, -inf  ;;  %v813_v49 = vpop.f32.mrf.mxu1 }
 0x255   : > { %2656 = vst [vmem:[#allocation1 + $0x22] ss:$4 sm:$0xff] %v4591_v13  ;;  %930 = vmax.xlane.f32.xlu0 %v929_v36  ;;  %936 = vmax.xlane.f32.xlu1 %v935_v43 }
 0x256   : > { %v5065_v0 = vld.sshfl [vmem:[#allocation1] sm:$0xff pattern:$0x73625140] }
 0x257   : > { %6163 = vst [vmem:[#allocation44_spill] sm:$0xff] %v5065_v0  ;;  %v837_v0 = vpop.f32.mrf.mxu2 }
 0x258   : > { %2658 = vst [vmem:[#allocation1] ss:$4 sm:$0xff] %v4599_v18 }
 0x259   : > { %2659 = vst [vmem:[#allocation1 + $0x1] ss:$4 sm:$0xff] %v4604_v30 }
 0x25a   : > { %2660 = vst [vmem:[#allocation1 + $0x2] ss:$4 sm:$0xff] %v4607_v15 }
 0x25c   : > { %v5078_v27 = vld.sshfl [vmem:[#allocation1 + $0x20] sm:$0xff pattern:$0x73625140]  ;;  %v883_v49 = vpop.f32.mrf.mxu1 }
 0x25d   : > { %6164 = vst [vmem:[#allocation45_spill] sm:$0xff] %v5078_v27  ;;  %v5098_v28 = vmul.f32 0.35355338, %v883_v49  ;;  %v1312_v27 = vpack.c.bf16 %v4773_v20, %v4773_v20 }
 0x25e   : > { %2662 = vst [vmem:[#allocation1 + $0x20] ss:$4 sm:$0xff] %v4610_v37 }
 0x25f   : > { %2663 = vst [vmem:[#allocation1 + $0x21] ss:$4 sm:$0xff] %v4618_v38  ;;  %v907_v41 = vpop.f32.mrf.mxu2  ;;  %v938_v19 = vsel %vm919_vm7, %v5098_v28, -inf }
 0x260   : > { %2664 = vst [vmem:[#allocation1 + $0x22] ss:$4 sm:$0xff] %v4621_v26  ;;  %v5094_v36 = vmul.f32 0.35355338, %v907_v41  ;;  %939 = vmax.xlane.f32.xlu2 %v938_v19 }
 0x261   : > { %v5087_v8 = vld.sshfl [vmem:[#allocation1] sm:$0xff pattern:$0x73625140] }
 0x262   : > { %6165 = vst [vmem:[#allocation46_spill] sm:$0xff] %v5087_v8  ;;  %v941_v43 = vsel %vm919_vm7, %v5094_v36, -inf }
 0x263   : > { %2666 = vst [vmem:[#allocation1] ss:$4 sm:$0xff] %v4624_v42  ;;  %942 = vmax.xlane.f32.xlu0 %v941_v43  ;;  %v1486_v43 = vunpack.c.l.b16 %v1312_v27 }
 0x264   : > { %2667 = vst [vmem:[#allocation1 + $0x1] ss:$4 sm:$0xff] %v4627_v45  ;;  %v885_v49 = vpop.f32.mrf.mxu1 }
 0x265   : > { %2668 = vst [vmem:[#allocation1 + $0x2] ss:$4 sm:$0xff] %v4635_v29 }
 0x267   : > { %v5092_v0 = vld.sshfl [vmem:[#allocation1 + $0x20] sm:$0xff pattern:$0x73625140]  ;;  %v909_v41 = vpop.f32.mrf.mxu2 }
 0x268   : > { %6166 = vst [vmem:[#allocation47_spill] sm:$0xff] %v5092_v0  ;;  %v1487_v41 = vpack.c.b16 %v1486_v43, %v1486_v43 }
 0x269   : > { %2670 = vst [vmem:[#allocation1 + $0x20] ss:$4 sm:$0xff] %v4638_v47 }
 0x26a   : > { %2671 = vst [vmem:[#allocation1 + $0x21] ss:$4 sm:$0xff] %v4641_v48 }
 0x26b   : > { %2672 = vst [vmem:[#allocation1 + $0x22] ss:$4 sm:$0xff] %v4644_v53 }
 0x26c   : > { %v5105_v0 = vld.sshfl [vmem:[#allocation1] sm:$0xff pattern:$0x73625140] }
 0x26d   : > { %6167 = vst [vmem:[#allocation48_spill] sm:$0xff] %v5105_v0 }
 0x26e   : > { %2690 = vst [vmem:[#allocation1] ss:$4 sm:$0xff] %v4550_v44  ;;  %1488 = vrot.lane.b32.xlu1 %v1487_v41, %s4233_s18 }
 0x26f   : > { %2692 = vst [vmem:[#allocation1 + $0x1] ss:$4 sm:$0xff] %v4553_v62 }
 0x270   : > { %2694 = vst [vmem:[#allocation1 + $0x2] ss:$4 sm:$0xff] %v4556_v63 }
 0x272   : > { %v5110_v8 = vld.sshfl [vmem:[#allocation1 + $0x20] sm:$0xff pattern:$0x73625140] }
 0x273   : > { %6168 = vst [vmem:[#allocation49_spill] sm:$0xff] %v5110_v8 }
 0x274   : > { %2697 = vst [vmem:[#allocation1 + $0x20] ss:$4 sm:$0xff] %v4559_v2 }
 0x275   : > { %2699 = vst [vmem:[#allocation1 + $0x21] ss:$4 sm:$0xff] %v4565_v3 }
 0x276   : > { %2701 = vst [vmem:[#allocation1 + $0x22] ss:$4 sm:$0xff] %v4568_v4 }
 0x277   : > { %v5117_v19 = vld.sshfl [vmem:[#allocation1] sm:$0xff pattern:$0x73625140] }
 0x278   : > { %2703 = vst [vmem:[#allocation1] ss:$4 sm:$0xff] %v4575_v6 }
 0x279   : > { %2704 = vst [vmem:[#allocation1 + $0x1] ss:$4 sm:$0xff] %v4571_v5 }
 0x27a   : > { %2705 = vst [vmem:[#allocation1 + $0x2] ss:$4 sm:$0xff] %v4582_v9 }
 0x27d   : > { %v5123_v49 = vld.sshfl [vmem:[#allocation1 + $0x20] sm:$0xff pattern:$0x73625140] }
 0x27e   : > { %2707 = vst [vmem:[#allocation1 + $0x20] ss:$4 sm:$0xff] %v4585_v10 }
 0x27f   : > { %2708 = vst [vmem:[#allocation1 + $0x21] ss:$4 sm:$0xff] %v4588_v11 }
 0x280   : > { %2709 = vst [vmem:[#allocation1 + $0x22] ss:$4 sm:$0xff] %v4591_v13 }
 0x281   : > { %v5128_v20 = vld.sshfl [vmem:[#allocation1] sm:$0xff pattern:$0x73625140] }
 0x282   : > { %2711 = vst [vmem:[#allocation1] ss:$4 sm:$0xff] %v4599_v18 }
 0x283   : > { %2712 = vst [vmem:[#allocation1 + $0x1] ss:$4 sm:$0xff] %v4604_v30 }
 0x284   : > { %2713 = vst [vmem:[#allocation1 + $0x2] ss:$4 sm:$0xff] %v4607_v15 }
 0x287   : > { %v5133_v27 = vld.sshfl [vmem:[#allocation1 + $0x20] sm:$0xff pattern:$0x73625140] }
 0x288   : > { %2715 = vst [vmem:[#allocation1 + $0x20] ss:$4 sm:$0xff] %v4610_v37 }
 0x289   : > { %2716 = vst [vmem:[#allocation1 + $0x21] ss:$4 sm:$0xff] %v4618_v38 }
 0x28a   : > { %2717 = vst [vmem:[#allocation1 + $0x22] ss:$4 sm:$0xff] %v4621_v26 }
 0x28b   : > { %v5138_v43 = vld.sshfl [vmem:[#allocation1] sm:$0xff pattern:$0x73625140] }
 0x28c   : > { %2719 = vst [vmem:[#allocation1] ss:$4 sm:$0xff] %v4624_v42 }
 0x28d   : > { %2720 = vst [vmem:[#allocation1 + $0x1] ss:$4 sm:$0xff] %v4627_v45 }
 0x28e   : > { %2721 = vst [vmem:[#allocation1 + $0x2] ss:$4 sm:$0xff] %v4635_v29 }
 0x291   : > { %v5143_v41 = vld.sshfl [vmem:[#allocation1 + $0x20] sm:$0xff pattern:$0x73625140] }
 0x292   : > { %6169 = vst [vmem:[#allocation50_spill] sm:$0xff] %v5143_v41 }
 0x293   : > { %2723 = vst [vmem:[#allocation1 + $0x20] ss:$4 sm:$0xff] %v4638_v47 }
 0x294   : > { %2724 = vst [vmem:[#allocation1 + $0x21] ss:$4 sm:$0xff] %v4641_v48 }
 0x295   : > { %2725 = vst [vmem:[#allocation1 + $0x22] ss:$4 sm:$0xff] %v4644_v53  ;;  %v5148_v0 = vld.sshfl [vmem:[#allocation1] sm:$0xff pattern:$0x73625140] }
 0x296   : > { %3079 = vst [vmem:[#allocation1] ss:$4 sm:$0xff] %v4550_v44 }
 0x297   : > { %3081 = vst [vmem:[#allocation1 + $0x1] ss:$4 sm:$0xff] %v4553_v62 }
 0x298   : > { %3083 = vst [vmem:[#allocation1 + $0x2] ss:$4 sm:$0xff] %v4556_v63 }
 0x29c   : > { %v5153_v8 = vld.sshfl [vmem:[#allocation1 + $0x20] sm:$0xff pattern:$0x73625140] }
 0x29d   : > { %3086 = vst [vmem:[#allocation1 + $0x20] ss:$4 sm:$0xff] %v4559_v2 }
 0x29e   : > { %3088 = vst [vmem:[#allocation1 + $0x21] ss:$4 sm:$0xff] %v4565_v3  ;;  %v5183_v3 = vpop.permute.xlu0 %1459 }
 0x29f   : > { %3090 = vst [vmem:[#allocation1 + $0x22] ss:$4 sm:$0xff] %v4568_v4  ;;  %v5158_v41 = vld.sshfl [vmem:[#allocation1] sm:$0xff pattern:$0x73625140]  ;;  %v5185_v4 = vpop.permute.xlu2 %1435 }
 0x2a0   : > { %3092 = vst [vmem:[#allocation1] ss:$4 sm:$0xff] %v4575_v6  ;;  %v5189_v6 = vpop.permute.xlu1 %1372 }
 0x2a1   : > { %3093 = vst [vmem:[#allocation1 + $0x1] ss:$4 sm:$0xff] %v4571_v5 }
 0x2a2   : > { %3094 = vst [vmem:[#allocation1 + $0x2] ss:$4 sm:$0xff] %v4582_v9 }
 0x2a6   : > { %v5163_v44 = vld.sshfl [vmem:[#allocation1 + $0x20] sm:$0xff pattern:$0x73625140]  ;;  %v5194_v9 = vpop.permute.xlu0 %1377 }
 0x2a7   : > { %3096 = vst [vmem:[#allocation1 + $0x20] ss:$4 sm:$0xff] %v4585_v10 }
 0x2a8   : > { %3097 = vst [vmem:[#allocation1 + $0x21] ss:$4 sm:$0xff] %v4588_v11  ;;  %v5196_v11 = vpop.permute.xlu1 %1406 }
 0x2a9   : > { %3098 = vst [vmem:[#allocation1 + $0x22] ss:$4 sm:$0xff] %v4591_v13  ;;  %v5168_v62 = vld.sshfl [vmem:[#allocation1] sm:$0xff pattern:$0x73625140] }
 0x2aa   : > { %3100 = vst [vmem:[#allocation1] ss:$4 sm:$0xff] %v4599_v18 }
 0x2ab   : > { %3101 = vst [vmem:[#allocation1 + $0x1] ss:$4 sm:$0xff] %v4604_v30 }
 0x2ac   : > { %3102 = vst [vmem:[#allocation1 + $0x2] ss:$4 sm:$0xff] %v4607_v15 }
 0x2ae   : > { %v5199_v30 = vpop.permute.xlu0 %1464 }
 0x2b0   : > { %v5173_v63 = vld.sshfl [vmem:[#allocation1 + $0x20] sm:$0xff pattern:$0x73625140]  ;;  %v922_v10 = vpop.xlane.xlu2 %921 }
 0x2b1   : > { %3104 = vst [vmem:[#allocation1 + $0x20] ss:$4 sm:$0xff] %v4610_v37  ;;  %v944_v13 = vsub.f32 %v5040_v1, %v922_v10  ;;  %v5201_v37 = vpop.permute.xlu1 %1493 }
 0x2b2   : > { %3105 = vst [vmem:[#allocation1 + $0x21] ss:$4 sm:$0xff] %v4618_v38 }
 0x2b3   : > { %3106 = vst [vmem:[#allocation1 + $0x22] ss:$4 sm:$0xff] %v4621_v26  ;;  %v5178_v2 = vld.sshfl [vmem:[#allocation1] sm:$0xff pattern:$0x73625140] }
 0x2b4   : > { %3108 = vst [vmem:[#allocation1] ss:$4 sm:$0xff] %v4624_v42  ;;  %v952_v18 = vmul.f32 1.442695, %v944_v13 }
 0x2b5   : > { %3109 = vst [vmem:[#allocation1 + $0x1] ss:$4 sm:$0xff] %v4627_v45 }
 0x2b6   : > { %3110 = vst [vmem:[#allocation1 + $0x2] ss:$4 sm:$0xff] %v4635_v29  ;;  %4095 = vpow2.f32 %v952_v18 }
 0x2b8   : > { %v925_v15 = vpop.xlane.xlu2 %924 }
 0x2b9   : > { %v945_v38 = vsub.f32 %v5049_v14, %v925_v15 }
 0x2ba   : > { %v5187_v5 = vld.sshfl [vmem:[#allocation1 + $0x20] sm:$0xff pattern:$0x73625140] }
 0x2bb   : > { %3112 = vst [vmem:[#allocation1 + $0x20] ss:$4 sm:$0xff] %v4638_v47  ;;  %v954_v42 = vmul.f32 1.442695, %v945_v38 }
 0x2bc   : > { %3113 = vst [vmem:[#allocation1 + $0x21] ss:$4 sm:$0xff] %v4641_v48  ;;  %v5204_v26 = vpop.eup %4095 }
 0x2bd   : > { %3114 = vst [vmem:[#allocation1 + $0x22] ss:$4 sm:$0xff] %v4644_v53  ;;  %v968_v45 = vsel %vm919_vm7, %v5204_v26, 0.0  ;;  %4097 = vpow2.f32 %v954_v42 }
 0x2be   : > { %969 = vadd.xlane.f32.xlu0 %v968_v45 }
 0x2c0   : > { %v928_v47 = vpop.xlane.xlu2 %927  ;;  %v934_v1 = vpop.xlane.xlu1 %933 }
 0x2c1   : > { %v946_v53 = vsub.f32 %v5061_v23, %v928_v47  ;;  %v948_v14 = vsub.f32 %v5063_v16, %v934_v1 }
 0x2c3   : > { %v5210_v10 = vpop.eup %4097  ;;  %v956_v18 = vmul.f32 1.442695, %v946_v53  ;;  %v960_v38 = vmul.f32 1.442695, %v948_v14 }
 0x2c4   : > { %v971_v15 = vsel %vm919_vm7, %v5210_v10, 0.0 }
 0x2c5   : > { %972 = vadd.xlane.f32.xlu2 %v971_v15 }
 0x2c8   : > { %v931_v29 = vpop.xlane.xlu0 %930 }
 0x2c9   : > { %v947_v48 = vsub.f32 %v5067_v46, %v931_v29 }
 0x2cb   : > { %v958_v13 = vmul.f32 1.442695, %v947_v48 }
 0x2cd   : > { %4099 = vpow2.f32 %v958_v13 }
 0x2ce   : > { %4101 = vpow2.f32 %v956_v18  ;;  %v1309_v18 = vpack.c.bf16 %v4748_v60, %v4748_v60 }
 0x2cf   : > { %4103 = vpow2.f32 %v960_v38 }
 0x2d0   : > { %v1399_v14 = vunpack.c.l.b16 %v1309_v18 }
 0x2d2   : > { %v1400_v15 = vpack.c.b16 %v1399_v14, %v1399_v14 }
 0x2d3   : > { %v5215_v42 = vpop.eup %4099 }
 0x2d4   : > { %v5217_v45 = vpop.eup %4101  ;;  %v977_v46 = vsel %vm919_vm7, %v5215_v42, 0.0 }
 0x2d5   : > { %978 = vadd.xlane.f32.xlu2 %v977_v46  ;;  %v974_v23 = vsel %vm919_vm7, %v5217_v45, 0.0  ;;  %v5224_v1 = vpop.eup %4103 }
 0x2d6   : > { %975 = vadd.xlane.f32.xlu0 %v974_v23  ;;  %v943_v16 = vpop.xlane.xlu0 %942  ;;  %v980_v48 = vsel %vm919_vm7, %v5224_v1, 0.0  ;;  %v1368_v23 = vpack.c.bf16 %v4835_v57, %v4835_v57 }
 0x2d7   : > { %v951_v29 = vsub.f32 %v5094_v36, %v943_v16  ;;  %v1310_v36 = vpack.c.bf16 %v4759_v40, %v4759_v40 }
 0x2d8   : > { %v1578_v16 = vunpack.c.l.b16 %v1368_v23 }
 0x2d9   : > { %v966_v47 = vmul.f32 1.442695, %v951_v29  ;;  %v1428_v38 = vunpack.c.l.b16 %v1310_v36  ;;  %v940_v36 = vpop.xlane.xlu2 %939 }
 0x2da   : > { %v1579_v29 = vpack.c.b16 %v1578_v16, %v1578_v16  ;;  %v1752_v16 = vpack.c.bf16 %v4857_v21, %v4857_v21 }
 0x2db   : > { %4105 = vpow2.f32 %v966_v47  ;;  %v1429_v46 = vpack.c.b16 %v1428_v38, %v1428_v38  ;;  %v1315_v47 = vpack.c.bf16 %v4798_v39, %v4798_v39  ;;  %v1751_v39 = vpack.c.bf16 %v4851_v55, %v4851_v55 }
 0x2dc   : > { %v1807_v55 = vunpack.c.l.b16 %v1752_v16 }
 0x2dd   : > { %v1573_v60 = vunpack.c.l.b16 %v1315_v47  ;;  %v1783_v23 = vunpack.c.l.b16 %v1751_v39 }
 0x2de   : > { %981 = vadd.xlane.f32.xlu0 %v980_v48  ;;  %v937_v48 = vpop.xlane.xlu1 %936  ;;  %v1808_v47 = vpack.c.b16 %v1807_v55, %v1807_v55 }
 0x2df   : > { %v1574_v40 = vpack.c.b16 %v1573_v60, %v1573_v60  ;;  %v949_v18 = vsub.f32 %v5080_v24, %v937_v48  ;;  %v1784_v24 = vpack.c.b16 %v1783_v23, %v1783_v23  ;;  %v2048_v60 = vpack.c.bf16 %v4963_v59, %v4963_v59 }
 0x2e0   : > { %v1367_v59 = vpack.c.bf16 %v4828_v50, %v4828_v50 }
 0x2e1   : > { %v5228_v53 = vpop.eup %4105  ;;  %v962_v57 = vmul.f32 1.442695, %v949_v18  ;;  %v2062_v21 = vunpack.c.l.b16 %v2048_v60  ;;  %v1366_v18 = vpack.c.bf16 %v4823_v17, %v4823_v17  ;;  %v1314_v17 = vpack.c.bf16 %v4791_v32, %v4791_v32 }
 0x2e2   : > { %v989_v13 = vsel %vm919_vm7, %v5228_v53, 0.0  ;;  %v1755_v60 = vpack.c.bf16 %v4877_v61, %v4877_v61  ;;  %v1383_v61 = vsel %vm723_vm5, %v5194_v9, 0 }
 0x2e3   : > { %990 = vadd.xlane.f32.xlu1 %v989_v13  ;;  %v1750_v13 = vpack.c.bf16 %v4842_v12, %v4842_v12  ;;  %4107 = vpow2.f32 %v962_v57  ;;  %v1544_v50 = vunpack.c.l.b16 %v1314_v17 }
 0x2e5   : > { %v1759_v14 = vunpack.c.l.b16 %v1750_v13  ;;  %v1995_v13 = vpack.c.bf16 %v4906_v54, %v4906_v54  ;;  %v1313_v54 = vpack.c.bf16 %v4782_v22, %v4782_v22  ;;  %v1545_v16 = vpack.c.b16 %v1544_v50, %v1544_v50 }
 0x2e6   : > { %v1754_v22 = vpack.c.bf16 %v4870_v34, %v4870_v34 }
 0x2e7   : > { %v1760_v38 = vpack.c.b16 %v1759_v14, %v1759_v14  ;;  %v2057_v14 = vunpack.c.l.b16 %v1995_v13  ;;  %v1879_v13 = vunpack.c.l.b16 %v1755_v60 }
 0x2e8   : > { %v1855_v32 = vunpack.c.l.b16 %v1754_v22 }
 0x2e9   : > { %v5251_v12 = vpop.eup %4107  ;;  %v2058_v57 = vpack.c.b16 %v2057_v14, %v2057_v14 }
 0x2ed   : > { %1401 = vrot.lane.b32.xlu2 %v1400_v15, %s4233_s18  ;;  %v950_v15 = vsub.f32 %v5098_v28, %v940_v36  ;;  %v983_v28 = vsel %vm919_vm7, %v5251_v12, 0.0  ;;  %v1520_v36 = vunpack.c.l.b16 %v1366_v18 }
 0x2f2   : > { %1430 = vrot.lane.b32.xlu0 %v1429_v46, %s4233_s18  ;;  %v964_v46 = vmul.f32 1.442695, %v950_v15  ;;  %v1549_v15 = vunpack.c.l.b16 %v1367_v59  ;;  %v1880_v59 = vpack.c.b16 %v1879_v13, %v1879_v13 }
 0x2f4   : > { %4109 = vpow2.f32 %v964_v46  ;;  %v1550_v39 = vpack.c.b16 %v1549_v15, %v1549_v15  ;;  %v1515_v46 = vunpack.c.l.b16 %v1313_v54 }
 0x2f6   : > { %v1516_v23 = vpack.c.b16 %v1515_v46, %v1515_v46 }
 0x2fc   : > { %1580 = vrot.lane.b32.xlu1 %v1579_v29, %s4234_s19  ;;  %v5258_v29 = vpop.eup %4109 }
 0x2fd   : > { %v986_v48 = vsel %vm919_vm7, %v5258_v29, 0.0 }
 0x304   : > { %1575 = vrot.lane.b32.xlu1 %v1574_v40, %s4233_s18  ;;  %v2063_v40 = vpack.c.b16 %v2062_v21, %v2062_v21 }
 0x30c   : > { %1761 = vrot.lane.b32.xlu1 %v1760_v38, %s4235_s20  ;;  %v1521_v38 = vpack.c.b16 %v1520_v36, %v1520_v36  ;;  %v1756_v36 = vpack.c.bf16 %v4888_v7, %v4888_v7  ;;  %v1489_v7 = vpop.permute.xlu1 %1488 }
 0x30e   : > { %v1903_v17 = vunpack.c.l.b16 %v1756_v36 }
 0x314   : > { %1785 = vrot.lane.b32.xlu1 %v1784_v24, %s4235_s20  ;;  %v1753_v24 = vpack.c.bf16 %v4863_v31, %v4863_v31  ;;  %v1757_v31 = vpack.c.bf16 %v4893_v56, %v4893_v56  ;;  %v2051_v56 = vpack.c.bf16 %v4978_v35, %v4978_v35  ;;  %v1412_v35 = vsel %vm723_vm5, %v5196_v11, 0 }
 0x316   : > { %984 = vadd.xlane.f32.xlu2 %v983_v28  ;;  %v1831_v55 = vunpack.c.l.b16 %v1753_v24  ;;  %v1927_v14 = vunpack.c.l.b16 %v1757_v31  ;;  %v2149_v9 = vunpack.c.l.b16 %v2051_v56  ;;  %v1499_v31 = vsel %vm723_vm5, %v5201_v37, 0 }
 0x318   : > { %v2150_v46 = vpack.c.b16 %v2149_v9, %v2149_v9 }
 0x31c   : > { %987 = vadd.xlane.f32.xlu0 %v986_v48  ;;  %1809 = vrot.lane.b32.xlu1 %v1808_v47, %s4235_s20  ;;  %v1832_v47 = vpack.c.b16 %v1831_v55, %v1831_v55  ;;  %v1856_v48 = vpack.c.b16 %v1855_v32, %v1855_v32  ;;  %v1470_v55 = vsel %vm723_vm5, %v5199_v30, 0  ;;  %v1441_v32 = vsel %vm723_vm5, %v5185_v4, 0 }
 0x324   : > { %2064 = vrot.lane.b32.xlu1 %v2063_v40, %s4236_s23 }
 0x32c   : > { %2059 = vrot.lane.b32.xlu1 %v2058_v57, %s4237_s24 }
 0x32e   : > { %1522 = vrot.lane.b32.xlu2 %v1521_v38, %s4234_s19 }
 0x330   : > { %1551 = vrot.lane.b32.xlu0 %v1550_v39, %s4234_s19 }
 0x331   : > { %v970_v28 = vpop.xlane.xlu0 %969 }
 0x332   : > { %4111 = vrcp.f32 %v970_v28 }
 0x336   : > { %1517 = vrot.lane.b32.xlu2 %v1516_v23, %s4233_s18 }
 0x338   : > { %1546 = vrot.lane.b32.xlu0 %v1545_v16, %s4233_s18  ;;  %v4112_v21 = vpop.eup %4111  ;;  %v973_v34 = vpop.xlane.xlu2 %972  ;;  %s265_s18 = scalar_lea.vmem %s6094_s6, %s3976_s7 }
 0x339   : > { %v1000_v40 = vmul.f32 %v4112_v21, %v5204_v26  ;;  %4113 = vrcp.f32 %v973_v34  ;;  %v1928_v26 = vpack.c.b16 %v1927_v14, %v1927_v14 }
 0x33b   : > { %v1008_v18 = vpack.c.bf16 %v1000_v40, %v1000_v40 }
 0x33d   : > { %3996 = vmatmul.msk.bf16.vlgmr.msrb.gmra.mxu3 %vm1074_vm8, %v1008_v18 }
 0x33e   : > { %1833 = vrot.lane.b32.xlu2 %v1832_v47, %s4235_s20  ;;  %1392 = vmatpush.bf16.xpose.msrb.mxu3 %v1383_v61 }
 0x33f   : > { %v4114_v57 = vpop.eup %4113 }
 0x340   : > { %1857 = vrot.lane.b32.xlu0 %v1856_v48, %s4235_s20  ;;  %v1001_v15 = vmul.f32 %v4114_v57, %v5210_v10  ;;  %v1904_v10 = vpack.c.b16 %v1903_v17, %v1903_v17 }
 0x342   : > { %v1009_v39 = vpack.c.bf16 %v1001_v15, %v1001_v15 }
 0x344   : > { %3997 = vmatmul.msk.bf16.vlgmr.msra.gmra.mxu0 %vm1074_vm8, %v1009_v39 }
 0x345   : > { %1421 = vmatpush.bf16.xpose.msra.mxu0 %v1412_v35 }
 0x346   : > { %1881 = vrot.lane.b32.xlu2 %v1880_v59, %s4235_s20 }
 0x348   : > { %1929 = vrot.lane.b32.xlu0 %v1928_v26, %s4235_s20  ;;  %v979_v38 = vpop.xlane.xlu2 %978 }
 0x349   : > { %4115 = vrcp.f32 %v979_v38  ;;  %v976_v54 = vpop.xlane.xlu0 %975 }
 0x34a   : > { %4117 = vrcp.f32 %v976_v54 }
 0x34e   : > { %2151 = vrot.lane.b32.xlu2 %v2150_v46, %s4236_s23 }
 0x34f   : > { %v4116_v50 = vpop.eup %4115 }
 0x350   : > { %v4118_v23 = vpop.eup %4117  ;;  %v1003_v24 = vmul.f32 %v4116_v50, %v5215_v42  ;;  %1905 = vrot.lane.b32.xlu0 %v1904_v10, %s4235_s20  ;;  %v1402_v34 = vpop.permute.xlu2 %1401 }
 0x351   : > { %v1002_v16 = vmul.f32 %v4118_v23, %v5217_v45  ;;  %v982_v22 = vpop.xlane.xlu0 %981 }
 0x352   : > { %v1011_v28 = vpack.c.bf16 %v1003_v24, %v1003_v24  ;;  %4119 = vrcp.f32 %v982_v22 }
 0x353   : > { %v1010_v11 = vpack.c.bf16 %v1002_v16, %v1002_v16 }
 0x354   : > { %3999 = vmatmul.msk.bf16.vlgmr.msrb.gmra.mxu2 %vm1074_vm8, %v1011_v28 }
 0x355   : > { %3998 = vmatmul.msk.bf16.vlgmr.msrb.gmra.mxu1 %vm1074_vm8, %v1010_v11  ;;  %1479 = vmatpush.bf16.xpose.msrb.mxu2 %v1470_v55 }
 0x356   : > { %1450 = vmatpush.bf16.xpose.msrb.mxu1 %v1441_v32  ;;  %v991_v42 = vpop.xlane.xlu1 %990 }
 0x357   : > { %4121 = vrcp.f32 %v991_v42 }
 0x358   : > { %v4120_v47 = vpop.eup %4119 }
 0x359   : > { %v1004_v45 = vmul.f32 %v4120_v47, %v5224_v1 }
 0x35b   : > { %v1012_v60 = vpack.c.bf16 %v1004_v45, %v1004_v45 }
 0x35d   : > { %v4122_v48 = vpop.eup %4121  ;;  %4000 = vmatmul.msk.bf16.vlgmr.msra.gmra.mxu3 %vm1074_vm8, %v1012_v60 }
 0x35e   : > { %v1007_v30 = vmul.f32 %v4122_v48, %v5228_v53  ;;  %1508 = vmatpush.bf16.xpose.msra.mxu3 %v1499_v31 }
 0x360   : > { %v1015_v4 = vpack.c.bf16 %v1007_v30, %v1007_v30 }
 0x364   : > { %4003 = vmatmul.msk.bf16.vlgmr.msra.gmra.mxu2 %vm1074_vm8, %v1015_v4  ;;  %v1431_v13 = vpop.permute.xlu0 %1430 }
 0x36d   : > { %4004 = vmatmul.msk.bf16.vlgmr.msrb.gmra.mxu3 %vm723_vm5, %v5189_v6 }
 0x36e   : > { %v1581_v21 = vpop.permute.xlu1 %1580 }
 0x36f   : > { %v1586_v40 = vsel %vm723_vm5, %v1581_v21, 0 }
 0x370   : > { %1595 = vmatpush.bf16.xpose.msra.mxu2 %v1586_v40 }
 0x374   : > { %4007 = vmatmul.msk.bf16.vlgmr.msrb.gmra.mxu2 %vm723_vm5, %v5183_v3 }
 0x376   : > { %v1576_v1 = vpop.permute.xlu1 %1575 }
 0x37d   : > { %4008 = vmatmul.msk.bf16.vlgmr.msra.gmra.mxu3 %vm723_vm5, %v1489_v7 }
 0x37e   : > { %v1762_v37 = vpop.permute.xlu1 %1761 }
 0x37f   : > { %v1767_v53 = vsel %vm1078_vm6, %v1762_v37, 0 }
 0x380   : > { %1776 = vmatpush.bf16.msrb.mxu3 %v1767_v53 }
 0x384   : > { %4011 = vmatmul.msk.bf16.vlgmr.msra.gmra.mxu2 %vm723_vm5, %v1576_v1 }
 0x386   : > { %v1786_v38 = vpop.permute.xlu1 %1785 }
 0x387   : > { %v1791_v17 = vsel %vm1078_vm6, %v1786_v38, 0 }
 0x389   : > { %v985_v18 = vpop.xlane.xlu2 %984 }
 0x38a   : > { %4123 = vrcp.f32 %v985_v18 }
 0x38e   : > { %v1810_v35 = vpop.permute.xlu1 %1809 }
 0x38f   : > { %v988_v6 = vpop.xlane.xlu0 %987  ;;  %v1815_v46 = vsel %vm1078_vm6, %v1810_v35, 0 }
 0x390   : > { %v4124_v14 = vpop.eup %4123  ;;  %4125 = vrcp.f32 %v988_v6 }
 0x391   : > { %v1005_v61 = vmul.f32 %v4124_v14, %v5251_v12  ;;  %v1523_v59 = vpop.permute.xlu2 %1522 }
 0x392   : > { %v1528_v56 = vsel %vm723_vm5, %v1523_v59, 0 }
 0x393   : > { %v1013_v3 = vpack.c.bf16 %v1005_v61, %v1005_v61  ;;  %v2052_v61 = vpack.c.bf16 %v4983_v51, %v4983_v51 }
 0x395   : > { %4001 = vmatmul.msk.bf16.vlgmr.msrb.gmra.mxu0 %vm1074_vm8, %v1013_v3 }
 0x396   : > { %v4126_v26 = vpop.eup %4125  ;;  %1537 = vmatpush.bf16.xpose.msrb.mxu0 %v1528_v56  ;;  %v2178_v56 = vunpack.c.l.b16 %v2052_v61 }
 0x397   : > { %v1006_v36 = vmul.f32 %v4126_v26, %v5258_v29 }
 0x398   : > { %v2179_v26 = vpack.c.b16 %v2178_v56, %v2178_v56 }
 0x399   : > { %v1014_v57 = vpack.c.bf16 %v1006_v36, %v1006_v36  ;;  %v1518_v15 = vpop.permute.xlu2 %1517 }
 0x39b   : > { %4002 = vmatmul.msk.bf16.vlgmr.msra.gmra.mxu1 %vm1074_vm8, %v1014_v57 }
 0x3a1   : > { %v1834_v9 = vpop.permute.xlu2 %1833 }
 0x3a2   : > { %v1839_v54 = vsel %vm1078_vm6, %v1834_v9, 0  ;;  %v1552_v39 = vpop.permute.xlu0 %1551 }
 0x3a3   : > { %v1557_v12 = vsel %vm723_vm5, %v1552_v39, 0  ;;  %1848 = vmatpush.bf16.msrb.mxu2 %v1839_v54 }
 0x3a4   : > { %1566 = vmatpush.bf16.xpose.msra.mxu1 %v1557_v12 }
 0x3a5   : > { %4005 = vmatmul.msk.bf16.vlgmr.msra.gmra.mxu0 %vm723_vm5, %v1402_v34 }
 0x3a6   : > { %1800 = vmatpush.bf16.msra.mxu0 %v1791_v17 }
 0x3a9   : > { %v1882_v7 = vpop.permute.xlu2 %1881 }
 0x3aa   : > { %v1547_v29 = vpop.permute.xlu0 %1546  ;;  %v1887_v23 = vsel %vm1078_vm6, %v1882_v7, 0 }
 0x3ab   : > { %4006 = vmatmul.msk.bf16.vlgmr.msrb.gmra.mxu1 %vm723_vm5, %v1431_v13 }
 0x3ac   : > { %1824 = vmatpush.bf16.msrb.mxu1 %v1815_v46 }
 0x3b2   : > { %v1858_v10 = vpop.permute.xlu0 %1857 }
 0x3b3   : > { %v1863_v50 = vsel %vm1078_vm6, %v1858_v10, 0 }
 0x3b4   : > { %1872 = vmatpush.bf16.msra.mxu3 %v1863_v50 }
 0x3b5   : > { %4009 = vmatmul.msk.bf16.vlgmr.msrb.gmra.mxu0 %vm723_vm5, %v1518_v15 }
 0x3b6   : > { %1896 = vmatpush.bf16.msrb.mxu0 %v1887_v23 }
 0x3ba   : > { %v1930_v24 = vpop.permute.xlu0 %1929 }
 0x3bb   : > { %v1935_v16 = vsel %vm1078_vm6, %v1930_v24, 0  ;;  %4010 = vmatmul.msk.bf16.vlgmr.msra.gmra.mxu1 %vm723_vm5, %v1547_v29 }
 0x3bc   : > { %1944 = vmatpush.bf16.msra.mxu2 %v1935_v16 }
 0x3c0   : > { %v5346_v11 = vpop.f32.mrf.mxu3 }
 0x3c1   : > { %v5348_v55 = vpop.f32.mrf.mxu0 }
 0x3c2   : > { %v1906_v22 = vpop.permute.xlu0 %1905 }
 0x3c3   : > { %v1911_v28 = vsel %vm1078_vm6, %v1906_v22, 0 }
 0x3c4   : > { %1920 = vmatpush.bf16.msra.mxu1 %v1911_v28 }
 0x3c8   : > { %v1093_v32 = vpop.f32.mrf.mxu3 }
 0x3c9   : > { %v1117_v42 = vpop.f32.mrf.mxu0 }
 0x3d2   : > { %v5350_v47 = vpop.f32.mrf.mxu1 }
 0x3d7   : > { %v5352_v45 = vpop.f32.mrf.mxu2 }
 0x3da   : > { %v1141_v60 = vpop.f32.mrf.mxu1 }
 0x3db   : > { %v2050_v60 = vpack.c.bf16 %v4973_v58, %v4973_v58  ;;  %v5388_v58 = vpop.permute.xlu1 %2064 }
 0x3df   : > { %v1165_v48 = vpop.f32.mrf.mxu2 }
 0x3e0   : > { %v5354_v31 = vpop.f32.mrf.mxu3  ;;  %v2049_v48 = vpack.c.bf16 %v4968_v25, %v4968_v25 }
 0x3e7   : > { %v5356_v30 = vpop.f32.mrf.mxu2 }
 0x3e8   : > { %v1189_v4 = vpop.f32.mrf.mxu3 }
 0x3e9   : > { %v2120_v4 = vunpack.c.l.b16 %v2050_v60 }
 0x3ef   : > { %v1261_v21 = vpop.f32.mrf.mxu2 }
 0x3f0   : > { %v1394_v40 = vpop.f32.mrf.mxu3  ;;  %v2091_v21 = vunpack.c.l.b16 %v2049_v48 }
 0x3f1   : > { %v1601_v12 = vmul.f32 0.35355338, %v1394_v40  ;;  %v2121_v40 = vpack.c.b16 %v2120_v4, %v2120_v4 }
 0x3f3   : > { %v1609_v29 = vsel %vm919_vm7, %v1601_v12, -inf }
 0x3f7   : > { %v1481_v1 = vpop.f32.mrf.mxu2 }
 0x3f8   : > { %v1396_v37 = vpop.f32.mrf.mxu3  ;;  %v1604_v46 = vmul.f32 0.35355338, %v1481_v1  ;;  %v2092_v1 = vpack.c.b16 %v2091_v21, %v2091_v21 }
 0x3f9   : > { %v1999_v37 = vpack.c.bf16 %v4940_v52, %v4940_v52 }
 0x3fa   : > { %v1618_v23 = vsel %vm919_vm7, %v1604_v46, -inf }
 0x3ff   : > { %v1483_v53 = vpop.f32.mrf.mxu2 }
 0x400   : > { %v1510_v34 = vpop.f32.mrf.mxu3  ;;  %v2173_v53 = vunpack.c.l.b16 %v1999_v37 }
 0x401   : > { %v5358_v13 = vmul.f32 0.35355338, %v1510_v34 }
 0x402   : > { %v2174_v34 = vpack.c.b16 %v2173_v53, %v2173_v53 }
 0x403   : > { %v1621_v18 = vsel %vm919_vm7, %v5358_v13, -inf }
 0x404   : > { %1622 = vmax.xlane.f32.xlu0 %v1621_v18 }
 0x407   : > { %v1597_v6 = vpop.f32.mrf.mxu2 }
 0x408   : > { %v1512_v14 = vpop.f32.mrf.mxu3  ;;  %v1608_v28 = vmul.f32 0.35355338, %v1597_v6  ;;  %v5390_v6 = vpop.permute.xlu1 %2059 }
 0x409   : > { %v5392_v14 = vpop.permute.xlu2 %2151 }
 0x40a   : > { %v1630_v42 = vsel %vm919_vm7, %v1608_v28, -inf }
 0x40f   : > { %v1599_v59 = vpop.f32.mrf.mxu2 }
 0x412   : > { %v5364_v3 = vpop.f32.mrf.mxu0 }
 0x418   : > { %2180 = vrot.lane.b32.xlu0 %v2179_v26, %s4236_s23  ;;  %v5367_v36 = vpop.f32.mrf.mxu1 }
 0x41a   : > { %v1213_v57 = vpop.f32.mrf.mxu0 }
 0x420   : > { %v1237_v15 = vpop.f32.mrf.mxu1 }
 0x422   : > { %v1423_v38 = vpop.f32.mrf.mxu0 }
 0x423   : > { %v1602_v9 = vmul.f32 0.35355338, %v1423_v38 }
 0x425   : > { %v1612_v54 = vsel %vm919_vm7, %v1602_v9, -inf }
 0x426   : > { %1613 = vmax.xlane.f32.xlu1 %v1612_v54 }
 0x428   : > { %v1452_v39 = vpop.f32.mrf.mxu1 }
 0x429   : > { %v1603_v17 = vmul.f32 0.35355338, %v1452_v39 }
 0x42a   : > { %v1425_v51 = vpop.f32.mrf.mxu0 }
 0x42b   : > { %v1615_v35 = vsel %vm919_vm7, %v1603_v17, -inf }
 0x42c   : > { %1616 = vmax.xlane.f32.xlu2 %v1615_v35 }
 0x42e   : > { %1610 = vmax.xlane.f32.xlu1 %v1609_v29 }
 0x430   : > { %v1454_v7 = vpop.f32.mrf.mxu1 }
 0x432   : > { %v1539_v10 = vpop.f32.mrf.mxu0 }
 0x433   : > { %v1606_v50 = vmul.f32 0.35355338, %v1539_v10 }
 0x434   : > { %1619 = vmax.xlane.f32.xlu2 %v1618_v23 }
 0x435   : > { %v1624_v24 = vsel %vm919_vm7, %v1606_v50, -inf }
 0x436   : > { %1625 = vmax.xlane.f32.xlu1 %v1624_v24 }
 0x438   : > { %v1568_v16 = vpop.f32.mrf.mxu1 }
 0x439   : > { %v5384_v18 = vmul.f32 0.35355338, %v1568_v16 }
 0x43a   : > { %v1541_v22 = vpop.f32.mrf.mxu0 }
 0x43b   : > { %v1627_v25 = vsel %vm919_vm7, %v5384_v18, -inf }
 0x440   : > { %v1570_v32 = vpop.f32.mrf.mxu1 }
 0x442   : > { %1631 = vmax.xlane.f32.xlu0 %v1630_v42 }
 0x44c   : > { %2122 = vrot.lane.b32.xlu2 %v2121_v40, %s4236_s23 }
 0x44f   : > { %2093 = vrot.lane.b32.xlu1 %v2092_v1, %s4236_s23 }
 0x457   : > { %2175 = vrot.lane.b32.xlu1 %v2174_v34, %s4237_s24 }
 0x475   : > { %1628 = vmax.xlane.f32.xlu2 %v1627_v25 }
 0x477   : > { %v1623_v39 = vpop.xlane.xlu0 %1622 }
 0x478   : > { %v1637_v42 = vsub.f32 %v5358_v13, %v1623_v39  ;;  %v6172_v39 = vld [vmem:[#allocation26_spill] sm:$0xff] }
 0x47a   : > { %v1649_v4 = vmul.f32 1.442695, %v1637_v42  ;;  %v6175_v42 = vld [vmem:[#allocation35_spill] sm:$0xff] }
 0x499   : > { %v1614_v61 = vpop.xlane.xlu1 %1613 }
 0x49a   : > { %v1634_v52 = vsub.f32 %v1602_v9, %v1614_v61 }
 0x49c   : > { %v1643_v59 = vmul.f32 1.442695, %v1634_v52  ;;  %v6170_v52 = vld [vmem:[#allocation27_spill] sm:$0xff] }
 0x49e   : > { %4127 = vpow2.f32 %v1643_v59  ;;  %v1998_v59 = vpack.c.bf16 %v6170_v52, %v6170_v52 }
 0x49f   : > { %v1617_v56 = vpop.xlane.xlu2 %1616 }
 0x4a0   : > { %v1635_v15 = vsub.f32 %v1603_v17, %v1617_v56  ;;  %v5400_v17 = vpop.permute.xlu0 %2180  ;;  %v6171_v56 = vld [vmem:[#allocation33_spill] sm:$0xff] }
 0x4a1   : > { %v1611_v26 = vpop.xlane.xlu1 %1610 }
 0x4a2   : > { %v1633_v57 = vsub.f32 %v1601_v12, %v1611_v26  ;;  %v1645_v35 = vmul.f32 1.442695, %v1635_v15  ;;  %v2055_v26 = vpack.c.bf16 %v6171_v56, %v6171_v56 }
 0x4a4   : > { %v5394_v38 = vpop.eup %4127  ;;  %v1641_v54 = vmul.f32 1.442695, %v1633_v57  ;;  %v2144_v57 = vunpack.c.l.b16 %v1998_v59  ;;  %v2265_v15 = vunpack.c.l.b16 %v2055_v26  ;;  %v6177_v26 = vld [vmem:[#allocation36_spill] sm:$0xff] }
 0x4a5   : > { %v1660_v51 = vsel %vm919_vm7, %v5394_v38, 0.0 }
 0x4a6   : > { %4129 = vpow2.f32 %v1641_v54  ;;  %1661 = vadd.xlane.f32.xlu2 %v1660_v51  ;;  %v2145_v54 = vpack.c.b16 %v2144_v57, %v2144_v57  ;;  %v2266_v51 = vpack.c.b16 %v2265_v15, %v2265_v15  ;;  %v2439_v57 = vpack.c.bf16 %v6177_v26, %v6177_v26 }
 0x4a7   : > { %v1620_v29 = vpop.xlane.xlu2 %1619  ;;  %4131 = vpow2.f32 %v1645_v35  ;;  %v6173_v35 = vld [vmem:[#allocation30_spill] sm:$0xff] }
 0x4a8   : > { %v1636_v7 = vsub.f32 %v1604_v46, %v1620_v29  ;;  %v2002_v29 = vpack.c.bf16 %v6173_v35, %v6173_v35  ;;  %v6178_v35 = vld [vmem:[#allocation40_spill] sm:$0xff] }
 0x4a9   : > { %v1626_v10 = vpop.xlane.xlu1 %1625 }
 0x4aa   : > { %v1647_v9 = vmul.f32 1.442695, %v1636_v7  ;;  %v1638_v12 = vsub.f32 %v1606_v50, %v1626_v10  ;;  %v2260_v10 = vunpack.c.l.b16 %v2002_v29  ;;  %v2443_v29 = vpack.c.bf16 %v6178_v35, %v6178_v35 }
 0x4ac   : > { %v5398_v23 = vpop.eup %4129  ;;  %4133 = vpow2.f32 %v1647_v9  ;;  %v1651_v16 = vmul.f32 1.442695, %v1638_v12 }
 0x4ad   : > { %v1657_v24 = vsel %vm919_vm7, %v5398_v23, 0.0  ;;  %v5404_v22 = vpop.eup %4131 }
 0x4ae   : > { %1658 = vadd.xlane.f32.xlu0 %v1657_v24  ;;  %4135 = vpow2.f32 %v1651_v16  ;;  %v1663_v50 = vsel %vm919_vm7, %v5404_v22, 0.0  ;;  %v6174_v24 = vld [vmem:[#allocation32_spill] sm:$0xff] }
 0x4af   : > { %v5438_v9 = vpop.permute.xlu2 %2122  ;;  %v2054_v16 = vpack.c.bf16 %v6174_v24, %v6174_v24 }
 0x4b2   : > { %v5406_v32 = vpop.eup %4133 }
 0x4b3   : > { %v1666_v46 = vsel %vm919_vm7, %v5406_v32, 0.0 }
 0x4b4   : > { %1667 = vadd.xlane.f32.xlu2 %v1666_v46  ;;  %v5413_v40 = vpop.eup %4135  ;;  %v2261_v46 = vpack.c.b16 %v2260_v10, %v2260_v10 }
 0x4b5   : > { %v1632_v60 = vpop.xlane.xlu0 %1631  ;;  %v1672_v1 = vsel %vm919_vm7, %v5413_v40, 0.0 }
 0x4b6   : > { %v1640_v48 = vsub.f32 %v1608_v28, %v1632_v60  ;;  %1664 = vadd.xlane.f32.xlu0 %v1663_v50  ;;  %v1996_v28 = vpack.c.bf16 %v4914_v33, %v4914_v33  ;;  %v1997_v33 = vpack.c.bf16 %v6172_v39, %v6172_v39  ;;  %v2438_v60 = vpack.c.bf16 %v6175_v42, %v6175_v42 }
 0x4b7   : > { %v2236_v50 = vunpack.c.l.b16 %v2054_v16  ;;  %v2494_v39 = vunpack.c.l.b16 %v2439_v57  ;;  %v6180_v16 = vld [vmem:[#allocation31_spill] sm:$0xff] }
 0x4b8   : > { %v1655_v21 = vmul.f32 1.442695, %v1640_v48  ;;  %v2086_v25 = vunpack.c.l.b16 %v1996_v28  ;;  %v2115_v7 = vunpack.c.l.b16 %v1997_v33  ;;  %v2470_v48 = vunpack.c.l.b16 %v2438_v60 }
 0x4ba   : > { %4137 = vpow2.f32 %v1655_v21  ;;  %v2087_v61 = vpack.c.b16 %v2086_v25, %v2086_v25  ;;  %v2116_v12 = vpack.c.b16 %v2115_v7, %v2115_v7  ;;  %v2237_v21 = vpack.c.b16 %v2236_v50, %v2236_v50 }
 0x4bb   : > { %4139 = vpow2.f32 %v1649_v4  ;;  %v2735_v25 = vpack.c.bf16 %v5117_v19, %v5117_v19 }
 0x4bd   : > { %v2749_v59 = vunpack.c.l.b16 %v2735_v25 }
 0x4be   : > { %1673 = vadd.xlane.f32.xlu0 %v1672_v1  ;;  %v6176_v1 = vld [vmem:[#allocation29_spill] sm:$0xff] }
 0x4bf   : > { %v2750_v15 = vpack.c.b16 %v2749_v59, %v2749_v59  ;;  %v6183_v59 = vld [vmem:[#allocation37_spill] sm:$0xff] }
 0x4c0   : > { %v5417_v37 = vpop.eup %4137 }
 0x4c1   : > { %v1678_v13 = vsel %vm919_vm7, %v5417_v37, 0.0  ;;  %v5421_v53 = vpop.eup %4139 }
 0x4c2   : > { %1679 = vadd.xlane.f32.xlu1 %v1678_v13  ;;  %v1669_v34 = vsel %vm919_vm7, %v5421_v53, 0.0  ;;  %v2001_v13 = vpack.c.bf16 %v6176_v1, %v6176_v1 }
 0x4c4   : > { %v2231_v52 = vunpack.c.l.b16 %v2001_v13 }
 0x4c6   : > { %1670 = vadd.xlane.f32.xlu0 %v1669_v34  ;;  %v2471_v34 = vpack.c.b16 %v2470_v48, %v2470_v48  ;;  %v2232_v56 = vpack.c.b16 %v2231_v52, %v2231_v52 }
 0x4cc   : > { %2088 = vrot.lane.b32.xlu2 %v2087_v61, %s4237_s24 }
 0x4da   : > { %2146 = vrot.lane.b32.xlu0 %v2145_v54, %s4237_s24 }
 0x4db   : > { %2267 = vrot.lane.b32.xlu1 %v2266_v51, %s4236_s23  ;;  %v2495_v51 = vpack.c.b16 %v2494_v39, %v2494_v39 }
 0x4e2   : > { %2117 = vrot.lane.b32.xlu0 %v2116_v12, %s4237_s24  ;;  %v6179_v12 = vld [vmem:[#allocation41_spill] sm:$0xff] }
 0x4e3   : > { %2262 = vrot.lane.b32.xlu1 %v2261_v46, %s4237_s24  ;;  %v2444_v24 = vpack.c.bf16 %v6179_v12, %v6179_v12  ;;  %v2053_v46 = vpack.c.bf16 %v6180_v16, %v6180_v16 }
 0x4e5   : > { %v2614_v42 = vunpack.c.l.b16 %v2444_v24  ;;  %v2207_v60 = vunpack.c.l.b16 %v2053_v46  ;;  %v6185_v46 = vld [vmem:[#allocation39_spill] sm:$0xff] }
 0x4e7   : > { %v2615_v50 = vpack.c.b16 %v2614_v42, %v2614_v42  ;;  %v2208_v48 = vpack.c.b16 %v2207_v60, %v2207_v60  ;;  %v2442_v42 = vpack.c.bf16 %v6185_v46, %v6185_v46  ;;  %v2070_v60 = vsel %vm723_vm5, %v5388_v58, 0 }
 0x4e8   : > { %v1629_v4 = vpop.xlane.xlu2 %1628 }
 0x4e9   : > { %v1639_v28 = vsub.f32 %v5384_v18, %v1629_v4  ;;  %v2736_v18 = vpack.c.bf16 %v5123_v49, %v5123_v49  ;;  %v2590_v49 = vunpack.c.l.b16 %v2443_v29  ;;  %v6181_v4 = vld [vmem:[#allocation28_spill] sm:$0xff] }
 0x4ea   : > { %2238 = vrot.lane.b32.xlu0 %v2237_v21, %s4236_s23  ;;  %v2000_v21 = vpack.c.bf16 %v6181_v4, %v6181_v4 }
 0x4eb   : > { %v1653_v61 = vmul.f32 1.442695, %v1639_v28  ;;  %2472 = vrot.lane.b32.xlu1 %v2471_v34, %s4238_s25  ;;  %v2778_v33 = vunpack.c.l.b16 %v2736_v18  ;;  %v2591_v10 = vpack.c.b16 %v2590_v49, %v2590_v49  ;;  %v6182_v28 = vld [vmem:[#allocation34_spill] sm:$0xff] }
 0x4ec   : > { %v2202_v1 = vunpack.c.l.b16 %v2000_v21  ;;  %v2437_v34 = vpack.c.bf16 %v6182_v28, %v6182_v28 }
 0x4ed   : > { %4141 = vpow2.f32 %v1653_v61  ;;  %v2779_v7 = vpack.c.b16 %v2778_v33, %v2778_v33 }
 0x4ee   : > { %v2203_v13 = vpack.c.b16 %v2202_v1, %v2202_v1  ;;  %v2446_v25 = vunpack.c.l.b16 %v2437_v34  ;;  %v2157_v34 = vsel %vm723_vm5, %v5392_v14, 0 }
 0x4f0   : > { %v2447_v52 = vpack.c.b16 %v2446_v25, %v2446_v25 }
 0x4f2   : > { %2233 = vrot.lane.b32.xlu0 %v2232_v56, %s4237_s24  ;;  %v2440_v56 = vpack.c.bf16 %v6183_v59, %v6183_v59 }
 0x4f3   : > { %v5458_v19 = vpop.eup %4141  ;;  %2751 = vrot.lane.b32.xlu1 %v2750_v15, %s4239_s26 }
 0x4f4   : > { %v1675_v54 = vsel %vm919_vm7, %v5458_v19, 0.0  ;;  %v2518_v26 = vunpack.c.l.b16 %v2440_v56 }
 0x4f5   : > { %1676 = vadd.xlane.f32.xlu2 %v1675_v54  ;;  %v2094_v54 = vpop.permute.xlu1 %2093 }
 0x4f6   : > { %v2519_v33 = vpack.c.b16 %v2518_v26, %v2518_v26  ;;  %v2099_v29 = vsel %vm723_vm5, %v2094_v54, 0 }
 0x4fa   : > { %2496 = vrot.lane.b32.xlu0 %v2495_v51, %s4238_s25  ;;  %v6184_v51 = vld [vmem:[#allocation38_spill] sm:$0xff] }
 0x4fb   : > { %2780 = vrot.lane.b32.xlu1 %v2779_v7, %s4239_s26  ;;  %v2441_v35 = vpack.c.bf16 %v6184_v51, %v6184_v51 }
 0x4fd   : > { %v2542_v49 = vunpack.c.l.b16 %v2441_v35 }
 0x4ff   : > { %v2543_v16 = vpack.c.b16 %v2542_v49, %v2542_v49 }
 0x502   : > { %2592 = vrot.lane.b32.xlu0 %v2591_v10, %s4238_s25 }
 0x50a   : > { %2616 = vrot.lane.b32.xlu0 %v2615_v50, %s4238_s25  ;;  %v2176_v50 = vpop.permute.xlu1 %2175 }
 0x50d   : > { %2209 = vrot.lane.b32.xlu2 %v2208_v48, %s4236_s23 }
 0x515   : > { %2204 = vrot.lane.b32.xlu2 %v2203_v13, %s4237_s24 }
 0x519   : > { %v1662_v61 = vpop.xlane.xlu2 %1661 }
 0x51a   : > { %4143 = vrcp.f32 %v1662_v61  ;;  %v6186_v61 = vld [vmem:[#allocation42_spill] sm:$0xff] }
 0x51d   : > { %2448 = vrot.lane.b32.xlu2 %v2447_v52, %s4238_s25  ;;  %v2682_v52 = vpack.c.bf16 %v6186_v61, %v6186_v61 }
 0x520   : > { %v4144_v57 = vpop.eup %4143 }
 0x521   : > { %v1690_v15 = vmul.f32 %v4144_v57, %v5394_v38  ;;  %v1659_v18 = vpop.xlane.xlu0 %1658 }
 0x522   : > { %4145 = vrcp.f32 %v1659_v18 }
 0x523   : > { %v1698_v39 = vpack.c.bf16 %v1690_v15, %v1690_v15 }
 0x525   : > { %2520 = vrot.lane.b32.xlu2 %v2519_v33, %s4238_s25  ;;  %4013 = vmatmul.msk.bf16.vlgmr.msra.gmra.mxu0 %vm1074_vm8, %v1698_v39 }
 0x526   : > { %2108 = vmatpush.bf16.xpose.msra.mxu0 %v2099_v29 }
 0x527   : > { %v1668_v7 = vpop.xlane.xlu2 %1667 }
 0x528   : > { %v4146_v10 = vpop.eup %4145  ;;  %4147 = vrcp.f32 %v1668_v7 }
 0x529   : > { %v1689_v38 = vmul.f32 %v4146_v10, %v5398_v23  ;;  %v1665_v12 = vpop.xlane.xlu0 %1664  ;;  %v2566_v23 = vunpack.c.l.b16 %v2442_v42 }
 0x52a   : > { %4149 = vrcp.f32 %v1665_v12 }
 0x52b   : > { %v1697_v24 = vpack.c.bf16 %v1689_v38, %v1689_v38  ;;  %v2567_v25 = vpack.c.b16 %v2566_v23, %v2566_v23 }
 0x52d   : > { %2544 = vrot.lane.b32.xlu2 %v2543_v16, %s4238_s25  ;;  %4012 = vmatmul.msk.bf16.vlgmr.msrb.gmra.mxu3 %vm1074_vm8, %v1697_v24 }
 0x52e   : > { %v4148_v48 = vpop.eup %4147  ;;  %2079 = vmatpush.bf16.xpose.msrb.mxu3 %v2070_v60 }
 0x52f   : > { %v1692_v4 = vmul.f32 %v4148_v48, %v5406_v32  ;;  %v2128_v32 = vsel %vm723_vm5, %v5438_v9, 0  ;;  %v2089_v35 = vpop.permute.xlu2 %2088 }
 0x530   : > { %v4150_v21 = vpop.eup %4149 }
 0x531   : > { %v1700_v1 = vpack.c.bf16 %v1692_v4, %v1692_v4  ;;  %v1691_v13 = vmul.f32 %v4150_v21, %v5404_v22  ;;  %v1674_v28 = vpop.xlane.xlu0 %1673  ;;  %v2744_v22 = vunpack.c.l.b16 %v2682_v52 }
 0x532   : > { %4151 = vrcp.f32 %v1674_v28 }
 0x533   : > { %v1699_v58 = vpack.c.bf16 %v1691_v13, %v1691_v13  ;;  %4015 = vmatmul.msk.bf16.vlgmr.msrb.gmra.mxu2 %vm1074_vm8, %v1700_v1  ;;  %v2745_v15 = vpack.c.b16 %v2744_v22, %v2744_v22 }
 0x534   : > { %2166 = vmatpush.bf16.xpose.msrb.mxu2 %v2157_v34 }
 0x535   : > { %2568 = vrot.lane.b32.xlu2 %v2567_v25, %s4238_s25  ;;  %v1680_v59 = vpop.xlane.xlu1 %1679  ;;  %4014 = vmatmul.msk.bf16.vlgmr.msrb.gmra.mxu1 %vm1074_vm8, %v1699_v58 }
 0x536   : > { %4153 = vrcp.f32 %v1680_v59  ;;  %2137 = vmatpush.bf16.xpose.msrb.mxu1 %v2128_v32 }
 0x538   : > { %v4152_v14 = vpop.eup %4151 }
 0x539   : > { %v1694_v56 = vmul.f32 %v4152_v14, %v5413_v40  ;;  %v1671_v26 = vpop.xlane.xlu0 %1670  ;;  %v2186_v40 = vsel %vm723_vm5, %v5400_v17, 0 }
 0x53a   : > { %4155 = vrcp.f32 %v1671_v26 }
 0x53b   : > { %v1702_v57 = vpack.c.bf16 %v1694_v56, %v1694_v56 }
 0x53c   : > { %v4154_v18 = vpop.eup %4153 }
 0x53d   : > { %v1696_v54 = vmul.f32 %v4154_v18, %v5417_v37  ;;  %2746 = vrot.lane.b32.xlu2 %v2745_v15, %s4240_s27  ;;  %4017 = vmatmul.msk.bf16.vlgmr.msrb.gmra.mxu0 %vm1074_vm8, %v1702_v57 }
 0x53f   : > { %v1704_v39 = vpack.c.bf16 %v1696_v54, %v1696_v54 }
 0x540   : > { %v4156_v9 = vpop.eup %4155 }
 0x541   : > { %v1693_v33 = vmul.f32 %v4156_v9, %v5421_v53 }
 0x543   : > { %v1701_v51 = vpack.c.bf16 %v1693_v33, %v1693_v33  ;;  %4019 = vmatmul.msk.bf16.vlgmr.msra.gmra.mxu2 %vm1074_vm8, %v1704_v39 }
 0x545   : > { %4016 = vmatmul.msk.bf16.vlgmr.msra.gmra.mxu3 %vm1074_vm8, %v1701_v51 }
 0x546   : > { %2195 = vmatpush.bf16.xpose.msra.mxu3 %v2186_v40 }
 0x54c   : > { %v2147_v37 = vpop.permute.xlu0 %2146 }
 0x54d   : > { %v2268_v29 = vpop.permute.xlu1 %2267  ;;  %4021 = vmatmul.msk.bf16.vlgmr.msra.gmra.mxu0 %vm723_vm5, %v2089_v35 }
 0x54e   : > { %v2273_v7 = vsel %vm723_vm5, %v2268_v29, 0 }
 0x54f   : > { %2282 = vmatpush.bf16.xpose.msra.mxu2 %v2273_v7 }
 0x553   : > { %4023 = vmatmul.msk.bf16.vlgmr.msrb.gmra.mxu2 %vm723_vm5, %v2147_v37 }
 0x554   : > { %v2118_v53 = vpop.permute.xlu0 %2117 }
 0x555   : > { %4020 = vmatmul.msk.bf16.vlgmr.msrb.gmra.mxu3 %vm723_vm5, %v5390_v6  ;;  %v2263_v10 = vpop.permute.xlu1 %2262 }
 0x55c   : > { %v2239_v49 = vpop.permute.xlu0 %2238 }
 0x55d   : > { %v2473_v24 = vpop.permute.xlu1 %2472  ;;  %v2244_v4 = vsel %vm723_vm5, %v2239_v49, 0 }
 0x55e   : > { %v2478_v60 = vsel %vm1078_vm6, %v2473_v24, 0 }
 0x563   : > { %4027 = vmatmul.msk.bf16.vlgmr.msra.gmra.mxu2 %vm723_vm5, %v2263_v10 }
 0x564   : > { %v2234_v38 = vpop.permute.xlu0 %2233 }
 0x565   : > { %4024 = vmatmul.msk.bf16.vlgmr.msra.gmra.mxu3 %vm723_vm5, %v2176_v50 }
 0x568   : > { %v1677_v17 = vpop.xlane.xlu2 %1676 }
 0x569   : > { %4157 = vrcp.f32 %v1677_v17 }
 0x56c   : > { %v2497_v6 = vpop.permute.xlu0 %2496 }
 0x56d   : > { %v2502_v1 = vsel %vm1078_vm6, %v2497_v6, 0 }
 0x56f   : > { %v4158_v12 = vpop.eup %4157 }
 0x570   : > { %v1695_v16 = vmul.f32 %v4158_v12, %v5458_v19  ;;  %v2210_v46 = vpop.permute.xlu2 %2209 }
 0x571   : > { %v2215_v42 = vsel %vm723_vm5, %v2210_v46, 0 }
 0x572   : > { %v1703_v48 = vpack.c.bf16 %v1695_v16, %v1695_v16  ;;  %2224 = vmatpush.bf16.xpose.msrb.mxu0 %v2215_v42  ;;  %v2739_v42 = vpack.c.bf16 %v5138_v43, %v5138_v43 }
 0x574   : > { %4018 = vmatmul.msk.bf16.vlgmr.msra.gmra.mxu1 %vm1074_vm8, %v1703_v48  ;;  %v2593_v23 = vpop.permute.xlu0 %2592  ;;  %v2865_v48 = vunpack.c.l.b16 %v2739_v42 }
 0x575   : > { %2253 = vmatpush.bf16.xpose.msra.mxu1 %v2244_v4  ;;  %v2598_v52 = vsel %vm1078_vm6, %v2593_v23, 0 }
 0x578   : > { %v2205_v50 = vpop.permute.xlu2 %2204 }
 0x579   : > { %4025 = vmatmul.msk.bf16.vlgmr.msrb.gmra.mxu0 %vm723_vm5, %v2205_v50  ;;  %v2866_v50 = vpack.c.b16 %v2865_v48, %v2865_v48 }
 0x57a   : > { %2487 = vmatpush.bf16.msra.mxu0 %v2478_v60 }
 0x57c   : > { %v2617_v13 = vpop.permute.xlu0 %2616 }
 0x57d   : > { %v2622_v58 = vsel %vm1078_vm6, %v2617_v13, 0 }
 0x580   : > { %v2449_v21 = vpop.permute.xlu2 %2448 }
 0x581   : > { %v2454_v19 = vsel %vm1078_vm6, %v2449_v21, 0 }
 0x582   : > { %2463 = vmatpush.bf16.msrb.mxu3 %v2454_v19 }
 0x584   : > { %4022 = vmatmul.msk.bf16.vlgmr.msrb.gmra.mxu1 %vm723_vm5, %v2118_v53 }
 0x585   : > { %2511 = vmatpush.bf16.msrb.mxu1 %v2502_v1 }
 0x588   : > { %v2521_v28 = vpop.permute.xlu2 %2520 }
 0x589   : > { %v2526_v34 = vsel %vm1078_vm6, %v2521_v28, 0 }
 0x58a   : > { %2535 = vmatpush.bf16.msrb.mxu2 %v2526_v34 }
 0x58e   : > { %2631 = vmatpush.bf16.msra.mxu2 %v2622_v58 }
 0x590   : > { %v2545_v25 = vpop.permute.xlu2 %2544 }
 0x591   : > { %v2550_v61 = vsel %vm1078_vm6, %v2545_v25, 0 }
 0x592   : > { %2559 = vmatpush.bf16.msra.mxu3 %v2550_v61 }
 0x594   : > { %4026 = vmatmul.msk.bf16.vlgmr.msra.gmra.mxu1 %vm723_vm5, %v2234_v38 }
 0x595   : > { %2607 = vmatpush.bf16.msra.mxu1 %v2598_v52 }
 0x598   : > { %v2569_v32 = vpop.permute.xlu2 %2568 }
 0x599   : > { %v2574_v59 = vsel %vm1078_vm6, %v2569_v32, 0  ;;  %v2737_v32 = vpack.c.bf16 %v5128_v20, %v5128_v20  ;;  %v2738_v20 = vpack.c.bf16 %v5133_v27, %v5133_v27 }
 0x59a   : > { %2583 = vmatpush.bf16.msrb.mxu0 %v2574_v59 }
 0x5a2   : > { %v5537_v22 = vpop.f32.mrf.mxu0 }
 0x5aa   : > { %v1804_v14 = vpop.f32.mrf.mxu0 }
 0x5b0   : > { %v5539_v56 = vpop.f32.mrf.mxu3 }
 0x5b2   : > { %v5541_v26 = vpop.f32.mrf.mxu1 }
 0x5b6   : > { %v5543_v57 = vpop.f32.mrf.mxu2 }
 0x5b8   : > { %v1780_v15 = vpop.f32.mrf.mxu3 }
 0x5ba   : > { %v1828_v18 = vpop.f32.mrf.mxu1  ;;  %v5545_v54 = vpop.f32.mrf.mxu0 }
 0x5bb   : > { %v2807_v18 = vunpack.c.l.b16 %v2737_v32 }
 0x5be   : > { %v1852_v9 = vpop.f32.mrf.mxu2 }
 0x5c2   : > { %v1900_v39 = vpop.f32.mrf.mxu0 }
 0x5c6   : > { %v5547_v33 = vpop.f32.mrf.mxu2 }
 0x5c8   : > { %v5549_v51 = vpop.f32.mrf.mxu3 }
 0x5ca   : > { %v2110_v40 = vpop.f32.mrf.mxu0 }
 0x5cb   : > { %v2289_v35 = vmul.f32 0.35355338, %v2110_v40  ;;  %v2808_v40 = vpack.c.b16 %v2807_v18, %v2807_v18 }
 0x5cd   : > { %v2299_v37 = vsel %vm919_vm7, %v2289_v35, -inf }
 0x5ce   : > { %v1948_v29 = vpop.f32.mrf.mxu2  ;;  %2300 = vmax.xlane.f32.xlu2 %v2299_v37 }
 0x5d0   : > { %v1876_v7 = vpop.f32.mrf.mxu3 }
 0x5d1   : > { %v2836_v7 = vunpack.c.l.b16 %v2738_v20 }
 0x5d2   : > { %v2112_v53 = vpop.f32.mrf.mxu0 }
 0x5d3   : > { %v2837_v53 = vpack.c.b16 %v2836_v7, %v2836_v7 }
 0x5d6   : > { %v2168_v49 = vpop.f32.mrf.mxu2 }
 0x5d7   : > { %v2291_v59 = vmul.f32 0.35355338, %v2168_v49  ;;  %v5576_v49 = vpop.permute.xlu2 %2746 }
 0x5d8   : > { %v2081_v10 = vpop.f32.mrf.mxu3 }
 0x5d9   : > { %v5552_v17 = vmul.f32 0.35355338, %v2081_v10  ;;  %v2305_v9 = vsel %vm919_vm7, %v2291_v59, -inf }
 0x5db   : > { %v2296_v38 = vsel %vm919_vm7, %v5552_v17, -inf }
 0x5dc   : > { %2297 = vmax.xlane.f32.xlu1 %v2296_v38 }
 0x5de   : > { %v2170_v12 = vpop.f32.mrf.mxu2 }
 0x5e0   : > { %v2083_v24 = vpop.f32.mrf.mxu3 }
 0x5e6   : > { %v2284_v16 = vpop.f32.mrf.mxu2 }
 0x5e7   : > { %v5569_v37 = vmul.f32 0.35355338, %v2284_v16 }
 0x5e8   : > { %v2197_v46 = vpop.f32.mrf.mxu3 }
 0x5e9   : > { %v2292_v15 = vmul.f32 0.35355338, %v2197_v46  ;;  %v2317_v29 = vsel %vm919_vm7, %v5569_v37, -inf  ;;  %v5582_v46 = vpop.permute.xlu1 %2751 }
 0x5eb   : > { %v2308_v39 = vsel %vm919_vm7, %v2292_v15, -inf }
 0x5ee   : > { %v2286_v60 = vpop.f32.mrf.mxu2 }
 0x5f0   : > { %v2199_v6 = vpop.f32.mrf.mxu3 }
 0x5f1   : > { %v5558_v4 = vpop.f32.mrf.mxu1  ;;  %v5584_v42 = vpop.permute.xlu1 %2780 }
 0x5f5   : > { %2867 = vrot.lane.b32.xlu1 %v2866_v50, %s4239_s26 }
 0x5f6   : > { %v2226_v23 = vpop.f32.mrf.mxu0 }
 0x5f7   : > { %v2293_v34 = vmul.f32 0.35355338, %v2226_v23 }
 0x5f9   : > { %v1924_v21 = vpop.f32.mrf.mxu1  ;;  %v2311_v43 = vsel %vm919_vm7, %v2293_v34, -inf }
 0x5fe   : > { %v2228_v19 = vpop.f32.mrf.mxu0 }
 0x601   : > { %v2139_v1 = vpop.f32.mrf.mxu1 }
 0x602   : > { %v2290_v13 = vmul.f32 0.35355338, %v2139_v1 }
 0x604   : > { %v2302_v28 = vsel %vm919_vm7, %v2290_v13, -inf }
 0x605   : > { %2303 = vmax.xlane.f32.xlu0 %v2302_v28 }
 0x609   : > { %v2141_v58 = vpop.f32.mrf.mxu1 }
 0x60d   : > { %2312 = vmax.xlane.f32.xlu0 %v2311_v43 }
 0x611   : > { %v2255_v25 = vpop.f32.mrf.mxu1 }
 0x612   : > { %v2294_v61 = vmul.f32 0.35355338, %v2255_v25 }
 0x614   : > { %v2314_v52 = vsel %vm919_vm7, %v2294_v61, -inf }
 0x615   : > { %2315 = vmax.xlane.f32.xlu2 %v2314_v52 }
 0x619   : > { %v2257_v14 = vpop.f32.mrf.mxu1 }
 0x61d   : > { %2306 = vmax.xlane.f32.xlu2 %v2305_v9 }
 0x61f   : > { %2309 = vmax.xlane.f32.xlu1 %v2308_v39 }
 0x621   : > { %2809 = vrot.lane.b32.xlu0 %v2808_v40, %s4239_s26 }
 0x627   : > { %2318 = vmax.xlane.f32.xlu1 %v2317_v29 }
 0x635   : > { %2838 = vrot.lane.b32.xlu2 %v2837_v53, %s4239_s26  ;;  %v6187_v53 = vld [vmem:[#allocation44_spill] sm:$0xff] }
 0x641   : > { %v2301_v10 = vpop.xlane.xlu2 %2300 }
 0x642   : > { %v2321_v38 = vsub.f32 %v2289_v35, %v2301_v10  ;;  %v2684_v10 = vpack.c.bf16 %v6187_v53, %v6187_v53 }
 0x644   : > { %v2330_v12 = vmul.f32 1.442695, %v2321_v38 }
 0x646   : > { %4159 = vpow2.f32 %v2330_v12  ;;  %v2802_v12 = vunpack.c.l.b16 %v2684_v10  ;;  %v6193_v10 = vld [vmem:[#allocation47_spill] sm:$0xff] }
 0x64c   : > { %v5578_v24 = vpop.eup %4159 }
 0x64d   : > { %v2347_v16 = vsel %vm919_vm7, %v5578_v24, 0.0 }
 0x64e   : > { %2348 = vadd.xlane.f32.xlu1 %v2347_v16  ;;  %v2803_v16 = vpack.c.b16 %v2802_v12, %v2802_v12 }
 0x64f   : > { %v2298_v27 = vpop.xlane.xlu1 %2297 }
 0x650   : > { %v2320_v6 = vsub.f32 %v5552_v17, %v2298_v27  ;;  %v6188_v27 = vld [vmem:[#allocation50_spill] sm:$0xff] }
 0x652   : > { %v2328_v35 = vmul.f32 1.442695, %v2320_v6  ;;  %v6189_v6 = vld [vmem:[#allocation43_spill] sm:$0xff] }
 0x667   : > { %v5593_v25 = vpop.permute.xlu1 %2867 }
 0x678   : > { %v2304_v60 = vpop.xlane.xlu0 %2303 }
 0x679   : > { %v2322_v48 = vsub.f32 %v2290_v13, %v2304_v60  ;;  %v2740_v60 = vpack.c.bf16 %v6188_v27, %v6188_v27  ;;  %v6194_v27 = vld [vmem:[#allocation48_spill] sm:$0xff] }
 0x67b   : > { %v2332_v50 = vmul.f32 1.442695, %v2322_v48  ;;  %v2894_v48 = vunpack.c.l.b16 %v2740_v60  ;;  %v2688_v60 = vpack.c.bf16 %v6194_v27, %v6194_v27 }
 0x67d   : > { %4161 = vpow2.f32 %v2332_v50  ;;  %v2683_v50 = vpack.c.bf16 %v6189_v6, %v6189_v6 }
 0x67e   : > { %4163 = vpow2.f32 %v2328_v35  ;;  %v2895_v35 = vpack.c.b16 %v2894_v48, %v2894_v48  ;;  %v2918_v48 = vunpack.c.l.b16 %v2688_v60 }
 0x680   : > { %v2313_v23 = vpop.xlane.xlu0 %2312 }
 0x681   : > { %v2325_v21 = vsub.f32 %v2293_v34, %v2313_v23  ;;  %v6190_v23 = vld [vmem:[#allocation49_spill] sm:$0xff] }
 0x683   : > { %v5587_v19 = vpop.eup %4161  ;;  %v2338_v1 = vmul.f32 1.442695, %v2325_v21  ;;  %v2689_v21 = vpack.c.bf16 %v6190_v23, %v6190_v23  ;;  %v3124_v23 = vpack.c.bf16 %v5158_v41, %v5158_v41 }
 0x684   : > { %v2350_v28 = vsel %vm919_vm7, %v5587_v19, 0.0  ;;  %v5591_v43 = vpop.eup %4163 }
 0x685   : > { %4165 = vpow2.f32 %v2338_v1  ;;  %2351 = vadd.xlane.f32.xlu0 %v2350_v28  ;;  %v2344_v34 = vsel %vm919_vm7, %v5591_v43, 0.0  ;;  %v6191_v1 = vld [vmem:[#allocation45_spill] sm:$0xff] }
 0x686   : > { %v2685_v28 = vpack.c.bf16 %v6191_v1, %v6191_v1  ;;  %v2786_v1 = vsel %vm723_vm5, %v5584_v42, 0  ;;  %v2742_v42 = vpack.c.bf16 %v5153_v8, %v5153_v8 }
 0x688   : > { %v2316_v58 = vpop.xlane.xlu2 %2315 }
 0x689   : > { %v2326_v13 = vsub.f32 %v2294_v61, %v2316_v58  ;;  %v2773_v58 = vunpack.c.l.b16 %v2683_v50 }
 0x68b   : > { %v5595_v17 = vpop.eup %4165  ;;  %v2340_v52 = vmul.f32 1.442695, %v2326_v13  ;;  %v2947_v13 = vunpack.c.l.b16 %v2689_v21 }
 0x68c   : > { %v2359_v32 = vsel %vm919_vm7, %v5595_v17, 0.0 }
 0x68d   : > { %4167 = vpow2.f32 %v2340_v52  ;;  %2345 = vadd.xlane.f32.xlu0 %v2344_v34  ;;  %2360 = vadd.xlane.f32.xlu2 %v2359_v32  ;;  %v2831_v52 = vunpack.c.l.b16 %v2685_v28  ;;  %v2774_v34 = vpack.c.b16 %v2773_v58, %v2773_v58  ;;  %v6192_v32 = vld [vmem:[#allocation46_spill] sm:$0xff]  ;;  %v3133_v28 = vunpack.c.l.b16 %v3124_v23 }
 0x690   : > { %v2307_v14 = vpop.xlane.xlu2 %2306 }
 0x691   : > { %v2323_v18 = vsub.f32 %v2291_v59, %v2307_v14  ;;  %v2686_v14 = vpack.c.bf16 %v6192_v32, %v6192_v32  ;;  %v2952_v32 = vunpack.c.l.b16 %v2742_v42  ;;  %v2873_v42 = vsel %vm723_vm5, %v5593_v25, 0 }
 0x692   : > { %v2310_v9 = vpop.xlane.xlu1 %2309 }
 0x693   : > { %v5601_v39 = vpop.eup %4167  ;;  %v2334_v61 = vmul.f32 1.442695, %v2323_v18  ;;  %v2324_v40 = vsub.f32 %v2292_v15, %v2310_v9  ;;  %v2948_v18 = vpack.c.b16 %v2947_v13, %v2947_v13  ;;  %v3125_v9 = vpack.c.bf16 %v5163_v44, %v5163_v44 }
 0x694   : > { %v2362_v29 = vsel %vm919_vm7, %v5601_v39, 0.0  ;;  %v3134_v13 = vpack.c.b16 %v3133_v28, %v3133_v28 }
 0x695   : > { %4169 = vpow2.f32 %v2334_v61  ;;  %v2336_v20 = vmul.f32 1.442695, %v2324_v40  ;;  %2363 = vadd.xlane.f32.xlu0 %v2362_v29  ;;  %v2832_v61 = vpack.c.b16 %v2831_v52, %v2831_v52  ;;  %v2860_v40 = vunpack.c.l.b16 %v2686_v14 }
 0x696   : > { %v3157_v29 = vunpack.c.l.b16 %v3125_v9  ;;  %v2953_v14 = vpack.c.b16 %v2952_v32, %v2952_v32 }
 0x697   : > { %4171 = vpow2.f32 %v2336_v20  ;;  %v2861_v53 = vpack.c.b16 %v2860_v40, %v2860_v40 }
 0x69a   : > { %v2319_v20 = vpop.xlane.xlu1 %2318 }
 0x69b   : > { %v5605_v7 = vpop.eup %4169  ;;  %v2327_v58 = vsub.f32 %v5569_v37, %v2319_v20  ;;  %v2741_v37 = vpack.c.bf16 %v5148_v0, %v5148_v0 }
 0x69c   : > { %v2353_v59 = vsel %vm919_vm7, %v5605_v7, 0.0 }
 0x69d   : > { %v5611_v38 = vpop.eup %4171  ;;  %2354 = vadd.xlane.f32.xlu1 %v2353_v59  ;;  %v2687_v59 = vpack.c.bf16 %v6193_v10, %v6193_v10  ;;  %v2342_v52 = vmul.f32 1.442695, %v2327_v58 }
 0x69e   : > { %v2356_v15 = vsel %vm919_vm7, %v5611_v38, 0.0 }
 0x69f   : > { %2357 = vadd.xlane.f32.xlu0 %v2356_v15  ;;  %v3158_v15 = vpack.c.b16 %v3157_v29, %v3157_v29  ;;  %v2889_v12 = vunpack.c.l.b16 %v2687_v59 }
 0x6a5   : > { %2804 = vrot.lane.b32.xlu2 %v2803_v16, %s4240_s27  ;;  %v2890_v16 = vpack.c.b16 %v2889_v12, %v2889_v12 }
 0x6ad   : > { %2896 = vrot.lane.b32.xlu2 %v2895_v35, %s4239_s26  ;;  %v2919_v35 = vpack.c.b16 %v2918_v48, %v2918_v48  ;;  %v2757_v48 = vsel %vm723_vm5, %v5582_v46, 0 }
 0x6b3   : > { %2775 = vrot.lane.b32.xlu0 %v2774_v34, %s4240_s27  ;;  %v2810_v34 = vpop.permute.xlu0 %2809 }
 0x6b4   : > { %v2815_v59 = vsel %vm723_vm5, %v2810_v34, 0 }
 0x6b5   : > { %2949 = vrot.lane.b32.xlu2 %v2948_v18, %s4240_s27  ;;  %v2839_v18 = vpop.permute.xlu2 %2838 }
 0x6b6   : > { %2833 = vrot.lane.b32.xlu1 %v2832_v61, %s4240_s27  ;;  %v2923_v61 = vunpack.c.l.b16 %v2741_v37 }
 0x6b8   : > { %v2924_v29 = vpack.c.b16 %v2923_v61, %v2923_v61 }
 0x6bb   : > { %2862 = vrot.lane.b32.xlu0 %v2861_v53, %s4240_s27 }
 0x6bd   : > { %3159 = vrot.lane.b32.xlu2 %v3158_v15, %s4241_s28 }
 0x6c1   : > { %v2349_v44 = vpop.xlane.xlu1 %2348 }
 0x6c2   : > { %4173 = vrcp.f32 %v2349_v44 }
 0x6c3   : > { %2891 = vrot.lane.b32.xlu0 %v2890_v16, %s4240_s27  ;;  %4175 = vpow2.f32 %v2342_v52 }
 0x6c8   : > { %v4174_v6 = vpop.eup %4173 }
 0x6c9   : > { %v2377_v50 = vmul.f32 %v4174_v6, %v5578_v24  ;;  %v5648_v24 = vpop.eup %4175 }
 0x6ca   : > { %v2365_v41 = vsel %vm919_vm7, %v5648_v24, 0.0 }
 0x6cb   : > { %v2385_v21 = vpack.c.bf16 %v2377_v50, %v2377_v50  ;;  %2920 = vrot.lane.b32.xlu0 %v2919_v35, %s4240_s27 }
 0x6cd   : > { %4029 = vmatmul.msk.bf16.vlgmr.msra.gmra.mxu0 %vm1074_vm8, %v2385_v21 }
 0x6ce   : > { %2795 = vmatpush.bf16.xpose.msra.mxu0 %v2786_v1 }
 0x6d3   : > { %3135 = vrot.lane.b32.xlu0 %v3134_v13, %s4241_s28 }
 0x6e0   : > { %2366 = vadd.xlane.f32.xlu1 %v2365_v41 }
 0x6f8   : > { %v2352_v9 = vpop.xlane.xlu0 %2351 }
 0x6f9   : > { %4177 = vrcp.f32 %v2352_v9  ;;  %2954 = vrot.lane.b32.xlu1 %v2953_v14, %s4239_s26 }
 0x6ff   : > { %v4178_v40 = vpop.eup %4177 }
 0x700   : > { %v2378_v20 = vmul.f32 %v4178_v40, %v5587_v19  ;;  %v2346_v53 = vpop.xlane.xlu0 %2345  ;;  %v2361_v10 = vpop.xlane.xlu2 %2360 }
 0x701   : > { %4179 = vrcp.f32 %v2346_v53  ;;  %2925 = vrot.lane.b32.xlu1 %v2924_v29, %s4239_s26 }
 0x702   : > { %v2386_v8 = vpack.c.bf16 %v2378_v20, %v2378_v20  ;;  %4181 = vrcp.f32 %v2361_v10 }
 0x704   : > { %4030 = vmatmul.msk.bf16.vlgmr.msrb.gmra.mxu1 %vm1074_vm8, %v2386_v8 }
 0x705   : > { %2824 = vmatpush.bf16.xpose.msrb.mxu1 %v2815_v59 }
 0x707   : > { %v4180_v0 = vpop.eup %4179 }
 0x708   : > { %v4182_v15 = vpop.eup %4181  ;;  %v2376_v12 = vmul.f32 %v4180_v0, %v5591_v43  ;;  %v2364_v44 = vpop.xlane.xlu0 %2363 }
 0x709   : > { %v2805_v16 = vpop.permute.xlu2 %2804  ;;  %v2381_v19 = vmul.f32 %v4182_v15, %v5595_v17  ;;  %4183 = vrcp.f32 %v2364_v44 }
 0x70a   : > { %v2384_v27 = vpack.c.bf16 %v2376_v12, %v2376_v12 }
 0x70b   : > { %v2389_v60 = vpack.c.bf16 %v2381_v19, %v2381_v19 }
 0x70c   : > { %4028 = vmatmul.msk.bf16.vlgmr.msrb.gmra.mxu3 %vm1074_vm8, %v2384_v27 }
 0x70d   : > { %4033 = vmatmul.msk.bf16.vlgmr.msrb.gmra.mxu0 %vm1074_vm8, %v2389_v60  ;;  %2766 = vmatpush.bf16.xpose.msrb.mxu3 %v2757_v48 }
 0x70f   : > { %v4184_v6 = vpop.eup %4183 }
 0x710   : > { %v2382_v50 = vmul.f32 %v4184_v6, %v5601_v39  ;;  %v2355_v43 = vpop.xlane.xlu1 %2354  ;;  %v2844_v39 = vsel %vm723_vm5, %v2839_v18, 0 }
 0x711   : > { %v2897_v35 = vpop.permute.xlu2 %2896  ;;  %4185 = vrcp.f32 %v2355_v43 }
 0x712   : > { %v2902_v23 = vsel %vm723_vm5, %v2897_v35, 0  ;;  %v2390_v17 = vpack.c.bf16 %v2382_v50, %v2382_v50  ;;  %v2358_v21 = vpop.xlane.xlu0 %2357 }
 0x713   : > { %2911 = vmatpush.bf16.xpose.msrb.mxu0 %v2902_v23  ;;  %4187 = vrcp.f32 %v2358_v21 }
 0x714   : > { %4034 = vmatmul.msk.bf16.vlgmr.msra.gmra.mxu1 %vm1074_vm8, %v2390_v17 }
 0x717   : > { %v4186_v46 = vpop.eup %4185 }
 0x718   : > { %v2379_v1 = vmul.f32 %v4186_v46, %v5605_v7 }
 0x719   : > { %v4188_v28 = vpop.eup %4187  ;;  %v2950_v58 = vpop.permute.xlu2 %2949 }
 0x71a   : > { %v2387_v13 = vpack.c.bf16 %v2379_v1, %v2379_v1  ;;  %v2380_v52 = vmul.f32 %v4188_v28, %v5611_v38 }
 0x71c   : > { %v2388_v41 = vpack.c.bf16 %v2380_v52, %v2380_v52  ;;  %4031 = vmatmul.msk.bf16.vlgmr.msrb.gmra.mxu2 %vm1074_vm8, %v2387_v13 }
 0x71d   : > { %2853 = vmatpush.bf16.xpose.msrb.mxu2 %v2844_v39 }
 0x71e   : > { %4032 = vmatmul.msk.bf16.vlgmr.msra.gmra.mxu3 %vm1074_vm8, %v2388_v41 }
 0x71f   : > { %2882 = vmatpush.bf16.xpose.msra.mxu3 %v2873_v42 }
 0x721   : > { %v3160_v34 = vpop.permute.xlu2 %3159 }
 0x722   : > { %v3165_v32 = vsel %vm1078_vm6, %v3160_v34, 0 }
 0x724   : > { %4038 = vmatmul.msk.bf16.vlgmr.msrb.gmra.mxu1 %vm723_vm5, %v2805_v16 }
 0x725   : > { %v2776_v7 = vpop.permute.xlu0 %2775 }
 0x726   : > { %4037 = vmatmul.msk.bf16.vlgmr.msra.gmra.mxu0 %vm723_vm5, %v2776_v7 }
 0x727   : > { %3174 = vmatpush.bf16.msra.mxu0 %v3165_v32 }
 0x728   : > { %v2834_v61 = vpop.permute.xlu1 %2833 }
 0x72d   : > { %v2863_v38 = vpop.permute.xlu0 %2862 }
 0x72e   : > { %4036 = vmatmul.msk.bf16.vlgmr.msrb.gmra.mxu3 %vm723_vm5, %v5576_v49 }
 0x735   : > { %v2892_v14 = vpop.permute.xlu0 %2891 }
 0x736   : > { %4041 = vmatmul.msk.bf16.vlgmr.msrb.gmra.mxu0 %vm723_vm5, %v2892_v14 }
 0x73d   : > { %v2921_v25 = vpop.permute.xlu0 %2920 }
 0x73e   : > { %4040 = vmatmul.msk.bf16.vlgmr.msra.gmra.mxu3 %vm723_vm5, %v2863_v38 }
 0x745   : > { %v3136_v37 = vpop.permute.xlu0 %3135 }
 0x746   : > { %v3141_v18 = vsel %vm1078_vm6, %v3136_v37, 0 }
 0x747   : > { %3150 = vmatpush.bf16.msrb.mxu3 %v3141_v18 }
 0x74a   : > { %v5685_v9 = vpop.f32.mrf.mxu0 }
 0x752   : > { %v2491_v40 = vpop.f32.mrf.mxu0 }
 0x753   : > { %v2367_v29 = vpop.xlane.xlu1 %2366 }
 0x754   : > { %4189 = vrcp.f32 %v2367_v29 }
 0x75a   : > { %v4190_v20 = vpop.eup %4189 }
 0x75b   : > { %v2383_v53 = vmul.f32 %v4190_v20, %v5648_v24 }
 0x75d   : > { %v2391_v49 = vpack.c.bf16 %v2383_v53, %v2383_v53 }
 0x75f   : > { %4035 = vmatmul.msk.bf16.vlgmr.msra.gmra.mxu2 %vm1074_vm8, %v2391_v49 }
 0x76b   : > { %v2955_v10 = vpop.permute.xlu1 %2954 }
 0x76c   : > { %v2960_v8 = vsel %vm723_vm5, %v2955_v10, 0 }
 0x76d   : > { %2969 = vmatpush.bf16.xpose.msra.mxu2 %v2960_v8 }
 0x76f   : > { %4039 = vmatmul.msk.bf16.vlgmr.msrb.gmra.mxu2 %vm723_vm5, %v2834_v61 }
 0x773   : > { %v2926_v59 = vpop.permute.xlu1 %2925 }
 0x774   : > { %v2931_v0 = vsel %vm723_vm5, %v2926_v59, 0 }
 0x775   : > { %2940 = vmatpush.bf16.xpose.msra.mxu1 %v2931_v0 }
 0x77c   : > { %4042 = vmatmul.msk.bf16.vlgmr.msra.gmra.mxu1 %vm723_vm5, %v2921_v25 }
 0x77f   : > { %4043 = vmatmul.msk.bf16.vlgmr.msra.gmra.mxu2 %vm723_vm5, %v2950_v58 }
 0x781   : > { %v5694_v15 = vpop.f32.mrf.mxu1 }
 0x789   : > { %v2515_v24 = vpop.f32.mrf.mxu1 }
 0x78a   : > { %v5696_v12 = vpop.f32.mrf.mxu0 }
 0x78f   : > { %v5698_v44 = vpop.f32.mrf.mxu3 }
 0x791   : > { %v5700_v16 = vpop.f32.mrf.mxu1 }
 0x792   : > { %v2587_v19 = vpop.f32.mrf.mxu0 }
 0x797   : > { %v2467_v27 = vpop.f32.mrf.mxu3 }
 0x799   : > { %v2611_v60 = vpop.f32.mrf.mxu1 }
 0x79a   : > { %v3126_v60 = vpack.c.bf16 %v5168_v62, %v5168_v62 }
 0x79f   : > { %v5702_v48 = vpop.f32.mrf.mxu2 }
 0x7a1   : > { %v2826_v6 = vpop.f32.mrf.mxu1  ;;  %v5704_v50 = vpop.f32.mrf.mxu3 }
 0x7a2   : > { %v5706_v35 = vmul.f32 0.35355338, %v2826_v6  ;;  %v3181_v6 = vunpack.c.l.b16 %v3126_v60 }
 0x7a3   : > { %v2797_v43 = vpop.f32.mrf.mxu0 }
 0x7a4   : > { %v2976_v23 = vmul.f32 0.35355338, %v2797_v43  ;;  %v2989_v17 = vsel %vm919_vm7, %v5706_v35, -inf }
 0x7a5   : > { %2990 = vmax.xlane.f32.xlu0 %v2989_v17 }
 0x7a6   : > { %v2986_v21 = vsel %vm919_vm7, %v2976_v23, -inf }
 0x7a7   : > { %v2539_v46 = vpop.f32.mrf.mxu2  ;;  %2987 = vmax.xlane.f32.xlu1 %v2986_v21  ;;  %v3182_v21 = vpack.c.b16 %v3181_v6, %v3181_v6 }
 0x7a9   : > { %v2828_v1 = vpop.f32.mrf.mxu1  ;;  %v2563_v28 = vpop.f32.mrf.mxu3 }
 0x7ab   : > { %v2799_v58 = vpop.f32.mrf.mxu0 }
 0x7b1   : > { %v2768_v13 = vpop.f32.mrf.mxu3 }
 0x7b2   : > { %v2975_v52 = vmul.f32 0.35355338, %v2768_v13 }
 0x7b3   : > { %v2913_v39 = vpop.f32.mrf.mxu0 }
 0x7b4   : > { %v2980_v41 = vmul.f32 0.35355338, %v2913_v39  ;;  %v2983_v42 = vsel %vm919_vm7, %v2975_v52, -inf }
 0x7b5   : > { %2984 = vmax.xlane.f32.xlu2 %v2983_v42 }
 0x7b6   : > { %v2998_v34 = vsel %vm919_vm7, %v2980_v41, -inf }
 0x7b7   : > { %2999 = vmax.xlane.f32.xlu0 %v2998_v34  ;;  %v3128_v34 = vpack.c.bf16 %v5178_v2, %v5178_v2 }
 0x7b9   : > { %v2770_v7 = vpop.f32.mrf.mxu3 }
 0x7bb   : > { %v2915_v32 = vpop.f32.mrf.mxu0 }
 0x7bc   : > { %v3229_v32 = vunpack.c.l.b16 %v3128_v34 }
 0x7c1   : > { %v2884_v38 = vpop.f32.mrf.mxu3 }
 0x7c2   : > { %v2979_v10 = vmul.f32 0.35355338, %v2884_v38 }
 0x7c4   : > { %v2995_v24 = vsel %vm919_vm7, %v2979_v10, -inf }
 0x7c9   : > { %v2886_v14 = vpop.f32.mrf.mxu3 }
 0x7e2   : > { %v5713_v25 = vpop.f32.mrf.mxu2 }
 0x7ea   : > { %v2635_v37 = vpop.f32.mrf.mxu2 }
 0x7eb   : > { %v3230_v37 = vpack.c.b16 %v3229_v32, %v3229_v32 }
 0x7f2   : > { %v2855_v18 = vpop.f32.mrf.mxu2 }
 0x7f3   : > { %v2978_v61 = vmul.f32 0.35355338, %v2855_v18 }
 0x7f5   : > { %v2992_v40 = vsel %vm919_vm7, %v2978_v61, -inf }
 0x7f6   : > { %2993 = vmax.xlane.f32.xlu2 %v2992_v40 }
 0x7f9   : > { %v2942_v29 = vpop.f32.mrf.mxu1 }
 0x7fa   : > { %v5716_v20 = vmul.f32 0.35355338, %v2942_v29  ;;  %v2857_v53 = vpop.f32.mrf.mxu2 }
 0x7fc   : > { %v3001_v49 = vsel %vm919_vm7, %v5716_v20, -inf }
 0x7fd   : > { %3002 = vmax.xlane.f32.xlu1 %v3001_v49 }
 0x801   : > { %v2944_v8 = vpop.f32.mrf.mxu1 }
 0x802   : > { %v2971_v59 = vpop.f32.mrf.mxu2 }
 0x803   : > { %v2982_v0 = vmul.f32 0.35355338, %v2971_v59 }
 0x805   : > { %2996 = vmax.xlane.f32.xlu1 %v2995_v24  ;;  %v3004_v19 = vsel %vm919_vm7, %v2982_v0, -inf }
 0x806   : > { %3005 = vmax.xlane.f32.xlu2 %v3004_v19 }
 0x80a   : > { %v2973_v27 = vpop.f32.mrf.mxu2 }
 0x818   : > { %v2991_v62 = vpop.xlane.xlu0 %2990 }
 0x819   : > { %v3009_v7 = vsub.f32 %v5706_v35, %v2991_v62 }
 0x81a   : > { %v2988_v43 = vpop.xlane.xlu1 %2987 }
 0x81b   : > { %v3008_v17 = vsub.f32 %v2976_v23, %v2988_v43  ;;  %v3019_v38 = vmul.f32 1.442695, %v3009_v7  ;;  %v3111_v7 = vld.sshfl [vmem:[#allocation1] sm:$0xff pattern:$0x73625140] }
 0x81d   : > { %v3017_v46 = vmul.f32 1.442695, %v3008_v17 }
 0x81e   : > { %3183 = vrot.lane.b32.xlu1 %v3182_v21, %s4241_s28 }
 0x81f   : > { %4191 = vpow2.f32 %v3017_v46 }
 0x825   : > { %v5725_v1 = vpop.eup %4191 }
 0x826   : > { %v3034_v28 = vsel %vm919_vm7, %v5725_v1, 0.0 }
 0x827   : > { %3035 = vadd.xlane.f32.xlu2 %v3034_v28 }
 0x828   : > { %v2985_v58 = vpop.xlane.xlu2 %2984 }
 0x829   : > { %v3007_v13 = vsub.f32 %v2975_v52, %v2985_v58 }
 0x82a   : > { %v3000_v14 = vpop.xlane.xlu0 %2999 }
 0x82b   : > { %v3015_v39 = vmul.f32 1.442695, %v3007_v13  ;;  %v3012_v52 = vsub.f32 %v2980_v41, %v3000_v14 }
 0x82d   : > { %4193 = vpow2.f32 %v3015_v39  ;;  %v3025_v18 = vmul.f32 1.442695, %v3012_v52  ;;  %v3115_v39 = vld.sshfl [vmem:[#allocation1 + $0x20] sm:$0xff pattern:$0x73625140] }
 0x82e   : > { %4195 = vpow2.f32 %v3019_v38  ;;  %v3131_v62 = vpack.c.bf16 %v3115_v39, %v3115_v39 }
 0x82f   : > { %4197 = vpow2.f32 %v3025_v18 }
 0x830   : > { %v3301_v34 = vunpack.c.l.b16 %v3131_v62 }
 0x832   : > { %v3302_v14 = vpack.c.b16 %v3301_v34, %v3301_v34 }
 0x833   : > { %v5729_v42 = vpop.eup %4193 }
 0x834   : > { %v3031_v23 = vsel %vm919_vm7, %v5729_v42, 0.0  ;;  %v5737_v40 = vpop.eup %4195 }
 0x835   : > { %3032 = vadd.xlane.f32.xlu0 %v3031_v23  ;;  %v3037_v29 = vsel %vm919_vm7, %v5737_v40, 0.0  ;;  %v5741_v53 = vpop.eup %4197  ;;  %v3129_v23 = vpack.c.bf16 %v5187_v5, %v5187_v5 }
 0x836   : > { %v3046_v2 = vsel %vm919_vm7, %v5741_v53, 0.0 }
 0x837   : > { %v3253_v32 = vunpack.c.l.b16 %v3129_v23 }
 0x839   : > { %v3254_v52 = vpack.c.b16 %v3253_v32, %v3253_v32 }
 0x83f   : > { %3231 = vrot.lane.b32.xlu2 %v3230_v37, %s4241_s28  ;;  %v3130_v37 = vpack.c.bf16 %v3111_v7, %v3111_v7 }
 0x841   : > { %v3277_v18 = vunpack.c.l.b16 %v3130_v37 }
 0x848   : > { %3038 = vadd.xlane.f32.xlu1 %v3037_v29 }
 0x850   : > { %3047 = vadd.xlane.f32.xlu1 %v3046_v2 }
 0x869   : > { %v2994_v35 = vpop.xlane.xlu2 %2993 }
 0x86a   : > { %v3010_v49 = vsub.f32 %v2978_v61, %v2994_v35  ;;  %v3127_v61 = vpack.c.bf16 %v5173_v63, %v5173_v63 }
 0x86c   : > { %v3021_v8 = vmul.f32 1.442695, %v3010_v49  ;;  %v3205_v58 = vunpack.c.l.b16 %v3127_v61 }
 0x86e   : > { %4199 = vpow2.f32 %v3021_v8  ;;  %v3278_v8 = vpack.c.b16 %v3277_v18, %v3277_v18 }
 0x870   : > { %v3003_v41 = vpop.xlane.xlu1 %3002 }
 0x871   : > { %v3013_v2 = vsub.f32 %v5716_v20, %v3003_v41 }
 0x874   : > { %v5745_v59 = vpop.eup %4199 }
 0x875   : > { %v3040_v24 = vsel %vm919_vm7, %v5745_v59, 0.0 }
 0x876   : > { %3041 = vadd.xlane.f32.xlu0 %v3040_v24 }
 0x878   : > { %v2997_v19 = vpop.xlane.xlu1 %2996 }
 0x879   : > { %v3011_v27 = vsub.f32 %v2979_v10, %v2997_v19  ;;  %v3006_v60 = vpop.xlane.xlu2 %3005  ;;  %v3027_v19 = vmul.f32 1.442695, %v3013_v2 }
 0x87a   : > { %v3014_v6 = vsub.f32 %v2982_v0, %v3006_v60  ;;  %v3206_v0 = vpack.c.b16 %v3205_v58, %v3205_v58 }
 0x87b   : > { %v3023_v43 = vmul.f32 1.442695, %v3011_v27 }
 0x87c   : > { %v3029_v17 = vmul.f32 1.442695, %v3014_v6 }
 0x87d   : > { %4201 = vpow2.f32 %v3023_v43 }
 0x87e   : > { %4203 = vpow2.f32 %v3029_v17 }
 0x883   : > { %v5751_v21 = vpop.eup %4201 }
 0x884   : > { %v5753_v46 = vpop.eup %4203  ;;  %v3043_v28 = vsel %vm919_vm7, %v5751_v21, 0.0 }
 0x885   : > { %3044 = vadd.xlane.f32.xlu2 %v3043_v28  ;;  %v3052_v10 = vsel %vm919_vm7, %v5753_v46, 0.0 }
 0x886   : > { %3053 = vadd.xlane.f32.xlu1 %v3052_v10 }
 0x88a   : > { %3207 = vrot.lane.b32.xlu0 %v3206_v0, %s4241_s28 }
 0x890   : > { %v3184_v13 = vpop.permute.xlu1 %3183 }
 0x891   : > { %v3189_v63 = vsel %vm1078_vm6, %v3184_v13, 0 }
 0x892   : > { %3198 = vmatpush.bf16.msrb.mxu1 %v3189_v63 }
 0x89a   : > { %v3036_v38 = vpop.xlane.xlu2 %3035 }
 0x89b   : > { %4205 = vrcp.f32 %v3036_v38 }
 0x89d   : > { %3303 = vrot.lane.b32.xlu2 %v3302_v14, %s4241_s28 }
 0x89f   : > { %3255 = vrot.lane.b32.xlu1 %v3254_v52, %s4241_s28 }
 0x8a1   : > { %v4206_v29 = vpop.eup %4205 }
 0x8a2   : > { %v3064_v35 = vmul.f32 %v4206_v29, %v5725_v1  ;;  %v3232_v49 = vpop.permute.xlu2 %3231 }
 0x8a3   : > { %v3237_v5 = vsel %vm1078_vm6, %v3232_v49, 0 }
 0x8a4   : > { %v3072_v24 = vpack.c.bf16 %v3064_v35, %v3064_v35  ;;  %3246 = vmatpush.bf16.msra.mxu3 %v3237_v5 }
 0x8a5   : > { %3279 = vrot.lane.b32.xlu2 %v3278_v8, %s4241_s28 }
 0x8a6   : > { %4045 = vmatmul.msk.bf16.vlgmr.msra.gmra.mxu0 %vm1074_vm8, %v3072_v24 }
 0x8a7   : > { %3332 = vrot.lane.b32.xlu1 %v5539_v56, %s4242_s29 }
 0x8a8   : > { %v3033_v27 = vpop.xlane.xlu0 %3032 }
 0x8a9   : > { %4207 = vrcp.f32 %v3033_v27 }
 0x8aa   : > { %4209 = vpow2.f32 %v3027_v19 }
 0x8ad   : > { %3334 = vrot.lane.b32.xlu2 %v5537_v22, %s4242_s29 }
 0x8af   : > { %v4208_v20 = vpop.eup %4207  ;;  %3336 = vrot.lane.b32.xlu1 %v5541_v26, %s4242_s29 }
 0x8b0   : > { %v5776_v1 = vpop.eup %4209  ;;  %v3063_v41 = vmul.f32 %v4208_v20, %v5729_v42 }
 0x8b1   : > { %v3049_v6 = vsel %vm919_vm7, %v5776_v1, 0.0 }
 0x8b2   : > { %v3071_v60 = vpack.c.bf16 %v3063_v41, %v3063_v41 }
 0x8b4   : > { %3050 = vadd.xlane.f32.xlu0 %v3049_v6  ;;  %4044 = vmatmul.msk.bf16.vlgmr.msrb.gmra.mxu3 %vm1074_vm8, %v3071_v60  ;;  %v4067_v60 = vld [vmem:[%s6092_s4] sm:$0xff] }
 0x8b5   : > { %3364 = vrot.lane.b32.xlu2 %v5698_v44, %s4243_s30 }
 0x8b7   : > { %3366 = vrot.lane.b32.xlu1 %v5685_v9, %s4243_s30 }
 0x8bb   : > { %v3039_v22 = vpop.xlane.xlu1 %3038 }
 0x8bc   : > { %4211 = vrcp.f32 %v3039_v22 }
 0x8bd   : > { %3368 = vrot.lane.b32.xlu2 %v5694_v15, %s4243_s30 }
 0x8bf   : > { %3338 = vrot.lane.b32.xlu1 %v5543_v57, %s4242_s29 }
 0x8c2   : > { %v4212_v56 = vpop.eup %4211 }
 0x8c3   : > { %v3065_v26 = vmul.f32 %v4212_v56, %v5737_v40  ;;  %v3048_v44 = vpop.xlane.xlu1 %3047 }
 0x8c5   : > { %v3073_v42 = vpack.c.bf16 %v3065_v26, %v3065_v26  ;;  %3340 = vrot.lane.b32.xlu2 %v5549_v51, %s4242_s29 }
 0x8c7   : > { %4046 = vmatmul.msk.bf16.vlgmr.msrb.gmra.mxu1 %vm1074_vm8, %v3073_v42 }
 0x8c8   : > { %3370 = vrot.lane.b32.xlu0 %v5702_v48, %s4243_s30 }
 0x8e9   : > { %v3042_v9 = vpop.xlane.xlu0 %3041 }
 0x8ea   : > { %4213 = vrcp.f32 %v3042_v9 }
 0x8f0   : > { %v4214_v43 = vpop.eup %4213 }
 0x8f1   : > { %v3066_v57 = vmul.f32 %v4214_v43, %v5745_v59 }
 0x8f3   : > { %v3074_v28 = vpack.c.bf16 %v3066_v57, %v3066_v57 }
 0x8f8   : > { %v3045_v15 = vpop.xlane.xlu2 %3044 }
 0x8f9   : > { %4215 = vrcp.f32 %v3045_v15  ;;  %v3054_v51 = vpop.xlane.xlu1 %3053 }
 0x8fa   : > { %4217 = vrcp.f32 %v3054_v51 }
 0x8fb   : > { %4219 = vrcp.f32 %v3048_v44 }
 0x8fc   : > { %v3208_v17 = vpop.permute.xlu0 %3207 }
 0x8fd   : > { %v3213_v40 = vsel %vm1078_vm6, %v3208_v17, 0 }
 0x8fe   : > { %3222 = vmatpush.bf16.msrb.mxu2 %v3213_v40 }
 0x8ff   : > { %v4216_v61 = vpop.eup %4215 }
 0x900   : > { %v3067_v58 = vmul.f32 %v4216_v61, %v5751_v21  ;;  %v3304_v10 = vpop.permute.xlu2 %3303  ;;  %v4218_v59 = vpop.eup %4217 }
 0x901   : > { %v3309_v48 = vsel %vm1078_vm6, %v3304_v10, 0  ;;  %4047 = vmatmul.msk.bf16.vlgmr.msrb.gmra.mxu2 %vm1074_vm8, %v3074_v28  ;;  %v3070_v63 = vmul.f32 %v4218_v59, %v5753_v46  ;;  %v4220_v62 = vpop.eup %4219 }
 0x902   : > { %v3075_v0 = vpack.c.bf16 %v3067_v58, %v3067_v58  ;;  %3318 = vmatpush.bf16.msra.mxu2 %v3309_v48  ;;  %v3068_v23 = vmul.f32 %v4220_v62, %v5741_v53 }
 0x903   : > { %v3078_v21 = vpack.c.bf16 %v3070_v63, %v3070_v63 }
 0x904   : > { %4048 = vmatmul.msk.bf16.vlgmr.msra.gmra.mxu3 %vm1074_vm8, %v3075_v0  ;;  %v3076_v32 = vpack.c.bf16 %v3068_v23, %v3068_v23 }
 0x908   : > { %v3280_v13 = vpop.permute.xlu2 %3279 }
 0x909   : > { %v3285_v39 = vsel %vm1078_vm6, %v3280_v13, 0 }
 0x90a   : > { %3294 = vmatpush.bf16.msra.mxu1 %v3285_v39 }
 0x910   : > { %v3335_v49 = vpop.permute.xlu2 %3334 }
 0x911   : > { %v3256_v34 = vpop.permute.xlu1 %3255  ;;  %4051 = vmatmul.msk.bf16.vlgmr.msra.gmra.mxu2 %vm1074_vm8, %v3078_v21  ;;  %v3421_v22 = vsel %vm723_vm5, %v5348_v55, %v3335_v49 }
 0x912   : > { %v3261_v7 = vsel %vm1078_vm6, %v3256_v34, 0 }
 0x913   : > { %3270 = vmatpush.bf16.msrb.mxu0 %v3261_v7 }
 0x916   : > { %4049 = vmatmul.msk.bf16.vlgmr.msrb.gmra.mxu0 %vm1074_vm8, %v3076_v32 }
 0x918   : > { %v3365_v8 = vpop.permute.xlu2 %3364 }
 0x923   : > { %v3176_v38 = vpop.f32.mrf.mxu0 }
 0x924   : > { %3398 = vrot.lane.b32.xlu1 %v3176_v38, %s4244_s9 }
 0x927   : > { %v3051_v14 = vpop.xlane.xlu0 %3050 }
 0x928   : > { %4221 = vrcp.f32 %v3051_v14 }
 0x92b   : > { %v3178_v46 = vpop.f32.mrf.mxu0 }
 0x92c   : > { %3372 = vrot.lane.b32.xlu1 %v5704_v50, %s4243_s30  ;;  %v3333_v50 = vpop.permute.xlu1 %3332 }
 0x92e   : > { %v4222_v53 = vpop.eup %4221 }
 0x92f   : > { %v3069_v37 = vmul.f32 %v4222_v53, %v5776_v1  ;;  %v3369_v1 = vpop.permute.xlu2 %3368 }
 0x931   : > { %v3077_v52 = vpack.c.bf16 %v3069_v37, %v3069_v37 }
 0x933   : > { %4050 = vmatmul.msk.bf16.vlgmr.msra.gmra.mxu1 %vm1074_vm8, %v3077_v52 }
 0x934   : > { %v3337_v5 = vpop.permute.xlu1 %3336 }
 0x935   : > { %v3422_v55 = vsel %vm723_vm5, %v5350_v47, %v3337_v5 }
 0x936   : > { %v3431_v57 = vsel %vm3428_vm10, %v3422_v55, %v3369_v1 }
 0x937   : > { %v3152_v18 = vpop.f32.mrf.mxu3  ;;  %v3341_v26 = vpop.permute.xlu2 %3340 }
 0x938   : > { %3396 = vrot.lane.b32.xlu0 %v3152_v18, %s4244_s9  ;;  %v3424_v62 = vsel %vm723_vm5, %v5354_v31, %v3341_v26 }
 0x93a   : > { %v3371_v28 = vpop.permute.xlu0 %3370 }
 0x93c   : > { %v3367_v24 = vpop.permute.xlu1 %3366 }
 0x93f   : > { %v3154_v29 = vpop.f32.mrf.mxu3 }
 0x944   : > { %v3200_v2 = vpop.f32.mrf.mxu1  ;;  %v5822_v41 = vpop.permute.xlu1 %3338 }
 0x945   : > { %3400 = vrot.lane.b32.xlu2 %v3200_v2, %s4244_s9  ;;  %v3423_v52 = vsel %vm723_vm5, %v5352_v45, %v5822_v41 }
 0x946   : > { %v3432_v18 = vsel %vm3428_vm10, %v3423_v52, %v3371_v28  ;;  %v6197_v28 = vld [vmem:[#allocation4_spill] sm:$0xff] }
 0x947   : > { %v6205_v52 = vld [vmem:[#allocation12_spill] sm:$0xff] }
 0x94c   : > { %v3202_v35 = vpop.f32.mrf.mxu1 }
 0x94d   : > { %3342 = vrot.lane.b32.xlu2 %v5545_v54, %s4242_s29 }
 0x955   : > { %3374 = vrot.lane.b32.xlu2 %v5696_v12, %s4243_s30 }
 0x95d   : > { %3346 = vrot.lane.b32.xlu2 %v5547_v33, %s4242_s29  ;;  %v4068_v33 = vld [vmem:[%s6092_s4 + $0x8] sm:$0xff] }
 0x95e   : > { %3547 = vmatpush.bf16.msrb.mxu3 %v4068_v33 }
 0x962   : > { %3548 = vmatpush.bf16.msrb.mxu3 %v4067_v60 }
 0x984   : > { %v3224_v19 = vpop.f32.mrf.mxu2 }
 0x987   : > { %v3248_v27 = vpop.f32.mrf.mxu3 }
 0x988   : > { %3404 = vrot.lane.b32.xlu1 %v3248_v27, %s4244_s9 }
 0x98c   : > { %v3226_v20 = vpop.f32.mrf.mxu2 }
 0x98f   : > { %v3250_v54 = vpop.f32.mrf.mxu3 }
 0x990   : > { %3344 = vrot.lane.b32.xlu1 %v5558_v4, %s4242_s29  ;;  %v3430_v4 = vsel %vm3428_vm10, %v3421_v22, %v3367_v24 }
 0x993   : > { %v3272_v12 = vpop.f32.mrf.mxu0 }
 0x994   : > { %3406 = vrot.lane.b32.xlu0 %v3272_v12, %s4244_s9  ;;  %v3320_v6 = vpop.f32.mrf.mxu2 }
 0x996   : > { %v3399_v56 = vpop.permute.xlu1 %3398 }
 0x997   : > { %v3439_v42 = vsel %vm3437_vm9, %v3430_v4, %v3399_v56 }
 0x998   : > { %v3456_v9 = vrot.slane %v3439_v42, 2  ;;  %v3457_v44 = vrot.slane %v3439_v42, 4  ;;  %3476 = vst [vmem:[#allocation1 + $0x3] ss:$4 sm:$0xff] %v3439_v42  ;;  %3378 = vrot.lane.b32.xlu1 %v5713_v25, %s4243_s30  ;;  %v3420_v25 = vsel %vm723_vm5, %v5346_v11, %v3333_v50 }
 0x999   : > { %v3429_v47 = vsel %vm3428_vm10, %v3420_v25, %v3365_v8 }
 0x99a   : > { %3478 = vst [vmem:[#allocation1 + $0x20] ss:$4 sm:$0xff] %v3456_v9 }
 0x99b   : > { %3480 = vst [vmem:[#allocation1 + $0x21] ss:$4 sm:$0xff] %v3457_v44  ;;  %v3274_v43 = vpop.f32.mrf.mxu0 }
 0x99c   : > { %3402 = vrot.lane.b32.xlu0 %v3224_v19, %s4244_s9  ;;  %v3322_v15 = vpop.f32.mrf.mxu2 }
 0x99e   : > { %v3373_v63 = vpop.permute.xlu1 %3372 }
 0x99f   : > { %v3401_v17 = vpop.permute.xlu2 %3400  ;;  %v3433_v23 = vsel %vm3428_vm10, %v3424_v62, %v3373_v63  ;;  %v6202_v62 = vld [vmem:[#allocation9_spill] sm:$0xff] }
 0x9a0   : > { %v3440_v40 = vsel %vm3437_vm9, %v3431_v57, %v3401_v17  ;;  %v6195_v57 = vld [vmem:[#allocation2_spill] sm:$0xff] }
 0x9a1   : > { %v3458_v61 = vrot.slane %v3440_v40, 2  ;;  %3482 = vst [vmem:[#allocation1 + $0x22] ss:$4 sm:$0xff] %v3440_v40  ;;  %v3459_v59 = vrot.slane %v3440_v40, 4  ;;  %v6196_v40 = vld [vmem:[#allocation3_spill] sm:$0xff] }
 0x9a3   : > { %3484 = vst [vmem:[#allocation1 + $0x23] ss:$4 sm:$0xff] %v3458_v61 }
 0x9a4   : > { %3376 = vrot.lane.b32.xlu0 %v5700_v16, %s4243_s30 }
 0x9a7   : > { %v3343_v21 = vpop.permute.xlu2 %3342 }
 0x9a8   : > { %v3425_v46 = vsel %vm723_vm5, %v5364_v3, %v3343_v21 }
 0x9aa   : > { %v3397_v51 = vpop.permute.xlu0 %3396  ;;  %v3486_v13 = vld.sshfl [vmem:[#allocation1 + $0x20] sm:$0xff pattern:$0x73625140] }
 0x9ab   : > { %v3438_v58 = vsel %vm3437_vm9, %v3429_v47, %v3397_v51  ;;  %v6198_v51 = vld [vmem:[#allocation5_spill] sm:$0xff] }
 0x9ac   : > { %v3454_v10 = vrot.slane %v3438_v58, 2  ;;  %v3455_v48 = vrot.slane %v3438_v58, 4  ;;  %3470 = vst [vmem:[#allocation1] ss:$4 sm:$0xff] %v3438_v58  ;;  %3410 = vrot.lane.b32.xlu0 %v3320_v6, %s4244_s9 }
 0x9ae   : > { %3472 = vst [vmem:[#allocation1 + $0x1] ss:$4 sm:$0xff] %v3454_v10 }
 0x9af   : > { %3474 = vst [vmem:[#allocation1 + $0x2] ss:$4 sm:$0xff] %v3455_v48  ;;  %v3375_v14 = vpop.permute.xlu2 %3374 }
 0x9b0   : > { %v3296_v0 = vpop.f32.mrf.mxu1  ;;  %v3434_v53 = vsel %vm3428_vm10, %v3425_v46, %v3375_v14  ;;  %v6203_v46 = vld [vmem:[#allocation10_spill] sm:$0xff] }
 0x9b1   : > { %3408 = vrot.lane.b32.xlu2 %v3296_v0, %s4244_s9 }
 0x9b6   : > { %v3485_v16 = vld.sshfl [vmem:[#allocation1] sm:$0xff pattern:$0x73625140] }
 0x9b7   : > { %v3513_v39 = vpack.c.bf16 %v3486_v13, %v3485_v16  ;;  %3487 = vst [vmem:[#allocation1] ss:$4 sm:$0xff] %v3459_v59  ;;  %v3347_v2 = vpop.permute.xlu2 %3346  ;;  %v6199_v59 = vld [vmem:[#allocation6_spill] sm:$0xff]  ;;  %v6200_v13 = vld [vmem:[#allocation7_spill] sm:$0xff] }
 0x9b8   : > { %v3298_v11 = vpop.f32.mrf.mxu1  ;;  %v3427_v6 = vsel %vm723_vm5, %v5356_v30, %v3347_v2 }
 0x9b9   : > { %4060 = vmatmul.msk.bf16.vlgmr.msrb.gmra.mxu3 %vm554_vm4, %v3513_v39  ;;  %v6201_v11 = vld [vmem:[#allocation8_spill] sm:$0xff] }
 0x9fa   : > { %v3405_v34 = vpop.permute.xlu1 %3404 }
 0x9fb   : > { %v3442_v7 = vsel %vm3437_vm9, %v3433_v23, %v3405_v34 }
 0x9fc   : > { %v3462_v32 = vrot.slane %v3442_v7, 2  ;;  %v3463_v38 = vrot.slane %v3442_v7, 4  ;;  %3491 = vst [vmem:[#allocation1 + $0x20] ss:$4 sm:$0xff] %v3442_v7 }
 0x9fe   : > { %3492 = vst [vmem:[#allocation1 + $0x21] ss:$4 sm:$0xff] %v3462_v32 }
 0x9ff   : > { %3493 = vst [vmem:[#allocation1 + $0x22] ss:$4 sm:$0xff] %v3463_v38 }
 0xa02   : > { %v3345_v3 = vpop.permute.xlu1 %3344 }
 0xa03   : > { %v3426_v5 = vsel %vm723_vm5, %v5367_v36, %v3345_v3 }
 0xa06   : > { %v3407_v37 = vpop.permute.xlu0 %3406 }
 0xa07   : > { %v3443_v31 = vsel %vm3437_vm9, %v3434_v53, %v3407_v37  ;;  %v6204_v37 = vld [vmem:[#allocation11_spill] sm:$0xff] }
 0xa08   : > { %3494 = vst [vmem:[#allocation1 + $0x23] ss:$4 sm:$0xff] %v3443_v31  ;;  %v3464_v27 = vrot.slane %v3443_v31, 2  ;;  %v3465_v1 = vrot.slane %v3443_v31, 4 }
 0xa0a   : > { %v3379_v33 = vpop.permute.xlu1 %3378 }
 0xa0b   : > { %v3409_v24 = vpop.permute.xlu2 %3408  ;;  %v3436_v36 = vsel %vm3428_vm10, %v3427_v6, %v3379_v33 }
 0xa0e   : > { %v3403_v29 = vpop.permute.xlu0 %3402 }
 0xa0f   : > { %v3441_v35 = vsel %vm3437_vm9, %v3432_v18, %v3403_v29  ;;  %v3496_v20 = vld.sshfl [vmem:[#allocation1 + $0x20] sm:$0xff pattern:$0x73625140] }
 0xa10   : > { %v3460_v50 = vrot.slane %v3441_v35, 2  ;;  %v3461_v49 = vrot.slane %v3441_v35, 4  ;;  %3488 = vst [vmem:[#allocation1 + $0x1] ss:$4 sm:$0xff] %v3441_v35  ;;  %v6206_v29 = vld [vmem:[#allocation13_spill] sm:$0xff] }
 0xa12   : > { %3489 = vst [vmem:[#allocation1 + $0x2] ss:$4 sm:$0xff] %v3460_v50 }
 0xa13   : > { %3490 = vst [vmem:[#allocation1 + $0x3] ss:$4 sm:$0xff] %v3461_v49 }
 0xa16   : > { %v3377_v8 = vpop.permute.xlu0 %3376 }
 0xa17   : > { %v3435_v19 = vsel %vm3428_vm10, %v3426_v5, %v3377_v8  ;;  %v6207_v5 = vld [vmem:[#allocation14_spill] sm:$0xff] }
 0xa18   : > { %v3444_v45 = vsel %vm3437_vm9, %v3435_v19, %v3409_v24  ;;  %v6208_v19 = vld [vmem:[#allocation15_spill] sm:$0xff] }
 0xa19   : > { %v3466_v41 = vrot.slane %v3444_v45, 2  ;;  %v3467_v12 = vrot.slane %v3444_v45, 4 }
 0xa1a   : > { %v3495_v54 = vld.sshfl [vmem:[#allocation1] sm:$0xff pattern:$0x73625140] }
 0xa1b   : > { %v3514_v60 = vpack.c.bf16 %v3496_v20, %v3495_v54  ;;  %3497 = vst [vmem:[#allocation1] ss:$4 sm:$0xff] %v3464_v27  ;;  %v6209_v27 = vld [vmem:[#allocation16_spill] sm:$0xff] }
 0xa1c   : > { %3498 = vst [vmem:[#allocation1 + $0x1] ss:$4 sm:$0xff] %v3465_v1  ;;  %v6210_v1 = vld [vmem:[#allocation17_spill] sm:$0xff] }
 0xa1d   : > { %4061 = vmatmul.msk.bf16.gmra.mxu3 %vm554_vm4, %v3514_v60  ;;  %3499 = vst [vmem:[#allocation1 + $0x2] ss:$4 sm:$0xff] %v3444_v45 }
 0xa1e   : > { %3500 = vst [vmem:[#allocation1 + $0x3] ss:$4 sm:$0xff] %v3466_v41  ;;  %v3411_v22 = vpop.permute.xlu0 %3410 }
 0xa1f   : > { %3501 = vst [vmem:[#allocation1 + $0x20] ss:$4 sm:$0xff] %v3467_v12  ;;  %v3445_v4 = vsel %vm3437_vm9, %v3436_v36, %v3411_v22  ;;  %v6211_v36 = vld [vmem:[#allocation18_spill] sm:$0xff] }
 0xa20   : > { %v3468_v56 = vrot.slane %v3445_v4, 2  ;;  %v3469_v26 = vrot.slane %v3445_v4, 4  ;;  %3502 = vst [vmem:[#allocation1 + $0x21] ss:$4 sm:$0xff] %v3445_v4  ;;  %v6212_v4 = vld [vmem:[#allocation19_spill] sm:$0xff] }
 0xa22   : > { %3503 = vst [vmem:[#allocation1 + $0x22] ss:$4 sm:$0xff] %v3468_v56 }
 0xa23   : > { %3504 = vst [vmem:[#allocation1 + $0x23] ss:$4 sm:$0xff] %v3469_v26  ;;  %v6213_v26 = vld [vmem:[#allocation20_spill] sm:$0xff] }
 0xa25   : > { %v3505_v42 = vld.sshfl [vmem:[#allocation1] sm:$0xff pattern:$0x73625140] }
 0xa2a   : > { %v3506_v9 = vld.sshfl [vmem:[#allocation1 + $0x20] sm:$0xff pattern:$0x73625140] }
 0xa2b   : > { %v3515_v44 = vpack.c.bf16 %v3506_v9, %v3505_v42  ;;  %v6214_v9 = vld [vmem:[#allocation21_spill] sm:$0xff] }
 0xa2d   : > { %4062 = vmatmul.msk.bf16.gmra.mxu3 %vm554_vm4, %v3515_v44 }
 0xa3c   : > { %v3550_v30 = vpop.f32.mrf.mxu3 }
 0xa3d   : > { %v3571_v43 = vrot.slane %v3550_v30, 2  ;;  %v3572_v55 = vrot.slane %v3550_v30, 4  ;;  %v3573_v15 = vrot.slane %v3550_v30, 6  ;;  %v5877_v17 = vadd.f32 %v3550_v30, %v6195_v57 }
 0xa3f   : > { %v5880_v61 = vadd.f32 %v3571_v43, %v6196_v40  ;;  %v5883_v25 = vadd.f32 %v3572_v55, %v6197_v28  ;;  %v5886_v47 = vadd.f32 %v3573_v15, %v6198_v51  ;;  %3655 = vst [vmem:[#allocation1] ss:$4 sm:$0xff] %v5877_v17  ;;  %v6215_v40 = vld [vmem:[#allocation22_spill] sm:$0xff]  ;;  %v6216_v51 = vld [vmem:[#allocation23_spill] sm:$0xff] }
 0xa41   : > { %3657 = vst [vmem:[#allocation1 + $0x1] ss:$4 sm:$0xff] %v5880_v61 }
 0xa42   : > { %3659 = vst [vmem:[#allocation1 + $0x2] ss:$4 sm:$0xff] %v5883_v25 }
 0xa43   : > { %3662 = vst [vmem:[#allocation1 + $0x20] ss:$4 sm:$0xff] %v5886_v47 }
 0xa44   : > { %v3552_v58 = vpop.f32.mrf.mxu3 }
 0xa45   : > { %v3574_v10 = vrot.slane %v3552_v58, 2  ;;  %v3575_v48 = vrot.slane %v3552_v58, 4  ;;  %v3576_v0 = vrot.slane %v3552_v58, 6  ;;  %v5893_v16 = vadd.f32 %v3552_v58, %v6199_v59  ;;  %v6218_v59 = vld [vmem:[#allocation25_spill] sm:$0xff] }
 0xa47   : > { %v5903_v39 = vadd.f32 %v3574_v10, %v6200_v13  ;;  %v5906_v63 = vadd.f32 %v3575_v48, %v6201_v11  ;;  %3664 = vst [vmem:[#allocation1 + $0x21] ss:$4 sm:$0xff] %v5893_v16  ;;  %v5910_v21 = vadd.f32 %v3576_v0, %v6202_v62  ;;  %v6217_v10 = vld [vmem:[#allocation24_spill] sm:$0xff] }
 0xa49   : > { %v3660_v23 = vld.sshfl [vmem:[#allocation1] sm:$0xff pattern:$0x73625140]  ;;  %3666 = vst [vmem:[#allocation1 + $0x22] ss:$4 sm:$0xff] %v5903_v39 }
 0xa4a   : > { %3701 = vst.msk [vmem:[%s5900_s16] sm:$0x3f] %vm3700_vm11, %v3660_v23 }
 0xa4b   : > { %3668 = vst [vmem:[#allocation1] ss:$4 sm:$0xff] %v5906_v63 }
 0xa4c   : > { %3669 = vst [vmem:[#allocation1 + $0x1] ss:$4 sm:$0xff] %v5910_v21 }
 0xa50   : > { %v3667_v34 = vld.sshfl [vmem:[#allocation1 + $0x20] sm:$0xff pattern:$0x73625140] }
 0xa51   : > { %3702 = vst.msk [vmem:[%s5900_s16 + $0x8] sm:$0x3f] %vm3700_vm11, %v3667_v34 }
 0xaa0   : > { %v3555_v7 = vpop.f32.mrf.mxu3 }
 0xaa1   : > { %v3577_v32 = vrot.slane %v3555_v7, 2  ;;  %v3578_v38 = vrot.slane %v3555_v7, 4  ;;  %v3579_v14 = vrot.slane %v3555_v7, 6  ;;  %v5920_v53 = vadd.f32 %v3555_v7, %v6203_v46 }
 0xaa3   : > { %v5923_v31 = vadd.f32 %v3577_v32, %v6204_v37  ;;  %v5926_v18 = vadd.f32 %v3578_v38, %v6205_v52  ;;  %v5929_v2 = vadd.f32 %v3579_v14, %v6206_v29  ;;  %3670 = vst [vmem:[#allocation1 + $0x2] ss:$4 sm:$0xff] %v5920_v53  ;;  %v3769_v38 = vmul.f32 %v5877_v17, %v5877_v17 }
 0xaa4   : > { %v3770_v14 = vmul.f32 %v5880_v61, %v5880_v61  ;;  %v3771_v37 = vmul.f32 %v5883_v25, %v5883_v25  ;;  %v3772_v52 = vmul.f32 %v5886_v47, %v5886_v47  ;;  %v3773_v29 = vmul.f32 %v5893_v16, %v5893_v16 }
 0xaa5   : > { %3672 = vst [vmem:[#allocation1 + $0x20] ss:$4 sm:$0xff] %v5923_v31 }
 0xaa6   : > { %3673 = vst [vmem:[#allocation1 + $0x21] ss:$4 sm:$0xff] %v5926_v18 }
 0xaa7   : > { %3674 = vst [vmem:[#allocation1 + $0x22] ss:$4 sm:$0xff] %v5929_v2 }
 0xaa8   : > { %v3557_v35 = vpop.f32.mrf.mxu3 }
 0xaa9   : > { %v3580_v50 = vrot.slane %v3557_v35, 2  ;;  %v3581_v49 = vrot.slane %v3557_v35, 4  ;;  %v3582_v3 = vrot.slane %v3557_v35, 6  ;;  %v5936_v8 = vadd.f32 %v3557_v35, %v6207_v5 }
 0xaaa   : > { %v3671_v24 = vld.sshfl [vmem:[#allocation1] sm:$0xff pattern:$0x73625140] }
 0xaab   : > { %3703 = vst.msk [vmem:[%s5900_s16 + $0x10] sm:$0x3f] %vm3700_vm11, %v3671_v24  ;;  %v5941_v45 = vadd.f32 %v3580_v50, %v6208_v19  ;;  %v5944_v20 = vadd.f32 %v3581_v49, %v6209_v27  ;;  %v5947_v41 = vadd.f32 %v3582_v3, %v6210_v1 }
 0xaac   : > { %3676 = vst [vmem:[#allocation1] ss:$4 sm:$0xff] %v5936_v8 }
 0xaad   : > { %3677 = vst [vmem:[#allocation1 + $0x1] ss:$4 sm:$0xff] %v5941_v45  ;;  %v3784_v24 = vmul.f32 %v5947_v41, %v5947_v41 }
 0xaae   : > { %v3675_v54 = vld.sshfl [vmem:[#allocation1 + $0x20] sm:$0xff pattern:$0x73625140]  ;;  %3678 = vst [vmem:[#allocation1 + $0x2] ss:$4 sm:$0xff] %v5944_v20 }
 0xaaf   : > { %3704 = vst.msk [vmem:[%s5900_s16 + $0x18] sm:$0x3f] %vm3700_vm11, %v3675_v54 }
 0xab0   : > { %3680 = vst [vmem:[#allocation1 + $0x20] ss:$4 sm:$0xff] %v5947_v41  ;;  %v3560_v33 = vpop.f32.mrf.mxu3 }
 0xab1   : > { %v3583_v12 = vrot.slane %v3560_v33, 2  ;;  %v3584_v60 = vrot.slane %v3560_v33, 4  ;;  %v3585_v6 = vrot.slane %v3560_v33, 6  ;;  %v5956_v22 = vadd.f32 %v3560_v33, %v6211_v36 }
 0xab3   : > { %v5959_v56 = vadd.f32 %v3583_v12, %v6212_v4  ;;  %v5962_v42 = vadd.f32 %v3584_v60, %v6213_v26  ;;  %3681 = vst [vmem:[#allocation1 + $0x21] ss:$4 sm:$0xff] %v5956_v22  ;;  %v5966_v44 = vadd.f32 %v3585_v6, %v6214_v9  ;;  %v3785_v27 = vmul.f32 %v5956_v22, %v5956_v22 }
 0xab5   : > { %v3679_v30 = vld.sshfl [vmem:[#allocation1] sm:$0xff pattern:$0x73625140]  ;;  %3682 = vst [vmem:[#allocation1 + $0x22] ss:$4 sm:$0xff] %v5959_v56  ;;  %v3786_v1 = vmul.f32 %v5959_v56, %v5959_v56  ;;  %v3787_v33 = vmul.f32 %v5962_v42, %v5962_v42 }
 0xab6   : > { %3705 = vst.msk [vmem:[%s5900_s16 + $0x20] sm:$0x3f] %vm3700_vm11, %v3679_v30 }
 0xab7   : > { %3684 = vst [vmem:[#allocation1] ss:$4 sm:$0xff] %v5962_v42 }
 0xab8   : > { %3685 = vst [vmem:[#allocation1 + $0x1] ss:$4 sm:$0xff] %v5966_v44  ;;  %v3562_v43 = vpop.f32.mrf.mxu3 }
 0xab9   : > { %v3586_v55 = vrot.slane %v3562_v43, 2  ;;  %v3587_v15 = vrot.slane %v3562_v43, 4  ;;  %v3588_v57 = vrot.slane %v3562_v43, 6  ;;  %v5974_v28 = vadd.f32 %v3562_v43, %v6215_v40 }
 0xabb   : > { %v5977_v58 = vadd.f32 %v3586_v55, %v6216_v51  ;;  %v5980_v48 = vadd.f32 %v3587_v15, %v6217_v10  ;;  %3686 = vst [vmem:[#allocation1 + $0x2] ss:$4 sm:$0xff] %v5974_v28  ;;  %v5984_v13 = vadd.f32 %v3588_v57, %v6218_v59  ;;  %v3789_v36 = vmul.f32 %v5974_v28, %v5974_v28 }
 0xabc   : > { %v3683_v0 = vld.sshfl [vmem:[#allocation1 + $0x20] sm:$0xff pattern:$0x73625140] }
 0xabd   : > { %3706 = vst.msk [vmem:[%s5900_s16 + $0x28] sm:$0x3f] %vm3700_vm11, %v3683_v0  ;;  %v3791_v9 = vmul.f32 %v5980_v48, %v5980_v48  ;;  %v3792_v30 = vmul.f32 %v5984_v13, %v5984_v13 }
 0xabe   : > { %3688 = vst [vmem:[#allocation1 + $0x20] ss:$4 sm:$0xff] %v5977_v58 }
 0xabf   : > { %3689 = vst [vmem:[#allocation1 + $0x21] ss:$4 sm:$0xff] %v5980_v48 }
 0xac0   : > { %3690 = vst [vmem:[#allocation1 + $0x22] ss:$4 sm:$0xff] %v5984_v13 }
 0xac2   : > { %v3687_v11 = vld.sshfl [vmem:[#allocation1] sm:$0xff pattern:$0x73625140] }
 0xac3   : > { %3707 = vst.msk [vmem:[%s5900_s16 + $0x30] sm:$0x3f] %vm3700_vm11, %v3687_v11 }
 0xac4   : > { %3709 = vst [vmem:[#allocation1] ss:$4 sm:$0xff] %v5877_v17  ;;  %v3774_v17 = vmul.f32 %v5903_v39, %v5903_v39 }
 0xac5   : > { %3711 = vst [vmem:[#allocation1 + $0x1] ss:$4 sm:$0xff] %v5880_v61  ;;  %v3775_v61 = vmul.f32 %v5906_v63, %v5906_v63 }
 0xac6   : > { %3713 = vst [vmem:[#allocation1 + $0x2] ss:$4 sm:$0xff] %v5883_v25  ;;  %v3776_v25 = vmul.f32 %v5910_v21, %v5910_v21 }
 0xac7   : > { %v3691_v62 = vld.sshfl [vmem:[#allocation1 + $0x20] sm:$0xff pattern:$0x73625140]  ;;  %3715 = vst [vmem:[#allocation1 + $0x3] ss:$4 sm:$0xff] %v5886_v47  ;;  %v3777_v47 = vmul.f32 %v5920_v53, %v5920_v53 }
 0xac8   : > { %3708 = vst.msk [vmem:[%s5900_s16 + $0x38] sm:$0x3f] %vm3700_vm11, %v3691_v62 }
 0xac9   : > { %3717 = vst [vmem:[#allocation1 + $0x20] ss:$4 sm:$0xff] %v5893_v16  ;;  %v3778_v16 = vmul.f32 %v5923_v31, %v5923_v31 }
 0xaca   : > { %3719 = vst [vmem:[#allocation1 + $0x21] ss:$4 sm:$0xff] %v5903_v39  ;;  %v3779_v39 = vmul.f32 %v5926_v18, %v5926_v18 }
 0xacb   : > { %3721 = vst [vmem:[#allocation1 + $0x22] ss:$4 sm:$0xff] %v5906_v63  ;;  %v3780_v63 = vmul.f32 %v5929_v2, %v5929_v2 }
 0xacc   : > { %3723 = vst [vmem:[#allocation1 + $0x23] ss:$4 sm:$0xff] %v5910_v21  ;;  %v3781_v21 = vmul.f32 %v5936_v8, %v5936_v8 }
 0xace   : > { %v3724_v23 = vld.sshfl [vmem:[#allocation1] sm:$0xff pattern:$0x73625140] }
 0xacf   : > { %3726 = vst [vmem:[#allocation1] ss:$4 sm:$0xff] %v5920_v53  ;;  %v3752_v53 = vsel %vm554_vm4, %v3724_v23, 0.0 }
 0xad0   : > { %3727 = vst [vmem:[#allocation1 + $0x1] ss:$4 sm:$0xff] %v5923_v31  ;;  %v3782_v31 = vmul.f32 %v5941_v45, %v5941_v45 }
 0xad1   : > { %3728 = vst [vmem:[#allocation1 + $0x2] ss:$4 sm:$0xff] %v5926_v18 }
 0xad2   : > { %3729 = vst [vmem:[#allocation1 + $0x3] ss:$4 sm:$0xff] %v5929_v2  ;;  %v3783_v2 = vmul.f32 %v5944_v20, %v5944_v20 }
 0xad3   : > { %v3725_v34 = vld.sshfl [vmem:[#allocation1 + $0x20] sm:$0xff pattern:$0x73625140] }
 0xad4   : > { %3730 = vst [vmem:[#allocation1 + $0x20] ss:$4 sm:$0xff] %v5936_v8  ;;  %v3753_v49 = vsel %vm554_vm4, %v3725_v34, 0.0 }
 0xad5   : > { %3731 = vst [vmem:[#allocation1 + $0x21] ss:$4 sm:$0xff] %v5941_v45  ;;  %v3754_v18 = vadd.f32 %v3753_v49, %v3752_v53 }
 0xad6   : > { %3732 = vst [vmem:[#allocation1 + $0x22] ss:$4 sm:$0xff] %v5944_v20 }
 0xad7   : > { %3733 = vst [vmem:[#allocation1 + $0x23] ss:$4 sm:$0xff] %v5947_v41  ;;  %v3788_v41 = vmul.f32 %v5966_v44, %v5966_v44 }
 0xad9   : > { %v3734_v7 = vld.sshfl [vmem:[#allocation1] sm:$0xff pattern:$0x73625140] }
 0xada   : > { %3736 = vst [vmem:[#allocation1] ss:$4 sm:$0xff] %v5956_v22  ;;  %v3755_v3 = vsel %vm554_vm4, %v3734_v7, 0.0  ;;  %v3790_v22 = vmul.f32 %v5977_v58, %v5977_v58 }
 0xadb   : > { %3737 = vst [vmem:[#allocation1 + $0x1] ss:$4 sm:$0xff] %v5959_v56  ;;  %v3756_v19 = vadd.f32 %v3755_v3, %v3754_v18 }
 0xadc   : > { %3738 = vst [vmem:[#allocation1 + $0x2] ss:$4 sm:$0xff] %v5962_v42 }
 0xadd   : > { %3739 = vst [vmem:[#allocation1 + $0x3] ss:$4 sm:$0xff] %v5966_v44 }
 0xade   : > { %v3735_v32 = vld.sshfl [vmem:[#allocation1 + $0x20] sm:$0xff pattern:$0x73625140] }
 0xadf   : > { %3740 = vst [vmem:[#allocation1 + $0x20] ss:$4 sm:$0xff] %v5974_v28  ;;  %v3757_v8 = vsel %vm554_vm4, %v3735_v32, 0.0 }
 0xae0   : > { %3741 = vst [vmem:[#allocation1 + $0x21] ss:$4 sm:$0xff] %v5977_v58  ;;  %v3758_v54 = vadd.f32 %v3757_v8, %v3756_v19 }
 0xae1   : > { %3742 = vst [vmem:[#allocation1 + $0x22] ss:$4 sm:$0xff] %v5980_v48 }
 0xae2   : > { %3743 = vst [vmem:[#allocation1 + $0x23] ss:$4 sm:$0xff] %v5984_v13 }
 0xae4   : > { %v3744_v46 = vld.sshfl [vmem:[#allocation1] sm:$0xff pattern:$0x73625140] }
 0xae5   : > { %3817 = vst [vmem:[#allocation1] ss:$4 sm:$0xff] %v3769_v38  ;;  %v3759_v45 = vsel %vm554_vm4, %v3744_v46, 0.0 }
 0xae6   : > { %3819 = vst [vmem:[#allocation1 + $0x1] ss:$4 sm:$0xff] %v3770_v14  ;;  %v3760_v12 = vadd.f32 %v3759_v45, %v3758_v54 }
 0xae7   : > { %3821 = vst [vmem:[#allocation1 + $0x2] ss:$4 sm:$0xff] %v3771_v37 }
 0xae8   : > { %3823 = vst [vmem:[#allocation1 + $0x3] ss:$4 sm:$0xff] %v3772_v52 }
 0xae9   : > { %v3745_v35 = vld.sshfl [vmem:[#allocation1 + $0x20] sm:$0xff pattern:$0x73625140] }
 0xaea   : > { %3825 = vst [vmem:[#allocation1 + $0x20] ss:$4 sm:$0xff] %v3773_v29  ;;  %v3761_v60 = vsel %vm554_vm4, %v3745_v35, 0.0 }
 0xaeb   : > { %3827 = vst [vmem:[#allocation1 + $0x21] ss:$4 sm:$0xff] %v3774_v17  ;;  %v3762_v42 = vadd.f32 %v3761_v60, %v3760_v12 }
 0xaec   : > { %3829 = vst [vmem:[#allocation1 + $0x22] ss:$4 sm:$0xff] %v3775_v61 }
 0xaed   : > { %3831 = vst [vmem:[#allocation1 + $0x23] ss:$4 sm:$0xff] %v3776_v25  ;;  %v3763_v15 = vrot.slane %v3762_v42, 4 }
 0xaef   : > { %v3832_v50 = vld.sshfl [vmem:[#allocation1] sm:$0xff pattern:$0x73625140]  ;;  %v3764_v51 = vadd.f32 %v3763_v15, %v3762_v42 }
 0xaf0   : > { %3834 = vst [vmem:[#allocation1] ss:$4 sm:$0xff] %v3777_v47  ;;  %v3860_v56 = vsel %vm554_vm4, %v3832_v50, 0.0 }
 0xaf1   : > { %3835 = vst [vmem:[#allocation1 + $0x1] ss:$4 sm:$0xff] %v3778_v16  ;;  %v3765_v0 = vrot.slane %v3764_v51, 2 }
 0xaf2   : > { %3836 = vst [vmem:[#allocation1 + $0x2] ss:$4 sm:$0xff] %v3779_v39 }
 0xaf3   : > { %3837 = vst [vmem:[#allocation1 + $0x3] ss:$4 sm:$0xff] %v3780_v63  ;;  %v3766_v11 = vadd.f32 %v3765_v0, %v3764_v51 }
 0xaf4   : > { %v3833_v5 = vld.sshfl [vmem:[#allocation1 + $0x20] sm:$0xff pattern:$0x73625140] }
 0xaf5   : > { %3838 = vst [vmem:[#allocation1 + $0x20] ss:$4 sm:$0xff] %v3781_v21  ;;  %v3861_v6 = vsel %vm554_vm4, %v3833_v5, 0.0  ;;  %v3767_v34 = vrot.slane %v3766_v11, 1 }
 0xaf6   : > { %3839 = vst [vmem:[#allocation1 + $0x21] ss:$4 sm:$0xff] %v3782_v31  ;;  %v3862_v44 = vadd.f32 %v3861_v6, %v3860_v56 }
 0xaf7   : > { %3840 = vst [vmem:[#allocation1 + $0x22] ss:$4 sm:$0xff] %v3783_v2  ;;  %v3768_v38 = vadd.f32 %v3767_v34, %v3766_v11 }
 0xaf8   : > { %3841 = vst [vmem:[#allocation1 + $0x23] ss:$4 sm:$0xff] %v3784_v24 }
 0xafa   : > { %v3842_v20 = vld.sshfl [vmem:[#allocation1] sm:$0xff pattern:$0x73625140] }
 0xafb   : > { %3844 = vst [vmem:[#allocation1] ss:$4 sm:$0xff] %v3785_v27  ;;  %v3863_v26 = vsel %vm554_vm4, %v3842_v20, 0.0 }
 0xafc   : > { %3845 = vst [vmem:[#allocation1 + $0x1] ss:$4 sm:$0xff] %v3786_v1  ;;  %v3864_v43 = vadd.f32 %v3863_v26, %v3862_v44 }
 0xafd   : > { %3846 = vst [vmem:[#allocation1 + $0x2] ss:$4 sm:$0xff] %v3787_v33 }
 0xafe   : > { %3847 = vst [vmem:[#allocation1 + $0x3] ss:$4 sm:$0xff] %v3788_v41 }
 0xaff   : > { %v3843_v4 = vld.sshfl [vmem:[#allocation1 + $0x20] sm:$0xff pattern:$0x73625140] }
 0xb00   : > { %3848 = vst [vmem:[#allocation1 + $0x20] ss:$4 sm:$0xff] %v3789_v36  ;;  %v3865_v55 = vsel %vm554_vm4, %v3843_v4, 0.0 }
 0xb01   : > { %3849 = vst [vmem:[#allocation1 + $0x21] ss:$4 sm:$0xff] %v3790_v22  ;;  %v3866_v40 = vadd.f32 %v3865_v55, %v3864_v43 }
 0xb02   : > { %3850 = vst [vmem:[#allocation1 + $0x22] ss:$4 sm:$0xff] %v3791_v9 }
 0xb03   : > { %3851 = vst [vmem:[#allocation1 + $0x23] ss:$4 sm:$0xff] %v3792_v30 }
 0xb05   : > { %v3852_v57 = vld.sshfl [vmem:[#allocation1] sm:$0xff pattern:$0x73625140] }
 0xb06   : > { %v3867_v28 = vsel %vm554_vm4, %v3852_v57, 0.0 }
 0xb07   : > { %v3868_v58 = vadd.f32 %v3867_v28, %v3866_v40 }
 0xb0a   : > { %v3853_v10 = vld.sshfl [vmem:[#allocation1 + $0x20] sm:$0xff pattern:$0x73625140] }
 0xb0b   : > { %v3869_v48 = vsel %vm554_vm4, %v3853_v10, 0.0 }
 0xb0c   : > { %v3870_v59 = vadd.f32 %v3869_v48, %v3868_v58 }
 0xb0e   : > { %v3871_v13 = vrot.slane %v3870_v59, 4 }
 0xb10   : > { %v3872_v62 = vadd.f32 %v3871_v13, %v3870_v59 }
 0xb12   : > { %v3873_v23 = vrot.slane %v3872_v62, 2 }
 0xb14   : > { %v3874_v7 = vadd.f32 %v3873_v23, %v3872_v62 }
 0xb16   : > { %v3875_v32 = vrot.slane %v3874_v7, 1 }
 0xb18   : > { %v3876_v14 = vadd.f32 %v3875_v32, %v3874_v7 }
 0xb1a   : > { %v3878_v46 = vsel %vm3877_vm12, %v3768_v38, %v3876_v14 }
 0xb1b   : > { %3879 = vst.msk [vmem:[%s265_s18] sm:$0x3] %vm269_vm0, %v3878_v46 }
 0xb1c PF: > { %s17_s21 = sadd.s32 1, %s4229_s21  }
 0xb1d   : > { %p14_p5 = scmp.ge.s32.totalorder %s17_s21, 4  }
 0xb1f   :  { %16 = sbr.rel (!%p14_p5) target bundleno = 1 (0x1), region = 175 }

// kernel: dba_agent_forward.13
= control target key start
LH: loop header
LB: loop body
LE: loop exit
PB: predicated region body
PF: predicated region fallthrough
CT: control target
= control target key end

     0   :  { %s2355_s21 = smov 0   ;;  %s2855_s0 = inlined_call_operand.vmem [shape: f32[12,8,32], index: 0, kind: input, shape index: {}]   ;;  %s2856_s1 = inlined_call_operand.vmem [shape: f32[2,2,32], index: 1, kind: input, shape index: {}]   ;;  %s2857_s2 = inlined_call_operand.vmem [shape: f32[2,32], index: 2, kind: input, shape index: {}]   ;;  %s2858_s3 = inlined_call_operand.vmem [shape: bf16[32,96], index: 3, kind: input, shape index: {}]   ;;  %s2859_s4 = inlined_call_operand.vmem [shape: bf16[32,32], index: 4, kind: input, shape index: {}]   ;;  %s2860_s5 = inlined_call_operand.vmem [shape: f32[12,8,32], index: 5, kind: output, shape index: {0}]   ;;  %s2861_s6 = inlined_call_operand.vmem [shape: f32[2,2,32], index: 6, kind: output, shape index: {1}]  }
   0x1 LB: > { %s2361_s22 = sadd.s32 4294967295, %s2304_s21   ;;  %p2051_p0 = scmp.ge.s32.totalorder %s2304_s21, 1  ;;  %s2304_s21 = sphi %s2355_s21, %s17_s21  }
   0x2   : > { %p216_p1 = scmp.lt.s32.totalorder %s2304_s21, 3 }
   0x4   : > { %p217_p2 = pnand %p2051_p0, %p216_p1 }
   0x5   : > { %s250_s7 = smul.u32 (!%p217_p2), 6, %s2361_s22  ;;  %s2306_s16 = smov (!%p217_p2), 96  }
   0x6   : > { %220 = sbr.rel (%p217_p2) target bundleno = 2533 (0x9e5), region = 40  ;;  %s2307_s17 = smov (!%p217_p2), 64  }
   0x7   : > { %p251_p3 = scmp.lt.s32.totalorder (!%p217_p2), %s250_s7, 11  ;;  %s2308_s18 = smov (!%p217_p2), 88  }
   0x8   : > { %s2309_s19 = smov (!%p217_p2), 120   ;;  %s2310_s20 = smov (!%p217_p2), 56  }
   0x9   : > { %s2311_s23 = smov (!%p217_p2), 80   ;;  %s2312_s24 = smov (!%p217_p2), 112  }
   0xa   : > { %s2313_s25 = smov (!%p217_p2), 48   ;;  %s2314_s26 = smov (!%p217_p2), 72  }
   0xb   : > { %v2128_v0 = vld [vmem:[%s2858_s3 + $0x8] sm:$0xff]  ;;  %v267_v1 = vld [vmem:[%s2856_s1] sm:$0x3]  ;;  %vm269_vm0 = vcmask 254976   ;;  %v268_v2 = vld [vmem:[%s2856_s1 + $0x2] sm:$0x3] }
   0xc   : > { %v270_v3 = vsel %vm269_vm0, %v267_v1, 0.0  ;;  %361 = vmatpush.bf16.msra.mxu0 %v2128_v0  ;;  %v2127_v4 = vld [vmem:[%s2858_s3] sm:$0xff]  ;;  %v271_v5 = vsel %vm269_vm0, %v268_v2, 0.0  ;;  %s2863_s7 = smov (!%p251_p3, %s250_s7), 11  ;;  %vm345_vm4 = vcmask 261120   ;;  %vm390_vm5 = vcmask 64512  }
   0xd   : > { %v272_v6 = vadd.f32 %v271_v5, %v270_v3  ;;  %s2052_s8 = sshll.u32 %s2863_s7, 3  ;;  %v2198_v25 = vld [vmem:[%s2857_s2] ss:$0 sm:$0xff]  ;;  %v2199_v28 = vld [vmem:[%s2857_s2 + $0x1] ss:$0 sm:$0xff]  ;;  %vm613_vm6 = vcmask 1043456  }
   0xe   : > { %s2388_s11 = scalar_lea.vmem %s2855_s0, %s2052_s8  ;;  %s2315_s27 = smov 104   ;;  %vm1839_vm7 = vcmask 130048   ;;  %vm1846_vm8 = vcmask 195584   ;;  %vm1957_vm9 = vcmask 1040384  }
   0xf   : > { %v273_v7 = vmul.f32 0.010416667, %v272_v6  ;;  %v279_v17 = vld [vmem:[%s2388_s11] sm:$0xff]  ;;  %v280_v18 = vld [vmem:[%s2388_s11 + $0x8] sm:$0xff]  ;;  %v281_v29 = vld [vmem:[%s2388_s11 + $0x10] sm:$0xff]  ;;  %s2316_s28 = smov 40  }
  0x10   : > { %362 = vmatpush.bf16.msra.mxu0 %v2127_v4  ;;  %v282_v30 = vld [vmem:[%s2388_s11 + $0x18] sm:$0xff]  ;;  %v283_v44 = vld [vmem:[%s2388_s11 + $0x20] sm:$0xff]  ;;  %v284_v45 = vld [vmem:[%s2388_s11 + $0x28] sm:$0xff]  ;;  %s2317_s29 = smov 16   ;;  %s2318_s30 = smov 8  }
  0x11   : > { %v274_v8 = vmul.f32 %v273_v7, %v273_v7  ;;  %v285_v16 = vperm.slane %v273_v7, 0  ;;  %s2319_s9 = smov 24   ;;  %p262_p4 = scmp.lt.s32.totalorder %s2361_s22, 1 }
  0x13   : > { %v276_v9 = vrot.slane %v274_v8, 7  ;;  %v286_v21 = vsub.f32 %v279_v17, %v285_v16  ;;  %v287_v22 = vsub.f32 %v280_v18, %v285_v16  ;;  %v288_v35 = vsub.f32 %v281_v29, %v285_v16  ;;  %s2865_s22 = smov (!%p262_p4, %s2361_s22), 1 }
  0x14   : > { %v289_v36 = vsub.f32 %v282_v30, %v285_v16  ;;  %v290_v47 = vsub.f32 %v283_v44, %v285_v16  ;;  %v291_v48 = vsub.f32 %v284_v45, %v285_v16  ;;  %s2054_s7 = sshll.u32 %s2865_s22, 1 }
  0x15   : > { %v278_v10 = vsub.f32 %v273_v7, %v276_v9 }
  0x17   : > { %v292_v11 = vadd.f32 1e-05, %v278_v10 }
  0x19   : > { %2200 = vrsqrt.f32 %v292_v11  ;;  %vm299_vm1 = vweird.f32 %v292_v11 }
  0x1f   : > { %v2201_v12 = vpop.eup %2200 }
  0x20   : > { %v294_v13 = vmul.f32 %v2201_v12, %v292_v11  ;;  %vm300_vm2 = vweird.f32 %v2201_v12 }
  0x21   : > { %vm301_vm3 = vmor %vm299_vm1, %vm300_vm2 }
  0x22   : > { %v295_v14 = vmul.f32 %v2201_v12, %v294_v13 }
  0x24   : > { %v296_v15 = vmul.f32 0.5, %v295_v14 }
  0x26   : > { %v297_v19 = vsub.f32 1.5, %v296_v15 }
  0x28   : > { %v298_v20 = vmul.f32 %v2201_v12, %v297_v19 }
  0x2a   : > { %v302_v23 = vsel %vm301_vm3, %v2201_v12, %v298_v20 }
  0x2b   : > { %v303_v24 = vperm.slane %v302_v23, 1 }
  0x2d   : > { %v304_v26 = vmul.f32 %v303_v24, %v286_v21  ;;  %v305_v27 = vmul.f32 %v303_v24, %v287_v22  ;;  %v306_v38 = vmul.f32 %v303_v24, %v288_v35  ;;  %v307_v39 = vmul.f32 %v303_v24, %v289_v36 }
  0x2e   : > { %v308_v49 = vmul.f32 %v303_v24, %v290_v47  ;;  %v309_v50 = vmul.f32 %v303_v24, %v291_v48 }
  0x2f   : > { %v312_v31 = vmul.f32 %v2198_v25, %v304_v26  ;;  %v313_v32 = vmul.f32 %v2198_v25, %v305_v27  ;;  %v314_v40 = vmul.f32 %v2198_v25, %v306_v38  ;;  %v315_v41 = vmul.f32 %v2198_v25, %v307_v39 }
  0x30   : > { %v316_v51 = vmul.f32 %v2198_v25, %v308_v49  ;;  %v317_v52 = vmul.f32 %v2198_v25, %v309_v50 }
  0x31   : > { %v2400_v33 = vadd.f32 %v2199_v28, %v312_v31  ;;  %v2402_v34 = vadd.f32 %v2199_v28, %v313_v32  ;;  %v2407_v42 = vadd.f32 %v2199_v28, %v314_v40  ;;  %v2409_v43 = vadd.f32 %v2199_v28, %v315_v41 }
  0x32   : > { %v2416_v53 = vadd.f32 %v2199_v28, %v316_v51  ;;  %v2418_v54 = vadd.f32 %v2199_v28, %v317_v52 }
  0x33   : > { %v326_v37 = vpack.c.bf16 %v2402_v34, %v2400_v33  ;;  %v327_v46 = vpack.c.bf16 %v2409_v43, %v2407_v42 }
  0x34   : > { %v328_v55 = vpack.c.bf16 %v2418_v54, %v2416_v53 }
  0x35   : > { %2063 = vmatmul.msk.bf16.vlgmr.msra.gmra.mxu0 %vm345_vm4, %v326_v37 }
  0x45   : > { %2064 = vmatmul.msk.bf16.gmra.mxu0 %vm345_vm4, %v327_v46 }
  0x55   : > { %2065 = vmatmul.msk.bf16.gmra.mxu0 %vm345_vm4, %v328_v55 }
  0xb2   : > { %v364_v56 = vpop.f32.mrf.mxu0 }
  0xb3   : > { %v379_v57 = vpack.c.bf16 %v364_v56, %v364_v56 }
  0xb5   : > { %v386_v58 = vunpack.c.l.b16 %v379_v57 }
  0xb7   : > { %v2423_v59 = vpack.c.b16 %v386_v58, %v386_v58 }
  0xb9   : > { %388 = vrot.lane.b32.xlu0 %v2423_v59, %s2306_s16 }
  0xba   : > { %v366_v60 = vpop.f32.mrf.mxu0 }
  0xbb   : > { %v380_v61 = vpack.c.bf16 %v366_v60, %v366_v60 }
  0xbd   : > { %v411_v62 = vunpack.c.l.b16 %v380_v61 }
  0xbf   : > { %v2426_v63 = vpack.c.b16 %v411_v62, %v411_v62 }
  0xc1   : > { %413 = vrot.lane.b32.xlu0 %v2426_v63, %s2306_s16 }
  0xc2   : > { %v369_v0 = vpop.f32.mrf.mxu0 }
  0xc3   : > { %v381_v1 = vpack.c.bf16 %v369_v0, %v369_v0 }
  0xc5   : > { %v435_v2 = vunpack.c.l.b16 %v381_v1 }
  0xc7   : > { %v2429_v3 = vpack.c.b16 %v435_v2, %v435_v2 }
  0xc9   : > { %608 = vrot.lane.b32.xlu0 %v2423_v59, %s2307_s17  ;;  %437 = vrot.lane.b32.xlu1 %v2429_v3, %s2306_s16 }
  0xca   : > { %v371_v4 = vpop.f32.mrf.mxu0 }
  0xcb   : > { %v382_v5 = vpack.c.bf16 %v371_v4, %v371_v4 }
  0xcd   : > { %v459_v6 = vunpack.c.l.b16 %v382_v5 }
  0xcf   : > { %v2433_v7 = vpack.c.b16 %v459_v6, %v459_v6 }
  0xd1   : > { %672 = vrot.lane.b32.xlu0 %v2433_v7, %s2307_s17  ;;  %461 = vrot.lane.b32.xlu1 %v2433_v7, %s2306_s16 }
  0xd2   : > { %v374_v8 = vpop.f32.mrf.mxu0 }
  0xd3   : > { %v383_v9 = vpack.c.bf16 %v374_v8, %v374_v8 }
  0xd5   : > { %v483_v10 = vunpack.c.l.b16 %v383_v9 }
  0xd7   : > { %v2437_v11 = vpack.c.b16 %v483_v10, %v483_v10 }
  0xd9   : > { %630 = vrot.lane.b32.xlu1 %v2426_v63, %s2307_s17  ;;  %485 = vrot.lane.b32.xlu2 %v2437_v11, %s2306_s16 }
  0xda   : > { %v376_v12 = vpop.f32.mrf.mxu0 }
  0xdb   : > { %v384_v13 = vpack.c.bf16 %v376_v12, %v376_v12 }
  0xdd   : > { %v507_v14 = vunpack.c.l.b16 %v384_v13 }
  0xdf   : > { %v2441_v15 = vpack.c.b16 %v507_v14, %v507_v14 }
  0xe1   : > { %509 = vrot.lane.b32.xlu2 %v2441_v15, %s2306_s16  ;;  %s2814_s16 = scalar_lea.vmem %s2860_s5, %s2052_s8 }
  0xe9   : > { %651 = vrot.lane.b32.xlu2 %v2429_v3, %s2307_s17 }
  0xf1   : > { %737 = vrot.lane.b32.xlu2 %v2423_v59, %s2308_s18 }
  0xf9   : > { %760 = vrot.lane.b32.xlu2 %v2426_v63, %s2308_s18 }
 0x101   : > { %693 = vrot.lane.b32.xlu2 %v2437_v11, %s2307_s17 }
 0x109   : > { %735 = vrot.lane.b32.xlu2 %v2423_v59, %s2309_s19 }
 0x111   : > { %714 = vrot.lane.b32.xlu2 %v2441_v15, %s2307_s17 }
 0x12b   : > { %v389_v16 = vpop.permute.xlu0 %388 }
 0x12c   : > { %v395_v17 = vsel %vm390_vm5, %v389_v16, 0 }
 0x12d   : > { %404 = vmatpush.bf16.xpose.msra.mxu1 %v395_v17 }
 0x133   : > { %v414_v18 = vpop.permute.xlu0 %413  ;;  %v486_v19 = vpop.permute.xlu2 %485 }
 0x134   : > { %2066 = vmatmul.msk.bf16.vlgmr.msra.gmra.mxu1 %vm390_vm5, %v379_v57  ;;  %v419_v20 = vsel %vm390_vm5, %v414_v18, 0  ;;  %v491_v21 = vsel %vm390_vm5, %v486_v19, 0 }
 0x135   : > { %428 = vmatpush.bf16.xpose.msra.mxu2 %v419_v20 }
 0x13b   : > { %v609_v22 = vpop.permute.xlu0 %608  ;;  %v438_v23 = vpop.permute.xlu1 %437 }
 0x13c   : > { %v510_v24 = vpop.permute.xlu2 %509  ;;  %2067 = vmatmul.msk.bf16.vlgmr.msra.gmra.mxu2 %vm390_vm5, %v380_v61  ;;  %v443_v25 = vsel %vm390_vm5, %v438_v23, 0  ;;  %v615_v35 = vsel %vm613_vm6, %v609_v22, 0 }
 0x13d   : > { %500 = vmatpush.bf16.xpose.msrb.mxu2 %v491_v21  ;;  %452 = vmatpush.bf16.xpose.msrb.mxu0 %v443_v25  ;;  %v515_v26 = vsel %vm390_vm5, %v510_v24, 0 }
 0x13e   : > { %524 = vmatpush.bf16.xpose.msra.mxu3 %v515_v26 }
 0x143   : > { %v673_v27 = vpop.permute.xlu0 %672  ;;  %v462_v28 = vpop.permute.xlu1 %461 }
 0x144   : > { %v678_v29 = vsel %vm613_vm6, %v673_v27, 0  ;;  %v652_v30 = vpop.permute.xlu2 %651  ;;  %2068 = vmatmul.msk.bf16.vlgmr.msrb.gmra.mxu0 %vm390_vm5, %v381_v1  ;;  %v467_v31 = vsel %vm390_vm5, %v462_v28, 0 }
 0x145   : > { %2071 = vmatmul.msk.bf16.vlgmr.msra.gmra.mxu3 %vm390_vm5, %v384_v13  ;;  %476 = vmatpush.bf16.xpose.msrb.mxu1 %v467_v31  ;;  %v657_v32 = vsel %vm613_vm6, %v652_v30, 0 }
 0x146   : > { %666 = vmatpush.bf16.msrb.mxu3 %v657_v32  ;;  %687 = vmatpush.bf16.msra.mxu0 %v678_v29 }
 0x14b   : > { %v631_v36 = vpop.permute.xlu1 %630 }
 0x14c   : > { %v636_v37 = vsel %vm613_vm6, %v631_v36, 0  ;;  %v738_v38 = vpop.permute.xlu2 %737  ;;  %2069 = vmatmul.msk.bf16.vlgmr.msrb.gmra.mxu1 %vm390_vm5, %v382_v5  ;;  %2070 = vmatmul.msk.bf16.vlgmr.msrb.gmra.mxu2 %vm390_vm5, %v383_v9 }
 0x14d   : > { %624 = vmatpush.bf16.msra.mxu1 %v615_v35  ;;  %v743_v39 = vsel %vm390_vm5, %v738_v38, 0  ;;  %645 = vmatpush.bf16.msra.mxu2 %v636_v37 }
 0x14e   : > { %752 = vmatpush.bf16.xpose.msra.mxu3 %v743_v39 }
 0x154   : > { %v761_v40 = vpop.permute.xlu2 %760 }
 0x155   : > { %v766_v41 = vsel %vm390_vm5, %v761_v40, 0 }
 0x156   : > { %775 = vmatpush.bf16.xpose.msrb.mxu0 %v766_v41 }
 0x15c   : > { %v694_v44 = vpop.permute.xlu2 %693 }
 0x15d   : > { %v699_v45 = vsel %vm613_vm6, %v694_v44, 0 }
 0x15e   : > { %708 = vmatpush.bf16.msrb.mxu1 %v699_v45 }
 0x164   : > { %v2472_v46 = vpop.permute.xlu2 %735 }
 0x16c   : > { %v715_v47 = vpop.permute.xlu2 %714 }
 0x16d   : > { %v720_v48 = vsel %vm613_vm6, %v715_v47, 0 }
 0x16e   : > { %729 = vmatpush.bf16.msrb.mxu2 %v720_v48 }
 0x1b1   : > { %v406_v49 = vpop.f32.mrf.mxu1 }
 0x1b2   : > { %v530_v50 = vmul.f32 0.35355338, %v406_v49 }
 0x1b4   : > { %v536_v51 = vsel %vm390_vm5, %v530_v50, -inf }
 0x1b5   : > { %537 = vmax.xlane.f32.xlu0 %v536_v51 }
 0x1b9   : > { %v408_v52 = vpop.f32.mrf.mxu1 }
 0x1bf   : > { %v430_v55 = vpop.f32.mrf.mxu2 }
 0x1c0   : > { %v531_v56 = vmul.f32 0.35355338, %v430_v55 }
 0x1c1   : > { %v454_v57 = vpop.f32.mrf.mxu0 }
 0x1c2   : > { %v532_v58 = vmul.f32 0.35355338, %v454_v57  ;;  %v539_v60 = vsel %vm390_vm5, %v531_v56, -inf }
 0x1c3   : > { %540 = vmax.xlane.f32.xlu1 %v539_v60 }
 0x1c4   : > { %v542_v61 = vsel %vm390_vm5, %v532_v58, -inf }
 0x1c5   : > { %543 = vmax.xlane.f32.xlu2 %v542_v61 }
 0x1c7   : > { %v432_v62 = vpop.f32.mrf.mxu2 }
 0x1c8   : > { %v526_v0 = vpop.f32.mrf.mxu3 }
 0x1c9   : > { %v535_v1 = vmul.f32 0.35355338, %v526_v0  ;;  %v456_v2 = vpop.f32.mrf.mxu0  ;;  %v478_v4 = vpop.f32.mrf.mxu1 }
 0x1ca   : > { %v533_v5 = vmul.f32 0.35355338, %v478_v4 }
 0x1cb   : > { %v551_v6 = vsel %vm390_vm5, %v535_v1, -inf }
 0x1cc   : > { %552 = vmax.xlane.f32.xlu1 %v551_v6  ;;  %v545_v8 = vsel %vm390_vm5, %v533_v5, -inf }
 0x1cd   : > { %546 = vmax.xlane.f32.xlu2 %v545_v8 }
 0x1cf   : > { %v502_v9 = vpop.f32.mrf.mxu2 }
 0x1d0   : > { %v534_v10 = vmul.f32 0.35355338, %v502_v9  ;;  %v528_v12 = vpop.f32.mrf.mxu3 }
 0x1d1   : > { %v480_v13 = vpop.f32.mrf.mxu1 }
 0x1d2   : > { %v548_v14 = vsel %vm390_vm5, %v534_v10, -inf }
 0x1d3   : > { %549 = vmax.xlane.f32.xlu0 %v548_v14 }
 0x1d7   : > { %v504_v16 = vpop.f32.mrf.mxu2 }
 0x1e5   : > { %758 = vrot.lane.b32.xlu1 %v2426_v63, %s2309_s19  ;;  %806 = vrot.lane.b32.xlu2 %v2433_v7, %s2308_s18 }
 0x1e7   : > { %783 = vrot.lane.b32.xlu0 %v2429_v3, %s2308_s18 }
 0x1ed   : > { %829 = vrot.lane.b32.xlu2 %v2437_v11, %s2308_s18 }
 0x228   : > { %v538_v17 = vpop.xlane.xlu0 %537 }
 0x229   : > { %v554_v18 = vsub.f32 %v530_v50, %v538_v17 }
 0x22b   : > { %v560_v19 = vmul.f32 1.442695, %v554_v18 }
 0x22d   : > { %2202 = vpow2.f32 %v560_v19 }
 0x233   : > { %v2203_v20 = vpop.eup %2202 }
 0x234   : > { %v572_v21 = vsel %vm390_vm5, %v2203_v20, 0.0 }
 0x235   : > { %573 = vadd.xlane.f32.xlu2 %v572_v21 }
 0x236   : > { %v541_v22 = vpop.xlane.xlu1 %540 }
 0x237   : > { %v555_v23 = vsub.f32 %v531_v56, %v541_v22 }
 0x238   : > { %v544_v24 = vpop.xlane.xlu2 %543 }
 0x239   : > { %v562_v25 = vmul.f32 1.442695, %v555_v23  ;;  %v556_v26 = vsub.f32 %v532_v58, %v544_v24 }
 0x23b   : > { %2204 = vpow2.f32 %v562_v25  ;;  %v564_v27 = vmul.f32 1.442695, %v556_v26 }
 0x23d   : > { %2206 = vpow2.f32 %v564_v27 }
 0x23f   : > { %v553_v47 = vpop.xlane.xlu1 %552 }
 0x240   : > { %v547_v28 = vpop.xlane.xlu2 %546  ;;  %v559_v48 = vsub.f32 %v535_v1, %v553_v47 }
 0x241   : > { %v2205_v29 = vpop.eup %2204  ;;  %v557_v30 = vsub.f32 %v533_v5, %v547_v28 }
 0x242   : > { %v575_v31 = vsel %vm390_vm5, %v2205_v29, 0.0  ;;  %v570_v49 = vmul.f32 1.442695, %v559_v48 }
 0x243   : > { %v2207_v32 = vpop.eup %2206  ;;  %v566_v35 = vmul.f32 1.442695, %v557_v30  ;;  %576 = vadd.xlane.f32.xlu0 %v575_v31 }
 0x244   : > { %v578_v36 = vsel %vm390_vm5, %v2207_v32, 0.0 }
 0x245   : > { %2208 = vpow2.f32 %v566_v35  ;;  %579 = vadd.xlane.f32.xlu1 %v578_v36 }
 0x246   : > { %v550_v37 = vpop.xlane.xlu0 %549 }
 0x247   : > { %v558_v38 = vsub.f32 %v534_v10, %v550_v37 }
 0x248   : > { %v807_v52 = vpop.permute.xlu2 %806 }
 0x249   : > { %v568_v39 = vmul.f32 1.442695, %v558_v38  ;;  %v812_v12 = vsel %vm390_vm5, %v807_v52, 0 }
 0x24b   : > { %v2209_v40 = vpop.eup %2208  ;;  %2210 = vpow2.f32 %v568_v39 }
 0x24c   : > { %v581_v41 = vsel %vm390_vm5, %v2209_v40, 0.0  ;;  %2212 = vpow2.f32 %v570_v49 }
 0x24d   : > { %582 = vadd.xlane.f32.xlu2 %v581_v41 }
 0x250   : > { %v830_v55 = vpop.permute.xlu2 %829 }
 0x251   : > { %v2493_v44 = vpop.eup %2210  ;;  %v835_v14 = vsel %vm390_vm5, %v830_v55, 0 }
 0x252   : > { %v584_v45 = vsel %vm390_vm5, %v2493_v44, 0.0  ;;  %v2508_v50 = vpop.eup %2212 }
 0x253   : > { %585 = vadd.xlane.f32.xlu1 %v584_v45  ;;  %v587_v51 = vsel %vm390_vm5, %v2508_v50, 0.0 }
 0x257   : > { %781 = vrot.lane.b32.xlu0 %v2429_v3, %s2309_s19  ;;  %v759_v60 = vpop.permute.xlu1 %758 }
 0x259   : > { %v784_v57 = vpop.permute.xlu0 %783 }
 0x25a   : > { %v789_v0 = vsel %vm390_vm5, %v784_v57, 0 }
 0x265   : > { %852 = vrot.lane.b32.xlu2 %v2441_v15, %s2308_s18  ;;  %s265_s18 = scalar_lea.vmem %s2861_s6, %s2054_s7 }
 0x26c   : > { %804 = vrot.lane.b32.xlu1 %v2433_v7, %s2309_s19 }
 0x26d   : > { %827 = vrot.lane.b32.xlu2 %v2437_v11, %s2309_s19 }
 0x274   : > { %951 = vrot.lane.b32.xlu1 %v2423_v59, %s2310_s20 }
 0x275   : > { %1056 = vrot.lane.b32.xlu2 %v2441_v15, %s2310_s20 }
 0x27c   : > { %993 = vrot.lane.b32.xlu1 %v2429_v3, %s2310_s20 }
 0x27d   : > { %1148 = vrot.lane.b32.xlu2 %v2433_v7, %s2311_s23 }
 0x281   : > { %588 = vadd.xlane.f32.xlu0 %v587_v51 }
 0x284   : > { %1014 = vrot.lane.b32.xlu1 %v2433_v7, %s2310_s20 }
 0x28c   : > { %1035 = vrot.lane.b32.xlu1 %v2437_v11, %s2310_s20 }
 0x294   : > { %1079 = vrot.lane.b32.xlu1 %v2423_v59, %s2311_s23 }
 0x295   : > { %850 = vrot.lane.b32.xlu0 %v2441_v15, %s2309_s19 }
 0x29d   : > { %972 = vrot.lane.b32.xlu0 %v2426_v63, %s2310_s20 }
 0x2a8   : > { %v574_v56 = vpop.xlane.xlu2 %573 }
 0x2a9   : > { %2214 = vrcp.f32 %v574_v56 }
 0x2af   : > { %v2215_v58 = vpop.eup %2214 }
 0x2b0   : > { %v596_v61 = vmul.f32 %v2215_v58, %v2203_v20 }
 0x2b2   : > { %v602_v62 = vpack.c.bf16 %v596_v61, %v596_v61 }
 0x2b4   : > { %2072 = vmatmul.msk.bf16.vlgmr.msra.gmra.mxu1 %vm390_vm5, %v602_v62 }
 0x2b5   : > { %798 = vmatpush.bf16.xpose.msra.mxu1 %v789_v0 }
 0x2b6   : > { %v577_v1 = vpop.xlane.xlu0 %576 }
 0x2b7   : > { %2216 = vrcp.f32 %v577_v1 }
 0x2b8   : > { %v580_v2 = vpop.xlane.xlu1 %579 }
 0x2b9   : > { %2218 = vrcp.f32 %v580_v2 }
 0x2bd   : > { %v2217_v4 = vpop.eup %2216 }
 0x2be   : > { %v597_v5 = vmul.f32 %v2217_v4, %v2205_v29 }
 0x2bf   : > { %v2219_v6 = vpop.eup %2218 }
 0x2c0   : > { %v603_v8 = vpack.c.bf16 %v597_v5, %v597_v5  ;;  %v598_v9 = vmul.f32 %v2219_v6, %v2207_v32  ;;  %v583_v10 = vpop.xlane.xlu2 %582 }
 0x2c1   : > { %2220 = vrcp.f32 %v583_v10 }
 0x2c2   : > { %2073 = vmatmul.msk.bf16.vlgmr.msra.gmra.mxu2 %vm390_vm5, %v603_v8  ;;  %v604_v13 = vpack.c.bf16 %v598_v9, %v598_v9 }
 0x2c3   : > { %821 = vmatpush.bf16.xpose.msra.mxu2 %v812_v12 }
 0x2c4   : > { %2074 = vmatmul.msk.bf16.vlgmr.msrb.gmra.mxu3 %vm390_vm5, %v604_v13 }
 0x2c5   : > { %844 = vmatpush.bf16.xpose.msrb.mxu3 %v835_v14 }
 0x2c6   : > { %v586_v16 = vpop.xlane.xlu1 %585 }
 0x2c7   : > { %v2221_v17 = vpop.eup %2220  ;;  %2222 = vrcp.f32 %v586_v16 }
 0x2c8   : > { %v599_v18 = vmul.f32 %v2221_v17, %v2209_v40  ;;  %v853_v19 = vpop.permute.xlu2 %852 }
 0x2c9   : > { %v858_v21 = vsel %vm390_vm5, %v853_v19, 0  ;;  %v782_v26 = vpop.permute.xlu0 %781 }
 0x2ca   : > { %v605_v20 = vpack.c.bf16 %v599_v18, %v599_v18 }
 0x2cc   : > { %2075 = vmatmul.msk.bf16.vlgmr.msra.gmra.mxu0 %vm390_vm5, %v605_v20 }
 0x2cd   : > { %v2223_v22 = vpop.eup %2222  ;;  %867 = vmatpush.bf16.xpose.msra.mxu0 %v858_v21 }
 0x2ce   : > { %v600_v23 = vmul.f32 %v2223_v22, %v2493_v44 }
 0x2d0   : > { %v606_v24 = vpack.c.bf16 %v600_v23, %v600_v23  ;;  %v828_v27 = vpop.permute.xlu2 %827 }
 0x2d2   : > { %2076 = vmatmul.msk.bf16.vlgmr.msrb.gmra.mxu1 %vm390_vm5, %v606_v24 }
 0x2d4   : > { %2078 = vmatmul.msk.bf16.vlgmr.msra.gmra.mxu3 %vm390_vm5, %v2472_v46 }
 0x2d8   : > { %v1057_v47 = vpop.permute.xlu2 %1056 }
 0x2dc   : > { %2079 = vmatmul.msk.bf16.vlgmr.msrb.gmra.mxu0 %vm390_vm5, %v759_v60 }
 0x2de   : > { %v805_v25 = vpop.permute.xlu1 %804 }
 0x2e2   : > { %2080 = vmatmul.msk.bf16.vlgmr.msra.gmra.mxu1 %vm390_vm5, %v782_v26 }
 0x2e4   : > { %2082 = vmatmul.msk.bf16.vlgmr.msrb.gmra.mxu3 %vm390_vm5, %v828_v27 }
 0x2e6   : > { %v952_v28 = vpop.permute.xlu1 %951 }
 0x2e7   : > { %v957_v29 = vsel %vm613_vm6, %v952_v28, 0 }
 0x2e8   : > { %966 = vmatpush.bf16.msrb.mxu1 %v957_v29 }
 0x2ee   : > { %v994_v30 = vpop.permute.xlu1 %993 }
 0x2ef   : > { %v999_v31 = vsel %vm613_vm6, %v994_v30, 0 }
 0x2f0   : > { %1008 = vmatpush.bf16.msra.mxu3 %v999_v31  ;;  %v2571_v31 = vpop.permute.xlu2 %1148 }
 0x2f4   : > { %v589_v32 = vpop.xlane.xlu0 %588 }
 0x2f5   : > { %2224 = vrcp.f32 %v589_v32 }
 0x2f6   : > { %v1015_v46 = vpop.permute.xlu1 %1014 }
 0x2f7   : > { %v1020_v35 = vsel %vm613_vm6, %v1015_v46, 0 }
 0x2f8   : > { %1029 = vmatpush.bf16.msrb.mxu0 %v1020_v35 }
 0x2fb   : > { %v2225_v36 = vpop.eup %2224 }
 0x2fc   : > { %v601_v37 = vmul.f32 %v2225_v36, %v2508_v50  ;;  %v1062_v50 = vsel %vm613_vm6, %v1057_v47, 0 }
 0x2fe   : > { %v607_v38 = vpack.c.bf16 %v601_v37, %v601_v37  ;;  %v1036_v39 = vpop.permute.xlu1 %1035 }
 0x2ff   : > { %v1041_v40 = vsel %vm613_vm6, %v1036_v39, 0 }
 0x300   : > { %2077 = vmatmul.msk.bf16.vlgmr.msrb.gmra.mxu2 %vm390_vm5, %v607_v38  ;;  %1050 = vmatpush.bf16.msra.mxu1 %v1041_v40 }
 0x306   : > { %v1080_v41 = vpop.permute.xlu1 %1079 }
 0x307   : > { %v1085_v44 = vsel %vm390_vm5, %v1080_v41, 0  ;;  %v851_v45 = vpop.permute.xlu0 %850 }
 0x308   : > { %2083 = vmatmul.msk.bf16.vlgmr.msra.gmra.mxu0 %vm390_vm5, %v851_v45  ;;  %1094 = vmatpush.bf16.xpose.msrb.mxu3 %v1085_v44 }
 0x30f   : > { %v973_v48 = vpop.permute.xlu0 %972 }
 0x310   : > { %v978_v49 = vsel %vm613_vm6, %v973_v48, 0  ;;  %2081 = vmatmul.msk.bf16.vlgmr.msra.gmra.mxu2 %vm390_vm5, %v805_v25 }
 0x311   : > { %987 = vmatpush.bf16.msrb.mxu2 %v978_v49 }
 0x315   : > { %1071 = vmatpush.bf16.msra.mxu2 %v1062_v50 }
 0x331   : > { %v2547_v51 = vpop.f32.mrf.mxu1 }
 0x339   : > { %v628_v52 = vpop.f32.mrf.mxu1 }
 0x345   : > { %v2549_v55 = vpop.f32.mrf.mxu2 }
 0x347   : > { %v2551_v56 = vpop.f32.mrf.mxu3 }
 0x349   : > { %v2553_v57 = vpop.f32.mrf.mxu0 }
 0x34d   : > { %v649_v58 = vpop.f32.mrf.mxu2 }
 0x34f   : > { %v670_v60 = vpop.f32.mrf.mxu3  ;;  %v2555_v61 = vpop.f32.mrf.mxu1 }
 0x351   : > { %v691_v62 = vpop.f32.mrf.mxu0 }
 0x357   : > { %v712_v0 = vpop.f32.mrf.mxu1  ;;  %v754_v1 = vpop.f32.mrf.mxu3 }
 0x358   : > { %v873_v2 = vmul.f32 0.35355338, %v754_v1 }
 0x359   : > { %v777_v4 = vpop.f32.mrf.mxu0 }
 0x35a   : > { %v874_v5 = vmul.f32 0.35355338, %v777_v4  ;;  %v879_v6 = vsel %vm390_vm5, %v873_v2, -inf }
 0x35b   : > { %880 = vmax.xlane.f32.xlu2 %v879_v6 }
 0x35c   : > { %v882_v8 = vsel %vm390_vm5, %v874_v5, -inf }
 0x35d   : > { %883 = vmax.xlane.f32.xlu1 %v882_v8 }
 0x35f   : > { %v756_v9 = vpop.f32.mrf.mxu3  ;;  %v800_v10 = vpop.f32.mrf.mxu1 }
 0x360   : > { %v875_v12 = vmul.f32 0.35355338, %v800_v10 }
 0x361   : > { %v779_v13 = vpop.f32.mrf.mxu0 }
 0x362   : > { %v885_v14 = vsel %vm390_vm5, %v875_v12, -inf }
 0x363   : > { %886 = vmax.xlane.f32.xlu0 %v885_v14 }
 0x367   : > { %v802_v16 = vpop.f32.mrf.mxu1  ;;  %v846_v17 = vpop.f32.mrf.mxu3 }
 0x368   : > { %v877_v18 = vmul.f32 0.35355338, %v846_v17 }
 0x36a   : > { %v891_v19 = vsel %vm390_vm5, %v877_v18, -inf }
 0x36b   : > { %892 = vmax.xlane.f32.xlu0 %v891_v19 }
 0x36f   : > { %v848_v20 = vpop.f32.mrf.mxu3 }
 0x373   : > { %1125 = vrot.lane.b32.xlu2 %v2429_v3, %s2311_s23 }
 0x37f   : > { %1077 = vrot.lane.b32.xlu0 %v2423_v59, %s2312_s24 }
 0x383   : > { %v2565_v21 = vpop.f32.mrf.mxu2 }
 0x385   : > { %v869_v22 = vpop.f32.mrf.mxu0 }
 0x386   : > { %v878_v23 = vmul.f32 0.35355338, %v869_v22 }
 0x388   : > { %v894_v24 = vsel %vm390_vm5, %v878_v23, -inf }
 0x389   : > { %895 = vmax.xlane.f32.xlu1 %v894_v24 }
 0x38b   : > { %v733_v25 = vpop.f32.mrf.mxu2 }
 0x38d   : > { %v871_v26 = vpop.f32.mrf.mxu0 }
 0x393   : > { %v823_v27 = vpop.f32.mrf.mxu2 }
 0x394   : > { %v876_v28 = vmul.f32 0.35355338, %v823_v27 }
 0x396   : > { %v888_v30 = vsel %vm390_vm5, %v876_v28, -inf }
 0x39b   : > { %v825_v29 = vpop.f32.mrf.mxu2 }
 0x39c   : > { %889 = vmax.xlane.f32.xlu2 %v888_v30 }
 0x3a2   : > { %1102 = vrot.lane.b32.xlu1 %v2426_v63, %s2311_s23 }
 0x3ce   : > { %v881_v32 = vpop.xlane.xlu2 %880 }
 0x3cf   : > { %v897_v46 = vsub.f32 %v873_v2, %v881_v32 }
 0x3d0   : > { %v884_v35 = vpop.xlane.xlu1 %883 }
 0x3d1   : > { %v903_v36 = vmul.f32 1.442695, %v897_v46  ;;  %v898_v37 = vsub.f32 %v874_v5, %v884_v35 }
 0x3d3   : > { %2226 = vpow2.f32 %v903_v36  ;;  %v905_v38 = vmul.f32 1.442695, %v898_v37 }
 0x3d5   : > { %2228 = vpow2.f32 %v905_v38 }
 0x3d6   : > { %v887_v45 = vpop.xlane.xlu0 %886  ;;  %v1126_v47 = vpop.permute.xlu2 %1125 }
 0x3d7   : > { %v899_v48 = vsub.f32 %v875_v12, %v887_v45  ;;  %v1131_v26 = vsel %vm390_vm5, %v1126_v47, 0 }
 0x3d9   : > { %v2227_v39 = vpop.eup %2226  ;;  %v907_v50 = vmul.f32 1.442695, %v899_v48 }
 0x3da   : > { %v915_v40 = vsel %vm390_vm5, %v2227_v39, 0.0 }
 0x3db   : > { %v2229_v41 = vpop.eup %2228  ;;  %916 = vadd.xlane.f32.xlu2 %v915_v40  ;;  %2230 = vpow2.f32 %v907_v50 }
 0x3dc   : > { %v918_v44 = vsel %vm390_vm5, %v2229_v41, 0.0 }
 0x3dd   : > { %919 = vadd.xlane.f32.xlu1 %v918_v44 }
 0x3de   : > { %v893_v52 = vpop.xlane.xlu0 %892 }
 0x3df   : > { %v901_v62 = vsub.f32 %v877_v18, %v893_v52 }
 0x3e1   : > { %v911_v4 = vmul.f32 1.442695, %v901_v62  ;;  %v2231_v5 = vpop.eup %2230 }
 0x3e2   : > { %v921_v9 = vsel %vm390_vm5, %v2231_v5, 0.0 }
 0x3f1   : > { %v1078_v30 = vpop.permute.xlu0 %1077 }
 0x3f3   : > { %1100 = vrot.lane.b32.xlu2 %v2426_v63, %s2312_s24 }
 0x3f6   : > { %1146 = vrot.lane.b32.xlu1 %v2433_v7, %s2312_s24 }
 0x3fc   : > { %v896_v49 = vpop.xlane.xlu1 %895 }
 0x3fd   : > { %v902_v8 = vsub.f32 %v878_v23, %v896_v49 }
 0x3fe   : > { %1123 = vrot.lane.b32.xlu1 %v2429_v3, %s2312_s24 }
 0x3ff   : > { %v913_v12 = vmul.f32 1.442695, %v902_v8 }
 0x406   : > { %1169 = vrot.lane.b32.xlu1 %v2437_v11, %s2312_s24 }
 0x40e   : > { %1293 = vrot.lane.b32.xlu1 %v2423_v59, %s2313_s25 }
 0x40f   : > { %v890_v58 = vpop.xlane.xlu2 %889 }
 0x410   : > { %v900_v60 = vsub.f32 %v876_v28, %v890_v58  ;;  %v1154_v28 = vsel %vm390_vm5, %v2571_v31, 0 }
 0x412   : > { %v909_v0 = vmul.f32 1.442695, %v900_v60 }
 0x414   : > { %2232 = vpow2.f32 %v909_v0  ;;  %v1103_v1 = vpop.permute.xlu1 %1102 }
 0x415   : > { %v1108_v2 = vsel %vm390_vm5, %v1103_v1, 0  ;;  %2234 = vpow2.f32 %v911_v4 }
 0x416   : > { %1117 = vmatpush.bf16.xpose.msra.mxu0 %v1108_v2  ;;  %2236 = vpow2.f32 %v913_v12 }
 0x41a   : > { %v2233_v6 = vpop.eup %2232 }
 0x41b   : > { %v924_v10 = vsel %vm390_vm5, %v2233_v6, 0.0  ;;  %v2235_v13 = vpop.eup %2234 }
 0x41c   : > { %922 = vadd.xlane.f32.xlu2 %v921_v9  ;;  %925 = vadd.xlane.f32.xlu0 %v924_v10  ;;  %v927_v14 = vsel %vm390_vm5, %v2235_v13, 0.0  ;;  %v2237_v16 = vpop.eup %2236 }
 0x41d   : > { %v930_v17 = vsel %vm390_vm5, %v2237_v16, 0.0 }
 0x424   : > { %928 = vadd.xlane.f32.xlu2 %v927_v14 }
 0x42c   : > { %931 = vadd.xlane.f32.xlu2 %v930_v17 }
 0x430   : > { %1194 = vrot.lane.b32.xlu0 %v2441_v15, %s2311_s23 }
 0x438   : > { %1335 = vrot.lane.b32.xlu0 %v2429_v3, %s2313_s25 }
 0x444   : > { %1171 = vrot.lane.b32.xlu2 %v2437_v11, %s2311_s23 }
 0x44c   : > { %1192 = vrot.lane.b32.xlu2 %v2441_v15, %s2312_s24 }
 0x44e   : > { %v917_v18 = vpop.xlane.xlu2 %916 }
 0x44f   : > { %2238 = vrcp.f32 %v917_v18 }
 0x450   : > { %v920_v19 = vpop.xlane.xlu1 %919 }
 0x451   : > { %2240 = vrcp.f32 %v920_v19 }
 0x454   : > { %1314 = vrot.lane.b32.xlu2 %v2426_v63, %s2313_s25 }
 0x455   : > { %v2239_v20 = vpop.eup %2238 }
 0x456   : > { %v939_v22 = vmul.f32 %v2239_v20, %v2227_v39  ;;  %v1101_v31 = vpop.permute.xlu2 %1100 }
 0x457   : > { %v2241_v23 = vpop.eup %2240 }
 0x458   : > { %v945_v24 = vpack.c.bf16 %v939_v22, %v939_v22  ;;  %v940_v25 = vmul.f32 %v2241_v23, %v2229_v41 }
 0x45a   : > { %v946_v27 = vpack.c.bf16 %v940_v25, %v940_v25  ;;  %2084 = vmatmul.msk.bf16.vlgmr.msrb.gmra.mxu1 %vm390_vm5, %v945_v24 }
 0x45b   : > { %1140 = vmatpush.bf16.xpose.msrb.mxu1 %v1131_v26 }
 0x45c   : > { %2085 = vmatmul.msk.bf16.vlgmr.msrb.gmra.mxu2 %vm390_vm5, %v946_v27  ;;  %1356 = vrot.lane.b32.xlu2 %v2433_v7, %s2313_s25 }
 0x45d   : > { %1163 = vmatpush.bf16.xpose.msrb.mxu2 %v1154_v28 }
 0x464   : > { %1421 = vrot.lane.b32.xlu2 %v2423_v59, %s2314_s26 }
 0x468   : > { %v1147_v29 = vpop.permute.xlu1 %1146 }
 0x46c   : > { %1444 = vrot.lane.b32.xlu2 %v2426_v63, %s2314_s26 }
 0x470   : > { %v1124_v32 = vpop.permute.xlu1 %1123 }
 0x474   : > { %1377 = vrot.lane.b32.xlu2 %v2437_v11, %s2313_s25 }
 0x478   : > { %v1170_v37 = vpop.permute.xlu1 %1169 }
 0x47c   : > { %1398 = vrot.lane.b32.xlu2 %v2441_v15, %s2313_s25 }
 0x480   : > { %v1294_v50 = vpop.permute.xlu1 %1293 }
 0x481   : > { %v1299_v60 = vsel %vm613_vm6, %v1294_v50, 0 }
 0x48f   : > { %v926_v46 = vpop.xlane.xlu0 %925  ;;  %v923_v35 = vpop.xlane.xlu2 %922 }
 0x490   : > { %2242 = vrcp.f32 %v926_v46 }
 0x491   : > { %2244 = vrcp.f32 %v923_v35 }
 0x496   : > { %v2243_v36 = vpop.eup %2242 }
 0x497   : > { %v2245_v38 = vpop.eup %2244  ;;  %v942_v39 = vmul.f32 %v2243_v36, %v2233_v6  ;;  %v929_v40 = vpop.xlane.xlu2 %928 }
 0x498   : > { %v941_v41 = vmul.f32 %v2245_v38, %v2231_v5  ;;  %2246 = vrcp.f32 %v929_v40 }
 0x499   : > { %v948_v44 = vpack.c.bf16 %v942_v39, %v942_v39 }
 0x49a   : > { %v947_v45 = vpack.c.bf16 %v941_v41, %v941_v41 }
 0x49b   : > { %2087 = vmatmul.msk.bf16.vlgmr.msrb.gmra.mxu0 %vm390_vm5, %v948_v44 }
 0x49c   : > { %2086 = vmatmul.msk.bf16.vlgmr.msra.gmra.mxu3 %vm390_vm5, %v947_v45 }
 0x49e   : > { %v2247_v47 = vpop.eup %2246 }
 0x49f   : > { %v943_v48 = vmul.f32 %v2247_v47, %v2235_v13  ;;  %v932_v49 = vpop.xlane.xlu2 %931 }
 0x4a0   : > { %2248 = vrcp.f32 %v932_v49 }
 0x4a1   : > { %v949_v52 = vpack.c.bf16 %v943_v48, %v943_v48 }
 0x4a2   : > { %v1195_v58 = vpop.permute.xlu0 %1194 }
 0x4a3   : > { %v1200_v62 = vsel %vm390_vm5, %v1195_v58, 0  ;;  %2088 = vmatmul.msk.bf16.vlgmr.msra.gmra.mxu1 %vm390_vm5, %v949_v52 }
 0x4a4   : > { %1308 = vmatpush.bf16.msra.mxu1 %v1299_v60  ;;  %1209 = vmatpush.bf16.xpose.msrb.mxu0 %v1200_v62 }
 0x4a6   : > { %v2249_v0 = vpop.eup %2248 }
 0x4a7   : > { %v944_v1 = vmul.f32 %v2249_v0, %v2237_v16  ;;  %v1172_v2 = vpop.permute.xlu2 %1171 }
 0x4a8   : > { %v1177_v4 = vsel %vm390_vm5, %v1172_v2, 0 }
 0x4a9   : > { %v950_v5 = vpack.c.bf16 %v944_v1, %v944_v1  ;;  %1186 = vmatpush.bf16.xpose.msra.mxu3 %v1177_v4 }
 0x4aa   : > { %v1336_v6 = vpop.permute.xlu0 %1335 }
 0x4ab   : > { %v1341_v8 = vsel %vm613_vm6, %v1336_v6, 0  ;;  %2089 = vmatmul.msk.bf16.vlgmr.msra.gmra.mxu2 %vm390_vm5, %v950_v5  ;;  %2091 = vmatmul.msk.bf16.vlgmr.msra.gmra.mxu0 %vm390_vm5, %v1101_v31 }
 0x4ac   : > { %2090 = vmatmul.msk.bf16.vlgmr.msrb.gmra.mxu3 %vm390_vm5, %v1078_v30 }
 0x4af   : > { %v1193_v9 = vpop.permute.xlu2 %1192 }
 0x4b1   : > { %1350 = vmatpush.bf16.msrb.mxu3 %v1341_v8 }
 0x4b3   : > { %2092 = vmatmul.msk.bf16.vlgmr.msrb.gmra.mxu1 %vm390_vm5, %v1124_v32 }
 0x4b7   : > { %v1315_v10 = vpop.permute.xlu2 %1314 }
 0x4b8   : > { %v1320_v12 = vsel %vm613_vm6, %v1315_v10, 0 }
 0x4b9   : > { %1329 = vmatpush.bf16.msra.mxu2 %v1320_v12 }
 0x4bb   : > { %2093 = vmatmul.msk.bf16.vlgmr.msrb.gmra.mxu2 %vm390_vm5, %v1147_v29  ;;  %2095 = vmatmul.msk.bf16.vlgmr.msrb.gmra.mxu0 %vm390_vm5, %v1193_v9 }
 0x4bc   : > { %2094 = vmatmul.msk.bf16.vlgmr.msra.gmra.mxu3 %vm390_vm5, %v1170_v37 }
 0x4bf   : > { %v1357_v13 = vpop.permute.xlu2 %1356 }
 0x4c0   : > { %v1362_v14 = vsel %vm613_vm6, %v1357_v13, 0 }
 0x4c1   : > { %1371 = vmatpush.bf16.msra.mxu0 %v1362_v14 }
 0x4c7   : > { %v1422_v16 = vpop.permute.xlu2 %1421 }
 0x4c8   : > { %v1427_v17 = vsel %vm390_vm5, %v1422_v16, 0 }
 0x4c9   : > { %1436 = vmatpush.bf16.xpose.msra.mxu3 %v1427_v17 }
 0x4cf   : > { %v1445_v18 = vpop.permute.xlu2 %1444 }
 0x4d0   : > { %v1450_v19 = vsel %vm390_vm5, %v1445_v18, 0 }
 0x4d1   : > { %1459 = vmatpush.bf16.xpose.msrb.mxu0 %v1450_v19 }
 0x4d7   : > { %v2633_v20 = vpop.f32.mrf.mxu1  ;;  %v1378_v22 = vpop.permute.xlu2 %1377 }
 0x4d8   : > { %v1383_v23 = vsel %vm613_vm6, %v1378_v22, 0 }
 0x4d9   : > { %1392 = vmatpush.bf16.msrb.mxu1 %v1383_v23 }
 0x4df   : > { %v970_v24 = vpop.f32.mrf.mxu1  ;;  %v2636_v25 = vpop.f32.mrf.mxu2 }
 0x4e0   : > { %v2153_v26 = vpack.i.bf16 %v2636_v25, %v2633_v20  ;;  %v1399_v27 = vpop.permute.xlu2 %1398 }
 0x4e1   : > { %v1404_v28 = vsel %vm613_vm6, %v1399_v27, 0 }
 0x4e2   : > { %1413 = vmatpush.bf16.msrb.mxu2 %v1404_v28 }
 0x4e7   : > { %v991_v29 = vpop.f32.mrf.mxu2 }
 0x518   : > { %v2641_v30 = vpop.f32.mrf.mxu0 }
 0x51f   : > { %v2643_v31 = vpop.f32.mrf.mxu3 }
 0x520   : > { %v2168_v32 = vpack.i.bf16 %v2641_v30, %v2643_v31  ;;  %v1033_v46 = vpop.f32.mrf.mxu0  ;;  %v2647_v35 = vpop.f32.mrf.mxu1 }
 0x527   : > { %v1012_v36 = vpop.f32.mrf.mxu3 }
 0x528   : > { %v1054_v37 = vpop.f32.mrf.mxu1  ;;  %v1119_v38 = vpop.f32.mrf.mxu0 }
 0x529   : > { %v1216_v39 = vmul.f32 0.35355338, %v1119_v38 }
 0x52b   : > { %v1224_v40 = vsel %vm390_vm5, %v1216_v39, -inf }
 0x52c   : > { %1225 = vmax.xlane.f32.xlu1 %v1224_v40 }
 0x52e   : > { %v2650_v41 = vpop.f32.mrf.mxu2 }
 0x52f   : > { %v2183_v44 = vpack.i.bf16 %v2650_v41, %v2647_v35  ;;  %v1096_v45 = vpop.f32.mrf.mxu3 }
 0x530   : > { %v1215_v47 = vmul.f32 0.35355338, %v1096_v45  ;;  %v1121_v48 = vpop.f32.mrf.mxu0  ;;  %v1142_v49 = vpop.f32.mrf.mxu1 }
 0x531   : > { %v1217_v50 = vmul.f32 0.35355338, %v1142_v49 }
 0x532   : > { %v1221_v52 = vsel %vm390_vm5, %v1215_v47, -inf }
 0x533   : > { %1222 = vmax.xlane.f32.xlu0 %v1221_v52  ;;  %v1227_v58 = vsel %vm390_vm5, %v1217_v50, -inf }
 0x534   : > { %1228 = vmax.xlane.f32.xlu2 %v1227_v58 }
 0x536   : > { %v1075_v60 = vpop.f32.mrf.mxu2 }
 0x537   : > { %v1098_v62 = vpop.f32.mrf.mxu3 }
 0x538   : > { %v1144_v0 = vpop.f32.mrf.mxu1  ;;  %v1211_v1 = vpop.f32.mrf.mxu0 }
 0x539   : > { %v1220_v2 = vmul.f32 0.35355338, %v1211_v1 }
 0x53b   : > { %v1236_v4 = vsel %vm390_vm5, %v1220_v2, -inf }
 0x53c   : > { %1237 = vmax.xlane.f32.xlu2 %v1236_v4 }
 0x53e   : > { %v1165_v5 = vpop.f32.mrf.mxu2 }
 0x53f   : > { %v1218_v6 = vmul.f32 0.35355338, %v1165_v5  ;;  %v1188_v8 = vpop.f32.mrf.mxu3 }
 0x540   : > { %v1219_v9 = vmul.f32 0.35355338, %v1188_v8  ;;  %v1213_v10 = vpop.f32.mrf.mxu0 }
 0x541   : > { %v1230_v12 = vsel %vm390_vm5, %v1218_v6, -inf }
 0x542   : > { %1231 = vmax.xlane.f32.xlu0 %v1230_v12  ;;  %v1233_v13 = vsel %vm390_vm5, %v1219_v9, -inf }
 0x543   : > { %1234 = vmax.xlane.f32.xlu1 %v1233_v13 }
 0x546   : > { %v1167_v14 = vpop.f32.mrf.mxu2 }
 0x547   : > { %v1190_v16 = vpop.f32.mrf.mxu3 }
 0x554   : > { %1419 = vrot.lane.b32.xlu2 %v2423_v59, %s2315_s27 }
 0x59f   : > { %v1226_v17 = vpop.xlane.xlu1 %1225 }
 0x5a0   : > { %v1240_v18 = vsub.f32 %v1216_v39, %v1226_v17 }
 0x5a2   : > { %v1247_v19 = vmul.f32 1.442695, %v1240_v18 }
 0x5a4   : > { %2250 = vpow2.f32 %v1247_v19 }
 0x5a6   : > { %v1223_v22 = vpop.xlane.xlu0 %1222 }
 0x5a7   : > { %v1239_v23 = vsub.f32 %v1215_v47, %v1223_v22  ;;  %v1229_v24 = vpop.xlane.xlu2 %1228 }
 0x5a8   : > { %v1241_v27 = vsub.f32 %v1217_v50, %v1229_v24 }
 0x5a9   : > { %v1245_v28 = vmul.f32 1.442695, %v1239_v23 }
 0x5aa   : > { %v2251_v29 = vpop.eup %2250  ;;  %v1249_v46 = vmul.f32 1.442695, %v1241_v27 }
 0x5ab   : > { %2252 = vpow2.f32 %v1245_v28  ;;  %v1260_v36 = vsel %vm390_vm5, %v2251_v29, 0.0 }
 0x5ac   : > { %2254 = vpow2.f32 %v1249_v46  ;;  %1261 = vadd.xlane.f32.xlu1 %v1260_v36 }
 0x5af   : > { %v1238_v0 = vpop.xlane.xlu2 %1237 }
 0x5b0   : > { %v1244_v1 = vsub.f32 %v1220_v2, %v1238_v0 }
 0x5b1   : > { %v2253_v37 = vpop.eup %2252 }
 0x5b2   : > { %v2255_v38 = vpop.eup %2254  ;;  %v1257_v40 = vsel %vm390_vm5, %v2253_v37, 0.0  ;;  %v1255_v5 = vmul.f32 1.442695, %v1244_v1 }
 0x5b3   : > { %1258 = vadd.xlane.f32.xlu0 %v1257_v40  ;;  %v1263_v39 = vsel %vm390_vm5, %v2255_v38, 0.0 }
 0x5b4   : > { %1264 = vadd.xlane.f32.xlu2 %v1263_v39 }
 0x5b5   : > { %v1232_v45 = vpop.xlane.xlu0 %1231 }
 0x5b6   : > { %v1242_v47 = vsub.f32 %v1218_v6, %v1232_v45  ;;  %v1235_v52 = vpop.xlane.xlu1 %1234 }
 0x5b7   : > { %v1243_v58 = vsub.f32 %v1219_v9, %v1235_v52  ;;  %v1420_v9 = vpop.permute.xlu2 %1419 }
 0x5b8   : > { %v1251_v48 = vmul.f32 1.442695, %v1242_v47 }
 0x5b9   : > { %v1253_v60 = vmul.f32 1.442695, %v1243_v58 }
 0x5ba   : > { %2256 = vpow2.f32 %v1251_v48 }
 0x5bb   : > { %2258 = vpow2.f32 %v1253_v60 }
 0x5bc   : > { %2260 = vpow2.f32 %v1255_v5 }
 0x5c0   : > { %v2257_v49 = vpop.eup %2256 }
 0x5c1   : > { %v1266_v50 = vsel %vm390_vm5, %v2257_v49, 0.0  ;;  %v2259_v62 = vpop.eup %2258 }
 0x5c2   : > { %1267 = vadd.xlane.f32.xlu0 %v1266_v50  ;;  %v1269_v4 = vsel %vm390_vm5, %v2259_v62, 0.0  ;;  %v2261_v6 = vpop.eup %2260 }
 0x5c3   : > { %v1272_v8 = vsel %vm390_vm5, %v2261_v6, 0.0 }
 0x5c5   : > { %1442 = vrot.lane.b32.xlu1 %v2426_v63, %s2315_s27 }
 0x5cc   : > { %1490 = vrot.lane.b32.xlu2 %v2433_v7, %s2314_s26 }
 0x5d4   : > { %1465 = vrot.lane.b32.xlu2 %v2429_v3, %s2315_s27 }
 0x5d6   : > { %1467 = vrot.lane.b32.xlu0 %v2429_v3, %s2314_s26 }
 0x5dc   : > { %1488 = vrot.lane.b32.xlu2 %v2433_v7, %s2315_s27 }
 0x5e4   : > { %1511 = vrot.lane.b32.xlu2 %v2437_v11, %s2315_s27 }
 0x5ef   : > { %1270 = vadd.xlane.f32.xlu1 %v1269_v4 }
 0x600   : > { %1273 = vadd.xlane.f32.xlu0 %v1272_v8 }
 0x608   : > { %1536 = vrot.lane.b32.xlu1 %v2441_v15, %s2314_s26 }
 0x614   : > { %1513 = vrot.lane.b32.xlu0 %v2437_v11, %s2314_s26 }
 0x61c   : > { %1534 = vrot.lane.b32.xlu0 %v2441_v15, %s2315_s27 }
 0x61f   : > { %v1262_v2 = vpop.xlane.xlu1 %1261 }
 0x620   : > { %2262 = vrcp.f32 %v1262_v2 }
 0x624   : > { %1656 = vrot.lane.b32.xlu0 %v2426_v63, %s2316_s28 }
 0x626   : > { %v2263_v10 = vpop.eup %2262  ;;  %v1259_v12 = vpop.xlane.xlu0 %1258 }
 0x627   : > { %v1282_v13 = vmul.f32 %v2263_v10, %v2251_v29  ;;  %2264 = vrcp.f32 %v1259_v12  ;;  %v1265_v14 = vpop.xlane.xlu2 %1264 }
 0x628   : > { %2266 = vrcp.f32 %v1265_v14 }
 0x629   : > { %v1288_v16 = vpack.c.bf16 %v1282_v13, %v1282_v13 }
 0x62b   : > { %2097 = vmatmul.msk.bf16.vlgmr.msra.gmra.mxu2 %vm390_vm5, %v1288_v16 }
 0x62d   : > { %v2265_v17 = vpop.eup %2264 }
 0x62e   : > { %v2267_v18 = vpop.eup %2266  ;;  %v1281_v19 = vmul.f32 %v2265_v17, %v2253_v37 }
 0x62f   : > { %v1283_v22 = vmul.f32 %v2267_v18, %v2255_v38  ;;  %v1491_v23 = vpop.permute.xlu2 %1490 }
 0x630   : > { %v1287_v24 = vpack.c.bf16 %v1281_v19, %v1281_v19  ;;  %v1496_v27 = vsel %vm390_vm5, %v1491_v23, 0 }
 0x631   : > { %v1289_v28 = vpack.c.bf16 %v1283_v22, %v1283_v22  ;;  %1505 = vmatpush.bf16.xpose.msra.mxu2 %v1496_v27 }
 0x632   : > { %2096 = vmatmul.msk.bf16.vlgmr.msra.gmra.mxu1 %vm390_vm5, %v1287_v24 }
 0x633   : > { %2098 = vmatmul.msk.bf16.vlgmr.msrb.gmra.mxu3 %vm390_vm5, %v1289_v28 }
 0x635   : > { %v1268_v63 = vpop.xlane.xlu0 %1267 }
 0x636   : > { %2268 = vrcp.f32 %v1268_v63 }
 0x637   : > { %v1443_v40 = vpop.permute.xlu1 %1442  ;;  %v1466_v52 = vpop.permute.xlu2 %1465 }
 0x63c   : > { %v2269_v29 = vpop.eup %2268 }
 0x63d   : > { %v1284_v46 = vmul.f32 %v2269_v29, %v2257_v49 }
 0x63f   : > { %v1290_v36 = vpack.c.bf16 %v1284_v46, %v1284_v46  ;;  %v1489_v4 = vpop.permute.xlu2 %1488 }
 0x641   : > { %2099 = vmatmul.msk.bf16.vlgmr.msra.gmra.mxu0 %vm390_vm5, %v1290_v36 }
 0x643   : > { %2102 = vmatmul.msk.bf16.vlgmr.msra.gmra.mxu3 %vm390_vm5, %v1420_v9 }
 0x647   : > { %v1512_v8 = vpop.permute.xlu2 %1511 }
 0x648   : > { %v1468_v37 = vpop.permute.xlu0 %1467 }
 0x649   : > { %v1473_v38 = vsel %vm390_vm5, %v1468_v37, 0 }
 0x64a   : > { %1482 = vmatpush.bf16.xpose.msra.mxu1 %v1473_v38 }
 0x651   : > { %2103 = vmatmul.msk.bf16.vlgmr.msrb.gmra.mxu0 %vm390_vm5, %v1443_v40 }
 0x662   : > { %v1271_v39 = vpop.xlane.xlu1 %1270 }
 0x663   : > { %2270 = vrcp.f32 %v1271_v39 }
 0x669   : > { %v2271_v45 = vpop.eup %2270 }
 0x66a   : > { %v1285_v47 = vmul.f32 %v2271_v45, %v2259_v62 }
 0x66c   : > { %v1291_v48 = vpack.c.bf16 %v1285_v47, %v1285_v47 }
 0x66e   : > { %2100 = vmatmul.msk.bf16.vlgmr.msrb.gmra.mxu1 %vm390_vm5, %v1291_v48 }
 0x673   : > { %v1274_v49 = vpop.xlane.xlu0 %1273 }
 0x674   : > { %2272 = vrcp.f32 %v1274_v49 }
 0x67a   : > { %v2273_v50 = vpop.eup %2272  ;;  %v1537_v58 = vpop.permute.xlu1 %1536 }
 0x67b   : > { %v1286_v60 = vmul.f32 %v2273_v50, %v2261_v6  ;;  %v1542_v0 = vsel %vm390_vm5, %v1537_v58, 0 }
 0x67c   : > { %1551 = vmatpush.bf16.xpose.msra.mxu0 %v1542_v0 }
 0x67d   : > { %v1292_v1 = vpack.c.bf16 %v1286_v60, %v1286_v60 }
 0x67e   : > { %2104 = vmatmul.msk.bf16.vlgmr.msra.gmra.mxu1 %vm390_vm5, %v1466_v52 }
 0x67f   : > { %2101 = vmatmul.msk.bf16.vlgmr.msrb.gmra.mxu2 %vm390_vm5, %v1292_v1 }
 0x686   : > { %v1514_v5 = vpop.permute.xlu0 %1513 }
 0x687   : > { %v1519_v62 = vsel %vm390_vm5, %v1514_v5, 0 }
 0x688   : > { %1528 = vmatpush.bf16.xpose.msrb.mxu3 %v1519_v62 }
 0x68e   : > { %v1535_v9 = vpop.permute.xlu0 %1534 }
 0x68f   : > { %2105 = vmatmul.msk.bf16.vlgmr.msra.gmra.mxu2 %vm390_vm5, %v1489_v4  ;;  %2106 = vmatmul.msk.bf16.vlgmr.msrb.gmra.mxu3 %vm390_vm5, %v1512_v8 }
 0x690   : > { %2107 = vmatmul.msk.bf16.vlgmr.msra.gmra.mxu0 %vm390_vm5, %v1535_v9 }
 0x696   : > { %v1657_v6 = vpop.permute.xlu0 %1656 }
 0x697   : > { %v1662_v2 = vsel %vm613_vm6, %v1657_v6, 0 }
 0x698   : > { %1671 = vmatpush.bf16.msrb.mxu2 %v1662_v2 }
 0x6ae   : > { %v2704_v10 = vpop.f32.mrf.mxu2 }
 0x6af   : > { %v2706_v12 = vpop.f32.mrf.mxu1 }
 0x6b0   : > { %v2158_v13 = vpack.i.bf16 %v2704_v10, %v2706_v12 }
 0x6b6   : > { %v1333_v14 = vpop.f32.mrf.mxu2  ;;  %v2710_v16 = vpop.f32.mrf.mxu3 }
 0x6b7   : > { %v1312_v17 = vpop.f32.mrf.mxu1 }
 0x6be   : > { %v1354_v18 = vpop.f32.mrf.mxu3  ;;  %v2712_v19 = vpop.f32.mrf.mxu0 }
 0x6bf   : > { %v2173_v22 = vpack.i.bf16 %v2712_v19, %v2710_v16 }
 0x6c6   : > { %v1375_v23 = vpop.f32.mrf.mxu0  ;;  %v1438_v24 = vpop.f32.mrf.mxu3 }
 0x6c7   : > { %v1557_v27 = vmul.f32 0.35355338, %v1438_v24 }
 0x6c9   : > { %v1563_v28 = vsel %vm390_vm5, %v1557_v27, -inf }
 0x6ca   : > { %1564 = vmax.xlane.f32.xlu2 %v1563_v28 }
 0x6ce   : > { %v1440_v63 = vpop.f32.mrf.mxu3  ;;  %v1461_v29 = vpop.f32.mrf.mxu0 }
 0x6cf   : > { %v1558_v46 = vmul.f32 0.35355338, %v1461_v29 }
 0x6d1   : > { %v1566_v36 = vsel %vm390_vm5, %v1558_v46, -inf }
 0x6d2   : > { %1567 = vmax.xlane.f32.xlu1 %v1566_v36 }
 0x6d6   : > { %v1463_v37 = vpop.f32.mrf.mxu0 }
 0x6eb   : > { %v2718_v38 = vpop.f32.mrf.mxu1 }
 0x6f3   : > { %v1396_v40 = vpop.f32.mrf.mxu1 }
 0x6fb   : > { %v1484_v39 = vpop.f32.mrf.mxu1 }
 0x6fc   : > { %v1559_v45 = vmul.f32 0.35355338, %v1484_v39 }
 0x6fe   : > { %v1569_v47 = vsel %vm390_vm5, %v1559_v45, -inf }
 0x6ff   : > { %1570 = vmax.xlane.f32.xlu0 %v1569_v47 }
 0x702   : > { %v2721_v48 = vpop.f32.mrf.mxu2 }
 0x703   : > { %v2188_v49 = vpack.i.bf16 %v2721_v48, %v2718_v38  ;;  %v1486_v50 = vpop.f32.mrf.mxu1 }
 0x70a   : > { %v1417_v52 = vpop.f32.mrf.mxu2 }
 0x70d   : > { %v1553_v58 = vpop.f32.mrf.mxu0 }
 0x70e   : > { %v1562_v60 = vmul.f32 0.35355338, %v1553_v58 }
 0x710   : > { %v1578_v0 = vsel %vm390_vm5, %v1562_v60, -inf }
 0x711   : > { %1579 = vmax.xlane.f32.xlu2 %v1578_v0 }
 0x712   : > { %v1507_v1 = vpop.f32.mrf.mxu2  ;;  %v1530_v4 = vpop.f32.mrf.mxu3 }
 0x713   : > { %v1560_v5 = vmul.f32 0.35355338, %v1507_v1  ;;  %v1561_v62 = vmul.f32 0.35355338, %v1530_v4 }
 0x715   : > { %v1555_v8 = vpop.f32.mrf.mxu0  ;;  %v1572_v9 = vsel %vm390_vm5, %v1560_v5, -inf  ;;  %v1575_v6 = vsel %vm390_vm5, %v1561_v62, -inf }
 0x716   : > { %1573 = vmax.xlane.f32.xlu1 %v1572_v9  ;;  %1576 = vmax.xlane.f32.xlu0 %v1575_v6 }
 0x71a   : > { %v1509_v2 = vpop.f32.mrf.mxu2  ;;  %v1532_v14 = vpop.f32.mrf.mxu3 }
 0x72a   : > { %1677 = vrot.lane.b32.xlu0 %v2429_v3, %s2316_s28 }
 0x73d   : > { %v1565_v17 = vpop.xlane.xlu2 %1564 }
 0x73e   : > { %v1581_v18 = vsub.f32 %v1557_v27, %v1565_v17 }
 0x740   : > { %v1587_v23 = vmul.f32 1.442695, %v1581_v18 }
 0x742   : > { %2274 = vpow2.f32 %v1587_v23 }
 0x745   : > { %v1568_v24 = vpop.xlane.xlu1 %1567 }
 0x746   : > { %v1582_v28 = vsub.f32 %v1558_v46, %v1568_v24 }
 0x748   : > { %v2275_v63 = vpop.eup %2274  ;;  %v1589_v29 = vmul.f32 1.442695, %v1582_v28 }
 0x749   : > { %v1599_v36 = vsel %vm390_vm5, %v2275_v63, 0.0 }
 0x74a   : > { %2276 = vpow2.f32 %v1589_v29  ;;  %1600 = vadd.xlane.f32.xlu2 %v1599_v36 }
 0x750   : > { %v2277_v37 = vpop.eup %2276 }
 0x751   : > { %v1602_v40 = vsel %vm390_vm5, %v2277_v37, 0.0 }
 0x752   : > { %1603 = vadd.xlane.f32.xlu1 %v1602_v40 }
 0x762   : > { %1698 = vrot.lane.b32.xlu2 %v2433_v7, %s2316_s28 }
 0x76b   : > { %1635 = vrot.lane.b32.xlu1 %v2423_v59, %s2316_s28 }
 0x772   : > { %v1571_v3 = vpop.xlane.xlu0 %1570 }
 0x773   : > { %v1583_v27 = vsub.f32 %v1559_v45, %v1571_v3 }
 0x775   : > { %v1591_v39 = vmul.f32 1.442695, %v1583_v27 }
 0x777   : > { %2278 = vpow2.f32 %v1591_v39 }
 0x77d   : > { %v2279_v50 = vpop.eup %2278 }
 0x77e   : > { %v1605_v1 = vsel %vm390_vm5, %v2279_v50, 0.0 }
 0x784   : > { %v1580_v46 = vpop.xlane.xlu2 %1579 }
 0x785   : > { %v1586_v47 = vsub.f32 %v1562_v60, %v1580_v46 }
 0x787   : > { %v1597_v52 = vmul.f32 1.442695, %v1586_v47 }
 0x789   : > { %2280 = vpow2.f32 %v1597_v52  ;;  %v1577_v58 = vpop.xlane.xlu0 %1576 }
 0x78a   : > { %v1585_v0 = vsub.f32 %v1561_v62, %v1577_v58  ;;  %v1574_v62 = vpop.xlane.xlu1 %1573 }
 0x78b   : > { %1606 = vadd.xlane.f32.xlu2 %v1605_v1  ;;  %v1584_v6 = vsub.f32 %v1560_v5, %v1574_v62 }
 0x78c   : > { %v1595_v4 = vmul.f32 1.442695, %v1585_v0 }
 0x78d   : > { %v1593_v14 = vmul.f32 1.442695, %v1584_v6 }
 0x78e   : > { %2282 = vpow2.f32 %v1595_v4 }
 0x78f   : > { %v2281_v8 = vpop.eup %2280  ;;  %2284 = vpow2.f32 %v1593_v14 }
 0x790   : > { %v1614_v7 = vsel %vm390_vm5, %v2281_v8, 0.0 }
 0x791   : > { %1615 = vadd.xlane.f32.xlu0 %v1614_v7 }
 0x794   : > { %v2283_v59 = vpop.eup %2282 }
 0x795   : > { %v1611_v45 = vsel %vm390_vm5, %v2283_v59, 0.0  ;;  %v2285_v23 = vpop.eup %2284 }
 0x796   : > { %1612 = vadd.xlane.f32.xlu1 %v1611_v45  ;;  %v1608_v10 = vsel %vm390_vm5, %v2285_v23, 0.0  ;;  %v2130_v45 = vld [vmem:[%s2859_s4 + $0x8] sm:$0xff] }
 0x79c   : > { %v1678_v9 = vpop.permute.xlu0 %1677 }
 0x79d   : > { %v1683_v60 = vsel %vm613_vm6, %v1678_v9, 0  ;;  %v2129_v9 = vld [vmem:[%s2859_s4] sm:$0xff] }
 0x79e   : > { %1692 = vmatpush.bf16.msra.mxu3 %v1683_v60 }
 0x7a2   : > { %1887 = vmatpush.bf16.msrb.mxu3 %v2130_v45 }
 0x7a3   : > { %1740 = vrot.lane.b32.xlu2 %v2441_v15, %s2316_s28 }
 0x7a5   : > { %2159 = vrot.lane.b32.xlu0 %v2158_v13, %s2317_s29 }
 0x7a6   : > { %1888 = vmatpush.bf16.msrb.mxu3 %v2129_v9 }
 0x7ad   : > { %2184 = vrot.lane.b32.xlu0 %v2183_v44, %s2318_s30 }
 0x7bd   : > { %v1601_v2 = vpop.xlane.xlu2 %1600 }
 0x7c5   : > { %v1604_v17 = vpop.xlane.xlu1 %1603  ;;  %v1699_v18 = vpop.permute.xlu2 %1698 }
 0x7c6   : > { %2286 = vrcp.f32 %v1604_v17  ;;  %v1704_v15 = vsel %vm613_vm6, %v1699_v18, 0 }
 0x7c7   : > { %1713 = vmatpush.bf16.msrb.mxu0 %v1704_v15  ;;  %2288 = vrcp.f32 %v1601_v2 }
 0x7cc   : > { %v2287_v12 = vpop.eup %2286  ;;  %1609 = vadd.xlane.f32.xlu2 %v1608_v10 }
 0x7cd   : > { %v1624_v13 = vmul.f32 %v2287_v12, %v2277_v37  ;;  %v2289_v35 = vpop.eup %2288 }
 0x7ce   : > { %v1623_v41 = vmul.f32 %v2289_v35, %v2275_v63 }
 0x7cf   : > { %v1630_v24 = vpack.c.bf16 %v1624_v13, %v1624_v13 }
 0x7d0   : > { %v1629_v28 = vpack.c.bf16 %v1623_v41, %v1623_v41 }
 0x7d1   : > { %2109 = vmatmul.msk.bf16.vlgmr.msrb.gmra.mxu2 %vm390_vm5, %v1630_v24 }
 0x7dd   : > { %v1636_v44 = vpop.permute.xlu1 %1635 }
 0x7de   : > { %v1641_v5 = vsel %vm613_vm6, %v1636_v44, 0 }
 0x7df   : > { %1650 = vmatpush.bf16.msrb.mxu1 %v1641_v5 }
 0x7e2   : > { %2108 = vmatmul.msk.bf16.vlgmr.msrb.gmra.mxu1 %vm390_vm5, %v1629_v28 }
 0x7e4   : > { %1719 = vrot.lane.b32.xlu2 %v2437_v11, %s2316_s28 }
 0x7ec   : > { %2154 = vrot.lane.b32.xlu2 %v2153_v26, %s2318_s30 }
 0x7f4   : > { %2169 = vrot.lane.b32.xlu2 %v2168_v32, %s2318_s30 }
 0x7fc   : > { %2174 = vrot.lane.b32.xlu2 %v2173_v22, %s2317_s29 }
 0x7fe   : > { %v1607_v63 = vpop.xlane.xlu2 %1606 }
 0x7ff   : > { %2290 = vrcp.f32 %v1607_v63 }
 0x804   : > { %v1616_v29 = vpop.xlane.xlu0 %1615 }
 0x805   : > { %v2291_v36 = vpop.eup %2290  ;;  %2292 = vrcp.f32 %v1616_v29 }
 0x806   : > { %v1625_v37 = vmul.f32 %v2291_v36, %v2279_v50  ;;  %v1741_v11 = vpop.permute.xlu2 %1740 }
 0x807   : > { %v1746_v40 = vsel %vm613_vm6, %v1741_v11, 0 }
 0x808   : > { %v1631_v20 = vpack.c.bf16 %v1625_v37, %v1625_v37  ;;  %1755 = vmatpush.bf16.msra.mxu2 %v1746_v40 }
 0x809   : > { %v1613_v31 = vpop.xlane.xlu1 %1612 }
 0x80a   : > { %2110 = vmatmul.msk.bf16.vlgmr.msra.gmra.mxu3 %vm390_vm5, %v1631_v20  ;;  %2294 = vrcp.f32 %v1613_v31 }
 0x80b   : > { %v2293_v25 = vpop.eup %2292 }
 0x80c   : > { %v1628_v26 = vmul.f32 %v2293_v25, %v2281_v8 }
 0x80e   : > { %v1634_v30 = vpack.c.bf16 %v1628_v26, %v1628_v26 }
 0x810   : > { %2113 = vmatmul.msk.bf16.vlgmr.msra.gmra.mxu2 %vm390_vm5, %v1634_v30  ;;  %v2295_v16 = vpop.eup %2294 }
 0x811   : > { %v1627_v22 = vmul.f32 %v2295_v16, %v2283_v59 }
 0x813   : > { %v1633_v47 = vpack.c.bf16 %v1627_v22, %v1627_v22 }
 0x83f   : > { %v1610_v32 = vpop.xlane.xlu2 %1609 }
 0x840   : > { %2296 = vrcp.f32 %v1610_v32 }
 0x846   : > { %v2297_v19 = vpop.eup %2296 }
 0x847   : > { %v1626_v3 = vmul.f32 %v2297_v19, %v2285_v23  ;;  %v1720_v27 = vpop.permute.xlu2 %1719  ;;  %v2160_v23 = vpop.permute.xlu0 %2159 }
 0x848   : > { %v1725_v39 = vsel %vm613_vm6, %v1720_v27, 0  ;;  %v2162_v24 = vunpack.i.h.bf16 %v2160_v23  ;;  %v2161_v35 = vunpack.i.l.bf16 %v2160_v23 }
 0x849   : > { %v1632_v46 = vpack.c.bf16 %v1626_v3, %v1626_v3  ;;  %1734 = vmatpush.bf16.msra.mxu1 %v1725_v39 }
 0x84b   : > { %2111 = vmatmul.msk.bf16.vlgmr.msrb.gmra.mxu0 %vm390_vm5, %v1632_v46 }
 0x84c   : > { %2112 = vmatmul.msk.bf16.vlgmr.msra.gmra.mxu1 %vm390_vm5, %v1633_v47 }
 0x84f   : > { %v2155_v14 = vpop.permute.xlu2 %2154  ;;  %v2185_v3 = vpop.permute.xlu0 %2184 }
 0x850   : > { %v2157_v17 = vunpack.i.h.bf16 %v2155_v14  ;;  %v2156_v18 = vunpack.i.l.bf16 %v2155_v14  ;;  %v2186_v39 = vunpack.i.l.bf16 %v2185_v3 }
 0x852   : > { %v1834_v12 = vsel %vm390_vm5, %v2549_v55, %v2157_v17  ;;  %v1833_v13 = vsel %vm390_vm5, %v2547_v51, %v2156_v18 }
 0x853   : > { %v1840_v28 = vsel %vm1839_vm7, %v1833_v13, %v2161_v35  ;;  %v1841_v63 = vsel %vm1839_vm7, %v1834_v12, %v2162_v24 }
 0x854   : > { %v1673_v50 = vpop.f32.mrf.mxu2 }
 0x857   : > { %v2170_v36 = vpop.permute.xlu2 %2169 }
 0x858   : > { %v2172_v48 = vunpack.i.h.bf16 %v2170_v36 }
 0x85a   : > { %v1836_v20 = vsel %vm390_vm5, %v2553_v57, %v2172_v48  ;;  %v2187_v57 = vunpack.i.h.bf16 %v2185_v3 }
 0x85c   : > { %v1675_v52 = vpop.f32.mrf.mxu2 }
 0x85d   : > { %v1837_v52 = vsel %vm390_vm5, %v2555_v61, %v2186_v39 }
 0x85f   : > { %v1652_v58 = vpop.f32.mrf.mxu1  ;;  %v2175_v38 = vpop.permute.xlu2 %2174 }
 0x860   : > { %v2163_v0 = vpack.i.bf16 %v1673_v50, %v1652_v58  ;;  %v2177_v37 = vunpack.i.h.bf16 %v2175_v38  ;;  %v2176_v11 = vunpack.i.l.bf16 %v2175_v38  ;;  %v1838_v50 = vsel %vm390_vm5, %v2565_v21, %v2187_v57 }
 0x862   : > { %2164 = vrot.lane.b32.xlu1 %v2163_v0, %s2319_s9  ;;  %v1843_v32 = vsel %vm1839_vm7, %v1836_v20, %v2177_v37 }
 0x867   : > { %v1654_v1 = vpop.f32.mrf.mxu1 }
 0x88d   : > { %v1694_v4 = vpop.f32.mrf.mxu3 }
 0x893   : > { %v1757_v8 = vpop.f32.mrf.mxu2 }
 0x895   : > { %v1696_v7 = vpop.f32.mrf.mxu3 }
 0x89b   : > { %v1759_v59 = vpop.f32.mrf.mxu2 }
 0x8c8   : > { %v1715_v60 = vpop.f32.mrf.mxu0 }
 0x8c9   : > { %v2178_v62 = vpack.i.bf16 %v1715_v60, %v1694_v4  ;;  %v1736_v6 = vpop.f32.mrf.mxu1 }
 0x8ca   : > { %v2193_v2 = vpack.i.bf16 %v1757_v8, %v1736_v6 }
 0x8cb   : > { %2179 = vrot.lane.b32.xlu2 %v2178_v62, %s2319_s9 }
 0x8cc   : > { %2194 = vrot.lane.b32.xlu1 %v2193_v2, %s2319_s9 }
 0x8d0   : > { %v1717_v15 = vpop.f32.mrf.mxu0 }
 0x8d1   : > { %v1738_v10 = vpop.f32.mrf.mxu1 }
 0x8d3   : > { %2189 = vrot.lane.b32.xlu2 %v2188_v49, %s2317_s29  ;;  %v2171_v49 = vunpack.i.l.bf16 %v2170_v36 }
 0x8d4   : > { %v2165_v41 = vpop.permute.xlu1 %2164 }
 0x8d5   : > { %v2167_v44 = vunpack.i.h.bf16 %v2165_v41  ;;  %v2166_v5 = vunpack.i.l.bf16 %v2165_v41  ;;  %v1835_v25 = vsel %vm390_vm5, %v2551_v56, %v2171_v49 }
 0x8d6   : > { %v1842_v31 = vsel %vm1839_vm7, %v1835_v25, %v2176_v11 }
 0x8d7   : > { %v1847_v55 = vsel %vm1846_vm8, %v1840_v28, %v2166_v5  ;;  %v1848_v51 = vsel %vm1846_vm8, %v1841_v63, %v2167_v44 }
 0x8d8   : > { %v1853_v29 = vpack.c.bf16 %v1848_v51, %v1847_v55 }
 0x8da   : > { %2122 = vmatmul.msk.bf16.vlgmr.msrb.gmra.mxu3 %vm345_vm4, %v1853_v29 }
 0x925   : > { %v2180_v40 = vpop.permute.xlu2 %2179 }
 0x926   : > { %v2182_v26 = vunpack.i.h.bf16 %v2180_v40  ;;  %v2181_v30 = vunpack.i.l.bf16 %v2180_v40 }
 0x928   : > { %v1849_v16 = vsel %vm1846_vm8, %v1842_v31, %v2181_v30  ;;  %v1850_v19 = vsel %vm1846_vm8, %v1843_v32, %v2182_v26 }
 0x929   : > { %v1854_v22 = vpack.c.bf16 %v1850_v19, %v1849_v16 }
 0x92b   : > { %2123 = vmatmul.msk.bf16.gmra.mxu3 %vm345_vm4, %v1854_v22 }
 0x92d   : > { %v2190_v27 = vpop.permute.xlu2 %2189 }
 0x92e   : > { %v2192_v46 = vunpack.i.h.bf16 %v2190_v27  ;;  %v2191_v56 = vunpack.i.l.bf16 %v2190_v27 }
 0x930   : > { %v1845_v1 = vsel %vm1839_vm7, %v1838_v50, %v2192_v46  ;;  %v1844_v4 = vsel %vm1839_vm7, %v1837_v52, %v2191_v56 }
 0x93e   : > { %v2195_v47 = vpop.permute.xlu1 %2194 }
 0x93f   : > { %v2197_v58 = vunpack.i.h.bf16 %v2195_v47  ;;  %v2196_v0 = vunpack.i.l.bf16 %v2195_v47 }
 0x941   : > { %v1851_v8 = vsel %vm1846_vm8, %v1844_v4, %v2196_v0  ;;  %v1852_v7 = vsel %vm1846_vm8, %v1845_v1, %v2197_v58 }
 0x942   : > { %v1855_v59 = vpack.c.bf16 %v1852_v7, %v1851_v8 }
 0x944   : > { %2124 = vmatmul.msk.bf16.gmra.mxu3 %vm345_vm4, %v1855_v59 }
 0x95d   : > { %v1890_v61 = vpop.f32.mrf.mxu3 }
 0x95e   : > { %v1905_v21 = vadd.f32 %v1890_v61, %v2400_v33 }
 0x960   : > { %1911 = vst.msk [vmem:[%s2814_s16] sm:$0xff] %vm345_vm4, %v1905_v21  ;;  %v1934_v9 = vmul.f32 %v1905_v21, %v1905_v21  ;;  %v1917_v62 = vsel %vm345_vm4, %v1905_v21, 0.0 }
 0x962   : > { %v1940_v17 = vsel %vm345_vm4, %v1934_v9, 0.0 }
 0x965   : > { %v1892_v45 = vpop.f32.mrf.mxu3 }
 0x966   : > { %v1906_v60 = vadd.f32 %v1892_v45, %v2402_v34 }
 0x968   : > { %1912 = vst.msk [vmem:[%s2814_s16 + $0x8] sm:$0xff] %vm345_vm4, %v1906_v60  ;;  %v1918_v6 = vsel %vm345_vm4, %v1906_v60, 0.0  ;;  %v1935_v2 = vmul.f32 %v1906_v60, %v1906_v60 }
 0x969   : > { %v1919_v14 = vadd.f32 %v1918_v6, %v1917_v62 }
 0x96a   : > { %v1941_v33 = vsel %vm345_vm4, %v1935_v2, 0.0 }
 0x96b   : > { %v1942_v18 = vadd.f32 %v1941_v33, %v1940_v17 }
 0x9ae   : > { %v1895_v15 = vpop.f32.mrf.mxu3 }
 0x9af   : > { %v1907_v23 = vadd.f32 %v1895_v15, %v2407_v42 }
 0x9b1   : > { %1913 = vst.msk [vmem:[%s2814_s16 + $0x10] sm:$0xff] %vm345_vm4, %v1907_v23  ;;  %v1936_v13 = vmul.f32 %v1907_v23, %v1907_v23  ;;  %v1920_v35 = vsel %vm345_vm4, %v1907_v23, 0.0 }
 0x9b2   : > { %v1921_v28 = vadd.f32 %v1920_v35, %v1919_v14 }
 0x9b3   : > { %v1943_v44 = vsel %vm345_vm4, %v1936_v13, 0.0 }
 0x9b4   : > { %v1944_v55 = vadd.f32 %v1943_v44, %v1942_v18 }
 0x9b6   : > { %v1897_v34 = vpop.f32.mrf.mxu3 }
 0x9b7   : > { %v1908_v10 = vadd.f32 %v1897_v34, %v2409_v43 }
 0x9b9   : > { %1914 = vst.msk [vmem:[%s2814_s16 + $0x18] sm:$0xff] %vm345_vm4, %v1908_v10  ;;  %v1937_v41 = vmul.f32 %v1908_v10, %v1908_v10  ;;  %v1922_v42 = vsel %vm345_vm4, %v1908_v10, 0.0 }
 0x9ba   : > { %v1923_v51 = vadd.f32 %v1922_v42, %v1921_v28 }
 0x9bb   : > { %v1945_v43 = vsel %vm345_vm4, %v1937_v41, 0.0 }
 0x9bc   : > { %v1946_v38 = vadd.f32 %v1945_v43, %v1944_v55 }
 0x9c7   : > { %v1900_v12 = vpop.f32.mrf.mxu3 }
 0x9c8   : > { %v1909_v24 = vadd.f32 %v1900_v12, %v2416_v53 }
 0x9ca   : > { %1915 = vst.msk [vmem:[%s2814_s16 + $0x20] sm:$0xff] %vm345_vm4, %v1909_v24  ;;  %v1938_v5 = vmul.f32 %v1909_v24, %v1909_v24  ;;  %v1924_v63 = vsel %vm345_vm4, %v1909_v24, 0.0 }
 0x9cb   : > { %v1925_v48 = vadd.f32 %v1924_v63, %v1923_v51 }
 0x9cc   : > { %v1947_v29 = vsel %vm345_vm4, %v1938_v5, 0.0 }
 0x9cd   : > { %v1948_v11 = vadd.f32 %v1947_v29, %v1946_v38 }
 0x9cf   : > { %v1902_v53 = vpop.f32.mrf.mxu3 }
 0x9d0   : > { %v1910_v36 = vadd.f32 %v1902_v53, %v2418_v54 }
 0x9d2   : > { %1916 = vst.msk [vmem:[%s2814_s16 + $0x28] sm:$0xff] %vm345_vm4, %v1910_v36  ;;  %v1926_v49 = vsel %vm345_vm4, %v1910_v36, 0.0  ;;  %v1939_v37 = vmul.f32 %v1910_v36, %v1910_v36 }
 0x9d3   : > { %v1927_v40 = vadd.f32 %v1926_v49, %v1925_v48 }
 0x9d4   : > { %v1949_v20 = vsel %vm345_vm4, %v1939_v37, 0.0 }
 0x9d5   : > { %v1928_v25 = vrot.slane %v1927_v40, 4  ;;  %v1950_v26 = vadd.f32 %v1949_v20, %v1948_v11 }
 0x9d7   : > { %v1929_v30 = vadd.f32 %v1928_v25, %v1927_v40  ;;  %v1951_v31 = vrot.slane %v1950_v26, 4 }
 0x9d9   : > { %v1930_v32 = vrot.slane %v1929_v30, 2  ;;  %v1952_v16 = vadd.f32 %v1951_v31, %v1950_v26 }
 0x9db   : > { %v1931_v54 = vadd.f32 %v1930_v32, %v1929_v30  ;;  %v1953_v19 = vrot.slane %v1952_v16, 2 }
 0x9dd   : > { %v1932_v22 = vrot.slane %v1931_v54, 1  ;;  %v1954_v3 = vadd.f32 %v1953_v19, %v1952_v16 }
 0x9df   : > { %v1955_v27 = vrot.slane %v1954_v3, 1  ;;  %v1933_v57 = vadd.f32 %v1932_v22, %v1931_v54 }
 0x9e1   : > { %v1956_v39 = vadd.f32 %v1955_v27, %v1954_v3 }
 0x9e3   : > { %v1958_v46 = vsel %vm1957_vm9, %v1933_v57, %v1956_v39 }
 0x9e4   : > { %1959 = vst.msk [vmem:[%s265_s18] sm:$0x3] %vm269_vm0, %v1958_v46 }
 0x9e5 PF: > { %s17_s21 = sadd.s32 1, %s2304_s21  }
 0x9e6   : > { %p14_p5 = scmp.ge.s32.totalorder %s17_s21, 4  }
 0x9e8   :  { %16 = sbr.rel (!%p14_p5) target bundleno = 1 (0x1), region = 82 }

</bundles_post_ra>
